<compile_context>
chip_gen: v5e
topology: v5e:2x2
jax: 0.10.0
libtpu: 0.0.40
codegen_flags: <defaults>
</compile_context>

<pallas_src>
import jax
import jax.numpy as jnp
from jax.experimental import pallas as pl
from jax.experimental.pallas import tpu as pltpu

NEG_SLOPE = 0.01   # nn.LeakyReLU default slope (MLP hidden activation)
EPS = 1e-6         # epsilon used in normalize_adj_rc


def _leaky_relu(x):
    return jnp.where(x >= 0, x, NEG_SLOPE * x)


# ----------------------------------------------------------------------------
# Pallas kernel: block_b graphs per grid step, everything VMEM-resident.
# ----------------------------------------------------------------------------
def naive_mpnn_kernel(hv_ref, he2_ref, vewu_ref, vewuT_ref, vewvT_ref,
                      ea_wu_ref, ea_we_ref, ea_wv_ref, ea_b1_ref,
                      ea_w2_ref, ea_b2_ref,
                      gcn_w_ref, gcn_b_ref,
                      gru_wi_ref, gru_wh_ref, gru_bi_ref, gru_bh_ref,
                      rm_w1a_ref, rm_w1b_ref, rm_b1_ref,
                      rm_w2_ref, rm_b2_ref,
                      out_ref):
    f32 = jnp.float32

    hv3 = hv_ref[...]                        # [Bb, V, Dv]          f32
    he2 = he2_ref[...]                       # [Bb, 2E, De]         f32
    vew_u = vewu_ref[...].astype(f32)        # [Bb, V, 2E]   bf16 in VMEM (0/1 exact)
    vew_uT = vewuT_ref[...].astype(f32)      # [Bb, 2E, V]
    vew_vT = vewvT_ref[...].astype(f32)      # [Bb, 2E, V]

    Bb, V, Dv = hv3.shape
    E2 = he2.shape[1]
    NV = Bb * V                              # flattened vertex rows
    NE = Bb * E2                             # flattened edge rows

    # --- per-edge endpoint features (per-graph batched MXU matmuls) ---
    hv_u = jnp.einsum('bev,bvd->bed', vew_uT, hv3,
                      preferred_element_type=f32).reshape(NE, Dv)
    hv_v = jnp.einsum('bev,bvd->bed', vew_vT, hv3,
                      preferred_element_type=f32).reshape(NE, Dv)
    he2f = he2.reshape(NE, he2.shape[2])

    # edge_attend MLP on flattened rows (shared weights):
    # Linear -> LeakyReLU -> Linear -> Sigmoid; first layer as three partial
    # matmuls (pre-split weight rows) -- no lane-axis concat.
    h1 = _leaky_relu(
        jnp.dot(hv_u, ea_wu_ref[...], preferred_element_type=f32)
        + jnp.dot(he2f, ea_we_ref[...], preferred_element_type=f32)
        + jnp.dot(hv_v, ea_wv_ref[...], preferred_element_type=f32)
        + ea_b1_ref[...])
    ew = jax.nn.sigmoid(
        jnp.dot(h1, ea_w2_ref[...], preferred_element_type=f32)
        + ea_b2_ref[0, 0])                                     # [NE, 1], bias from SMEM

    # adj[b] = vew_u[b] @ (ew[b] * vew_vT[b])   (per graph)
    weighted_vT = ew.reshape(Bb, E2, 1) * vew_vT               # [Bb, 2E, V]
    adj = jnp.einsum('bve,bew->bvw', vew_u, weighted_vT,
                     preferred_element_type=f32)               # [Bb, V, V]

    # normalize_adj_rc: D_r^{-1/2} A D_c^{-1/2}; degree sums on the MXU.
    dr = jnp.einsum('bvw,bwo->bvo', adj, jnp.ones((Bb, V, 1), f32),
                    preferred_element_type=f32)                # [Bb, V, 1] row sums
    dc = jnp.einsum('bov,bvw->bow', jnp.ones((Bb, 1, V), f32), adj,
                    preferred_element_type=f32)                # [Bb, 1, V] col sums
    adj = adj * jax.lax.rsqrt(dr + EPS) * jax.lax.rsqrt(dc + EPS)

    # --- loop-invariant GRU weights / pre-broadcast biases (hoisted once) ---
    wir, wiz, win = gru_wi_ref[0], gru_wi_ref[1], gru_wi_ref[2]     # [Dv, Dv]
    whr, whz, whn = gru_wh_ref[0], gru_wh_ref[1], gru_wh_ref[2]     # [Dv, Dv]
    b_r = jnp.broadcast_to(gru_bi_ref[0] + gru_bh_ref[0], (NV, Dv))
    b_z = jnp.broadcast_to(gru_bi_ref[1] + gru_bh_ref[1], (NV, Dv))
    b_in = jnp.broadcast_to(gru_bi_ref[2], (NV, Dv))
    b_hn = jnp.broadcast_to(gru_bh_ref[2], (NV, Dv))

    hv2 = hv3.reshape(NV, Dv)

    # 4 x (GCN message + GRUCell); sample_ftr is None -> hvs_ftr == hv_ftr.
    # Shared-weight matmuls on flattened rows; only adj @ lin is per-graph.
    def gru_step(i, hidden):
        lin = (jnp.dot(hidden, gcn_w_ref[i], preferred_element_type=f32)
               + gcn_b_ref[i])                                 # [NV, Dv]
        msg = jnp.maximum(
            jnp.einsum('bvw,bwd->bvd', adj, lin.reshape(Bb, V, Dv),
                       preferred_element_type=f32).reshape(NV, Dv), 0.0)
        r = jax.nn.sigmoid(jnp.dot(msg, wir, preferred_element_type=f32)
                           + jnp.dot(hidden, whr, preferred_element_type=f32)
                           + b_r)
        z = jax.nn.sigmoid(jnp.dot(msg, wiz, preferred_element_type=f32)
                           + jnp.dot(hidden, whz, preferred_element_type=f32)
                           + b_z)
        n = jnp.tanh(jnp.dot(msg, win, preferred_element_type=f32) + b_in
                     + r * (jnp.dot(hidden, whn, preferred_element_type=f32)
                            + b_hn))
        return (1.0 - z) * n + z * hidden

    hidden = jax.lax.fori_loop(0, 4, gru_step, hv2, unroll=True)

    # remap MLP: Linear -> LeakyReLU -> Dropout(0.2, eval: identity) -> Linear.
    # First layer pre-split over [hv | hidden]; last layer zero-padded to a
    # lane-dense 128-multiple output width (sliced back in the wrapper).
    # TODO(synk): training-mode dropout (p=0.2) not implemented; eval semantics.
    h2 = _leaky_relu(
        jnp.dot(hv2, rm_w1a_ref[...], preferred_element_type=f32)
        + jnp.dot(hidden, rm_w1b_ref[...], preferred_element_type=f32)
        + rm_b1_ref[...])
    out = (jnp.dot(h2, rm_w2_ref[...], preferred_element_type=f32)
           + rm_b2_ref[...])                                   # [NV, OUT_PAD]
    out_ref[...] = out.reshape(Bb, V, out.shape[1])


# ----------------------------------------------------------------------------
# Wrapper: host-side layout plumbing + batched pallas_call.
# ----------------------------------------------------------------------------
def naive_mpnn(hv, he, vew1, vew2, p, *, block_b=4):
    """Batched _NaiveMPNN forward.

    hv: [B, V, Dv], he: [B, E, De], vew1/vew2: [B, V, E] (incidence matrices).
    Returns [B, V, out_dim].
    """
    B, V, Dv = hv.shape
    _, E, De = he.shape
    E2 = 2 * E
    OUT = p["rm_w2"].shape[1]
    OUT_PAD = ((OUT + 127) // 128) * 128

    # ---- pad the batch to a multiple of block_b (zero graphs, sliced off) ----
    block_b = min(block_b, B)
    n_blocks = pl.cdiv(B, block_b)
    B_pad = n_blocks * block_b
    if B_pad != B:
        pad = ((0, B_pad - B), (0, 0), (0, 0))
        hv, he = jnp.pad(hv, pad), jnp.pad(he, pad)
        vew1, vew2 = jnp.pad(vew1, pad), jnp.pad(vew2, pad)

    # ---- pre-transposed / pre-stacked graph tensors (host side, free) ----
    vew_u = jnp.concatenate([vew1, vew2], axis=2)                     # [B, V, 2E]
    vew_uT = jnp.swapaxes(vew_u, 1, 2)                                # [B, 2E, V]
    vew_vT = jnp.concatenate([jnp.swapaxes(vew2, 1, 2),
                              jnp.swapaxes(vew1, 1, 2)], axis=1)      # [B, 2E, V]
    he2 = jnp.concatenate([he, he], axis=1)                           # [B, 2E, De]

    # 0/1 incidence is exact in bf16: halves its HBM/VMEM/DMA footprint;
    # upcast to f32 inside the kernel (all arithmetic stays f32).
    vew_u = vew_u.astype(jnp.bfloat16)
    vew_uT = vew_uT.astype(jnp.bfloat16)
    vew_vT = vew_vT.astype(jnp.bfloat16)

    # ---- pre-split / restacked weights ----
    ea_w1 = p["ea_w1"]
    ea_wu = ea_w1[:Dv]                      # pairs with hv_u
    ea_we = ea_w1[Dv:Dv + De]               # pairs with he2
    ea_wv = ea_w1[Dv + De:]                 # pairs with hv_v
    gru_wi = jnp.stack([p["gru_wih"][:, :Dv],
                        p["gru_wih"][:, Dv:2 * Dv],
                        p["gru_wih"][:, 2 * Dv:]])          # [3, Dv, Dv]
    gru_wh = jnp.stack([p["gru_whh"][:, :Dv],
                        p["gru_whh"][:, Dv:2 * Dv],
                        p["gru_whh"][:, 2 * Dv:]])          # [3, Dv, Dv]
    gru_bi = jnp.stack([p["gru_bih"][:, :Dv],
                        p["gru_bih"][:, Dv:2 * Dv],
                        p["gru_bih"][:, 2 * Dv:]])          # [3, 1, Dv]
    gru_bh = jnp.stack([p["gru_bhh"][:, :Dv],
                        p["gru_bhh"][:, Dv:2 * Dv],
                        p["gru_bhh"][:, 2 * Dv:]])          # [3, 1, Dv]
    rm_w1a = p["rm_w1"][:Dv]
    rm_w1b = p["rm_w1"][Dv:]
    rm_w2p = jnp.pad(p["rm_w2"], ((0, 0), (0, OUT_PAD - OUT)))
    rm_b2p = jnp.pad(p["rm_b2"], ((0, 0), (0, OUT_PAD - OUT)))

    def batched(shape):
        nd = len(shape)
        return pl.BlockSpec((block_b,) + shape,
                            lambda b, nd=nd: (b,) + (0,) * nd)

    def shared(arr):
        nd = arr.ndim
        return pl.BlockSpec(arr.shape, lambda b, nd=nd: (0,) * nd)

    weight_args = (ea_wu, ea_we, ea_wv, p["ea_b1"], p["ea_w2"], p["ea_b2"],
                   p["gcn_w"], p["gcn_b"],
                   gru_wi, gru_wh, gru_bi, gru_bh,
                   rm_w1a, rm_w1b, p["rm_b1"], rm_w2p, rm_b2p)

    weight_specs = [shared(w) for w in weight_args]
    # ea_b2 is a [1,1] true scalar -> SMEM (no (8,128)-padded VMEM tile).
    weight_specs[5] = pl.BlockSpec(memory_space=pltpu.MemorySpace.SMEM)

    in_specs = ([batched((V, Dv)),       # hv
                 batched((E2, De)),      # he2
                 batched((V, E2)),       # vew_u
                 batched((E2, V)),       # vew_uT
                 batched((E2, V))]       # vew_vT
                + weight_specs)

    out_padded = pl.pallas_call(
        naive_mpnn_kernel,
        grid=(n_blocks,),
        out_shape=jax.ShapeDtypeStruct((B_pad, V, OUT_PAD), jnp.float32),
        in_specs=in_specs,
        out_specs=pl.BlockSpec((block_b, V, OUT_PAD), lambda b: (b, 0, 0)),
        compiler_params=pltpu.CompilerParams(
            dimension_semantics=("parallel",),
            vmem_limit_bytes=64 * 1024 * 1024),
    )(hv, he2, vew_u, vew_uT, vew_vT, *weight_args)

    return out_padded[:B, :, :OUT]


# ----------------------------------------------------------------------------
# Pure-JAX reference (single graph, original formulation) for correctness.
# ----------------------------------------------------------------------------
def naive_mpnn_reference(hv, he, vew1, vew2, p):
    dv = hv.shape[1]
    vew_u = jnp.concatenate([vew1, vew2], axis=1)
    vew_v = jnp.concatenate([vew2, vew1], axis=1)
    hv_u = vew_u.T @ hv
    hv_v = vew_v.T @ hv
    he2 = jnp.concatenate([he, he], axis=0)
    uev = jnp.concatenate([hv_u, he2, hv_v], axis=1)
    h1 = _leaky_relu(uev @ p["ea_w1"] + p["ea_b1"])
    ew = jax.nn.sigmoid(h1 @ p["ea_w2"] + p["ea_b2"])          # [2E, 1]
    adj = vew_u @ (vew_v * ew.T).T
    dr = adj.sum(1, keepdims=True)
    dc = adj.sum(0, keepdims=True)
    adj = adj * jax.lax.rsqrt(dr + EPS) * jax.lax.rsqrt(dc + EPS)
    hidden = hv
    for i in range(4):
        lin = hidden @ p["gcn_w"][i] + p["gcn_b"][i]
        msg = jnp.maximum(adj @ lin, 0.0)
        gi = msg @ p["gru_wih"] + p["gru_bih"]
        gh = hidden @ p["gru_whh"] + p["gru_bhh"]
        r = jax.nn.sigmoid(gi[:, :dv] + gh[:, :dv])
        z = jax.nn.sigmoid(gi[:, dv:2 * dv] + gh[:, dv:2 * dv])
        n = jnp.tanh(gi[:, 2 * dv:] + r * gh[:, 2 * dv:])
        hidden = (1.0 - z) * n + z * hidden
    cat = jnp.concatenate([hv, hidden], axis=1)
    h2 = _leaky_relu(cat @ p["rm_w1"] + p["rm_b1"])
    return h2 @ p["rm_w2"] + p["rm_b2"]


def init_params(key, dv, de, out_dim):
    ks = jax.random.split(key, 14)
    s = 0.1

    def w(k, shape):
        return s * jax.random.normal(k, shape, dtype=jnp.float32)

    return dict(
        # edge_attend MLP: (2*Dv+De) -> Dv -> 1, sigmoid
        ea_w1=w(ks[0], (2 * dv + de, dv)), ea_b1=w(ks[1], (1, dv)),
        ea_w2=w(ks[2], (dv, 1)),           ea_b2=w(ks[3], (1, 1)),
        # 4 GCN layers, each Linear(Dv, Dv)
        gcn_w=w(ks[4], (4, dv, dv)),       gcn_b=w(ks[5], (4, 1, dv)),
        # GRUCell(Dv, Dv): weights pre-transposed to [Dv, 3*Dv], gate order (r, z, n)
        gru_wih=w(ks[6], (dv, 3 * dv)),    gru_whh=w(ks[7], (dv, 3 * dv)),
        gru_bih=w(ks[8], (1, 3 * dv)),     gru_bhh=w(ks[9], (1, 3 * dv)),
        # remap MLP: 2*Dv -> Dv -> out_dim
        rm_w1=w(ks[10], (2 * dv, dv)),     rm_b1=w(ks[11], (1, dv)),
        rm_w2=w(ks[12], (dv, out_dim)),    rm_b2=w(ks[13], (1, out_dim)),
    )


if __name__ == "__main__":
    key = jax.random.PRNGKey(0)
    B, V, E, Dv, De, OUT = 6, 16, 24, 32, 16, 24   # B=6 exercises the pad path

    k_hv, k_he, k_src, k_dst, k_p = jax.random.split(key, 5)
    hv = jax.random.normal(k_hv, (B, V, Dv), dtype=jnp.float32)
    he = jax.random.normal(k_he, (B, E, De), dtype=jnp.float32)
    src = jax.random.randint(k_src, (B, E), 0, V)
    dst = jax.random.randint(k_dst, (B, E), 0, V)
    vew1 = jnp.swapaxes(jax.nn.one_hot(src, V, dtype=jnp.float32), 1, 2)   # [B, V, E]
    vew2 = jnp.swapaxes(jax.nn.one_hot(dst, V, dtype=jnp.float32), 1, 2)   # [B, V, E]

    params = init_params(k_p, Dv, De, OUT)

    out = naive_mpnn(hv, he, vew1, vew2, params, block_b=4)
    out = jax.block_until_ready(out)

    ref = jax.vmap(naive_mpnn_reference, in_axes=(0, 0, 0, 0, None))(
        hv, he, vew1, vew2, params)
    assert out.shape == (B, V, OUT)
    assert jnp.allclose(out, ref, atol=2e-3, rtol=2e-3), "mismatch vs reference"

    print("KERNEL_OK")
</pallas_src>

<mosaic_0001>
module attributes {stable_mosaic.version = 11 : i64} {
  func.func @naive_mpnn_kernel(%arg0: i32, %arg1: memref<4x16x32xf32, #tpu.memory_space<vmem>>, %arg2: memref<4x48x16xf32, #tpu.memory_space<vmem>>, %arg3: memref<4x16x48xbf16, #tpu.memory_space<vmem>>, %arg4: memref<4x48x16xbf16, #tpu.memory_space<vmem>>, %arg5: memref<4x48x16xbf16, #tpu.memory_space<vmem>>, %arg6: memref<32x32xf32, #tpu.memory_space<vmem>>, %arg7: memref<16x32xf32, #tpu.memory_space<vmem>>, %arg8: memref<32x32xf32, #tpu.memory_space<vmem>>, %arg9: memref<1x32xf32, #tpu.memory_space<vmem>>, %arg10: memref<32x1xf32, #tpu.memory_space<vmem>>, %arg11: memref<1x1xf32, #tpu.memory_space<smem>>, %arg12: memref<4x32x32xf32, #tpu.memory_space<vmem>>, %arg13: memref<4x1x32xf32, #tpu.memory_space<vmem>>, %arg14: memref<3x32x32xf32, #tpu.memory_space<vmem>>, %arg15: memref<3x32x32xf32, #tpu.memory_space<vmem>>, %arg16: memref<3x1x32xf32, #tpu.memory_space<vmem>>, %arg17: memref<3x1x32xf32, #tpu.memory_space<vmem>>, %arg18: memref<32x32xf32, #tpu.memory_space<vmem>>, %arg19: memref<32x32xf32, #tpu.memory_space<vmem>>, %arg20: memref<1x32xf32, #tpu.memory_space<vmem>>, %arg21: memref<32x128xf32, #tpu.memory_space<vmem>>, %arg22: memref<1x128xf32, #tpu.memory_space<vmem>>, %arg23: memref<4x16x128xf32, #tpu.memory_space<vmem>>) attributes {dimension_semantics = [#tpu.dimension_semantics<parallel>], iteration_bounds = array<i64: 2>, scalar_prefetch = 0 : i64, scratch_operands = 0 : i64, tpu.core_type = #tpu.core_type<tc>, window_params = [{transform_indices = @transform_0, window_bounds = array<i64: 4, 16, 32>}, {transform_indices = @transform_1, window_bounds = array<i64: 4, 48, 16>}, {transform_indices = @transform_2, window_bounds = array<i64: 4, 16, 48>}, {transform_indices = @transform_3, window_bounds = array<i64: 4, 48, 16>}, {transform_indices = @transform_4, window_bounds = array<i64: 4, 48, 16>}, {pipeline_mode = #tpu.pipeline_mode<synchronous>, transform_indices = @transform_5, window_bounds = array<i64: 32, 32>}, {pipeline_mode = #tpu.pipeline_mode<synchronous>, transform_indices = @transform_6, window_bounds = array<i64: 16, 32>}, {pipeline_mode = #tpu.pipeline_mode<synchronous>, transform_indices = @transform_7, window_bounds = array<i64: 32, 32>}, {pipeline_mode = #tpu.pipeline_mode<synchronous>, transform_indices = @transform_8, window_bounds = array<i64: 1, 32>}, {pipeline_mode = #tpu.pipeline_mode<synchronous>, transform_indices = @transform_9, window_bounds = array<i64: 32, 1>}, {transform_indices = @transform_10, window_bounds = array<i64: 1, 1>}, {pipeline_mode = #tpu.pipeline_mode<synchronous>, transform_indices = @transform_11, window_bounds = array<i64: 4, 32, 32>}, {pipeline_mode = #tpu.pipeline_mode<synchronous>, transform_indices = @transform_12, window_bounds = array<i64: 4, 1, 32>}, {pipeline_mode = #tpu.pipeline_mode<synchronous>, transform_indices = @transform_13, window_bounds = array<i64: 3, 32, 32>}, {pipeline_mode = #tpu.pipeline_mode<synchronous>, transform_indices = @transform_14, window_bounds = array<i64: 3, 32, 32>}, {pipeline_mode = #tpu.pipeline_mode<synchronous>, transform_indices = @transform_15, window_bounds = array<i64: 3, 1, 32>}, {pipeline_mode = #tpu.pipeline_mode<synchronous>, transform_indices = @transform_16, window_bounds = array<i64: 3, 1, 32>}, {pipeline_mode = #tpu.pipeline_mode<synchronous>, transform_indices = @transform_17, window_bounds = array<i64: 32, 32>}, {pipeline_mode = #tpu.pipeline_mode<synchronous>, transform_indices = @transform_18, window_bounds = array<i64: 32, 32>}, {pipeline_mode = #tpu.pipeline_mode<synchronous>, transform_indices = @transform_19, window_bounds = array<i64: 1, 32>}, {pipeline_mode = #tpu.pipeline_mode<synchronous>, transform_indices = @transform_20, window_bounds = array<i64: 32, 128>}, {pipeline_mode = #tpu.pipeline_mode<synchronous>, transform_indices = @transform_21, window_bounds = array<i64: 1, 128>}, {transform_indices = @transform_22, window_bounds = array<i64: 4, 16, 128>}]} {
    %c0 = arith.constant 0 : index
    %c0_0 = arith.constant 0 : index
    %c0_1 = arith.constant 0 : index
    %0 = vector.load %arg1[%c0, %c0_0, %c0_1] : memref<4x16x32xf32, #tpu.memory_space<vmem>>, vector<4x16x32xf32>
    %c0_2 = arith.constant 0 : index
    %c0_3 = arith.constant 0 : index
    %c0_4 = arith.constant 0 : index
    %1 = vector.load %arg2[%c0_2, %c0_3, %c0_4] : memref<4x48x16xf32, #tpu.memory_space<vmem>>, vector<4x48x16xf32>
    %c0_5 = arith.constant 0 : index
    %c0_6 = arith.constant 0 : index
    %c0_7 = arith.constant 0 : index
    %2 = vector.load %arg3[%c0_5, %c0_6, %c0_7] : memref<4x16x48xbf16, #tpu.memory_space<vmem>>, vector<4x16x48xbf16>
    %3 = arith.extf %2 : vector<4x16x48xbf16> to vector<4x16x48xf32>
    %c0_8 = arith.constant 0 : index
    %c0_9 = arith.constant 0 : index
    %c0_10 = arith.constant 0 : index
    %4 = vector.load %arg4[%c0_8, %c0_9, %c0_10] : memref<4x48x16xbf16, #tpu.memory_space<vmem>>, vector<4x48x16xbf16>
    %5 = arith.extf %4 : vector<4x48x16xbf16> to vector<4x48x16xf32>
    %c0_11 = arith.constant 0 : index
    %c0_12 = arith.constant 0 : index
    %c0_13 = arith.constant 0 : index
    %6 = vector.load %arg5[%c0_11, %c0_12, %c0_13] : memref<4x48x16xbf16, #tpu.memory_space<vmem>>, vector<4x48x16xbf16>
    %7 = arith.extf %6 : vector<4x48x16xbf16> to vector<4x48x16xf32>
    "tpu.trace_start"() <{level = 10 : i32, message = "bev,bvd->bed"}> : () -> ()
    %cst = arith.constant dense<0.000000e+00> : vector<4x48x32xf32>
    %8 = tpu.matmul %5, %0, %cst {dimension_numbers = #tpu.dot_dimension_numbers<[2], [1], [1], [2], [0, 0, 0, 1, 1, 2], [0], [0]>} : vector<4x48x16xf32>, vector<4x16x32xf32>, vector<4x48x32xf32> -> vector<4x48x32xf32>
    "tpu.trace_stop"() : () -> ()
    %9 = vector.shape_cast %8 : vector<4x48x32xf32> to vector<192x32xf32>
    "tpu.trace_start"() <{level = 10 : i32, message = "bev,bvd->bed"}> : () -> ()
    %cst_14 = arith.constant dense<0.000000e+00> : vector<4x48x32xf32>
    %10 = tpu.matmul %7, %0, %cst_14 {dimension_numbers = #tpu.dot_dimension_numbers<[2], [1], [1], [2], [0, 0, 0, 1, 1, 2], [0], [0]>} : vector<4x48x16xf32>, vector<4x16x32xf32>, vector<4x48x32xf32> -> vector<4x48x32xf32>
    "tpu.trace_stop"() : () -> ()
    %11 = vector.shape_cast %10 : vector<4x48x32xf32> to vector<192x32xf32>
    %12 = vector.shape_cast %1 : vector<4x48x16xf32> to vector<192x16xf32>
    %c0_15 = arith.constant 0 : index
    %c0_16 = arith.constant 0 : index
    %13 = vector.load %arg6[%c0_15, %c0_16] : memref<32x32xf32, #tpu.memory_space<vmem>>, vector<32x32xf32>
    %cst_17 = arith.constant dense<0.000000e+00> : vector<192x32xf32>
    %14 = tpu.matmul %9, %13, %cst_17 {dimension_numbers = #tpu.dot_dimension_numbers<[1], [0], [0], [1], [0, 0, 1, 1], [], []>} : vector<192x32xf32>, vector<32x32xf32>, vector<192x32xf32> -> vector<192x32xf32>
    %c0_18 = arith.constant 0 : index
    %c0_19 = arith.constant 0 : index
    %15 = vector.load %arg7[%c0_18, %c0_19] : memref<16x32xf32, #tpu.memory_space<vmem>>, vector<16x32xf32>
    %cst_20 = arith.constant dense<0.000000e+00> : vector<192x32xf32>
    %16 = tpu.matmul %12, %15, %cst_20 {dimension_numbers = #tpu.dot_dimension_numbers<[1], [0], [0], [1], [0, 0, 1, 1], [], []>} : vector<192x16xf32>, vector<16x32xf32>, vector<192x32xf32> -> vector<192x32xf32>
    %17 = arith.addf %14, %16 : vector<192x32xf32>
    %c0_21 = arith.constant 0 : index
    %c0_22 = arith.constant 0 : index
    %18 = vector.load %arg8[%c0_21, %c0_22] : memref<32x32xf32, #tpu.memory_space<vmem>>, vector<32x32xf32>
    %cst_23 = arith.constant dense<0.000000e+00> : vector<192x32xf32>
    %19 = tpu.matmul %11, %18, %cst_23 {dimension_numbers = #tpu.dot_dimension_numbers<[1], [0], [0], [1], [0, 0, 1, 1], [], []>} : vector<192x32xf32>, vector<32x32xf32>, vector<192x32xf32> -> vector<192x32xf32>
    %20 = arith.addf %17, %19 : vector<192x32xf32>
    %c0_24 = arith.constant 0 : index
    %c0_25 = arith.constant 0 : index
    %21 = vector.load %arg9[%c0_24, %c0_25] : memref<1x32xf32, #tpu.memory_space<vmem>>, vector<1x32xf32>
    %22 = vector.broadcast %21 : vector<1x32xf32> to vector<192x32xf32>
    %23 = arith.addf %20, %22 : vector<192x32xf32>
    %cst_26 = arith.constant 0.000000e+00 : f32
    %24 = vector.broadcast %cst_26 : f32 to vector<192x32xf32>
    %25 = arith.cmpf oge, %23, %24 : vector<192x32xf32>
    %cst_27 = arith.constant 0.00999999977 : f32
    %26 = vector.broadcast %cst_27 : f32 to vector<192x32xf32>
    %27 = arith.mulf %26, %23 : vector<192x32xf32>
    %28 = arith.select %25, %23, %27 : vector<192x32xi1>, vector<192x32xf32>
    %c0_28 = arith.constant 0 : index
    %c0_29 = arith.constant 0 : index
    %29 = vector.load %arg10[%c0_28, %c0_29] : memref<32x1xf32, #tpu.memory_space<vmem>>, vector<32x1xf32>
    %cst_30 = arith.constant dense<0.000000e+00> : vector<192x1xf32>
    %30 = tpu.matmul %28, %29, %cst_30 {dimension_numbers = #tpu.dot_dimension_numbers<[1], [0], [0], [1], [0, 0, 1, 1], [], []>} : vector<192x32xf32>, vector<32x1xf32>, vector<192x1xf32> -> vector<192x1xf32>
    %c0_31 = arith.constant 0 : index
    %c0_32 = arith.constant 0 : index
    %31 = memref.load %arg11[%c0_31, %c0_32] : memref<1x1xf32, #tpu.memory_space<smem>>
    %32 = vector.broadcast %31 : f32 to vector<192x1xf32>
    %33 = arith.addf %30, %32 : vector<192x1xf32>
    %34 = arith.negf %33 : vector<192x1xf32>
    %35 = math.exp %34 : vector<192x1xf32>
    %cst_33 = arith.constant 1.000000e+00 : f32
    %36 = vector.broadcast %cst_33 : f32 to vector<192x1xf32>
    %37 = arith.addf %36, %35 : vector<192x1xf32>
    %38 = arith.divf %36, %37 : vector<192x1xf32>
    %39 = vector.shape_cast %38 : vector<192x1xf32> to vector<4x48x1xf32>
    %40 = vector.broadcast %39 : vector<4x48x1xf32> to vector<4x48x16xf32>
    %41 = arith.mulf %40, %7 : vector<4x48x16xf32>
    "tpu.trace_start"() <{level = 10 : i32, message = "bve,bew->bvw"}> : () -> ()
    %cst_34 = arith.constant dense<0.000000e+00> : vector<4x16x16xf32>
    %42 = tpu.matmul %3, %41, %cst_34 {dimension_numbers = #tpu.dot_dimension_numbers<[2], [1], [1], [2], [0, 0, 0, 1, 1, 2], [0], [0]>} : vector<4x16x48xf32>, vector<4x48x16xf32>, vector<4x16x16xf32> -> vector<4x16x16xf32>
    %cst_35 = arith.constant 1.000000e+00 : f32
    "tpu.trace_stop"() : () -> ()
    %43 = vector.broadcast %cst_35 : f32 to vector<4x16x1xf32>
    "tpu.trace_start"() <{level = 10 : i32, message = "bvw,bwo->bvo"}> : () -> ()
    %cst_36 = arith.constant dense<0.000000e+00> : vector<4x16x1xf32>
    %44 = tpu.matmul %42, %43, %cst_36 {dimension_numbers = #tpu.dot_dimension_numbers<[2], [1], [1], [2], [0, 0, 0, 1, 1, 2], [0], [0]>} : vector<4x16x16xf32>, vector<4x16x1xf32>, vector<4x16x1xf32> -> vector<4x16x1xf32>
    %cst_37 = arith.constant 1.000000e+00 : f32
    "tpu.trace_stop"() : () -> ()
    %45 = vector.broadcast %cst_37 : f32 to vector<4x1x16xf32>
    "tpu.trace_start"() <{level = 10 : i32, message = "bov,bvw->bow"}> : () -> ()
    %cst_38 = arith.constant dense<0.000000e+00> : vector<4x1x16xf32>
    %46 = tpu.matmul %45, %42, %cst_38 {dimension_numbers = #tpu.dot_dimension_numbers<[2], [1], [1], [2], [0, 0, 0, 1, 1, 2], [0], [0]>} : vector<4x1x16xf32>, vector<4x16x16xf32>, vector<4x1x16xf32> -> vector<4x1x16xf32>
    "tpu.trace_stop"() : () -> ()
    %cst_39 = arith.constant 9.99999997E-7 : f32
    %47 = vector.broadcast %cst_39 : f32 to vector<4x16x1xf32>
    %48 = arith.addf %44, %47 : vector<4x16x1xf32>
    %49 = math.rsqrt %48 : vector<4x16x1xf32>
    %50 = vector.broadcast %49 : vector<4x16x1xf32> to vector<4x16x16xf32>
    %51 = arith.mulf %42, %50 : vector<4x16x16xf32>
    %cst_40 = arith.constant 9.99999997E-7 : f32
    %52 = vector.broadcast %cst_40 : f32 to vector<4x1x16xf32>
    %53 = arith.addf %46, %52 : vector<4x1x16xf32>
    %54 = math.rsqrt %53 : vector<4x1x16xf32>
    %55 = vector.broadcast %54 : vector<4x1x16xf32> to vector<4x16x16xf32>
    %56 = arith.mulf %51, %55 : vector<4x16x16xf32>
    %c0_41 = arith.constant 0 : index
    %c0_42 = arith.constant 0 : index
    %c0_43 = arith.constant 0 : index
    %57 = vector.load %arg14[%c0_41, %c0_42, %c0_43] : memref<3x32x32xf32, #tpu.memory_space<vmem>>, vector<1x32x32xf32>
    %58 = vector.shape_cast %57 : vector<1x32x32xf32> to vector<32x32xf32>
    %c1 = arith.constant 1 : index
    %c0_44 = arith.constant 0 : index
    %c0_45 = arith.constant 0 : index
    %59 = vector.load %arg14[%c1, %c0_44, %c0_45] : memref<3x32x32xf32, #tpu.memory_space<vmem>>, vector<1x32x32xf32>
    %60 = vector.shape_cast %59 : vector<1x32x32xf32> to vector<32x32xf32>
    %c2 = arith.constant 2 : index
    %c0_46 = arith.constant 0 : index
    %c0_47 = arith.constant 0 : index
    %61 = vector.load %arg14[%c2, %c0_46, %c0_47] : memref<3x32x32xf32, #tpu.memory_space<vmem>>, vector<1x32x32xf32>
    %62 = vector.shape_cast %61 : vector<1x32x32xf32> to vector<32x32xf32>
    %c0_48 = arith.constant 0 : index
    %c0_49 = arith.constant 0 : index
    %c0_50 = arith.constant 0 : index
    %63 = vector.load %arg15[%c0_48, %c0_49, %c0_50] : memref<3x32x32xf32, #tpu.memory_space<vmem>>, vector<1x32x32xf32>
    %64 = vector.shape_cast %63 : vector<1x32x32xf32> to vector<32x32xf32>
    %c1_51 = arith.constant 1 : index
    %c0_52 = arith.constant 0 : index
    %c0_53 = arith.constant 0 : index
    %65 = vector.load %arg15[%c1_51, %c0_52, %c0_53] : memref<3x32x32xf32, #tpu.memory_space<vmem>>, vector<1x32x32xf32>
    %66 = vector.shape_cast %65 : vector<1x32x32xf32> to vector<32x32xf32>
    %c2_54 = arith.constant 2 : index
    %c0_55 = arith.constant 0 : index
    %c0_56 = arith.constant 0 : index
    %67 = vector.load %arg15[%c2_54, %c0_55, %c0_56] : memref<3x32x32xf32, #tpu.memory_space<vmem>>, vector<1x32x32xf32>
    %68 = vector.shape_cast %67 : vector<1x32x32xf32> to vector<32x32xf32>
    %c0_57 = arith.constant 0 : index
    %c0_58 = arith.constant 0 : index
    %c0_59 = arith.constant 0 : index
    %69 = vector.load %arg16[%c0_57, %c0_58, %c0_59] : memref<3x1x32xf32, #tpu.memory_space<vmem>>, vector<1x1x32xf32>
    %70 = vector.shape_cast %69 : vector<1x1x32xf32> to vector<1x32xf32>
    %c0_60 = arith.constant 0 : index
    %c0_61 = arith.constant 0 : index
    %c0_62 = arith.constant 0 : index
    %71 = vector.load %arg17[%c0_60, %c0_61, %c0_62] : memref<3x1x32xf32, #tpu.memory_space<vmem>>, vector<1x1x32xf32>
    %72 = vector.shape_cast %71 : vector<1x1x32xf32> to vector<1x32xf32>
    %73 = arith.addf %70, %72 : vector<1x32xf32>
    %74 = vector.shape_cast %73 : vector<1x32xf32> to vector<1x32xf32>
    %75 = vector.broadcast %74 : vector<1x32xf32> to vector<64x32xf32>
    %c1_63 = arith.constant 1 : index
    %c0_64 = arith.constant 0 : index
    %c0_65 = arith.constant 0 : index
    %76 = vector.load %arg16[%c1_63, %c0_64, %c0_65] : memref<3x1x32xf32, #tpu.memory_space<vmem>>, vector<1x1x32xf32>
    %77 = vector.shape_cast %76 : vector<1x1x32xf32> to vector<1x32xf32>
    %c1_66 = arith.constant 1 : index
    %c0_67 = arith.constant 0 : index
    %c0_68 = arith.constant 0 : index
    %78 = vector.load %arg17[%c1_66, %c0_67, %c0_68] : memref<3x1x32xf32, #tpu.memory_space<vmem>>, vector<1x1x32xf32>
    %79 = vector.shape_cast %78 : vector<1x1x32xf32> to vector<1x32xf32>
    %80 = arith.addf %77, %79 : vector<1x32xf32>
    %81 = vector.shape_cast %80 : vector<1x32xf32> to vector<1x32xf32>
    %82 = vector.broadcast %81 : vector<1x32xf32> to vector<64x32xf32>
    %c2_69 = arith.constant 2 : index
    %c0_70 = arith.constant 0 : index
    %c0_71 = arith.constant 0 : index
    %83 = vector.load %arg16[%c2_69, %c0_70, %c0_71] : memref<3x1x32xf32, #tpu.memory_space<vmem>>, vector<1x1x32xf32>
    %84 = vector.shape_cast %83 : vector<1x1x32xf32> to vector<1x32xf32>
    %85 = vector.shape_cast %84 : vector<1x32xf32> to vector<1x32xf32>
    %86 = vector.broadcast %85 : vector<1x32xf32> to vector<64x32xf32>
    %c2_72 = arith.constant 2 : index
    %c0_73 = arith.constant 0 : index
    %c0_74 = arith.constant 0 : index
    %87 = vector.load %arg17[%c2_72, %c0_73, %c0_74] : memref<3x1x32xf32, #tpu.memory_space<vmem>>, vector<1x1x32xf32>
    %88 = vector.shape_cast %87 : vector<1x1x32xf32> to vector<1x32xf32>
    %89 = vector.shape_cast %88 : vector<1x32xf32> to vector<1x32xf32>
    %90 = vector.broadcast %89 : vector<1x32xf32> to vector<64x32xf32>
    %91 = vector.shape_cast %0 : vector<4x16x32xf32> to vector<64x32xf32>
    %c0_i32 = arith.constant 0 : i32
    %92 = arith.index_cast %c0_i32 : i32 to index
    %c0_75 = arith.constant 0 : index
    %c0_76 = arith.constant 0 : index
    %93 = vector.load %arg12[%92, %c0_75, %c0_76] : memref<4x32x32xf32, #tpu.memory_space<vmem>>, vector<1x32x32xf32>
    %94 = vector.shape_cast %93 : vector<1x32x32xf32> to vector<32x32xf32>
    %cst_77 = arith.constant dense<0.000000e+00> : vector<64x32xf32>
    %95 = tpu.matmul %91, %94, %cst_77 {dimension_numbers = #tpu.dot_dimension_numbers<[1], [0], [0], [1], [0, 0, 1, 1], [], []>} : vector<64x32xf32>, vector<32x32xf32>, vector<64x32xf32> -> vector<64x32xf32>
    %96 = arith.index_cast %c0_i32 : i32 to index
    %c0_78 = arith.constant 0 : index
    %c0_79 = arith.constant 0 : index
    %97 = vector.load %arg13[%96, %c0_78, %c0_79] : memref<4x1x32xf32, #tpu.memory_space<vmem>>, vector<1x1x32xf32>
    %98 = vector.shape_cast %97 : vector<1x1x32xf32> to vector<1x32xf32>
    %99 = vector.broadcast %98 : vector<1x32xf32> to vector<64x32xf32>
    %100 = arith.addf %95, %99 : vector<64x32xf32>
    %101 = vector.shape_cast %100 : vector<64x32xf32> to vector<4x16x32xf32>
    "tpu.trace_start"() <{level = 10 : i32, message = "bvw,bwd->bvd"}> : () -> ()
    %cst_80 = arith.constant dense<0.000000e+00> : vector<4x16x32xf32>
    %102 = tpu.matmul %56, %101, %cst_80 {dimension_numbers = #tpu.dot_dimension_numbers<[2], [1], [1], [2], [0, 0, 0, 1, 1, 2], [0], [0]>} : vector<4x16x16xf32>, vector<4x16x32xf32>, vector<4x16x32xf32> -> vector<4x16x32xf32>
    "tpu.trace_stop"() : () -> ()
    %103 = vector.shape_cast %102 : vector<4x16x32xf32> to vector<64x32xf32>
    %cst_81 = arith.constant 0.000000e+00 : f32
    %104 = vector.broadcast %cst_81 : f32 to vector<64x32xf32>
    %105 = arith.maximumf %103, %104 : vector<64x32xf32>
    %cst_82 = arith.constant dense<0.000000e+00> : vector<64x32xf32>
    %106 = tpu.matmul %105, %58, %cst_82 {dimension_numbers = #tpu.dot_dimension_numbers<[1], [0], [0], [1], [0, 0, 1, 1], [], []>} : vector<64x32xf32>, vector<32x32xf32>, vector<64x32xf32> -> vector<64x32xf32>
    %cst_83 = arith.constant dense<0.000000e+00> : vector<64x32xf32>
    %107 = tpu.matmul %91, %64, %cst_83 {dimension_numbers = #tpu.dot_dimension_numbers<[1], [0], [0], [1], [0, 0, 1, 1], [], []>} : vector<64x32xf32>, vector<32x32xf32>, vector<64x32xf32> -> vector<64x32xf32>
    %108 = arith.addf %106, %107 : vector<64x32xf32>
    %109 = arith.addf %108, %75 : vector<64x32xf32>
    %110 = arith.negf %109 : vector<64x32xf32>
    %111 = math.exp %110 : vector<64x32xf32>
    %cst_84 = arith.constant 1.000000e+00 : f32
    %112 = vector.broadcast %cst_84 : f32 to vector<64x32xf32>
    %113 = arith.addf %112, %111 : vector<64x32xf32>
    %114 = arith.divf %112, %113 : vector<64x32xf32>
    %cst_85 = arith.constant dense<0.000000e+00> : vector<64x32xf32>
    %115 = tpu.matmul %105, %60, %cst_85 {dimension_numbers = #tpu.dot_dimension_numbers<[1], [0], [0], [1], [0, 0, 1, 1], [], []>} : vector<64x32xf32>, vector<32x32xf32>, vector<64x32xf32> -> vector<64x32xf32>
    %cst_86 = arith.constant dense<0.000000e+00> : vector<64x32xf32>
    %116 = tpu.matmul %91, %66, %cst_86 {dimension_numbers = #tpu.dot_dimension_numbers<[1], [0], [0], [1], [0, 0, 1, 1], [], []>} : vector<64x32xf32>, vector<32x32xf32>, vector<64x32xf32> -> vector<64x32xf32>
    %117 = arith.addf %115, %116 : vector<64x32xf32>
    %118 = arith.addf %117, %82 : vector<64x32xf32>
    %119 = arith.negf %118 : vector<64x32xf32>
    %120 = math.exp %119 : vector<64x32xf32>
    %cst_87 = arith.constant 1.000000e+00 : f32
    %121 = vector.broadcast %cst_87 : f32 to vector<64x32xf32>
    %122 = arith.addf %121, %120 : vector<64x32xf32>
    %123 = arith.divf %121, %122 : vector<64x32xf32>
    %cst_88 = arith.constant dense<0.000000e+00> : vector<64x32xf32>
    %124 = tpu.matmul %105, %62, %cst_88 {dimension_numbers = #tpu.dot_dimension_numbers<[1], [0], [0], [1], [0, 0, 1, 1], [], []>} : vector<64x32xf32>, vector<32x32xf32>, vector<64x32xf32> -> vector<64x32xf32>
    %125 = arith.addf %124, %86 : vector<64x32xf32>
    %cst_89 = arith.constant dense<0.000000e+00> : vector<64x32xf32>
    %126 = tpu.matmul %91, %68, %cst_89 {dimension_numbers = #tpu.dot_dimension_numbers<[1], [0], [0], [1], [0, 0, 1, 1], [], []>} : vector<64x32xf32>, vector<32x32xf32>, vector<64x32xf32> -> vector<64x32xf32>
    %127 = arith.addf %126, %90 : vector<64x32xf32>
    %128 = arith.mulf %114, %127 : vector<64x32xf32>
    %129 = arith.addf %125, %128 : vector<64x32xf32>
    %130 = math.tanh %129 : vector<64x32xf32>
    %cst_90 = arith.constant 1.000000e+00 : f32
    %131 = vector.broadcast %cst_90 : f32 to vector<64x32xf32>
    %132 = arith.subf %131, %123 : vector<64x32xf32>
    %133 = arith.mulf %132, %130 : vector<64x32xf32>
    %134 = arith.mulf %123, %91 : vector<64x32xf32>
    %135 = arith.addf %133, %134 : vector<64x32xf32>
    %c1_i32 = arith.constant 1 : i32
    %136 = arith.index_cast %c1_i32 : i32 to index
    %c0_91 = arith.constant 0 : index
    %c0_92 = arith.constant 0 : index
    %137 = vector.load %arg12[%136, %c0_91, %c0_92] : memref<4x32x32xf32, #tpu.memory_space<vmem>>, vector<1x32x32xf32>
    %138 = vector.shape_cast %137 : vector<1x32x32xf32> to vector<32x32xf32>
    %cst_93 = arith.constant dense<0.000000e+00> : vector<64x32xf32>
    %139 = tpu.matmul %135, %138, %cst_93 {dimension_numbers = #tpu.dot_dimension_numbers<[1], [0], [0], [1], [0, 0, 1, 1], [], []>} : vector<64x32xf32>, vector<32x32xf32>, vector<64x32xf32> -> vector<64x32xf32>
    %140 = arith.index_cast %c1_i32 : i32 to index
    %c0_94 = arith.constant 0 : index
    %c0_95 = arith.constant 0 : index
    %141 = vector.load %arg13[%140, %c0_94, %c0_95] : memref<4x1x32xf32, #tpu.memory_space<vmem>>, vector<1x1x32xf32>
    %142 = vector.shape_cast %141 : vector<1x1x32xf32> to vector<1x32xf32>
    %143 = vector.broadcast %142 : vector<1x32xf32> to vector<64x32xf32>
    %144 = arith.addf %139, %143 : vector<64x32xf32>
    %145 = vector.shape_cast %144 : vector<64x32xf32> to vector<4x16x32xf32>
    "tpu.trace_start"() <{level = 10 : i32, message = "bvw,bwd->bvd"}> : () -> ()
    %cst_96 = arith.constant dense<0.000000e+00> : vector<4x16x32xf32>
    %146 = tpu.matmul %56, %145, %cst_96 {dimension_numbers = #tpu.dot_dimension_numbers<[2], [1], [1], [2], [0, 0, 0, 1, 1, 2], [0], [0]>} : vector<4x16x16xf32>, vector<4x16x32xf32>, vector<4x16x32xf32> -> vector<4x16x32xf32>
    "tpu.trace_stop"() : () -> ()
    %147 = vector.shape_cast %146 : vector<4x16x32xf32> to vector<64x32xf32>
    %cst_97 = arith.constant 0.000000e+00 : f32
    %148 = vector.broadcast %cst_97 : f32 to vector<64x32xf32>
    %149 = arith.maximumf %147, %148 : vector<64x32xf32>
    %cst_98 = arith.constant dense<0.000000e+00> : vector<64x32xf32>
    %150 = tpu.matmul %149, %58, %cst_98 {dimension_numbers = #tpu.dot_dimension_numbers<[1], [0], [0], [1], [0, 0, 1, 1], [], []>} : vector<64x32xf32>, vector<32x32xf32>, vector<64x32xf32> -> vector<64x32xf32>
    %cst_99 = arith.constant dense<0.000000e+00> : vector<64x32xf32>
    %151 = tpu.matmul %135, %64, %cst_99 {dimension_numbers = #tpu.dot_dimension_numbers<[1], [0], [0], [1], [0, 0, 1, 1], [], []>} : vector<64x32xf32>, vector<32x32xf32>, vector<64x32xf32> -> vector<64x32xf32>
    %152 = arith.addf %150, %151 : vector<64x32xf32>
    %153 = arith.addf %152, %75 : vector<64x32xf32>
    %154 = arith.negf %153 : vector<64x32xf32>
    %155 = math.exp %154 : vector<64x32xf32>
    %cst_100 = arith.constant 1.000000e+00 : f32
    %156 = vector.broadcast %cst_100 : f32 to vector<64x32xf32>
    %157 = arith.addf %156, %155 : vector<64x32xf32>
    %158 = arith.divf %156, %157 : vector<64x32xf32>
    %cst_101 = arith.constant dense<0.000000e+00> : vector<64x32xf32>
    %159 = tpu.matmul %149, %60, %cst_101 {dimension_numbers = #tpu.dot_dimension_numbers<[1], [0], [0], [1], [0, 0, 1, 1], [], []>} : vector<64x32xf32>, vector<32x32xf32>, vector<64x32xf32> -> vector<64x32xf32>
    %cst_102 = arith.constant dense<0.000000e+00> : vector<64x32xf32>
    %160 = tpu.matmul %135, %66, %cst_102 {dimension_numbers = #tpu.dot_dimension_numbers<[1], [0], [0], [1], [0, 0, 1, 1], [], []>} : vector<64x32xf32>, vector<32x32xf32>, vector<64x32xf32> -> vector<64x32xf32>
    %161 = arith.addf %159, %160 : vector<64x32xf32>
    %162 = arith.addf %161, %82 : vector<64x32xf32>
    %163 = arith.negf %162 : vector<64x32xf32>
    %164 = math.exp %163 : vector<64x32xf32>
    %cst_103 = arith.constant 1.000000e+00 : f32
    %165 = vector.broadcast %cst_103 : f32 to vector<64x32xf32>
    %166 = arith.addf %165, %164 : vector<64x32xf32>
    %167 = arith.divf %165, %166 : vector<64x32xf32>
    %cst_104 = arith.constant dense<0.000000e+00> : vector<64x32xf32>
    %168 = tpu.matmul %149, %62, %cst_104 {dimension_numbers = #tpu.dot_dimension_numbers<[1], [0], [0], [1], [0, 0, 1, 1], [], []>} : vector<64x32xf32>, vector<32x32xf32>, vector<64x32xf32> -> vector<64x32xf32>
    %169 = arith.addf %168, %86 : vector<64x32xf32>
    %cst_105 = arith.constant dense<0.000000e+00> : vector<64x32xf32>
    %170 = tpu.matmul %135, %68, %cst_105 {dimension_numbers = #tpu.dot_dimension_numbers<[1], [0], [0], [1], [0, 0, 1, 1], [], []>} : vector<64x32xf32>, vector<32x32xf32>, vector<64x32xf32> -> vector<64x32xf32>
    %171 = arith.addf %170, %90 : vector<64x32xf32>
    %172 = arith.mulf %158, %171 : vector<64x32xf32>
    %173 = arith.addf %169, %172 : vector<64x32xf32>
    %174 = math.tanh %173 : vector<64x32xf32>
    %cst_106 = arith.constant 1.000000e+00 : f32
    %175 = vector.broadcast %cst_106 : f32 to vector<64x32xf32>
    %176 = arith.subf %175, %167 : vector<64x32xf32>
    %177 = arith.mulf %176, %174 : vector<64x32xf32>
    %178 = arith.mulf %167, %135 : vector<64x32xf32>
    %179 = arith.addf %177, %178 : vector<64x32xf32>
    %c2_i32 = arith.constant 2 : i32
    %180 = arith.index_cast %c2_i32 : i32 to index
    %c0_107 = arith.constant 0 : index
    %c0_108 = arith.constant 0 : index
    %181 = vector.load %arg12[%180, %c0_107, %c0_108] : memref<4x32x32xf32, #tpu.memory_space<vmem>>, vector<1x32x32xf32>
    %182 = vector.shape_cast %181 : vector<1x32x32xf32> to vector<32x32xf32>
    %cst_109 = arith.constant dense<0.000000e+00> : vector<64x32xf32>
    %183 = tpu.matmul %179, %182, %cst_109 {dimension_numbers = #tpu.dot_dimension_numbers<[1], [0], [0], [1], [0, 0, 1, 1], [], []>} : vector<64x32xf32>, vector<32x32xf32>, vector<64x32xf32> -> vector<64x32xf32>
    %184 = arith.index_cast %c2_i32 : i32 to index
    %c0_110 = arith.constant 0 : index
    %c0_111 = arith.constant 0 : index
    %185 = vector.load %arg13[%184, %c0_110, %c0_111] : memref<4x1x32xf32, #tpu.memory_space<vmem>>, vector<1x1x32xf32>
    %186 = vector.shape_cast %185 : vector<1x1x32xf32> to vector<1x32xf32>
    %187 = vector.broadcast %186 : vector<1x32xf32> to vector<64x32xf32>
    %188 = arith.addf %183, %187 : vector<64x32xf32>
    %189 = vector.shape_cast %188 : vector<64x32xf32> to vector<4x16x32xf32>
    "tpu.trace_start"() <{level = 10 : i32, message = "bvw,bwd->bvd"}> : () -> ()
    %cst_112 = arith.constant dense<0.000000e+00> : vector<4x16x32xf32>
    %190 = tpu.matmul %56, %189, %cst_112 {dimension_numbers = #tpu.dot_dimension_numbers<[2], [1], [1], [2], [0, 0, 0, 1, 1, 2], [0], [0]>} : vector<4x16x16xf32>, vector<4x16x32xf32>, vector<4x16x32xf32> -> vector<4x16x32xf32>
    "tpu.trace_stop"() : () -> ()
    %191 = vector.shape_cast %190 : vector<4x16x32xf32> to vector<64x32xf32>
    %cst_113 = arith.constant 0.000000e+00 : f32
    %192 = vector.broadcast %cst_113 : f32 to vector<64x32xf32>
    %193 = arith.maximumf %191, %192 : vector<64x32xf32>
    %cst_114 = arith.constant dense<0.000000e+00> : vector<64x32xf32>
    %194 = tpu.matmul %193, %58, %cst_114 {dimension_numbers = #tpu.dot_dimension_numbers<[1], [0], [0], [1], [0, 0, 1, 1], [], []>} : vector<64x32xf32>, vector<32x32xf32>, vector<64x32xf32> -> vector<64x32xf32>
    %cst_115 = arith.constant dense<0.000000e+00> : vector<64x32xf32>
    %195 = tpu.matmul %179, %64, %cst_115 {dimension_numbers = #tpu.dot_dimension_numbers<[1], [0], [0], [1], [0, 0, 1, 1], [], []>} : vector<64x32xf32>, vector<32x32xf32>, vector<64x32xf32> -> vector<64x32xf32>
    %196 = arith.addf %194, %195 : vector<64x32xf32>
    %197 = arith.addf %196, %75 : vector<64x32xf32>
    %198 = arith.negf %197 : vector<64x32xf32>
    %199 = math.exp %198 : vector<64x32xf32>
    %cst_116 = arith.constant 1.000000e+00 : f32
    %200 = vector.broadcast %cst_116 : f32 to vector<64x32xf32>
    %201 = arith.addf %200, %199 : vector<64x32xf32>
    %202 = arith.divf %200, %201 : vector<64x32xf32>
    %cst_117 = arith.constant dense<0.000000e+00> : vector<64x32xf32>
    %203 = tpu.matmul %193, %60, %cst_117 {dimension_numbers = #tpu.dot_dimension_numbers<[1], [0], [0], [1], [0, 0, 1, 1], [], []>} : vector<64x32xf32>, vector<32x32xf32>, vector<64x32xf32> -> vector<64x32xf32>
    %cst_118 = arith.constant dense<0.000000e+00> : vector<64x32xf32>
    %204 = tpu.matmul %179, %66, %cst_118 {dimension_numbers = #tpu.dot_dimension_numbers<[1], [0], [0], [1], [0, 0, 1, 1], [], []>} : vector<64x32xf32>, vector<32x32xf32>, vector<64x32xf32> -> vector<64x32xf32>
    %205 = arith.addf %203, %204 : vector<64x32xf32>
    %206 = arith.addf %205, %82 : vector<64x32xf32>
    %207 = arith.negf %206 : vector<64x32xf32>
    %208 = math.exp %207 : vector<64x32xf32>
    %cst_119 = arith.constant 1.000000e+00 : f32
    %209 = vector.broadcast %cst_119 : f32 to vector<64x32xf32>
    %210 = arith.addf %209, %208 : vector<64x32xf32>
    %211 = arith.divf %209, %210 : vector<64x32xf32>
    %cst_120 = arith.constant dense<0.000000e+00> : vector<64x32xf32>
    %212 = tpu.matmul %193, %62, %cst_120 {dimension_numbers = #tpu.dot_dimension_numbers<[1], [0], [0], [1], [0, 0, 1, 1], [], []>} : vector<64x32xf32>, vector<32x32xf32>, vector<64x32xf32> -> vector<64x32xf32>
    %213 = arith.addf %212, %86 : vector<64x32xf32>
    %cst_121 = arith.constant dense<0.000000e+00> : vector<64x32xf32>
    %214 = tpu.matmul %179, %68, %cst_121 {dimension_numbers = #tpu.dot_dimension_numbers<[1], [0], [0], [1], [0, 0, 1, 1], [], []>} : vector<64x32xf32>, vector<32x32xf32>, vector<64x32xf32> -> vector<64x32xf32>
    %215 = arith.addf %214, %90 : vector<64x32xf32>
    %216 = arith.mulf %202, %215 : vector<64x32xf32>
    %217 = arith.addf %213, %216 : vector<64x32xf32>
    %218 = math.tanh %217 : vector<64x32xf32>
    %cst_122 = arith.constant 1.000000e+00 : f32
    %219 = vector.broadcast %cst_122 : f32 to vector<64x32xf32>
    %220 = arith.subf %219, %211 : vector<64x32xf32>
    %221 = arith.mulf %220, %218 : vector<64x32xf32>
    %222 = arith.mulf %211, %179 : vector<64x32xf32>
    %223 = arith.addf %221, %222 : vector<64x32xf32>
    %c3_i32 = arith.constant 3 : i32
    %224 = arith.index_cast %c3_i32 : i32 to index
    %c0_123 = arith.constant 0 : index
    %c0_124 = arith.constant 0 : index
    %225 = vector.load %arg12[%224, %c0_123, %c0_124] : memref<4x32x32xf32, #tpu.memory_space<vmem>>, vector<1x32x32xf32>
    %226 = vector.shape_cast %225 : vector<1x32x32xf32> to vector<32x32xf32>
    %cst_125 = arith.constant dense<0.000000e+00> : vector<64x32xf32>
    %227 = tpu.matmul %223, %226, %cst_125 {dimension_numbers = #tpu.dot_dimension_numbers<[1], [0], [0], [1], [0, 0, 1, 1], [], []>} : vector<64x32xf32>, vector<32x32xf32>, vector<64x32xf32> -> vector<64x32xf32>
    %228 = arith.index_cast %c3_i32 : i32 to index
    %c0_126 = arith.constant 0 : index
    %c0_127 = arith.constant 0 : index
    %229 = vector.load %arg13[%228, %c0_126, %c0_127] : memref<4x1x32xf32, #tpu.memory_space<vmem>>, vector<1x1x32xf32>
    %230 = vector.shape_cast %229 : vector<1x1x32xf32> to vector<1x32xf32>
    %231 = vector.broadcast %230 : vector<1x32xf32> to vector<64x32xf32>
    %232 = arith.addf %227, %231 : vector<64x32xf32>
    %233 = vector.shape_cast %232 : vector<64x32xf32> to vector<4x16x32xf32>
    "tpu.trace_start"() <{level = 10 : i32, message = "bvw,bwd->bvd"}> : () -> ()
    %cst_128 = arith.constant dense<0.000000e+00> : vector<4x16x32xf32>
    %234 = tpu.matmul %56, %233, %cst_128 {dimension_numbers = #tpu.dot_dimension_numbers<[2], [1], [1], [2], [0, 0, 0, 1, 1, 2], [0], [0]>} : vector<4x16x16xf32>, vector<4x16x32xf32>, vector<4x16x32xf32> -> vector<4x16x32xf32>
    "tpu.trace_stop"() : () -> ()
    %235 = vector.shape_cast %234 : vector<4x16x32xf32> to vector<64x32xf32>
    %cst_129 = arith.constant 0.000000e+00 : f32
    %236 = vector.broadcast %cst_129 : f32 to vector<64x32xf32>
    %237 = arith.maximumf %235, %236 : vector<64x32xf32>
    %cst_130 = arith.constant dense<0.000000e+00> : vector<64x32xf32>
    %238 = tpu.matmul %237, %58, %cst_130 {dimension_numbers = #tpu.dot_dimension_numbers<[1], [0], [0], [1], [0, 0, 1, 1], [], []>} : vector<64x32xf32>, vector<32x32xf32>, vector<64x32xf32> -> vector<64x32xf32>
    %cst_131 = arith.constant dense<0.000000e+00> : vector<64x32xf32>
    %239 = tpu.matmul %223, %64, %cst_131 {dimension_numbers = #tpu.dot_dimension_numbers<[1], [0], [0], [1], [0, 0, 1, 1], [], []>} : vector<64x32xf32>, vector<32x32xf32>, vector<64x32xf32> -> vector<64x32xf32>
    %240 = arith.addf %238, %239 : vector<64x32xf32>
    %241 = arith.addf %240, %75 : vector<64x32xf32>
    %242 = arith.negf %241 : vector<64x32xf32>
    %243 = math.exp %242 : vector<64x32xf32>
    %cst_132 = arith.constant 1.000000e+00 : f32
    %244 = vector.broadcast %cst_132 : f32 to vector<64x32xf32>
    %245 = arith.addf %244, %243 : vector<64x32xf32>
    %246 = arith.divf %244, %245 : vector<64x32xf32>
    %cst_133 = arith.constant dense<0.000000e+00> : vector<64x32xf32>
    %247 = tpu.matmul %237, %60, %cst_133 {dimension_numbers = #tpu.dot_dimension_numbers<[1], [0], [0], [1], [0, 0, 1, 1], [], []>} : vector<64x32xf32>, vector<32x32xf32>, vector<64x32xf32> -> vector<64x32xf32>
    %cst_134 = arith.constant dense<0.000000e+00> : vector<64x32xf32>
    %248 = tpu.matmul %223, %66, %cst_134 {dimension_numbers = #tpu.dot_dimension_numbers<[1], [0], [0], [1], [0, 0, 1, 1], [], []>} : vector<64x32xf32>, vector<32x32xf32>, vector<64x32xf32> -> vector<64x32xf32>
    %249 = arith.addf %247, %248 : vector<64x32xf32>
    %250 = arith.addf %249, %82 : vector<64x32xf32>
    %251 = arith.negf %250 : vector<64x32xf32>
    %252 = math.exp %251 : vector<64x32xf32>
    %cst_135 = arith.constant 1.000000e+00 : f32
    %253 = vector.broadcast %cst_135 : f32 to vector<64x32xf32>
    %254 = arith.addf %253, %252 : vector<64x32xf32>
    %255 = arith.divf %253, %254 : vector<64x32xf32>
    %cst_136 = arith.constant dense<0.000000e+00> : vector<64x32xf32>
    %256 = tpu.matmul %237, %62, %cst_136 {dimension_numbers = #tpu.dot_dimension_numbers<[1], [0], [0], [1], [0, 0, 1, 1], [], []>} : vector<64x32xf32>, vector<32x32xf32>, vector<64x32xf32> -> vector<64x32xf32>
    %257 = arith.addf %256, %86 : vector<64x32xf32>
    %cst_137 = arith.constant dense<0.000000e+00> : vector<64x32xf32>
    %258 = tpu.matmul %223, %68, %cst_137 {dimension_numbers = #tpu.dot_dimension_numbers<[1], [0], [0], [1], [0, 0, 1, 1], [], []>} : vector<64x32xf32>, vector<32x32xf32>, vector<64x32xf32> -> vector<64x32xf32>
    %259 = arith.addf %258, %90 : vector<64x32xf32>
    %260 = arith.mulf %246, %259 : vector<64x32xf32>
    %261 = arith.addf %257, %260 : vector<64x32xf32>
    %262 = math.tanh %261 : vector<64x32xf32>
    %cst_138 = arith.constant 1.000000e+00 : f32
    %263 = vector.broadcast %cst_138 : f32 to vector<64x32xf32>
    %264 = arith.subf %263, %255 : vector<64x32xf32>
    %265 = arith.mulf %264, %262 : vector<64x32xf32>
    %266 = arith.mulf %255, %223 : vector<64x32xf32>
    %267 = arith.addf %265, %266 : vector<64x32xf32>
    %c4_i32 = arith.constant 4 : i32
    %c0_139 = arith.constant 0 : index
    %c0_140 = arith.constant 0 : index
    %268 = vector.load %arg18[%c0_139, %c0_140] : memref<32x32xf32, #tpu.memory_space<vmem>>, vector<32x32xf32>
    %cst_141 = arith.constant dense<0.000000e+00> : vector<64x32xf32>
    %269 = tpu.matmul %91, %268, %cst_141 {dimension_numbers = #tpu.dot_dimension_numbers<[1], [0], [0], [1], [0, 0, 1, 1], [], []>} : vector<64x32xf32>, vector<32x32xf32>, vector<64x32xf32> -> vector<64x32xf32>
    %c0_142 = arith.constant 0 : index
    %c0_143 = arith.constant 0 : index
    %270 = vector.load %arg19[%c0_142, %c0_143] : memref<32x32xf32, #tpu.memory_space<vmem>>, vector<32x32xf32>
    %cst_144 = arith.constant dense<0.000000e+00> : vector<64x32xf32>
    %271 = tpu.matmul %267, %270, %cst_144 {dimension_numbers = #tpu.dot_dimension_numbers<[1], [0], [0], [1], [0, 0, 1, 1], [], []>} : vector<64x32xf32>, vector<32x32xf32>, vector<64x32xf32> -> vector<64x32xf32>
    %272 = arith.addf %269, %271 : vector<64x32xf32>
    %c0_145 = arith.constant 0 : index
    %c0_146 = arith.constant 0 : index
    %273 = vector.load %arg20[%c0_145, %c0_146] : memref<1x32xf32, #tpu.memory_space<vmem>>, vector<1x32xf32>
    %274 = vector.broadcast %273 : vector<1x32xf32> to vector<64x32xf32>
    %275 = arith.addf %272, %274 : vector<64x32xf32>
    %cst_147 = arith.constant 0.000000e+00 : f32
    %276 = vector.broadcast %cst_147 : f32 to vector<64x32xf32>
    %277 = arith.cmpf oge, %275, %276 : vector<64x32xf32>
    %cst_148 = arith.constant 0.00999999977 : f32
    %278 = vector.broadcast %cst_148 : f32 to vector<64x32xf32>
    %279 = arith.mulf %278, %275 : vector<64x32xf32>
    %280 = arith.select %277, %275, %279 : vector<64x32xi1>, vector<64x32xf32>
    %c0_149 = arith.constant 0 : index
    %c0_150 = arith.constant 0 : index
    %281 = vector.load %arg21[%c0_149, %c0_150] : memref<32x128xf32, #tpu.memory_space<vmem>>, vector<32x128xf32>
    %cst_151 = arith.constant dense<0.000000e+00> : vector<64x128xf32>
    %282 = tpu.matmul %280, %281, %cst_151 {dimension_numbers = #tpu.dot_dimension_numbers<[1], [0], [0], [1], [0, 0, 1, 1], [], []>} : vector<64x32xf32>, vector<32x128xf32>, vector<64x128xf32> -> vector<64x128xf32>
    %c0_152 = arith.constant 0 : index
    %c0_153 = arith.constant 0 : index
    %283 = vector.load %arg22[%c0_152, %c0_153] : memref<1x128xf32, #tpu.memory_space<vmem>>, vector<1x128xf32>
    %284 = vector.broadcast %283 : vector<1x128xf32> to vector<64x128xf32>
    %285 = arith.addf %282, %284 : vector<64x128xf32>
    %286 = vector.shape_cast %285 : vector<64x128xf32> to vector<4x16x128xf32>
    %c0_154 = arith.constant 0 : index
    %c0_155 = arith.constant 0 : index
    %c0_156 = arith.constant 0 : index
    %287 = vector.load %arg23[%c0_154, %c0_155, %c0_156] : memref<4x16x128xf32, #tpu.memory_space<vmem>>, vector<4x16x128xf32>
    tpu.vector_store %arg23[%c0_154, %c0_155, %c0_156], %286 {strides = array<i32>} : memref<4x16x128xf32, #tpu.memory_space<vmem>>, vector<4x16x128xf32>,
    return
  }
  func.func @transform_0(%arg0: i32) -> (i32, i32, i32) {
    %c0_i32 = arith.constant 0 : i32
    %c0_i32_0 = arith.constant 0 : i32
    %c0_i32_1 = arith.constant 0 : i32
    return %arg0, %c0_i32, %c0_i32_0 : i32, i32, i32
  }
  func.func @transform_1(%arg0: i32) -> (i32, i32, i32) {
    %c0_i32 = arith.constant 0 : i32
    %c0_i32_0 = arith.constant 0 : i32
    %c0_i32_1 = arith.constant 0 : i32
    return %arg0, %c0_i32, %c0_i32_0 : i32, i32, i32
  }
  func.func @transform_2(%arg0: i32) -> (i32, i32, i32) {
    %c0_i32 = arith.constant 0 : i32
    %c0_i32_0 = arith.constant 0 : i32
    %c0_i32_1 = arith.constant 0 : i32
    return %arg0, %c0_i32, %c0_i32_0 : i32, i32, i32
  }
  func.func @transform_3(%arg0: i32) -> (i32, i32, i32) {
    %c0_i32 = arith.constant 0 : i32
    %c0_i32_0 = arith.constant 0 : i32
    %c0_i32_1 = arith.constant 0 : i32
    return %arg0, %c0_i32, %c0_i32_0 : i32, i32, i32
  }
  func.func @transform_4(%arg0: i32) -> (i32, i32, i32) {
    %c0_i32 = arith.constant 0 : i32
    %c0_i32_0 = arith.constant 0 : i32
    %c0_i32_1 = arith.constant 0 : i32
    return %arg0, %c0_i32, %c0_i32_0 : i32, i32, i32
  }
  func.func @transform_5(%arg0: i32) -> (i32, i32) {
    %c0_i32 = arith.constant 0 : i32
    %c0_i32_0 = arith.constant 0 : i32
    %c0_i32_1 = arith.constant 0 : i32
    return %c0_i32, %c0_i32_0 : i32, i32
  }
  func.func @transform_6(%arg0: i32) -> (i32, i32) {
    %c0_i32 = arith.constant 0 : i32
    %c0_i32_0 = arith.constant 0 : i32
    %c0_i32_1 = arith.constant 0 : i32
    return %c0_i32, %c0_i32_0 : i32, i32
  }
  func.func @transform_7(%arg0: i32) -> (i32, i32) {
    %c0_i32 = arith.constant 0 : i32
    %c0_i32_0 = arith.constant 0 : i32
    %c0_i32_1 = arith.constant 0 : i32
    return %c0_i32, %c0_i32_0 : i32, i32
  }
  func.func @transform_8(%arg0: i32) -> (i32, i32) {
    %c0_i32 = arith.constant 0 : i32
    %c0_i32_0 = arith.constant 0 : i32
    %c0_i32_1 = arith.constant 0 : i32
    return %c0_i32, %c0_i32_0 : i32, i32
  }
  func.func @transform_9(%arg0: i32) -> (i32, i32) {
    %c0_i32 = arith.constant 0 : i32
    %c0_i32_0 = arith.constant 0 : i32
    %c0_i32_1 = arith.constant 0 : i32
    return %c0_i32, %c0_i32_0 : i32, i32
  }
  func.func @transform_10(%arg0: i32) -> (i32, i32) {
    %c0_i32 = arith.constant 0 : i32
    %c0_i32_0 = arith.constant 0 : i32
    %c0_i32_1 = arith.constant 0 : i32
    return %c0_i32, %c0_i32_0 : i32, i32
  }
  func.func @transform_11(%arg0: i32) -> (i32, i32, i32) {
    %c0_i32 = arith.constant 0 : i32
    %c0_i32_0 = arith.constant 0 : i32
    %c0_i32_1 = arith.constant 0 : i32
    %c0_i32_2 = arith.constant 0 : i32
    return %c0_i32, %c0_i32_0, %c0_i32_1 : i32, i32, i32
  }
  func.func @transform_12(%arg0: i32) -> (i32, i32, i32) {
    %c0_i32 = arith.constant 0 : i32
    %c0_i32_0 = arith.constant 0 : i32
    %c0_i32_1 = arith.constant 0 : i32
    %c0_i32_2 = arith.constant 0 : i32
    return %c0_i32, %c0_i32_0, %c0_i32_1 : i32, i32, i32
  }
  func.func @transform_13(%arg0: i32) -> (i32, i32, i32) {
    %c0_i32 = arith.constant 0 : i32
    %c0_i32_0 = arith.constant 0 : i32
    %c0_i32_1 = arith.constant 0 : i32
    %c0_i32_2 = arith.constant 0 : i32
    return %c0_i32, %c0_i32_0, %c0_i32_1 : i32, i32, i32
  }
  func.func @transform_14(%arg0: i32) -> (i32, i32, i32) {
    %c0_i32 = arith.constant 0 : i32
    %c0_i32_0 = arith.constant 0 : i32
    %c0_i32_1 = arith.constant 0 : i32
    %c0_i32_2 = arith.constant 0 : i32
    return %c0_i32, %c0_i32_0, %c0_i32_1 : i32, i32, i32
  }
  func.func @transform_15(%arg0: i32) -> (i32, i32, i32) {
    %c0_i32 = arith.constant 0 : i32
    %c0_i32_0 = arith.constant 0 : i32
    %c0_i32_1 = arith.constant 0 : i32
    %c0_i32_2 = arith.constant 0 : i32
    return %c0_i32, %c0_i32_0, %c0_i32_1 : i32, i32, i32
  }
  func.func @transform_16(%arg0: i32) -> (i32, i32, i32) {
    %c0_i32 = arith.constant 0 : i32
    %c0_i32_0 = arith.constant 0 : i32
    %c0_i32_1 = arith.constant 0 : i32
    %c0_i32_2 = arith.constant 0 : i32
    return %c0_i32, %c0_i32_0, %c0_i32_1 : i32, i32, i32
  }
  func.func @transform_17(%arg0: i32) -> (i32, i32) {
    %c0_i32 = arith.constant 0 : i32
    %c0_i32_0 = arith.constant 0 : i32
    %c0_i32_1 = arith.constant 0 : i32
    return %c0_i32, %c0_i32_0 : i32, i32
  }
  func.func @transform_18(%arg0: i32) -> (i32, i32) {
    %c0_i32 = arith.constant 0 : i32
    %c0_i32_0 = arith.constant 0 : i32
    %c0_i32_1 = arith.constant 0 : i32
    return %c0_i32, %c0_i32_0 : i32, i32
  }
  func.func @transform_19(%arg0: i32) -> (i32, i32) {
    %c0_i32 = arith.constant 0 : i32
    %c0_i32_0 = arith.constant 0 : i32
    %c0_i32_1 = arith.constant 0 : i32
    return %c0_i32, %c0_i32_0 : i32, i32
  }
  func.func @transform_20(%arg0: i32) -> (i32, i32) {
    %c0_i32 = arith.constant 0 : i32
    %c0_i32_0 = arith.constant 0 : i32
    %c0_i32_1 = arith.constant 0 : i32
    return %c0_i32, %c0_i32_0 : i32, i32
  }
  func.func @transform_21(%arg0: i32) -> (i32, i32) {
    %c0_i32 = arith.constant 0 : i32
    %c0_i32_0 = arith.constant 0 : i32
    %c0_i32_1 = arith.constant 0 : i32
    return %c0_i32, %c0_i32_0 : i32, i32
  }
  func.func @transform_22(%arg0: i32) -> (i32, i32, i32) {
    %c0_i32 = arith.constant 0 : i32
    %c0_i32_0 = arith.constant 0 : i32
    %c0_i32_1 = arith.constant 0 : i32
    return %arg0, %c0_i32, %c0_i32_0 : i32, i32, i32
  }
}

</mosaic_0001>

<bundles_post_ra>
// kernel: tpu_custom_call.1
= control target key start
LH: loop header
LB: loop body
LE: loop exit
PB: predicated region body
PF: predicated region fallthrough
CT: control target
= control target key end

     0   :  { %s12156_s0 = inlined_call_operand.vmem [shape: f32[8,16,32], index: 0, kind: input, shape index: {}]   ;;  %s12157_s1 = inlined_call_operand.vmem [shape: f32[8,48,16], index: 1, kind: input, shape index: {}]   ;;  %s12158_s2 = inlined_call_operand.vmem [shape: bf16[8,16,48], index: 2, kind: input, shape index: {}]   ;;  %s12159_s3 = inlined_call_operand.vmem [shape: bf16[8,48,16], index: 3, kind: input, shape index: {}]   ;;  %s12160_s4 = inlined_call_operand.vmem [shape: bf16[8,48,16], index: 4, kind: input, shape index: {}]   ;;  %s12161_s5 = inlined_call_operand.vmem [shape: f32[32,32], index: 5, kind: input, shape index: {}]   ;;  %s12162_s6 = inlined_call_operand.vmem [shape: f32[16,32], index: 6, kind: input, shape index: {}]   ;;  %s12163_s7 = inlined_call_operand.vmem [shape: f32[32,32], index: 7, kind: input, shape index: {}]   ;;  %s12164_s8 = inlined_call_operand.vmem [shape: f32[1,32], index: 8, kind: input, shape index: {}]   ;;  %s12165_s9 = inlined_call_operand.vmem [shape: f32[32,1], index: 9, kind: input, shape index: {}]   ;;  %s12166_s10 = inlined_call_operand.<no memory space> [shape: f32[1,1], index: 10, kind: input, shape index: {}]   ;;  %s12167_s11 = inlined_call_operand.vmem [shape: f32[4,32,32], index: 11, kind: input, shape index: {}]   ;;  %s12168_s12 = inlined_call_operand.vmem [shape: f32[4,1,32], index: 12, kind: input, shape index: {}]   ;;  %s12169_s13 = inlined_call_operand.vmem [shape: f32[3,32,32], index: 13, kind: input, shape index: {}]   ;;  %s12170_s14 = inlined_call_operand.vmem [shape: f32[3,32,32], index: 14, kind: input, shape index: {}]   ;;  %s12171_s15 = inlined_call_operand.vmem [shape: f32[3,1,32], index: 15, kind: input, shape index: {}]   ;;  %s12172_s16 = inlined_call_operand.vmem [shape: f32[3,1,32], index: 16, kind: input, shape index: {}]   ;;  %s12173_s17 = inlined_call_operand.vmem [shape: f32[32,32], index: 17, kind: input, shape index: {}]   ;;  %s12174_s18 = inlined_call_operand.vmem [shape: f32[32,32], index: 18, kind: input, shape index: {}]   ;;  %s12175_s19 = inlined_call_operand.vmem [shape: f32[1,32], index: 19, kind: input, shape index: {}]   ;;  %s12176_s20 = inlined_call_operand.vmem [shape: f32[32,128], index: 20, kind: input, shape index: {}]   ;;  %s12177_s21 = inlined_call_operand.vmem [shape: f32[1,128], index: 21, kind: input, shape index: {}]   ;;  %s12178_s22 = inlined_call_operand.hbm [shape: f32[8,16,128], index: 22, kind: output, shape index: {}]  }
   0x1   :  { %12204 = sst [smem:[#allocation19_spill]] %s12156_s0 }
   0x2   :  { %12205 = sst [smem:[#allocation20_spill]] %s12157_s1 }
   0x3   :  { %12206 = sst [smem:[#allocation21_spill]] %s12158_s2 }
   0x4   :  { %12207 = sst [smem:[#allocation22_spill]] %s12159_s3 }
   0x5   :  { %12208 = sst [smem:[#allocation23_spill]] %s12160_s4 }
   0x6   :  { %12209 = sst [smem:[#allocation24_spill]] %s12161_s5 }
   0x7   :  { %12210 = sst [smem:[#allocation25_spill]] %s12162_s6 }
   0x8   :  { %12211 = sst [smem:[#allocation26_spill]] %s12163_s7 }
   0x9   :  { %12212 = sst [smem:[#allocation27_spill]] %s12164_s8 }
   0xa   :  { %12213 = sst [smem:[#allocation28_spill]] %s12178_s22 }
   0xb   :  { %27 = sst [smem:[#allocation2]] %s12166_s10 }
   0xc   :  { %28 = vsyncpa [#allocation4], 0 }
   0xd   :  { %30 = vsyncpa [#allocation4 + $0x1], 0  ;;  %s8451_s29 = smov 0   ;;  %s8453_s30 = smov 0  }
   0xe   :  { %s8455_s4 = smov 0   ;;  %s8457_s0 = smov 0  }
   0xf LB: > { %12214 = sst [smem:[#allocation6_spill]] %s8315_s29  ;;  %s8472_s10 = sadd.s32 4294967295, %s8327_s0   ;;  %s8327_s0 = sphi %s8457_s0, %s12427_s0   ;;  %s8323_s4 = sphi %s8455_s4, %s12429_s4   ;;  %s8319_s30 = sphi %s8453_s30, %s12431_s30   ;;  %s8315_s29 = sphi %s8451_s29, %s12430_s29  }
  0x10   : > { %12215 = sst [smem:[#allocation7_spill]] %s8323_s4  ;;  %s6955_s23 = sadd.s32 4294967294, %s8327_s0  }
  0x11   : > { %12216 = sst [smem:[#allocation8_spill]] %s8327_s0  ;;  %s8476_s1 = sadd.s32 1, %s8327_s0  }
  0x12   : > { %12217 = sst [smem:[#allocation9_spill]] %s8472_s10  ;;  %s530_s5 = sadd.s32 1, %s8323_s4 }
  0x13   : > { %12218 = sst [smem:[#allocation10_spill]] %s8476_s1  ;;  %s527_s24 = ssub.s32 %s8327_s0, %s8476_s1 }
  0x14   : > { %p540_p0 = scmp.ne.s32.totalorder %s8323_s4, %s8319_s30  ;;  %p528_p1 = scmp.eq.s32.totalorder %s527_s24, 0 }
  0x15   : > { %p541_p2 = scmp.eq.s32.totalorder %s8472_s10, 1  ;;  %p546_p3 = scmp.ne.s32.totalorder %s8319_s30, %s8315_s29 }
  0x16   : > { %p547_p4 = scmp.eq.s32.totalorder %s6955_s23, 1  ;;  %p6958_p7 = scmp.ge.s32.totalorder %s8327_s0, 1 }
  0x17   : > { %s8487_s6 = scalar_select %p528_p1, %s8323_s4, %s530_s5  }
  0x18   : > { %p8489_p5 = por %p541_p2, %p540_p0  ;;  %p8493_p6 = por %p547_p4, %p546_p3 }
  0x19   : > { %12219 = sst [smem:[#allocation11_spill]] %s8487_s6  ;;  %p666_p8 = scmp.lt.s32.totalorder %s8327_s0, 3 }
  0x1a   : > { %s12220_s25 = scalar_select %p8489_p5, 1, 0 }
  0x1b   : > { %s12222_s26 = scalar_select %p8493_p6, 1, 0 }
  0x1c   : > { %12221 = sst [smem:[#allocation12_spill]] %s12220_s25  ;;  %p667_p9 = pnand %p6958_p7, %p666_p8 }
  0x1d   : > { %12223 = sst [smem:[#allocation13_spill]] %s12222_s26 }
  0x1e   : > { %670 = sbr.rel (%p667_p9) target bundleno = 3278 (0xcce), region = 108 }
  0x23   : > { %s6960_s2 = sshll.u32 %s8472_s10, 2  ;;  %s12224_s23 = sld [smem:[#allocation19_spill]]  ;;  %vm933_vm0 = vcmask 130048   ;;  %vm1525_vm1 = vcmask 261120  }
  0x24   : > { %p754_p10 = scmp.lt.s32.totalorder %s6960_s2, 7  ;;  %s12225_s1 = sld [smem:[#allocation22_spill]] }
  0x25   : > { %s12226_s22 = sld [smem:[#allocation23_spill]] }
  0x26   : > { %s12433_s2 = smov (!%p754_p10, %s6960_s2), 7  ;;  %s12227_s4 = sld [smem:[#allocation24_spill]] }
  0x27   : > { %s7545_s27 = sshll.u32 %s12433_s2, 4  ;;  %s7691_s24 = smul.u32 24, %s12433_s2 }
  0x28   : > { %s12229_s7 = sld [smem:[#allocation26_spill]]  ;;  %s7690_s25 = smul.u32 48, %s12433_s2 }
  0x29   : > { %s8506_s5 = scalar_lea.vmem %s12224_s23, %s7545_s27  ;;  %s12230_s29 = sld [smem:[#allocation25_spill]] }
  0x2a   : > { %v790_v0 = vld [vmem:[%s8506_s5 + $0x8] sm:$0xff]  ;;  %v789_v1 = vld [vmem:[%s8506_s5] sm:$0xff]  ;;  %s8514_s26 = scalar_lea.vmem %s12225_s1, %s7691_s24  ;;  %v792_v2 = vld [vmem:[%s8506_s5 + $0x18] sm:$0xff]  ;;  %s12233_s8 = sld [smem:[#allocation27_spill]] }
  0x2b   : > { %966 = vmatpush.msra.mxu1 %v790_v0  ;;  %1178 = vmatpush.msra.mxu0 %v790_v0  ;;  %s8519_s27 = scalar_lea.vmem %s12226_s22, %s7691_s24  ;;  %v7566_v3 = vld [vmem:[%s8514_s26] sm:$0xff]   ;;  %v7664_v5 = vld [vmem:[%s8514_s26 + $0x8] sm:$0xff]   ;;  %v791_v8 = vld [vmem:[%s8506_s5 + $0x10] sm:$0xff]  ;;  %s12232_s24 = sld [smem:[#allocation20_spill]] }
  0x2c   : > { %v8524_v4 = vld [vmem:[%s8519_s27] sm:$0xff]   ;;  %7686 = vmatpush.msra.mxu2 %v790_v0  ;;  %7687 = vmatpush.msra.mxu3 %v790_v0  ;;  %v7567_v6 = vunpack.c.l.bf16 %v7566_v3  ;;  %v7665_v9 = vld [vmem:[%s8514_s26 + $0x10] sm:$0xff]   ;;  %v7571_v10 = vunpack.c.l.bf16 %v7664_v5  ;;  %v794_v11 = vld [vmem:[%s8506_s5 + $0x28] sm:$0xff]  ;;  %v7568_v14 = vunpack.c.h.bf16 %v7566_v3  ;;  %v7572_v16 = vunpack.c.h.bf16 %v7664_v5  ;;  %s12228_s1 = smov %s12227_s4  ;;  %s7546_s28 = sshll.u32 %s12433_s2, 3 }
  0x2d   : > { %967 = vmatpush.msra.mxu1 %v789_v1  ;;  %1179 = vmatpush.msra.mxu0 %v789_v1  ;;  %v7615_v7 = vunpack.c.l.bf16 %v8524_v4  ;;  %v7575_v12 = vunpack.c.l.bf16 %v7665_v9  ;;  %v793_v13 = vld [vmem:[%s8506_s5 + $0x20] sm:$0xff]  ;;  %v7616_v15 = vunpack.c.h.bf16 %v8524_v4  ;;  %v7576_v17 = vunpack.c.h.bf16 %v7665_v9  ;;  %v7666_v18 = vld [vmem:[%s8514_s26 + $0x18] sm:$0xff]   ;;  %v8545_v19 = vld [vmem:[%s8519_s27 + $0x8] sm:$0xff]  }
  0x2e   : > { %7688 = vmatpush.msra.mxu2 %v789_v1  ;;  %6972 = vmatmul.msk.f32.vlgmr.msra.gmra.mxu1 %vm933_vm0, %v7567_v6  ;;  %v7669_v20 = vld [vmem:[%s8514_s26 + $0x30] sm:$0xff]   ;;  %v7579_v21 = vunpack.c.l.bf16 %v7666_v18  ;;  %v7619_v22 = vunpack.c.l.bf16 %v8545_v19  ;;  %v7580_v24 = vunpack.c.h.bf16 %v7666_v18  ;;  %v7620_v25 = vunpack.c.h.bf16 %v8545_v19  ;;  %v7667_v27 = vld [vmem:[%s8514_s26 + $0x20] sm:$0xff]   ;;  %v7670_v29 = vld [vmem:[%s8514_s26 + $0x38] sm:$0xff]  }
  0x2f   : > { %1019 = vmatpush.msrb.mxu1 %v792_v2  ;;  %6996 = vmatmul.msk.f32.vlgmr.msra.gmra.mxu0 %vm933_vm0, %v7615_v7  ;;  %v7591_v23 = vunpack.c.l.bf16 %v7669_v20  ;;  %v7592_v26 = vunpack.c.h.bf16 %v7669_v20  ;;  %v8563_v28 = vld [vmem:[%s8519_s27 + $0x10] sm:$0xff]   ;;  %v7583_v30 = vunpack.c.l.bf16 %v7667_v27  ;;  %v7595_v32 = vunpack.c.l.bf16 %v7670_v29  ;;  %v7668_v36 = vld [vmem:[%s8514_s26 + $0x28] sm:$0xff]   ;;  %v7671_v37 = vld [vmem:[%s8514_s26 + $0x40] sm:$0xff]   ;;  %s12231_s10 = smov %s12230_s29 }
  0x30   : > { %6974 = vmatmul.msk.f32.vlgmr.msra.gmra.mxu2 %vm933_vm0, %v7571_v10  ;;  %7689 = vmatpush.msra.mxu3 %v789_v1  ;;  %v7623_v31 = vunpack.c.l.bf16 %v8563_v28  ;;  %v7584_v33 = vunpack.c.h.bf16 %v7667_v27  ;;  %v7624_v34 = vunpack.c.h.bf16 %v8563_v28  ;;  %v7596_v35 = vunpack.c.h.bf16 %v7670_v29  ;;  %v8585_v42 = vld [vmem:[%s8519_s27 + $0x18] sm:$0xff]   ;;  %v8589_v43 = vld [vmem:[%s8519_s27 + $0x30] sm:$0xff]   ;;  %v7672_v49 = vld [vmem:[%s8514_s26 + $0x48] sm:$0xff]  }
  0x31   : > { %1020 = vmatpush.msrb.mxu1 %v791_v8  ;;  %1072 = vmatpush.msrb.mxu2 %v794_v11  ;;  %v7587_v38 = vunpack.c.l.bf16 %v7668_v36  ;;  %v7599_v39 = vunpack.c.l.bf16 %v7671_v37  ;;  %v7588_v40 = vunpack.c.h.bf16 %v7668_v36  ;;  %v7600_v41 = vunpack.c.h.bf16 %v7671_v37  ;;  %v796_v46 = vld [vmem:[%s8506_s5 + $0x38] sm:$0xff]  ;;  %v8607_v50 = vld [vmem:[%s8519_s27 + $0x20] sm:$0xff]   ;;  %v795_v51 = vld [vmem:[%s8506_s5 + $0x30] sm:$0xff]  ;;  %s8663_s22 = scalar_lea.vmem %s12232_s24, %s7690_s25 }
  0x32   : > { %6976 = vmatmul.msk.f32.vlgmr.msra.gmra.mxu3 %vm933_vm0, %v7575_v12  ;;  %v7627_v44 = vunpack.c.l.bf16 %v8585_v42  ;;  %v7639_v45 = vunpack.c.l.bf16 %v8589_v43  ;;  %v7628_v47 = vunpack.c.h.bf16 %v8585_v42  ;;  %v7640_v48 = vunpack.c.h.bf16 %v8589_v43  ;;  %v1361_v53 = vld [vmem:[%s12227_s4 + $0x18] sm:$0xff]  ;;  %v1360_v55 = vld [vmem:[%s12228_s1 + $0x10] sm:$0xff]  ;;  %v1363_v58 = vld [vmem:[%s12230_s29 + $0x8] sm:$0xff]  ;;  %s12421_s4 = sld [smem:[#allocation9_spill]] }
  0x33   : > { %1231 = vmatpush.msra.mxu1 %v792_v2  ;;  %1073 = vmatpush.msrb.mxu2 %v793_v13  ;;  %v7603_v52 = vunpack.c.l.bf16 %v7672_v49  ;;  %v1690_v54 = vld [vmem:[%s12229_s7 + $0x18] sm:$0xff]  ;;  %v1689_v57 = vld [vmem:[%s12229_s7 + $0x10] sm:$0xff]  ;;  %v1359_v59 = vld [vmem:[%s12228_s1 + $0x8] sm:$0xff]  ;;  %v7631_v60 = vunpack.c.l.bf16 %v8607_v50  ;;  %v7604_v63 = vunpack.c.h.bf16 %v7672_v49  ;;  %v7632_v1 = vunpack.c.h.bf16 %v8607_v50 }
  0x34   : > { %1125 = vmatpush.msrb.mxu3 %v796_v46  ;;  %v8623_v56 = vld [vmem:[%s8519_s27 + $0x38] sm:$0xff]   ;;  %1450 = vmatpush.msrb.mxu0 %v1363_v58  ;;  %v1688_v61 = vld [vmem:[%s12229_s7 + $0x8] sm:$0xff]  ;;  %v7673_v0 = vld [vmem:[%s8514_s26 + $0x50] sm:$0xff]  }
  0x35   : > { %1232 = vmatpush.msra.mxu1 %v791_v8  ;;  %1284 = vmatpush.msra.mxu2 %v794_v11  ;;  %v7643_v62 = vunpack.c.l.bf16 %v8623_v56  ;;  %v7644_v2 = vunpack.c.h.bf16 %v8623_v56  ;;  %v7607_v3 = vunpack.c.l.bf16 %v7673_v0  ;;  %v8655_v5 = vld [vmem:[%s8519_s27 + $0x28] sm:$0xff]   ;;  %v8666_v6 = vld [vmem:[%s8519_s27 + $0x40] sm:$0xff]   ;;  %v7674_v20 = vld [vmem:[%s8514_s26 + $0x58] sm:$0xff]  }
  0x36   : > { %6973 = vmatmul.msk.f32.gmra.mxu1 %vm933_vm0, %v7568_v14  ;;  %1126 = vmatpush.msrb.mxu3 %v795_v51  ;;  %v7635_v8 = vunpack.c.l.bf16 %v8655_v5  ;;  %v1362_v9 = vld [vmem:[%s12231_s10] sm:$0xff]  ;;  %v7647_v12 = vunpack.c.l.bf16 %v8666_v6  ;;  %v7608_v14 = vunpack.c.h.bf16 %v7673_v0  ;;  %v798_v18 = vld [vmem:[%s8663_s22 + $0x8] sm:$0xff]  ;;  %v804_v58 = vld [vmem:[%s8663_s22 + $0x38] sm:$0xff] }
  0x37   : > { %1285 = vmatpush.msra.mxu2 %v793_v13  ;;  %6997 = vmatmul.msk.f32.gmra.mxu0 %vm933_vm0, %v7616_v15  ;;  %v1358_v10 = vld [vmem:[%s12228_s1] sm:$0xff]  ;;  %v8707_v27 = vld [vmem:[%s8519_s27 + $0x48] sm:$0xff]  }
  0x38   : > { %6975 = vmatmul.msk.f32.gmra.mxu2 %vm933_vm0, %v7572_v16  ;;  %1337 = vmatpush.msra.mxu3 %v796_v46  ;;  %v1687_v11 = vld [vmem:[%s12229_s7] sm:$0xff]  ;;  %v7636_v16 = vunpack.c.h.bf16 %v8655_v5  ;;  %v12191_v29 = vunpack.c.l.bf16 %v8707_v27  ;;  %s7548_s0 = sshll.u32 %s12421_s4, 6 }
  0x39   : > { %1451 = vmatpush.msrb.mxu0 %v1362_v9  ;;  %v797_v13 = vld [vmem:[%s8663_s22] sm:$0xff] }
  0x3a   : > { %6977 = vmatmul.msk.f32.gmra.mxu3 %vm933_vm0, %v7576_v17  ;;  %v7648_v17 = vunpack.c.h.bf16 %v8666_v6 }
  0x3b   : > { %1338 = vmatpush.msra.mxu3 %v795_v51 }
  0x3e   : > { %6978 = vmatmul.msk.f32.vlgmr.msrb.gmra.mxu1 %vm933_vm0, %v7579_v21  ;;  %v7611_v21 = vunpack.c.l.bf16 %v7674_v20 }
  0x3f   : > { %6998 = vmatmul.msk.f32.gmra.mxu0 %vm933_vm0, %v7619_v22  ;;  %1610 = vmatpush.msrb.mxu1 %v1361_v53 }
  0x40   : > { %6984 = vmatmul.msk.f32.vlgmr.msrb.gmra.mxu2 %vm933_vm0, %v7591_v23  ;;  %v799_v23 = vld [vmem:[%s8663_s22 + $0x10] sm:$0xff] }
  0x41   : > { %1775 = vmatpush.msrb.mxu2 %v1690_v54  ;;  %1611 = vmatpush.msrb.mxu1 %v1360_v55 }
  0x42   : > { %6990 = vmatmul.msk.f32.vlgmr.msrb.gmra.mxu3 %vm933_vm0, %v7603_v52  ;;  %v803_v52 = vld [vmem:[%s8663_s22 + $0x30] sm:$0xff] }
  0x43   : > { %1776 = vmatpush.msrb.mxu2 %v1689_v57  ;;  %1612 = vmatpush.msrb.mxu1 %v1359_v59  ;;  %v8746_v59 = vld [vmem:[%s8519_s27 + $0x58] sm:$0xff]  }
  0x45   : > { %1777 = vmatpush.msrb.mxu2 %v1688_v61  ;;  %1613 = vmatpush.msrb.mxu1 %v1358_v10  ;;  %v7659_v61 = vunpack.c.l.bf16 %v8746_v59  ;;  %v805_v10 = vld [vmem:[%s8663_s22 + $0x40] sm:$0xff] }
  0x46   : > { %6979 = vmatmul.msk.f32.gmra.mxu1 %vm933_vm0, %v7580_v24  ;;  %v7612_v24 = vunpack.c.h.bf16 %v7674_v20 }
  0x47   : > { %6999 = vmatmul.msk.f32.gmra.mxu0 %vm933_vm0, %v7620_v25  ;;  %1778 = vmatpush.msrb.mxu2 %v1687_v11  ;;  %v7660_v11 = vunpack.c.h.bf16 %v8746_v59  ;;  %v12248_v59 = vunpack.c.l.bf16 %v8707_v27 }
  0x48   : > { %6985 = vmatmul.msk.f32.gmra.mxu2 %vm933_vm0, %v7592_v26  ;;  %v800_v26 = vld [vmem:[%s8663_s22 + $0x18] sm:$0xff] }
  0x4a   : > { %6991 = vmatmul.msk.f32.gmra.mxu3 %vm933_vm0, %v7604_v63 }
  0x4e   : > { %6980 = vmatmul.msk.f32.gmra.mxu1 %vm933_vm0, %v7583_v30 }
  0x4f   : > { %7000 = vmatmul.msk.f32.gmra.mxu0 %vm933_vm0, %v7623_v31 }
  0x50   : > { %6986 = vmatmul.msk.f32.gmra.mxu2 %vm933_vm0, %v7595_v32 }
  0x52   : > { %6992 = vmatmul.msk.f32.gmra.mxu3 %vm933_vm0, %v7607_v3 }
  0x56   : > { %6981 = vmatmul.msk.f32.gmra.mxu1 %vm933_vm0, %v7584_v33  ;;  %v801_v33 = vld [vmem:[%s8663_s22 + $0x20] sm:$0xff] }
  0x57   : > { %7001 = vmatmul.msk.f32.gmra.mxu0 %vm933_vm0, %v7624_v34 }
  0x58   : > { %6987 = vmatmul.msk.f32.gmra.mxu2 %vm933_vm0, %v7596_v35  ;;  %v12192_v35 = vunpack.c.h.bf16 %v8707_v27 }
  0x5a   : > { %6993 = vmatmul.msk.f32.gmra.mxu3 %vm933_vm0, %v7608_v14 }
  0x5e   : > { %6982 = vmatmul.msk.f32.gmra.mxu1 %vm933_vm0, %v7587_v38 }
  0x5f   : > { %7020 = vmatmul.msk.f32.vlgmr.msrb.gmra.mxu0 %vm933_vm0, %v797_v13 }
  0x60   : > { %6988 = vmatmul.msk.f32.gmra.mxu2 %vm933_vm0, %v7599_v39  ;;  %v802_v39 = vld [vmem:[%s8663_s22 + $0x28] sm:$0xff] }
  0x62   : > { %6994 = vmatmul.msk.f32.gmra.mxu3 %vm933_vm0, %v7611_v21  ;;  %v806_v21 = vld [vmem:[%s8663_s22 + $0x48] sm:$0xff] }
  0x66   : > { %6983 = vmatmul.msk.f32.gmra.mxu1 %vm933_vm0, %v7588_v40  ;;  %v8725_v40 = vld [vmem:[%s8519_s27 + $0x50] sm:$0xff]   ;;  %s12244_s27 = sld [smem:[#allocation21_spill]] }
  0x67   : > { %7021 = vmatmul.msk.f32.gmra.mxu0 %vm933_vm0, %v798_v18  ;;  %v7656_v53 = vunpack.c.h.bf16 %v8725_v40 }
  0x68   : > { %6989 = vmatmul.msk.f32.gmra.mxu2 %vm933_vm0, %v7600_v41  ;;  %v7655_v41 = vunpack.c.l.bf16 %v8725_v40 }
  0x6a   : > { %6995 = vmatmul.msk.f32.gmra.mxu3 %vm933_vm0, %v7612_v24 }
  0x6c   : > { %s9048_s25 = scalar_lea.vmem %s12244_s27, %s7546_s28  ;;  %s12423_s28 = sld [smem:[#allocation28_spill]] }
  0x6e   : > { %7002 = vmatmul.msk.f32.vlgmr.msra.gmra.mxu1 %vm933_vm0, %v7627_v44 }
  0x6f   : > { %7022 = vmatmul.msk.f32.gmra.mxu0 %vm933_vm0, %v799_v23 }
  0x70   : > { %7008 = vmatmul.msk.f32.vlgmr.msra.gmra.mxu2 %vm933_vm0, %v7639_v45 }
  0x72   : > { %7014 = vmatmul.msk.f32.vlgmr.msra.gmra.mxu3 %vm933_vm0, %v12191_v29  ;;  %s6841_s26 = scalar_lea.hbm %s12423_s28, %s7548_s0  ;;  %s8285_s0 = scalar_lea.hbm %s12423_s28, 128 }
  0x73   : > { %s6844_s27 = sshll.u32 %s6841_s26, 4  ;;  %s6845_s27 = int_to_ptr.hbm [resolvable:$true] %s6844_s27 }
  0x74   : > { %s8279_s24 = sshra.s32 %s6845_s27, 4  ;;  %s8280_s24 = int_to_ptr.hbm [resolvable:$true] %s8279_s24 }
  0x75   : > { %s8281_s29 = scalar_lea.hbm %s8280_s24, 64  ;;  %p8286_p0 = scmp.lt.s32.totalorder %s8280_s24, %s12423_s28 }
  0x76   : > { %7003 = vmatmul.msk.f32.gmra.mxu1 %vm933_vm0, %v7628_v47  ;;  %p8282_p11 = scmp.ne.s32.totalorder %s8280_s24, %s8281_s29  ;;  %p8287_p1 = scmp.lt.s32.totalorder %s8285_s0, %s8281_s29 }
  0x77   : > { %7023 = vmatmul.msk.f32.gmra.mxu0 %vm933_vm0, %v800_v26  ;;  %v807_v26 = vld [vmem:[%s8663_s22 + $0x50] sm:$0xff] }
  0x78   : > { %7009 = vmatmul.msk.f32.gmra.mxu2 %vm933_vm0, %v7640_v48  ;;  %p8283_p12 = pnand %p8282_p11, %p8489_p5  ;;  %p8288_p2 = por %p8287_p1, %p8286_p0 }
  0x7a   : > { %7015 = vmatmul.msk.f32.gmra.mxu3 %vm933_vm0, %v12192_v35  ;;  %p8284_p13 = pneg %p8283_p12 }
  0x7c   : > { %p8289_p3 = pnand %p8288_p2, %p8284_p13 }
  0x7e   : > { %7004 = vmatmul.msk.f32.gmra.mxu1 %vm933_vm0, %v7631_v60 }
  0x7f   : > { %7024 = vmatmul.msk.f32.gmra.mxu0 %vm933_vm0, %v801_v33  ;;  %v808_v33 = vld [vmem:[%s8663_s22 + $0x58] sm:$0xff] }
  0x80   : > { %7010 = vmatmul.msk.f32.gmra.mxu2 %vm933_vm0, %v7643_v62 }
  0x82   : > { %7016 = vmatmul.msk.f32.gmra.mxu3 %vm933_vm0, %v7655_v41 }
  0x86   : > { %7005 = vmatmul.msk.f32.gmra.mxu1 %vm933_vm0, %v7632_v1 }
  0x87   : > { %7025 = vmatmul.msk.f32.gmra.mxu0 %vm933_vm0, %v802_v39 }
  0x88   : > { %7011 = vmatmul.msk.f32.gmra.mxu2 %vm933_vm0, %v7644_v2 }
  0x8a   : > { %7017 = vmatmul.msk.f32.gmra.mxu3 %vm933_vm0, %v7656_v53 }
  0x8e   : > { %7006 = vmatmul.msk.f32.gmra.mxu1 %vm933_vm0, %v7635_v8 }
  0x8f   : > { %7026 = vmatmul.msk.f32.gmra.mxu0 %vm933_vm0, %v803_v52 }
  0x90   : > { %7012 = vmatmul.msk.f32.gmra.mxu2 %vm933_vm0, %v7647_v12 }
  0x92   : > { %7018 = vmatmul.msk.f32.gmra.mxu3 %vm933_vm0, %v7659_v61 }
  0x96   : > { %7007 = vmatmul.msk.f32.gmra.mxu1 %vm933_vm0, %v7636_v16 }
  0x97   : > { %7027 = vmatmul.msk.f32.gmra.mxu0 %vm933_vm0, %v804_v58 }
  0x98   : > { %7013 = vmatmul.msk.f32.gmra.mxu2 %vm933_vm0, %v7648_v17 }
  0x9a   : > { %7019 = vmatmul.msk.f32.gmra.mxu3 %vm933_vm0, %v7660_v11 }
  0x9f   : > { %7028 = vmatmul.msk.f32.gmra.mxu0 %vm933_vm0, %v805_v10 }
  0xa7   : > { %7029 = vmatmul.msk.f32.gmra.mxu0 %vm933_vm0, %v806_v21 }
  0xab   : > { %v969_v30 = vpop.f32.mrf.mxu1 }
  0xac   : > { %v1181_v32 = vpop.f32.mrf.mxu0  ;;  %7044 = vmatmul.msk.f32.vlgmr.msrb.gmra.mxu1 %vm1525_vm1, %v969_v30 }
  0xad   : > { %7068 = vmatmul.msk.f32.vlgmr.msrb.gmra.mxu2 %vm1525_vm1, %v1181_v32 }
  0xaf   : > { %7030 = vmatmul.msk.f32.gmra.mxu0 %vm933_vm0, %v807_v26  ;;  %v814_v26 = vld [vmem:[%s8663_s22 + $0x88] sm:$0xff] }
  0xb3   : > { %v975_v36 = vpop.f32.mrf.mxu2  ;;  %v972_v37 = vpop.f32.mrf.mxu1 }
  0xb4   : > { %v1184_v38 = vpop.f32.mrf.mxu0  ;;  %7045 = vmatmul.msk.f32.gmra.mxu1 %vm1525_vm1, %v972_v37 }
  0xb5   : > { %7069 = vmatmul.msk.f32.gmra.mxu2 %vm1525_vm1, %v1184_v38  ;;  %v981_v63 = vpop.f32.mrf.mxu3  ;;  %v809_v38 = vld [vmem:[%s8663_s22 + $0x60] sm:$0xff] }
  0xb7   : > { %7031 = vmatmul.msk.f32.gmra.mxu0 %vm933_vm0, %v808_v33  ;;  %v1976_v33 = vld [vmem:[%s12165_s9] sm:$0xff] }
  0xbb   : > { %v978_v46 = vpop.f32.mrf.mxu2  ;;  %v1022_v49 = vpop.f32.mrf.mxu1 }
  0xbc   : > { %v1187_v51 = vpop.f32.mrf.mxu0  ;;  %7046 = vmatmul.msk.f32.gmra.mxu1 %vm1525_vm1, %v975_v36 }
  0xbd   : > { %7070 = vmatmul.msk.f32.gmra.mxu2 %vm1525_vm1, %v1187_v51  ;;  %v984_v13 = vpop.f32.mrf.mxu3  ;;  %v811_v51 = vld [vmem:[%s8663_s22 + $0x70] sm:$0xff] }
  0xbf   : > { %7032 = vmatmul.msk.f32.gmra.mxu0 %vm933_vm0, %v809_v38 }
  0xc3   : > { %v8740_v54 = vpop.f32.mrf.mxu2  ;;  %v1025_v55 = vpop.f32.mrf.mxu1 }
  0xc4   : > { %v1190_v57 = vpop.f32.mrf.mxu0  ;;  %7047 = vmatmul.msk.f32.gmra.mxu1 %vm1525_vm1, %v978_v46 }
  0xc5   : > { %7071 = vmatmul.msk.f32.gmra.mxu2 %vm1525_vm1, %v1190_v57  ;;  %v812_v57 = vld [vmem:[%s8663_s22 + $0x78] sm:$0xff] }
  0xcb   : > { %v8753_v0 = vpop.f32.mrf.mxu2  ;;  %v1028_v3 = vpop.f32.mrf.mxu1 }
  0xcc   : > { %v1193_v9 = vpop.f32.mrf.mxu0  ;;  %7048 = vmatmul.msk.f32.gmra.mxu1 %vm1525_vm1, %v981_v63  ;;  %v8794_v63 = vpop.f32.mrf.mxu3 }
  0xcd   : > { %7072 = vmatmul.msk.f32.gmra.mxu2 %vm1525_vm1, %v1193_v9  ;;  %v813_v9 = vld [vmem:[%s8663_s22 + $0x80] sm:$0xff] }
  0xd3   : > { %v8763_v14 = vpop.f32.mrf.mxu2  ;;  %v1031_v18 = vpop.f32.mrf.mxu1 }
  0xd4   : > { %v1196_v20 = vpop.f32.mrf.mxu0  ;;  %7049 = vmatmul.msk.f32.gmra.mxu1 %vm1525_vm1, %v984_v13 }
  0xd5   : > { %7073 = vmatmul.msk.f32.gmra.mxu2 %vm1525_vm1, %v1196_v20  ;;  %v1979_v20 = vld [vmem:[%s12165_s9 + $0x18] sm:$0xff] }
  0xd6   : > { %2066 = vmatpush.msrb.mxu3 %v1979_v20 }
  0xdb   : > { %v8769_v23 = vpop.f32.mrf.mxu2  ;;  %v1034_v24 = vpop.f32.mrf.mxu1 }
  0xdc   : > { %7050 = vmatmul.msk.f32.gmra.mxu1 %vm1525_vm1, %v1022_v49  ;;  %v810_v49 = vld [vmem:[%s8663_s22 + $0x68] sm:$0xff]  ;;  %v1453_v13 = vpop.f32.mrf.mxu0 }
  0xdd   : > { %7033 = vmatmul.msk.f32.gmra.mxu0 %vm933_vm0, %v810_v49 }
  0xe3   : > { %v8774_v30 = vpop.f32.mrf.mxu2  ;;  %v1037_v32 = vpop.f32.mrf.mxu1 }
  0xe4   : > { %7051 = vmatmul.msk.f32.gmra.mxu1 %vm1525_vm1, %v1025_v55 }
  0xe5   : > { %7034 = vmatmul.msk.f32.gmra.mxu0 %vm933_vm0, %v811_v51 }
  0xeb   : > { %v8779_v36 = vpop.f32.mrf.mxu2  ;;  %v1234_v37 = vpop.f32.mrf.mxu1 }
  0xec   : > { %7052 = vmatmul.msk.f32.gmra.mxu1 %vm1525_vm1, %v1028_v3  ;;  %7074 = vmatmul.msk.f32.gmra.mxu2 %vm1525_vm1, %v1234_v37  ;;  %v1456_v37 = vpop.f32.mrf.mxu0 }
  0xed   : > { %7035 = vmatmul.msk.f32.gmra.mxu0 %vm933_vm0, %v812_v57 }
  0xf3   : > { %v1237_v39 = vpop.f32.mrf.mxu1  ;;  %v1287_v46 = vpop.f32.mrf.mxu2 }
  0xf4   : > { %7053 = vmatmul.msk.f32.gmra.mxu1 %vm1525_vm1, %v1031_v18  ;;  %7075 = vmatmul.msk.f32.gmra.mxu2 %vm1525_vm1, %v1237_v39  ;;  %v8803_v18 = vpop.f32.mrf.mxu3  ;;  %v815_v39 = vld [vmem:[%s8663_s22 + $0x90] sm:$0xff] }
  0xf5   : > { %7036 = vmatmul.msk.f32.gmra.mxu0 %vm933_vm0, %v813_v9 }
  0xfb   : > { %v1240_v52 = vpop.f32.mrf.mxu1  ;;  %v1290_v55 = vpop.f32.mrf.mxu2 }
  0xfc   : > { %7054 = vmatmul.msk.f32.gmra.mxu1 %vm1525_vm1, %v1034_v24  ;;  %7076 = vmatmul.msk.f32.gmra.mxu2 %vm1525_vm1, %v1240_v52  ;;  %v1978_v24 = vld [vmem:[%s12165_s9 + $0x10] sm:$0xff]  ;;  %v8823_v38 = vpop.f32.mrf.mxu3  ;;  %v816_v52 = vld [vmem:[%s8663_s22 + $0x98] sm:$0xff] }
  0xfd   : > { %2067 = vmatpush.msrb.mxu3 %v1978_v24  ;;  %7037 = vmatmul.msk.f32.gmra.mxu0 %vm933_vm0, %v814_v26  ;;  %v818_v26 = vld [vmem:[%s8663_s22 + $0xa8] sm:$0xff] }
 0x103   : > { %v1243_v58 = vpop.f32.mrf.mxu1  ;;  %v1293_v3 = vpop.f32.mrf.mxu2 }
 0x104   : > { %7055 = vmatmul.msk.f32.gmra.mxu1 %vm1525_vm1, %v1037_v32  ;;  %7077 = vmatmul.msk.f32.gmra.mxu2 %vm1525_vm1, %v1243_v58  ;;  %v1977_v32 = vld [vmem:[%s12165_s9 + $0x8] sm:$0xff]  ;;  %v8830_v51 = vpop.f32.mrf.mxu3 }
 0x105   : > { %2068 = vmatpush.msrb.mxu3 %v1977_v32  ;;  %7038 = vmatmul.msk.f32.gmra.mxu0 %vm933_vm0, %v815_v39 }
 0x107   : > { %2069 = vmatpush.msrb.mxu3 %v1976_v33 }
 0x10b   : > { %v1246_v10 = vpop.f32.mrf.mxu1  ;;  %v1296_v21 = vpop.f32.mrf.mxu2 }
 0x10c   : > { %7056 = vmatmul.msk.f32.gmra.mxu1 %vm1525_vm1, %v8740_v54  ;;  %7078 = vmatmul.msk.f32.gmra.mxu2 %vm1525_vm1, %v1246_v10  ;;  %v8838_v10 = vpop.f32.mrf.mxu3 }
 0x10d   : > { %7039 = vmatmul.msk.f32.gmra.mxu0 %vm933_vm0, %v816_v52 }
 0x113   : > { %v1249_v54 = vpop.f32.mrf.mxu1  ;;  %v1299_v49 = vpop.f32.mrf.mxu2 }
 0x114   : > { %7057 = vmatmul.msk.f32.gmra.mxu1 %vm1525_vm1, %v8753_v0  ;;  %7079 = vmatmul.msk.f32.gmra.mxu2 %vm1525_vm1, %v1249_v54  ;;  %v1459_v0 = vpop.f32.mrf.mxu0 }
 0x11b   : > { %v1302_v57 = vpop.f32.mrf.mxu2 }
 0x11c   : > { %7058 = vmatmul.msk.f32.gmra.mxu1 %vm1525_vm1, %v8763_v14  ;;  %7080 = vmatmul.msk.f32.gmra.mxu2 %vm1525_vm1, %v1287_v46  ;;  %v1462_v9 = vpop.f32.mrf.mxu0  ;;  %v817_v14 = vld [vmem:[%s8663_s22 + $0xa0] sm:$0xff] }
 0x11d   : > { %7040 = vmatmul.msk.f32.gmra.mxu0 %vm933_vm0, %v817_v14 }
 0x124   : > { %7059 = vmatmul.msk.f32.gmra.mxu1 %vm1525_vm1, %v8769_v23  ;;  %7081 = vmatmul.msk.f32.gmra.mxu2 %vm1525_vm1, %v1290_v55  ;;  %v8847_v23 = vld [vmem:[%s12233_s8] ss:$0 sm:$0xff] }
 0x125   : > { %7041 = vmatmul.msk.f32.gmra.mxu0 %vm933_vm0, %v818_v26 }
 0x129   : > { %v1615_v58 = vpop.f32.mrf.mxu1 }
 0x12a   : > { %v1616_v46 = vadd.f32 %v1615_v58, %v1453_v13 }
 0x12c   : > { %7060 = vmatmul.msk.f32.gmra.mxu1 %vm1525_vm1, %v8774_v30  ;;  %7082 = vmatmul.msk.f32.gmra.mxu2 %vm1525_vm1, %v1293_v3  ;;  %v1465_v30 = vpop.f32.mrf.mxu0  ;;  %v8854_v3 = vpop.f32.mrf.mxu3 }
 0x130   : > { %v1780_v55 = vpop.f32.mrf.mxu2 }
 0x131   : > { %v1852_v20 = vadd.f32 %v1780_v55, %v1616_v46  ;;  %v1618_v24 = vpop.f32.mrf.mxu1  ;;  %v819_v46 = vld [vmem:[%s8663_s22 + $0xb0] sm:$0xff] }
 0x132   : > { %v1619_v13 = vadd.f32 %v1618_v24, %v1456_v37  ;;  %7042 = vmatmul.msk.f32.gmra.mxu0 %vm933_vm0, %v819_v46 }
 0x133   : > { %v1880_v54 = vadd.f32 %v8847_v23, %v1852_v20 }
 0x134   : > { %7061 = vmatmul.msk.f32.gmra.mxu1 %vm1525_vm1, %v8779_v36  ;;  %7083 = vmatmul.msk.f32.gmra.mxu2 %vm1525_vm1, %v1296_v21  ;;  %v1468_v55 = vpop.f32.mrf.mxu0  ;;  %v1340_v24 = vpop.f32.mrf.mxu3 }
 0x135   : > { %v1928_v32 = vmul.f32 0.01, %v1880_v54  ;;  %vm1904_vm2 = vcmp.ge.f32.partialorder %v1880_v54, 0.0 }
 0x137   : > { %v1952_v33 = vsel %vm1904_vm2, %v1880_v54, %v1928_v32 }
 0x138   : > { %v1783_v39 = vpop.f32.mrf.mxu2  ;;  %7092 = vmatmul.msk.f32.vlgmr.msrb.gmra.mxu3 %vm1525_vm1, %v1952_v33 }
 0x139   : > { %v1853_v52 = vadd.f32 %v1783_v39, %v1619_v13  ;;  %v1621_v58 = vpop.f32.mrf.mxu1 }
 0x13a   : > { %v1622_v36 = vadd.f32 %v1621_v58, %v1459_v0  ;;  %v820_v0 = vld [vmem:[%s8663_s22 + $0xb8] sm:$0xff]  ;;  %s1980_s22 = sld [smem:[#allocation2]] }
 0x13b   : > { %v1881_v14 = vadd.f32 %v8847_v23, %v1853_v52  ;;  %7043 = vmatmul.msk.f32.gmra.mxu0 %vm933_vm0, %v820_v0 }
 0x13c   : > { %7062 = vmatmul.msk.f32.gmra.mxu1 %vm1525_vm1, %v8794_v63  ;;  %7084 = vmatmul.msk.f32.gmra.mxu2 %vm1525_vm1, %v1299_v49  ;;  %v1471_v52 = vpop.f32.mrf.mxu0 }
 0x13d   : > { %vm1905_vm3 = vcmp.ge.f32.partialorder %v1881_v14, 0.0  ;;  %v1929_v21 = vmul.f32 0.01, %v1881_v14 }
 0x13f   : > { %v1953_v37 = vsel %vm1905_vm3, %v1881_v14, %v1929_v21  ;;  %v1343_v14 = vpop.f32.mrf.mxu3 }
 0x140   : > { %v1786_v20 = vpop.f32.mrf.mxu2  ;;  %7093 = vmatmul.msk.f32.gmra.mxu3 %vm1525_vm1, %v1953_v37 }
 0x141   : > { %v1854_v54 = vadd.f32 %v1786_v20, %v1622_v36  ;;  %v1624_v26 = vpop.f32.mrf.mxu1 }
 0x142   : > { %v1625_v13 = vadd.f32 %v1624_v26, %v1462_v9 }
 0x143   : > { %v1882_v32 = vadd.f32 %v8847_v23, %v1854_v54 }
 0x144   : > { %7063 = vmatmul.msk.f32.gmra.mxu1 %vm1525_vm1, %v8803_v18  ;;  %7085 = vmatmul.msk.f32.gmra.mxu2 %vm1525_vm1, %v1302_v57  ;;  %v1474_v54 = vpop.f32.mrf.mxu0 }
 0x145   : > { %vm1906_vm4 = vcmp.ge.f32.partialorder %v1882_v32, 0.0  ;;  %v1930_v63 = vmul.f32 0.01, %v1882_v32 }
 0x147   : > { %v1954_v49 = vsel %vm1906_vm4, %v1882_v32, %v1930_v63  ;;  %v1346_v26 = vpop.f32.mrf.mxu3 }
 0x148   : > { %v1789_v33 = vpop.f32.mrf.mxu2  ;;  %7094 = vmatmul.msk.f32.gmra.mxu3 %vm1525_vm1, %v1954_v49 }
 0x149   : > { %v1855_v39 = vadd.f32 %v1789_v33, %v1625_v13  ;;  %v1627_v58 = vpop.f32.mrf.mxu1 }
 0x14a   : > { %v1628_v9 = vadd.f32 %v1627_v58, %v1465_v30 }
 0x14b   : > { %v1883_v46 = vadd.f32 %v8847_v23, %v1855_v39 }
 0x14c   : > { %7064 = vmatmul.msk.f32.gmra.mxu1 %vm1525_vm1, %v8823_v38  ;;  %7086 = vmatmul.msk.f32.gmra.mxu2 %vm1525_vm1, %v1340_v24 }
 0x14d   : > { %vm1907_vm5 = vcmp.ge.f32.partialorder %v1883_v46, 0.0  ;;  %v1931_v18 = vmul.f32 0.01, %v1883_v46 }
 0x14f   : > { %v1955_v57 = vsel %vm1907_vm5, %v1883_v46, %v1931_v18  ;;  %v1349_v49 = vpop.f32.mrf.mxu3 }
 0x150   : > { %v1792_v36 = vpop.f32.mrf.mxu2  ;;  %7095 = vmatmul.msk.f32.gmra.mxu3 %vm1525_vm1, %v1955_v57 }
 0x151   : > { %v1856_v21 = vadd.f32 %v1792_v36, %v1628_v9  ;;  %v1630_v37 = vpop.f32.mrf.mxu1 }
 0x152   : > { %v1631_v32 = vadd.f32 %v1630_v37, %v1468_v55 }
 0x153   : > { %v1884_v20 = vadd.f32 %v8847_v23, %v1856_v21 }
 0x154   : > { %7065 = vmatmul.msk.f32.gmra.mxu1 %vm1525_vm1, %v8830_v51  ;;  %7087 = vmatmul.msk.f32.gmra.mxu2 %vm1525_vm1, %v1343_v14  ;;  %v1477_v51 = vpop.f32.mrf.mxu0 }
 0x155   : > { %vm1908_vm6 = vcmp.ge.f32.partialorder %v1884_v20, 0.0  ;;  %v1932_v38 = vmul.f32 0.01, %v1884_v20 }
 0x157   : > { %v1956_v30 = vsel %vm1908_vm6, %v1884_v20, %v1932_v38  ;;  %v1352_v14 = vpop.f32.mrf.mxu3 }
 0x158   : > { %v1795_v24 = vpop.f32.mrf.mxu2  ;;  %7096 = vmatmul.msk.f32.gmra.mxu3 %vm1525_vm1, %v1956_v30 }
 0x159   : > { %v1857_v0 = vadd.f32 %v1795_v24, %v1631_v32  ;;  %v1633_v13 = vpop.f32.mrf.mxu1 }
 0x15b   : > { %v1885_v63 = vadd.f32 %v8847_v23, %v1857_v0 }
 0x15c   : > { %7066 = vmatmul.msk.f32.gmra.mxu1 %vm1525_vm1, %v8838_v10  ;;  %7088 = vmatmul.msk.f32.gmra.mxu2 %vm1525_vm1, %v1346_v26  ;;  %v1480_v58 = vpop.f32.mrf.mxu0  ;;  %v1634_v10 = vadd.f32 %v1633_v13, %v1471_v52 }
 0x15d   : > { %vm1909_vm7 = vcmp.ge.f32.partialorder %v1885_v63, 0.0  ;;  %v1933_v55 = vmul.f32 0.01, %v1885_v63 }
 0x15f   : > { %v1957_v33 = vsel %vm1909_vm7, %v1885_v63, %v1933_v55  ;;  %v1355_v21 = vpop.f32.mrf.mxu3 }
 0x160   : > { %7097 = vmatmul.msk.f32.gmra.mxu3 %vm1525_vm1, %v1957_v33 }
 0x161   : > { %v1636_v39 = vpop.f32.mrf.mxu1 }
 0x164   : > { %7067 = vmatmul.msk.f32.gmra.mxu1 %vm1525_vm1, %v8854_v3  ;;  %7089 = vmatmul.msk.f32.gmra.mxu2 %vm1525_vm1, %v1349_v49  ;;  %v1483_v57 = vpop.f32.mrf.mxu0  ;;  %v1637_v3 = vadd.f32 %v1636_v39, %v1474_v54 }
 0x169   : > { %v1639_v46 = vpop.f32.mrf.mxu1 }
 0x16a   : > { %v1640_v13 = vadd.f32 %v1639_v46, %v1477_v51 }
 0x16c   : > { %7090 = vmatmul.msk.f32.gmra.mxu2 %vm1525_vm1, %v1352_v14  ;;  %v1486_v24 = vpop.f32.mrf.mxu0 }
 0x16f   : > { %v1798_v9 = vpop.f32.mrf.mxu2 }
 0x170   : > { %v1858_v18 = vadd.f32 %v1798_v9, %v1634_v10 }
 0x171   : > { %v1642_v36 = vpop.f32.mrf.mxu1 }
 0x172   : > { %v1886_v37 = vadd.f32 %v8847_v23, %v1858_v18  ;;  %v1643_v10 = vadd.f32 %v1642_v36, %v1480_v58 }
 0x174   : > { %7091 = vmatmul.msk.f32.gmra.mxu2 %vm1525_vm1, %v1355_v21  ;;  %vm1910_vm8 = vcmp.ge.f32.partialorder %v1886_v37, 0.0  ;;  %v1934_v20 = vmul.f32 0.01, %v1886_v37  ;;  %v1489_v14 = vpop.f32.mrf.mxu0 }
 0x176   : > { %v1958_v26 = vsel %vm1910_vm8, %v1886_v37, %v1934_v20 }
 0x177   : > { %v1801_v32 = vpop.f32.mrf.mxu2  ;;  %7098 = vmatmul.msk.f32.gmra.mxu3 %vm1525_vm1, %v1958_v26 }
 0x178   : > { %v1859_v38 = vadd.f32 %v1801_v32, %v1637_v3 }
 0x179   : > { %v1645_v30 = vpop.f32.mrf.mxu1 }
 0x17a   : > { %v1887_v52 = vadd.f32 %v8847_v23, %v1859_v38  ;;  %v1646_v20 = vadd.f32 %v1645_v30, %v1483_v57 }
 0x17c   : > { %vm1911_vm9 = vcmp.ge.f32.partialorder %v1887_v52, 0.0  ;;  %v1935_v0 = vmul.f32 0.01, %v1887_v52  ;;  %v1492_v26 = vpop.f32.mrf.mxu0 }
 0x17e   : > { %v1959_v63 = vsel %vm1911_vm9, %v1887_v52, %v1935_v0 }
 0x17f   : > { %v1804_v55 = vpop.f32.mrf.mxu2  ;;  %7099 = vmatmul.msk.f32.gmra.mxu3 %vm1525_vm1, %v1959_v63 }
 0x180   : > { %v1860_v49 = vadd.f32 %v1804_v55, %v1640_v13 }
 0x181   : > { %v1648_v33 = vpop.f32.mrf.mxu1 }
 0x182   : > { %v1888_v54 = vadd.f32 %v8847_v23, %v1860_v49  ;;  %v1649_v0 = vadd.f32 %v1648_v33, %v1486_v24 }
 0x184   : > { %vm1912_vm10 = vcmp.ge.f32.partialorder %v1888_v54, 0.0  ;;  %v1936_v39 = vmul.f32 0.01, %v1888_v54  ;;  %v1495_v49 = vpop.f32.mrf.mxu0 }
 0x186   : > { %v1960_v9 = vsel %vm1912_vm10, %v1888_v54, %v1936_v39 }
 0x187   : > { %v1807_v18 = vpop.f32.mrf.mxu2  ;;  %7100 = vmatmul.msk.f32.gmra.mxu3 %vm1525_vm1, %v1960_v9 }
 0x188   : > { %v1861_v21 = vadd.f32 %v1807_v18, %v1643_v10 }
 0x189   : > { %v1651_v37 = vpop.f32.mrf.mxu1 }
 0x18a   : > { %v1889_v51 = vadd.f32 %v8847_v23, %v1861_v21  ;;  %v1652_v39 = vadd.f32 %v1651_v37, %v1489_v14 }
 0x18c   : > { %vm1913_vm11 = vcmp.ge.f32.partialorder %v1889_v51, 0.0  ;;  %v1937_v46 = vmul.f32 0.01, %v1889_v51  ;;  %v1498_v24 = vpop.f32.mrf.mxu0 }
 0x18e   : > { %v1961_v3 = vsel %vm1913_vm11, %v1889_v51, %v1937_v46 }
 0x18f   : > { %v1810_v32 = vpop.f32.mrf.mxu2  ;;  %7101 = vmatmul.msk.f32.gmra.mxu3 %vm1525_vm1, %v1961_v3 }
 0x190   : > { %v1862_v38 = vadd.f32 %v1810_v32, %v1646_v20 }
 0x191   : > { %v1654_v52 = vpop.f32.mrf.mxu1 }
 0x192   : > { %v1890_v58 = vadd.f32 %v8847_v23, %v1862_v38  ;;  %v1655_v46 = vadd.f32 %v1654_v52, %v1492_v26 }
 0x194   : > { %vm1914_vm12 = vcmp.ge.f32.partialorder %v1890_v58, 0.0  ;;  %v1938_v36 = vmul.f32 0.01, %v1890_v58  ;;  %v1501_v14 = vpop.f32.mrf.mxu0 }
 0x196   : > { %v1962_v13 = vsel %vm1914_vm12, %v1890_v58, %v1938_v36 }
 0x197   : > { %v1813_v63 = vpop.f32.mrf.mxu2  ;;  %7102 = vmatmul.msk.f32.gmra.mxu3 %vm1525_vm1, %v1962_v13 }
 0x198   : > { %v1863_v55 = vadd.f32 %v1813_v63, %v1649_v0 }
 0x199   : > { %v1657_v54 = vpop.f32.mrf.mxu1 }
 0x19a   : > { %v1891_v57 = vadd.f32 %v8847_v23, %v1863_v55  ;;  %v1658_v36 = vadd.f32 %v1657_v54, %v1495_v49  ;;  %v8329_v49 = vmov 0  }
 0x19b   : > { %7735 = vset.pattern.permute.xlu2 %v8329_v49  ;;  %7736 = vset.pattern.permute.xlu1 %v8329_v49 }
 0x19c   : > { %vm1915_vm13 = vcmp.ge.f32.partialorder %v1891_v57, 0.0  ;;  %v1939_v30 = vmul.f32 0.01, %v1891_v57  ;;  %7737 = vset.pattern.permute.xlu0 %v8329_v49 }
 0x19e   : > { %v1963_v10 = vsel %vm1915_vm13, %v1891_v57, %v1939_v30  ;;  %v1504_v57 = vpop.f32.mrf.mxu0 }
 0x19f   : > { %v1816_v9 = vpop.f32.mrf.mxu2  ;;  %7103 = vmatmul.msk.f32.gmra.mxu3 %vm1525_vm1, %v1963_v10 }
 0x1a0   : > { %v1864_v18 = vadd.f32 %v1816_v9, %v1652_v39 }
 0x1a1   : > { %v1660_v33 = vpop.f32.mrf.mxu1 }
 0x1a2   : > { %v1892_v21 = vadd.f32 %v8847_v23, %v1864_v18  ;;  %v1661_v55 = vadd.f32 %v1660_v33, %v1498_v24  ;;  %v8910_v18 = vstv %s1980_s22 }
 0x1a4   : > { %vm1916_vm14 = vcmp.ge.f32.partialorder %v1892_v21, 0.0  ;;  %v1940_v51 = vmul.f32 0.01, %v1892_v21 }
 0x1a6   : > { %v1964_v20 = vsel %vm1916_vm14, %v1892_v21, %v1940_v51 }
 0x1a7   : > { %v1819_v3 = vpop.f32.mrf.mxu2  ;;  %7104 = vmatmul.msk.f32.gmra.mxu3 %vm1525_vm1, %v1964_v20 }
 0x1a8   : > { %v1865_v32 = vadd.f32 %v1819_v3, %v1655_v46 }
 0x1a9   : > { %v1663_v58 = vpop.f32.mrf.mxu1 }
 0x1aa   : > { %v1893_v38 = vadd.f32 %v8847_v23, %v1865_v32  ;;  %v1664_v46 = vadd.f32 %v1663_v58, %v1501_v14  ;;  %v1507_v32 = vpop.f32.mrf.mxu0 }
 0x1ac   : > { %vm1917_vm15 = vcmp.ge.f32.partialorder %v1893_v38, 0.0  ;;  %v1941_v37 = vmul.f32 0.01, %v1893_v38 }
 0x1ae   : > { %v1965_v0 = vsel %vm1917_vm15, %v1893_v38, %v1941_v37 }
 0x1af   : > { %v1822_v13 = vpop.f32.mrf.mxu2  ;;  %7105 = vmatmul.msk.f32.gmra.mxu3 %vm1525_vm1, %v1965_v0 }
 0x1b0   : > { %v1866_v63 = vadd.f32 %v1822_v13, %v1658_v36 }
 0x1b1   : > { %v1666_v39 = vpop.f32.mrf.mxu1 }
 0x1b2   : > { %v1894_v26 = vadd.f32 %v8847_v23, %v1866_v63 }
 0x1b4   : > { %vm1918_vm2 = vcmp.ge.f32.partialorder %v1894_v26, 0.0  ;;  %v1942_v52 = vmul.f32 0.01, %v1894_v26 }
 0x1b6   : > { %v1966_v30 = vsel %vm1918_vm2, %v1894_v26, %v1942_v52 }
 0x1b7   : > { %v1825_v10 = vpop.f32.mrf.mxu2  ;;  %7106 = vmatmul.msk.f32.gmra.mxu3 %vm1525_vm1, %v1966_v30 }
 0x1b8   : > { %v1867_v9 = vadd.f32 %v1825_v10, %v1661_v55  ;;  %v1667_v55 = vadd.f32 %v1666_v39, %v1504_v57 }
 0x1b9   : > { %v1669_v37 = vpop.f32.mrf.mxu1 }
 0x1ba   : > { %v1895_v54 = vadd.f32 %v8847_v23, %v1867_v9  ;;  %v1510_v9 = vpop.f32.mrf.mxu0  ;;  %v1670_v39 = vadd.f32 %v1669_v37, %v1507_v32 }
 0x1bb   : > { %v2071_v21 = vpop.f32.mrf.mxu3 }
 0x1bc   : > { %v2072_v51 = vadd.f32 %v2071_v21, %v8910_v18  ;;  %vm1919_vm3 = vcmp.ge.f32.partialorder %v1895_v54, 0.0  ;;  %v1943_v24 = vmul.f32 0.01, %v1895_v54 }
 0x1be   : > { %v7116_v33 = vmul.f32 -1.442695, %v2072_v51  ;;  %v1967_v20 = vsel %vm1919_vm3, %v1895_v54, %v1943_v24 }
 0x1bf   : > { %v1828_v3 = vpop.f32.mrf.mxu2  ;;  %7107 = vmatmul.msk.f32.gmra.mxu3 %vm1525_vm1, %v1967_v20 }
 0x1c0   : > { %7747 = vpow2.f32 %v7116_v33  ;;  %v1868_v38 = vadd.f32 %v1828_v3, %v1664_v46 }
 0x1c1   : > { %v1672_v21 = vpop.f32.mrf.mxu1 }
 0x1c2   : > { %v1896_v36 = vadd.f32 %v8847_v23, %v1868_v38  ;;  %v1513_v37 = vpop.f32.mrf.mxu0 }
 0x1c3   : > { %v2074_v0 = vpop.f32.mrf.mxu3 }
 0x1c4   : > { %v2075_v13 = vadd.f32 %v2074_v0, %v8910_v18  ;;  %vm1920_vm4 = vcmp.ge.f32.partialorder %v1896_v36, 0.0  ;;  %v1944_v63 = vmul.f32 0.01, %v1896_v36 }
 0x1c6   : > { %v7748_v26 = vpop.eup %7747  ;;  %v7117_v52 = vmul.f32 -1.442695, %v2075_v13  ;;  %v1968_v14 = vsel %vm1920_vm4, %v1896_v36, %v1944_v63 }
 0x1c7   : > { %v2215_v30 = vadd.f32 1.0, %v7748_v26  ;;  %v1831_v58 = vpop.f32.mrf.mxu2  ;;  %7108 = vmatmul.msk.f32.gmra.mxu3 %vm1525_vm1, %v1968_v14 }
 0x1c8   : > { %7749 = vpow2.f32 %v7117_v52  ;;  %v1869_v10 = vadd.f32 %v1831_v58, %v1667_v55 }
 0x1c9   : > { %7751 = vrcp.f32 %v2215_v30  ;;  %v2250_v52 = vand.u32 2147483648, %v2215_v30  ;;  %v2248_v32 = vand.u32 2147483647, %v2215_v30  ;;  %vm2244_vm8 = vweird.f32 %v2215_v30 }
 0x1ca   : > { %v1897_v49 = vadd.f32 %v8847_v23, %v1869_v10 }
 0x1cb   : > { %v2077_v54 = vpop.f32.mrf.mxu3  ;;  %vm2249_vm10 = vcmp.eq.f32.partialorder %v2248_v32, 8.507059e+37 }
 0x1cc   : > { %v2078_v51 = vadd.f32 %v2077_v54, %v8910_v18  ;;  %vm1921_vm5 = vcmp.ge.f32.partialorder %v1897_v49, 0.0  ;;  %v1945_v24 = vmul.f32 0.01, %v1897_v49 }
 0x1ce   : > { %v7750_v33 = vpop.eup %7749  ;;  %v7118_v46 = vmul.f32 -1.442695, %v2078_v51  ;;  %v1969_v3 = vsel %vm1921_vm5, %v1897_v49, %v1945_v24  ;;  %v1675_v49 = vpop.f32.mrf.mxu1 }
 0x1cf   : > { %v7752_v57 = vpop.eup %7751  ;;  %v8920_v20 = vadd.f32 1.0, %v7750_v33  ;;  %v1834_v38 = vpop.f32.mrf.mxu2  ;;  %7109 = vmatmul.msk.f32.gmra.mxu3 %vm1525_vm1, %v1969_v3  ;;  %v1673_v33 = vadd.f32 %v1672_v21, %v1510_v9  ;;  %v2251_v3 = vor.u32 1.1754944e-38, %v2250_v52 }
 0x1d0   : > { %7753 = vpow2.f32 %v7118_v46  ;;  %v2240_v36 = vmul.f32 %v7752_v57, %v2215_v30  ;;  %v1870_v0 = vadd.f32 %v1834_v38, %v1670_v39  ;;  %vm2245_vm6 = vweird.f32 %v7752_v57 }
 0x1d1   : > { %7755 = vrcp.f32 %v8920_v20  ;;  %vm2246_vm9 = vmor %vm2244_vm8, %vm2245_vm6  ;;  %v2265_v21 = vand.u32 2147483648, %v8920_v20  ;;  %vm2259_vm13 = vweird.f32 %v8920_v20 }
 0x1d2   : > { %v2241_v13 = vsub.f32 1.0, %v2240_v36  ;;  %v1898_v63 = vadd.f32 %v8847_v23, %v1870_v0 }
 0x1d3   : > { %v2080_v26 = vpop.f32.mrf.mxu3 }
 0x1d4   : > { %v2081_v55 = vadd.f32 %v2080_v26, %v8910_v18  ;;  %v2242_v14 = vmul.f32 %v7752_v57, %v2241_v13  ;;  %vm1922_vm7 = vcmp.ge.f32.partialorder %v1898_v63, 0.0  ;;  %v1946_v58 = vmul.f32 0.01, %v1898_v63 }
 0x1d6   : > { %v7754_v10 = vpop.eup %7753  ;;  %v7119_v54 = vmul.f32 -1.442695, %v2081_v55  ;;  %v2243_v51 = vadd.f32 %v7752_v57, %v2242_v14  ;;  %v1970_v39 = vsel %vm1922_vm7, %v1898_v63, %v1946_v58  ;;  %v2263_v14 = vand.u32 2147483647, %v8920_v20 }
 0x1d7   : > { %v7756_v24 = vpop.eup %7755  ;;  %v2217_v46 = vadd.f32 1.0, %v7754_v10  ;;  %v1837_v38 = vpop.f32.mrf.mxu2  ;;  %7110 = vmatmul.msk.f32.gmra.mxu3 %vm1525_vm1, %v1970_v39 }
 0x1d8   : > { %7757 = vpow2.f32 %v7119_v54  ;;  %v2247_v36 = vsel %vm2246_vm9, %v7752_v57, %v2243_v51  ;;  %v2255_v0 = vmul.f32 %v7756_v24, %v8920_v20  ;;  %v1871_v13 = vadd.f32 %v1837_v38, %v1673_v33  ;;  %v1516_v33 = vpop.f32.mrf.mxu0 }
 0x1d9   : > { %7759 = vrcp.f32 %v2217_v46  ;;  %v2252_v26 = vsel %vm2249_vm10, %v2251_v3, %v2247_v36  ;;  %vm2260_vm11 = vweird.f32 %v7756_v24  ;;  %v1676_v51 = vadd.f32 %v1675_v49, %v1513_v37  ;;  %v1678_v36 = vpop.f32.mrf.mxu1 }
 0x1da   : > { %2601 = vperm.xlu2 %7735, %v2252_v26   ;;  %v2256_v55 = vsub.f32 1.0, %v2255_v0  ;;  %v1899_v30 = vadd.f32 %v8847_v23, %v1871_v13  ;;  %vm2261_vm14 = vmor %vm2259_vm13, %vm2260_vm11  ;;  %v2266_v38 = vor.u32 1.1754944e-38, %v2265_v21  ;;  %vm2264_vm15 = vcmp.eq.f32.partialorder %v2263_v14, 8.507059e+37 }
 0x1db   : > { %v2083_v9 = vpop.f32.mrf.mxu3  ;;  %vm2274_vm2 = vweird.f32 %v2217_v46  ;;  %v2278_v37 = vand.u32 2147483647, %v2217_v46 }
 0x1dc   : > { %v2084_v63 = vadd.f32 %v2083_v9, %v8910_v18  ;;  %v2257_v52 = vmul.f32 %v7756_v24, %v2256_v55  ;;  %vm1923_vm12 = vcmp.ge.f32.partialorder %v1899_v30, 0.0  ;;  %v1947_v57 = vmul.f32 0.01, %v1899_v30 }
 0x1dd   : > { %vm2279_vm6 = vcmp.eq.f32.partialorder %v2278_v37, 8.507059e+37 }
 0x1de   : > { %v7758_v32 = vpop.eup %7757  ;;  %v7120_v58 = vmul.f32 -1.442695, %v2084_v63  ;;  %v2258_v10 = vadd.f32 %v7756_v24, %v2257_v52  ;;  %v1971_v3 = vsel %vm1923_vm12, %v1899_v30, %v1947_v57  ;;  %v2280_v63 = vand.u32 2147483648, %v2217_v46 }
 0x1df   : > { %v7760_v54 = vpop.eup %7759  ;;  %v2218_v39 = vadd.f32 1.0, %v7758_v32  ;;  %v1840_v0 = vpop.f32.mrf.mxu2  ;;  %7111 = vmatmul.msk.f32.gmra.mxu3 %vm1525_vm1, %v1971_v3  ;;  %v1679_v3 = vadd.f32 %v1678_v36, %v1516_v33 }
 0x1e0   : > { %7761 = vpow2.f32 %v7120_v58  ;;  %v2262_v13 = vsel %vm2261_vm14, %v7756_v24, %v2258_v10  ;;  %v2270_v26 = vmul.f32 %v7760_v54, %v2217_v46  ;;  %v1872_v55 = vadd.f32 %v1840_v0, %v1676_v51 }
 0x1e1   : > { %7763 = vrcp.f32 %v2218_v39  ;;  %v2267_v9 = vsel %vm2264_vm15, %v2266_v38, %v2262_v13  ;;  %vm2275_vm3 = vweird.f32 %v7760_v54  ;;  %v2281_v14 = vor.u32 1.1754944e-38, %v2280_v63 }
 0x1e2   : > { %2606 = vperm.xlu2 %7735, %v2267_v9   ;;  %v2271_v20 = vsub.f32 1.0, %v2270_v26  ;;  %v1900_v49 = vadd.f32 %v8847_v23, %v1872_v55  ;;  %vm8936_vm5 = vmor %vm2274_vm2, %vm2275_vm3  ;;  %v2295_v63 = vand.u32 2147483648, %v2218_v39  ;;  %vm2289_vm7 = vweird.f32 %v2218_v39 }
 0x1e3   : > { %v2086_v30 = vpop.f32.mrf.mxu3  ;;  %v2293_v33 = vand.u32 2147483647, %v2218_v39 }
 0x1e4   : > { %v2087_v21 = vadd.f32 %v2086_v30, %v8910_v18  ;;  %v2272_v52 = vmul.f32 %v7760_v54, %v2271_v20  ;;  %vm1924_vm4 = vcmp.ge.f32.partialorder %v1900_v49, 0.0  ;;  %v1948_v57 = vmul.f32 0.01, %v1900_v49  ;;  %v1519_v20 = vpop.f32.mrf.mxu0  ;;  %v1681_v30 = vpop.f32.mrf.mxu1 }
 0x1e5   : > { %vm2294_vm11 = vcmp.eq.f32.partialorder %v2293_v33, 8.507059e+37 }
 0x1e6   : > { %v7762_v32 = vpop.eup %7761  ;;  %v7121_v58 = vmul.f32 -1.442695, %v2087_v21  ;;  %v2273_v10 = vadd.f32 %v7760_v54, %v2272_v52  ;;  %v1972_v38 = vsel %vm1924_vm4, %v1900_v49, %v1948_v57 }
 0x1e7   : > { %v7764_v51 = vpop.eup %7763  ;;  %v2219_v46 = vadd.f32 1.0, %v7762_v32  ;;  %v1843_v0 = vpop.f32.mrf.mxu2  ;;  %7112 = vmatmul.msk.f32.gmra.mxu3 %vm1525_vm1, %v1972_v38  ;;  %v1682_v32 = vadd.f32 %v1681_v30, %v1519_v20 }
 0x1e8   : > { %7765 = vpow2.f32 %v7121_v58  ;;  %v2277_v13 = vsel %vm8936_vm5, %v7760_v54, %v2273_v10  ;;  %v2285_v26 = vmul.f32 %v7764_v51, %v2218_v39  ;;  %v1873_v55 = vadd.f32 %v1843_v0, %v1679_v3 }
 0x1e9   : > { %7767 = vrcp.f32 %v2219_v46  ;;  %v2282_v9 = vsel %vm2279_vm6, %v2281_v14, %v2277_v13  ;;  %vm2290_vm8 = vweird.f32 %v7764_v51  ;;  %v2296_v54 = vor.u32 1.1754944e-38, %v2295_v63 }
 0x1ea   : > { %2611 = vperm.xlu1 %7736, %v2282_v9   ;;  %v2286_v37 = vsub.f32 1.0, %v2285_v26  ;;  %v1901_v36 = vadd.f32 %v8847_v23, %v1873_v55  ;;  %vm8944_vm10 = vmor %vm2289_vm7, %vm2290_vm8  ;;  %v2310_v26 = vand.u32 2147483648, %v2219_v46  ;;  %vm2304_vm12 = vweird.f32 %v2219_v46 }
 0x1eb   : > { %v2308_v9 = vand.u32 2147483647, %v2219_v46 }
 0x1ec   : > { %v2287_v49 = vmul.f32 %v7764_v51, %v2286_v37  ;;  %vm1925_vm9 = vcmp.ge.f32.partialorder %v1901_v36, 0.0  ;;  %v1949_v21 = vmul.f32 0.01, %v1901_v36  ;;  %v1522_v20 = vpop.f32.mrf.mxu0  ;;  %v1684_v30 = vpop.f32.mrf.mxu1 }
 0x1ed   : > { %vm2309_vm2 = vcmp.eq.f32.partialorder %v2308_v9, 8.507059e+37 }
 0x1ee   : > { %v7766_v57 = vpop.eup %7765  ;;  %v2288_v24 = vadd.f32 %v7764_v51, %v2287_v49  ;;  %v1973_v10 = vsel %vm1925_vm9, %v1901_v36, %v1949_v21  ;;  %v2311_v36 = vor.u32 1.1754944e-38, %v2310_v26  ;;  %v1685_v21 = vadd.f32 %v1684_v30, %v1522_v20 }
 0x1ef   : > { %v7768_v14 = vpop.eup %7767  ;;  %v2220_v58 = vadd.f32 1.0, %v7766_v57  ;;  %v1846_v3 = vpop.f32.mrf.mxu2  ;;  %7113 = vmatmul.msk.f32.gmra.mxu3 %vm1525_vm1, %v1973_v10 }
 0x1f0   : > { %v2292_v39 = vsel %vm8944_vm10, %v7764_v51, %v2288_v24  ;;  %v2300_v38 = vmul.f32 %v7768_v14, %v2219_v46  ;;  %v1874_v0 = vadd.f32 %v1846_v3, %v1682_v32  ;;  %vm2305_vm13 = vweird.f32 %v7768_v14 }
 0x1f1   : > { %7769 = vrcp.f32 %v2220_v58  ;;  %v2297_v13 = vsel %vm2294_vm11, %v2296_v54, %v2292_v39  ;;  %vm2306_vm15 = vmor %vm2304_vm12, %vm2305_vm13  ;;  %v2325_v10 = vand.u32 2147483648, %v2220_v58  ;;  %vm2319_vm3 = vweird.f32 %v2220_v58 }
 0x1f2   : > { %2616 = vperm.xlu1 %7736, %v2297_v13   ;;  %v2301_v55 = vsub.f32 1.0, %v2300_v38  ;;  %v1902_v63 = vadd.f32 %v8847_v23, %v1874_v0  ;;  %v2323_v39 = vand.u32 2147483647, %v2220_v58 }
 0x1f3   : > { %v2326_v9 = vor.u32 1.1754944e-38, %v2325_v10 }
 0x1f4   : > { %v2302_v37 = vmul.f32 %v7768_v14, %v2301_v55  ;;  %vm1926_vm14 = vcmp.ge.f32.partialorder %v1902_v63, 0.0  ;;  %v1950_v33 = vmul.f32 0.01, %v1902_v63  ;;  %vm2324_vm7 = vcmp.eq.f32.partialorder %v2323_v39, 8.507059e+37 }
 0x1f6   : > { %v2303_v51 = vadd.f32 %v7768_v14, %v2302_v37  ;;  %v1974_v52 = vsel %vm1926_vm14, %v1902_v63, %v1950_v33 }
 0x1f7   : > { %v7770_v49 = vpop.eup %7769  ;;  %v1849_v54 = vpop.f32.mrf.mxu2  ;;  %7114 = vmatmul.msk.f32.gmra.mxu3 %vm1525_vm1, %v1974_v52 }
 0x1f8   : > { %v2307_v57 = vsel %vm2306_vm15, %v7768_v14, %v2303_v51  ;;  %v2315_v24 = vmul.f32 %v7770_v49, %v2220_v58  ;;  %v1875_v46 = vadd.f32 %v1849_v54, %v1685_v21  ;;  %vm2320_vm4 = vweird.f32 %v7770_v49 }
 0x1f9   : > { %v2312_v32 = vsel %vm2309_vm2, %v2311_v36, %v2307_v57  ;;  %vm2321_vm6 = vmor %vm2319_vm3, %vm2320_vm4 }
 0x1fa   : > { %2621 = vperm.xlu0 %7737, %v2312_v32   ;;  %v2316_v3 = vsub.f32 1.0, %v2315_v24  ;;  %v1903_v38 = vadd.f32 %v8847_v23, %v1875_v46  ;;  %v2089_v0 = vpop.f32.mrf.mxu3 }
 0x1fb   : > { %v2090_v13 = vadd.f32 %v2089_v0, %v8910_v18 }
 0x1fc   : > { %v2317_v26 = vmul.f32 %v7770_v49, %v2316_v3  ;;  %vm1927_vm5 = vcmp.ge.f32.partialorder %v1903_v38, 0.0  ;;  %v1951_v55 = vmul.f32 0.01, %v1903_v38 }
 0x1fd   : > { %v7122_v14 = vmul.f32 -1.442695, %v2090_v13 }
 0x1fe   : > { %v2318_v63 = vadd.f32 %v7770_v49, %v2317_v26  ;;  %v1975_v20 = vsel %vm1927_vm5, %v1903_v38, %v1951_v55 }
 0x1ff   : > { %7771 = vpow2.f32 %v7122_v14  ;;  %7115 = vmatmul.msk.f32.gmra.mxu3 %vm1525_vm1, %v1975_v20 }
 0x200   : > { %v2322_v30 = vsel %vm2321_vm6, %v7770_v49, %v2318_v63 }
 0x201   : > { %v2327_v37 = vsel %vm2324_vm7, %v2326_v9, %v2322_v30 }
 0x202   : > { %2626 = vperm.xlu0 %7737, %v2327_v37   ;;  %v2092_v58 = vpop.f32.mrf.mxu3 }
 0x203   : > { %v2093_v23 = vadd.f32 %v2092_v58, %v8910_v18 }
 0x205   : > { %v7772_v33 = vpop.eup %7771  ;;  %v7123_v36 = vmul.f32 -1.442695, %v2093_v23 }
 0x206   : > { %v2221_v51 = vadd.f32 1.0, %v7772_v33 }
 0x207   : > { %7773 = vpow2.f32 %v7123_v36 }
 0x208   : > { %7775 = vrcp.f32 %v2221_v51  ;;  %v2340_v3 = vand.u32 2147483648, %v2221_v51  ;;  %v2338_v0 = vand.u32 2147483647, %v2221_v51  ;;  %vm2334_vm9 = vweird.f32 %v2221_v51 }
 0x20a   : > { %v2095_v21 = vpop.f32.mrf.mxu3  ;;  %v2341_v63 = vor.u32 1.1754944e-38, %v2340_v3  ;;  %vm2339_vm11 = vcmp.eq.f32.partialorder %v2338_v0, 8.507059e+37 }
 0x20b   : > { %v2096_v52 = vadd.f32 %v2095_v21, %v8910_v18 }
 0x20d   : > { %v7774_v54 = vpop.eup %7773  ;;  %v7124_v57 = vmul.f32 -1.442695, %v2096_v52 }
 0x20e   : > { %v7776_v24 = vpop.eup %7775  ;;  %v2222_v46 = vadd.f32 1.0, %v7774_v54 }
 0x20f   : > { %7777 = vpow2.f32 %v7124_v57  ;;  %v2330_v32 = vmul.f32 %v7776_v24, %v2221_v51  ;;  %vm2335_vm8 = vweird.f32 %v7776_v24 }
 0x210   : > { %7779 = vrcp.f32 %v2222_v46  ;;  %vm2336_vm10 = vmor %vm2334_vm9, %vm2335_vm8  ;;  %v2355_v33 = vand.u32 2147483648, %v2222_v46  ;;  %v2353_v52 = vand.u32 2147483647, %v2222_v46  ;;  %vm2349_vm13 = vweird.f32 %v2222_v46 }
 0x211   : > { %v2331_v49 = vsub.f32 1.0, %v2330_v32 }
 0x212   : > { %v2098_v10 = vpop.f32.mrf.mxu3  ;;  %vm2354_vm15 = vcmp.eq.f32.partialorder %v2353_v52, 8.507059e+37 }
 0x213   : > { %v2099_v39 = vadd.f32 %v2098_v10, %v8910_v18  ;;  %v2332_v38 = vmul.f32 %v7776_v24, %v2331_v49 }
 0x215   : > { %v7778_v13 = vpop.eup %7777  ;;  %v7125_v26 = vmul.f32 -1.442695, %v2099_v39  ;;  %v2333_v55 = vadd.f32 %v7776_v24, %v2332_v38 }
 0x216   : > { %v7780_v9 = vpop.eup %7779  ;;  %v2223_v14 = vadd.f32 1.0, %v7778_v13 }
 0x217   : > { %7781 = vpow2.f32 %v7125_v26  ;;  %v2337_v20 = vsel %vm2336_vm10, %v7776_v24, %v2333_v55  ;;  %v2345_v30 = vmul.f32 %v7780_v9, %v2222_v46  ;;  %vm2350_vm12 = vweird.f32 %v7780_v9 }
 0x218   : > { %7783 = vrcp.f32 %v2223_v14  ;;  %v2342_v37 = vsel %vm2339_vm11, %v2341_v63, %v2337_v20  ;;  %vm2351_vm14 = vmor %vm2349_vm13, %vm2350_vm12  ;;  %v2356_v24 = vor.u32 1.1754944e-38, %v2355_v33  ;;  %v2370_v13 = vand.u32 2147483648, %v2223_v14 }
 0x219   : > { %2631 = vperm.xlu2 %7735, %v2342_v37   ;;  %v2346_v58 = vsub.f32 1.0, %v2345_v30  ;;  %v2368_v63 = vand.u32 2147483647, %v2223_v14  ;;  %vm2364_vm3 = vweird.f32 %v2223_v14 }
 0x21a   : > { %v2101_v23 = vpop.f32.mrf.mxu3 }
 0x21b   : > { %v2102_v36 = vadd.f32 %v2101_v23, %v8910_v18  ;;  %v2347_v21 = vmul.f32 %v7780_v9, %v2346_v58  ;;  %vm2369_vm5 = vcmp.eq.f32.partialorder %v2368_v63, 8.507059e+37 }
 0x21d   : > { %v7782_v51 = vpop.eup %7781  ;;  %v7126_v54 = vmul.f32 -1.442695, %v2102_v36  ;;  %v2348_v57 = vadd.f32 %v7780_v9, %v2347_v21 }
 0x21e   : > { %v7784_v32 = vpop.eup %7783  ;;  %v2224_v49 = vadd.f32 1.0, %v7782_v51 }
 0x21f   : > { %7785 = vpow2.f32 %v7126_v54  ;;  %v2352_v10 = vsel %vm2351_vm14, %v7780_v9, %v2348_v57  ;;  %v2360_v3 = vmul.f32 %v7784_v32, %v2223_v14  ;;  %vm2365_vm2 = vweird.f32 %v7784_v32 }
 0x220   : > { %7787 = vrcp.f32 %v2224_v49  ;;  %v2357_v39 = vsel %vm2354_vm15, %v2356_v24, %v2352_v10  ;;  %vm2366_vm4 = vmor %vm2364_vm3, %vm2365_vm2  ;;  %v2371_v9 = vor.u32 1.1754944e-38, %v2370_v13  ;;  %v2385_v51 = vand.u32 2147483648, %v2224_v49 }
 0x221   : > { %2636 = vperm.xlu0 %7737, %v2357_v39   ;;  %v2361_v38 = vsub.f32 1.0, %v2360_v3  ;;  %v2383_v57 = vand.u32 2147483647, %v2224_v49  ;;  %vm2379_vm7 = vweird.f32 %v2224_v49 }
 0x222   : > { %v2104_v0 = vpop.f32.mrf.mxu3  ;;  %v2386_v39 = vor.u32 1.1754944e-38, %v2385_v51 }
 0x223   : > { %v2105_v26 = vadd.f32 %v2104_v0, %v8910_v18  ;;  %v2362_v55 = vmul.f32 %v7784_v32, %v2361_v38  ;;  %vm2384_vm9 = vcmp.eq.f32.partialorder %v2383_v57, 8.507059e+37 }
 0x225   : > { %v7786_v46 = vpop.eup %7785  ;;  %v7127_v20 = vmul.f32 -1.442695, %v2105_v26  ;;  %v2363_v30 = vadd.f32 %v7784_v32, %v2362_v55 }
 0x226   : > { %v7788_v37 = vpop.eup %7787  ;;  %v2225_v58 = vadd.f32 1.0, %v7786_v46 }
 0x227   : > { %7789 = vpow2.f32 %v7127_v20  ;;  %v2367_v23 = vsel %vm2366_vm4, %v7784_v32, %v2363_v30  ;;  %v2375_v33 = vmul.f32 %v7788_v37, %v2224_v49  ;;  %vm2380_vm6 = vweird.f32 %v7788_v37 }
 0x228   : > { %7791 = vrcp.f32 %v2225_v58  ;;  %v2372_v36 = vsel %vm2369_vm5, %v2371_v9, %v2367_v23  ;;  %vm2381_vm8 = vmor %vm2379_vm7, %vm2380_vm6  ;;  %v2400_v55 = vand.u32 2147483648, %v2225_v58  ;;  %v2398_v46 = vand.u32 2147483647, %v2225_v58 }
 0x229   : > { %2641 = vperm.xlu1 %7736, %v2372_v36   ;;  %v2376_v21 = vsub.f32 1.0, %v2375_v33  ;;  %vm2394_vm11 = vweird.f32 %v2225_v58 }
 0x22a   : > { %v2107_v52 = vpop.f32.mrf.mxu3  ;;  %v2401_v49 = vor.u32 1.1754944e-38, %v2400_v55  ;;  %vm2399_vm13 = vcmp.eq.f32.partialorder %v2398_v46, 8.507059e+37 }
 0x22b   : > { %v2377_v54 = vmul.f32 %v7788_v37, %v2376_v21 }
 0x22d   : > { %v7790_v24 = vpop.eup %7789  ;;  %v2378_v10 = vadd.f32 %v7788_v37, %v2377_v54 }
 0x22e   : > { %v7792_v14 = vpop.eup %7791  ;;  %v2226_v3 = vadd.f32 1.0, %v7790_v24 }
 0x22f   : > { %v2382_v38 = vsel %vm2381_vm8, %v7788_v37, %v2378_v10  ;;  %v2390_v32 = vmul.f32 %v7792_v14, %v2225_v58  ;;  %vm2395_vm10 = vweird.f32 %v7792_v14  ;;  %v2108_v58 = vadd.f32 %v2107_v52, %v8910_v18 }
 0x230   : > { %7793 = vrcp.f32 %v2226_v3  ;;  %v2387_v0 = vsel %vm2384_vm9, %v2386_v39, %v2382_v38  ;;  %vm2396_vm12 = vmor %vm2394_vm11, %vm2395_vm10  ;;  %v2415_v51 = vand.u32 2147483648, %v2226_v3  ;;  %v2413_v24 = vand.u32 2147483647, %v2226_v3 }
 0x231   : > { %2646 = vperm.xlu2 %7735, %v2387_v0   ;;  %v2391_v13 = vsub.f32 1.0, %v2390_v32  ;;  %vm2409_vm15 = vweird.f32 %v2226_v3  ;;  %v7128_v32 = vmul.f32 -1.442695, %v2108_v58 }
 0x232   : > { %v2110_v26 = vpop.f32.mrf.mxu3  ;;  %v2416_v39 = vor.u32 1.1754944e-38, %v2415_v51  ;;  %vm2414_vm3 = vcmp.eq.f32.partialorder %v2413_v24, 8.507059e+37 }
 0x233   : > { %v2392_v63 = vmul.f32 %v7792_v14, %v2391_v13  ;;  %v2111_v9 = vadd.f32 %v2110_v26, %v8910_v18 }
 0x235   : > { %v2393_v20 = vadd.f32 %v7792_v14, %v2392_v63  ;;  %v7129_v54 = vmul.f32 -1.442695, %v2111_v9 }
 0x236   : > { %v7794_v30 = vpop.eup %7793 }
 0x237   : > { %v2397_v23 = vsel %vm2396_vm12, %v7792_v14, %v2393_v20  ;;  %v2405_v37 = vmul.f32 %v7794_v30, %v2226_v3  ;;  %vm2410_vm14 = vweird.f32 %v7794_v30  ;;  %7795 = vpow2.f32 %v7129_v54 }
 0x238   : > { %v2402_v33 = vsel %vm2399_vm13, %v2401_v49, %v2397_v23  ;;  %vm2411_vm2 = vmor %vm2409_vm15, %vm2410_vm14  ;;  %7797 = vpow2.f32 %v7128_v32 }
 0x239   : > { %2651 = vperm.xlu1 %7736, %v2402_v33   ;;  %v2406_v36 = vsub.f32 1.0, %v2405_v37 }
 0x23a   : > { %v2113_v21 = vpop.f32.mrf.mxu3 }
 0x23b   : > { %v2407_v57 = vmul.f32 %v7794_v30, %v2406_v36  ;;  %v2114_v63 = vadd.f32 %v2113_v21, %v8910_v18 }
 0x23d   : > { %v2408_v10 = vadd.f32 %v7794_v30, %v2407_v57  ;;  %v7796_v26 = vpop.eup %7795  ;;  %v7130_v52 = vmul.f32 -1.442695, %v2114_v63 }
 0x23e   : > { %v8965_v3 = vadd.f32 1.0, %v7796_v26 }
 0x23f   : > { %v2412_v38 = vsel %vm2411_vm2, %v7794_v30, %v2408_v10  ;;  %v7798_v30 = vpop.eup %7797 }
 0x240   : > { %v2417_v14 = vsel %vm2414_vm3, %v2416_v39, %v2412_v38  ;;  %v8969_v37 = vadd.f32 1.0, %v7798_v30  ;;  %vm2439_vm9 = vweird.f32 %v8965_v3 }
 0x241   : > { %2656 = vperm.xlu0 %7737, %v2417_v14  }
 0x242   : > { %v2116_v0 = vpop.f32.mrf.mxu3  ;;  %vm2424_vm3 = vweird.f32 %v8969_v37 }
 0x243   : > { %v2117_v13 = vadd.f32 %v2116_v0, %v8910_v18 }
 0x245   : > { %v7131_v55 = vmul.f32 -1.442695, %v2117_v13 }
 0x247   : > { %7799 = vpow2.f32 %v7131_v55 }
 0x248   : > { %7801 = vrcp.f32 %v8965_v3 }
 0x249   : > { %7803 = vpow2.f32 %v7130_v52 }
 0x24a   : > { %v2119_v46 = vpop.f32.mrf.mxu3 }
 0x24b   : > { %v2120_v20 = vadd.f32 %v2119_v46, %v8910_v18 }
 0x24d   : > { %v7800_v49 = vpop.eup %7799  ;;  %v7132_v9 = vmul.f32 -1.442695, %v2120_v20 }
 0x24e   : > { %v2230_v23 = vadd.f32 1.0, %v7800_v49  ;;  %v8971_v33 = vpop.eup %7801 }
 0x24f   : > { %7805 = vpow2.f32 %v7132_v9  ;;  %v7804_v51 = vpop.eup %7803  ;;  %v2435_v24 = vmul.f32 %v8971_v33, %v8965_v3  ;;  %vm2440_vm8 = vweird.f32 %v8971_v33 }
 0x250   : > { %7807 = vrcp.f32 %v2230_v23  ;;  %v8977_v38 = vadd.f32 1.0, %v7804_v51  ;;  %v2475_v26 = vand.u32 2147483648, %v2230_v23  ;;  %v2473_v63 = vand.u32 2147483647, %v2230_v23  ;;  %vm8995_vm11 = vmor %vm2439_vm9, %vm2440_vm8 }
 0x251   : > { %7809 = vrcp.f32 %v8969_v37  ;;  %v2436_v0 = vsub.f32 1.0, %v2435_v24  ;;  %vm2469_vm5 = vweird.f32 %v2230_v23 }
 0x252   : > { %v2122_v36 = vpop.f32.mrf.mxu3  ;;  %vm2474_vm7 = vcmp.eq.f32.partialorder %v2473_v63, 8.507059e+37 }
 0x253   : > { %v2123_v21 = vadd.f32 %v2122_v36, %v8910_v18  ;;  %v2437_v30 = vmul.f32 %v8971_v33, %v2436_v0  ;;  %v2476_v36 = vor.u32 1.1754944e-38, %v2475_v26  ;;  %v2445_v0 = vand.u32 2147483648, %v8965_v3 }
 0x254   : > { %v2443_v26 = vand.u32 2147483647, %v8965_v3 }
 0x255   : > { %v7806_v54 = vpop.eup %7805  ;;  %v7133_v57 = vmul.f32 -1.442695, %v2123_v21  ;;  %v2438_v24 = vadd.f32 %v8971_v33, %v2437_v30 }
 0x256   : > { %v7808_v10 = vpop.eup %7807  ;;  %v2231_v58 = vadd.f32 1.0, %v7806_v54  ;;  %vm2444_vm14 = vcmp.eq.f32.partialorder %v2443_v26, 8.507059e+37 }
 0x257   : > { %7811 = vpow2.f32 %v7133_v57  ;;  %v2465_v39 = vmul.f32 %v7808_v10, %v2230_v23  ;;  %v8979_v14 = vpop.eup %7809  ;;  %vm2470_vm4 = vweird.f32 %v7808_v10 }
 0x258   : > { %7813 = vrcp.f32 %v2231_v58  ;;  %v2420_v52 = vmul.f32 %v8979_v14, %v8969_v37  ;;  %vm2471_vm6 = vmor %vm2469_vm5, %vm2470_vm4  ;;  %v2488_v63 = vand.u32 2147483647, %v2231_v58  ;;  %vm2484_vm12 = vweird.f32 %v2231_v58 }
 0x259   : > { %v2466_v32 = vsub.f32 1.0, %v2465_v39  ;;  %7815 = vrcp.f32 %v8977_v38  ;;  %vm2425_vm2 = vweird.f32 %v8979_v14 }
 0x25a   : > { %v2125_v13 = vpop.f32.mrf.mxu3  ;;  %v2421_v57 = vsub.f32 1.0, %v2420_v52  ;;  %vm2489_vm15 = vcmp.eq.f32.partialorder %v2488_v63, 8.507059e+37  ;;  %vm9014_vm5 = vmor %vm2424_vm3, %vm2425_vm2 }
 0x25b   : > { %v2467_v55 = vmul.f32 %v7808_v10, %v2466_v32  ;;  %v2126_v3 = vadd.f32 %v2125_v13, %v8910_v18 }
 0x25d   : > { %v7812_v46 = vpop.eup %7811  ;;  %v2468_v20 = vadd.f32 %v7808_v10, %v2467_v55 }
 0x25e   : > { %v7814_v49 = vpop.eup %7813  ;;  %v8985_v9 = vadd.f32 1.0, %v7812_v46  ;;  %v2422_v46 = vmul.f32 %v8979_v14, %v2421_v57 }
 0x25f   : > { %v2472_v21 = vsel %vm2471_vm6, %v7808_v10, %v2468_v20  ;;  %v2480_v51 = vmul.f32 %v7814_v49, %v2231_v58  ;;  %v8990_v39 = vpop.eup %7815  ;;  %v2490_v10 = vand.u32 2147483648, %v2231_v58  ;;  %vm2485_vm10 = vweird.f32 %v7814_v49 }
 0x260   : > { %7817 = vrcp.f32 %v8985_v9  ;;  %v2477_v54 = vsel %vm2474_vm7, %v2476_v36, %v2472_v21  ;;  %v2442_v20 = vsel %vm8995_vm11, %v8971_v33, %v2438_v24  ;;  %v2450_v36 = vmul.f32 %v8990_v39, %v8977_v38  ;;  %vm2486_vm13 = vmor %vm2484_vm12, %vm2485_vm10 }
 0x261   : > { %2676 = vperm.xlu1 %7736, %v2477_v54   ;;  %v2481_v23 = vsub.f32 1.0, %v2480_v51  ;;  %v2446_v51 = vor.u32 1.1754944e-38, %v2445_v0  ;;  %v2491_v54 = vor.u32 1.1754944e-38, %v2490_v10  ;;  %v2423_v58 = vadd.f32 %v8979_v14, %v2422_v46  ;;  %v2612_v10 = vpop.permute.xlu1 %2611 }
 0x262   : > { %v2128_v32 = vpop.f32.mrf.mxu3  ;;  %v2451_v24 = vsub.f32 1.0, %v2450_v36  ;;  %v2505_v0 = vand.u32 2147483648, %v8985_v9  ;;  %vm2499_vm6 = vweird.f32 %v8985_v9  ;;  %vm2455_vm10 = vweird.f32 %v8990_v39 }
 0x263   : > { %v2482_v55 = vmul.f32 %v7814_v49, %v2481_v23  ;;  %v2447_v29 = vsel %vm2444_vm14, %v2446_v51, %v2442_v20  ;;  %v2427_v20 = vsel %vm9014_vm5, %v8979_v14, %v2423_v58  ;;  %v2129_v36 = vadd.f32 %v2128_v32, %v8910_v18 }
 0x264   : > { %v2460_v32 = vand.u32 2147483648, %v8977_v38  ;;  %vm2454_vm11 = vweird.f32 %v8977_v38  ;;  %v2721_v28 = vmul.f32 %v7619_v22, %v2612_v10  ;;  %vm2743_vm14 = vcmask 392192  }
 0x265   : > { %v2483_v30 = vadd.f32 %v7814_v49, %v2482_v55  ;;  %v7134_v55 = vmul.f32 -1.442695, %v2126_v3  ;;  %v2506_v3 = vor.u32 1.1754944e-38, %v2505_v0  ;;  %v7135_v14 = vmul.f32 -1.442695, %v2129_v36  ;;  %vm9032_vm12 = vmor %vm2454_vm11, %vm2455_vm10 }
 0x266   : > { %v7818_v21 = vpop.eup %7817 }
 0x267   : > { %v2487_v23 = vsel %vm2486_vm13, %v7814_v49, %v2483_v30  ;;  %v2495_v57 = vmul.f32 %v7818_v21, %v8985_v9  ;;  %v2430_v49 = vand.u32 2147483648, %v8969_v37  ;;  %vm2500_vm4 = vweird.f32 %v7818_v21 }
 0x268   : > { %v2492_v35 = vsel %vm2489_vm15, %v2491_v54, %v2487_v23  ;;  %v2452_v30 = vmul.f32 %v8990_v39, %v2451_v24  ;;  %7819 = vpow2.f32 %v7134_v55  ;;  %vm2501_vm7 = vmor %vm2499_vm6, %vm2500_vm4 }
 0x269   : > { %2666 = vperm.xlu1 %7736, %v2447_v29   ;;  %2681 = vperm.xlu2 %7735, %v2492_v35   ;;  %v2496_v33 = vsub.f32 1.0, %v2495_v57  ;;  %v2503_v29 = vand.u32 2147483647, %v8985_v9  ;;  %v2428_v35 = vand.u32 2147483647, %v8969_v37  ;;  %v2431_v51 = vor.u32 1.1754944e-38, %v2430_v49  ;;  %v2602_v37 = vpop.permute.xlu2 %2601 }
 0x26a   : > { %v2131_v13 = vpop.f32.mrf.mxu3  ;;  %v2453_v9 = vadd.f32 %v8990_v39, %v2452_v30  ;;  %7821 = vpow2.f32 %v7135_v14  ;;  %v7550_v30 = vld [vmem:[%s9048_s25] sm:$0xff]   ;;  %v2719_v19 = vmul.f32 %v7615_v7, %v2602_v37 }
 0x26b   : > { %v2497_v63 = vmul.f32 %v7818_v21, %v2496_v33  ;;  %vm2504_vm8 = vcmp.eq.f32.partialorder %v2503_v29, 8.507059e+37  ;;  %vm2429_vm9 = vcmp.eq.f32.partialorder %v2428_v35, 8.507059e+37  ;;  %v2132_v52 = vadd.f32 %v2131_v13, %v8910_v18 }
 0x26c   : > { %v2622_v26 = vpop.permute.xlu0 %2621  ;;  %v2432_v57 = vsel %vm2429_vm9, %v2431_v51, %v2427_v20  ;;  %v2457_v35 = vsel %vm9032_vm12, %v8990_v39, %v2453_v9 }
 0x26d   : > { %v2498_v46 = vadd.f32 %v7818_v21, %v2497_v63  ;;  %v2617_v63 = vpop.permute.xlu1 %2616 }
 0x26e   : > { %v7820_v55 = vpop.eup %7819  ;;  %v2722_v39 = vmul.f32 %v7620_v25, %v2617_v63 }
 0x26f   : > { %v2502_v54 = vsel %vm2501_vm7, %v7818_v21, %v2498_v46  ;;  %v2458_v21 = vand.u32 2147483647, %v8977_v38  ;;  %v2723_v38 = vmul.f32 %v7623_v31, %v2622_v26  ;;  %v2461_v46 = vor.u32 1.1754944e-38, %v2460_v32 }
 0x270   : > { %v2507_v23 = vsel %vm2504_vm8, %v2506_v3, %v2502_v54  ;;  %v7136_v31 = vmul.f32 -1.442695, %v2132_v52  ;;  %v7822_v3 = vpop.eup %7821 }
 0x271   : > { %2686 = vperm.xlu0 %7737, %v2507_v23   ;;  %2661 = vperm.xlu2 %7735, %v2432_v57   ;;  %vm2459_vm13 = vcmp.eq.f32.partialorder %v2458_v21, 8.507059e+37  ;;  %v2607_v20 = vpop.permute.xlu2 %2606  ;;  %v7551_v23 = vunpack.c.l.bf16 %v7550_v30  ;;  %v9061_v10 = vadd.f32 1.0, %v7822_v3 }
 0x272   : > { %v2134_v33 = vpop.f32.mrf.mxu3  ;;  %v2462_v13 = vsel %vm2459_vm13, %v2461_v46, %v2457_v35  ;;  %v2720_v51 = vmul.f32 %v7616_v15, %v2607_v20 }
 0x273   : > { %v2135_v58 = vadd.f32 %v2134_v33, %v8910_v18  ;;  %v7552_v33 = vunpack.c.h.bf16 %v7550_v30 }
 0x274   : > { %v2627_v24 = vpop.permute.xlu0 %2626 }
 0x275   : > { %v2724_v0 = vmul.f32 %v7624_v34, %v2627_v24  ;;  %v7137_v29 = vmul.f32 -1.442695, %v2135_v58  ;;  %v9043_v34 = vadd.f32 1.0, %v7820_v55 }
 0x277   : > { %2760 = vmatpush.msra.mxu0 %v2724_v0  ;;  %7823 = vpow2.f32 %v7137_v29  ;;  %vm2514_vm6 = vweird.f32 %v9043_v34 }
 0x278   : > { %7825 = vrcp.f32 %v9043_v34 }
 0x279   : > { %2761 = vmatpush.msra.mxu0 %v2723_v38  ;;  %2671 = vperm.xlu0 %7737, %v2462_v13   ;;  %7827 = vpow2.f32 %v7136_v31 }
 0x27a   : > { %v2137_v26 = vpop.f32.mrf.mxu3 }
 0x27b   : > { %2762 = vmatpush.msra.mxu0 %v2722_v39  ;;  %v2138_v36 = vadd.f32 %v2137_v26, %v8910_v18 }
 0x27d   : > { %2763 = vmatpush.msra.mxu0 %v2721_v28  ;;  %v7824_v25 = vpop.eup %7823  ;;  %v7138_v54 = vmul.f32 -1.442695, %v2138_v36 }
 0x27e   : > { %v2236_v22 = vadd.f32 1.0, %v7824_v25  ;;  %v9063_v57 = vpop.eup %7825 }
 0x27f   : > { %2764 = vmatpush.msra.mxu0 %v2720_v51  ;;  %7829 = vpow2.f32 %v7138_v54  ;;  %v7828_v14 = vpop.eup %7827  ;;  %v2510_v4 = vmul.f32 %v9063_v57, %v9043_v34  ;;  %vm2515_vm5 = vweird.f32 %v9063_v57  ;;  %v2520_v54 = vand.u32 2147483648, %v9043_v34 }
 0x280   : > { %7831 = vrcp.f32 %v2236_v22  ;;  %v9070_v21 = vadd.f32 1.0, %v7828_v14  ;;  %v2565_v49 = vand.u32 2147483648, %v2236_v22  ;;  %v2563_v29 = vand.u32 2147483647, %v2236_v22  ;;  %vm9085_vm8 = vmor %vm2514_vm6, %vm2515_vm5 }
 0x281   : > { %2765 = vmatpush.msra.mxu0 %v2719_v19  ;;  %7833 = vrcp.f32 %v9061_v10  ;;  %v2511_v55 = vsub.f32 1.0, %v2510_v4  ;;  %vm2559_vm2 = vweird.f32 %v2236_v22 }
 0x282   : > { %7140 = vmatmul.msk.f32.vlgmr.msra.gmra.mxu0 %vm2743_vm14, %v7551_v23  ;;  %v2140_v15 = vpop.f32.mrf.mxu3  ;;  %v2566_v20 = vor.u32 1.1754944e-38, %v2565_v49  ;;  %vm2564_vm4 = vcmp.eq.f32.partialorder %v2563_v29, 8.507059e+37  ;;  %v2535_v29 = vand.u32 2147483648, %v9061_v10 }
 0x283   : > { %v2141_v9 = vadd.f32 %v2140_v15, %v8910_v18  ;;  %v2512_v35 = vmul.f32 %v9063_v57, %v2511_v55  ;;  %v2518_v15 = vand.u32 2147483647, %v9043_v34 }
 0x285   : > { %v7830_v7 = vpop.eup %7829  ;;  %v7139_v37 = vmul.f32 -1.442695, %v2141_v9  ;;  %v2513_v30 = vadd.f32 %v9063_v57, %v2512_v35  ;;  %vm2519_vm12 = vcmp.eq.f32.partialorder %v2518_v15, 8.507059e+37 }
 0x286   : > { %v7832_v32 = vpop.eup %7831  ;;  %v2237_v58 = vadd.f32 1.0, %v7830_v7 }
 0x287   : > { %7835 = vpow2.f32 %v7139_v37  ;;  %v2555_v24 = vmul.f32 %v7832_v32, %v2236_v22  ;;  %v9073_v0 = vpop.eup %7833  ;;  %vm2560_vm15 = vweird.f32 %v7832_v32  ;;  %v2517_v9 = vsel %vm9085_vm8, %v9063_v57, %v2513_v30  ;;  %v2632_v22 = vpop.permute.xlu2 %2631 }
 0x288   : > { %7837 = vrcp.f32 %v2237_v58  ;;  %v2525_v46 = vmul.f32 %v9073_v0, %v9061_v10  ;;  %vm2561_vm3 = vmor %vm2559_vm2, %vm2560_vm15  ;;  %v2580_v25 = vand.u32 2147483648, %v2237_v58  ;;  %v2578_v19 = vand.u32 2147483647, %v2237_v58 }
 0x289   : > { %v2556_v18 = vsub.f32 1.0, %v2555_v24  ;;  %7839 = vrcp.f32 %v9070_v21  ;;  %vm2574_vm9 = vweird.f32 %v2237_v58  ;;  %vm2530_vm13 = vweird.f32 %v9073_v0 }
 0x28a   : > { %7141 = vmatmul.msk.f32.gmra.mxu0 %vm2743_vm14, %v7552_v33  ;;  %v2526_v3 = vsub.f32 1.0, %v2525_v46  ;;  %v2581_v33 = vor.u32 1.1754944e-38, %v2580_v25  ;;  %vm2579_vm11 = vcmp.eq.f32.partialorder %v2578_v19, 8.507059e+37  ;;  %vm2529_vm15 = vweird.f32 %v9061_v10 }
 0x28b   : > { %v2557_v63 = vmul.f32 %v7832_v32, %v2556_v18 }
 0x28c   : > { %v2527_v4 = vmul.f32 %v9073_v0, %v2526_v3 }
 0x28d   : > { %v7836_v52 = vpop.eup %7835  ;;  %v2558_v38 = vadd.f32 %v7832_v32, %v2557_v63 }
 0x28e   : > { %v7838_v39 = vpop.eup %7837  ;;  %v2238_v13 = vadd.f32 1.0, %v7836_v52 }
 0x28f   : > { %v2562_v28 = vsel %vm2561_vm3, %v7832_v32, %v2558_v38  ;;  %v2570_v31 = vmul.f32 %v7838_v39, %v2237_v58  ;;  %v9081_v51 = vpop.eup %7839  ;;  %vm2575_vm7 = vweird.f32 %v7838_v39  ;;  %v2521_v32 = vor.u32 1.1754944e-38, %v2520_v54  ;;  %vm2531_vm3 = vmor %vm2529_vm15, %vm2530_vm13 }
 0x290   : > { %7841 = vrcp.f32 %v2238_v13  ;;  %v2567_v26 = vsel %vm2564_vm4, %v2566_v20, %v2562_v28  ;;  %v2540_v7 = vmul.f32 %v9081_v51, %v9070_v21  ;;  %vm2576_vm10 = vmor %vm2574_vm9, %vm2575_vm7  ;;  %v2528_v58 = vadd.f32 %v9073_v0, %v2527_v4  ;;  %v2647_v4 = vpop.permute.xlu2 %2646 }
 0x291   : > { %2706 = vperm.xlu2 %7735, %v2567_v26   ;;  %v2571_v36 = vsub.f32 1.0, %v2570_v31  ;;  %v2522_v18 = vsel %vm2519_vm12, %v2521_v32, %v2517_v9  ;;  %v2595_v63 = vand.u32 2147483648, %v2238_v13  ;;  %v2593_v52 = vand.u32 2147483647, %v2238_v13 }
 0x292   : > { %v2541_v49 = vsub.f32 1.0, %v2540_v7  ;;  %v2533_v38 = vand.u32 2147483647, %v9061_v10  ;;  %vm2589_vm4 = vweird.f32 %v2238_v13  ;;  %v2536_v31 = vor.u32 1.1754944e-38, %v2535_v29 }
 0x293   : > { %v2572_v23 = vmul.f32 %v7838_v39, %v2571_v36  ;;  %v2596_v28 = vor.u32 1.1754944e-38, %v2595_v63  ;;  %vm2594_vm6 = vcmp.eq.f32.partialorder %v2593_v52, 8.507059e+37  ;;  %vm2545_vm8 = vweird.f32 %v9081_v51 }
 0x294   : > { %v2542_v20 = vmul.f32 %v9081_v51, %v2541_v49  ;;  %vm2534_vm7 = vcmp.eq.f32.partialorder %v2533_v38, 8.507059e+37  ;;  %v2550_v10 = vand.u32 2147483648, %v9070_v21  ;;  %vm2544_vm9 = vweird.f32 %v9070_v21  ;;  %v7663_v38 = vld [vmem:[%s9048_s25 + $0x18] sm:$0xff]  }
 0x295   : > { %v2573_v14 = vadd.f32 %v7838_v39, %v2572_v23  ;;  %v2637_v23 = vpop.permute.xlu0 %2636  ;;  %v7564_v40 = vunpack.c.h.bf16 %v7663_v38 }
 0x296   : > { %v7842_v37 = vpop.eup %7841  ;;  %v2543_v3 = vadd.f32 %v9081_v51, %v2542_v20  ;;  %v2551_v25 = vor.u32 1.1754944e-38, %v2550_v10 }
 0x297   : > { %v2577_v24 = vsel %vm2576_vm10, %v7838_v39, %v2573_v14  ;;  %v2585_v55 = vmul.f32 %v7842_v37, %v2238_v13  ;;  %vm2590_vm2 = vweird.f32 %v7842_v37  ;;  %v2532_v39 = vsel %vm2531_vm3, %v9073_v0, %v2528_v58  ;;  %vm2546_vm10 = vmor %vm2544_vm9, %vm2545_vm8 }
 0x298   : > { %v2582_v34 = vsel %vm2579_vm11, %v2581_v33, %v2577_v24  ;;  %vm2591_vm5 = vmor %vm2589_vm4, %vm2590_vm2  ;;  %v2537_v36 = vsel %vm2534_vm7, %v2536_v31, %v2532_v39  ;;  %v2548_v0 = vand.u32 2147483647, %v9070_v21  ;;  %v2547_v13 = vsel %vm2546_vm10, %v9081_v51, %v2543_v3  ;;  %v3292_v31 = vld [vmem:[%s12167_s11 + $0x8] sm:$0xff]  ;;  %v9209_v3 = vld [vmem:[%s8506_s5 + $0x10] sm:$0xff] }
 0x299   : > { %2711 = vperm.xlu1 %7736, %v2582_v34   ;;  %2691 = vperm.xlu2 %7735, %v2522_v18   ;;  %v2586_v57 = vsub.f32 1.0, %v2585_v55  ;;  %v2728_v51 = vmul.f32 %v7632_v1, %v2647_v4  ;;  %v2726_v33 = vmul.f32 %v7628_v47, %v2637_v23  ;;  %v8330_v1 = vmov 1.0   ;;  %v7662_v18 = vld [vmem:[%s9048_s25 + $0x10] sm:$0xff]   ;;  %v9225_v23 = vld [vmem:[%s8506_s5 + $0x20] sm:$0xff] }
 0x29a   : > { %vm2549_vm11 = vcmp.eq.f32.partialorder %v2548_v0, 8.507059e+37  ;;  %2880 = vmatpush.msrb.mxu0 %v8330_v1  ;;  %v7560_v56 = vunpack.c.h.bf16 %v7662_v18  ;;  %v12247_v39 = vunpack.c.h.bf16 %v8707_v27  ;;  %v9216_v0 = vld [vmem:[%s8506_s5 + $0x18] sm:$0xff] }
 0x29b   : > { %v2587_v35 = vmul.f32 %v7842_v37, %v2586_v57  ;;  %v2552_v54 = vsel %vm2549_vm11, %v2551_v25, %v2547_v13  ;;  %v2642_v19 = vpop.permute.xlu1 %2641 }
 0x29c   : > { %v2727_v7 = vmul.f32 %v7631_v60, %v2642_v19  ;;  %2881 = vmatpush.msrb.mxu0 %v8330_v1 }
 0x29d   : > { %v2588_v46 = vadd.f32 %v7842_v37, %v2587_v35 }
 0x29f   : > { %v2592_v26 = vsel %vm2591_vm5, %v7842_v37, %v2588_v46  ;;  %v7661_v37 = vld [vmem:[%s9048_s25 + $0x8] sm:$0xff]   ;;  %s750_s25 = sand.u32 1, %s8319_s30  }
 0x2a0   : > { %v2597_v30 = vsel %vm2594_vm6, %v2596_v28, %v2592_v26  ;;  %v7555_v32 = vunpack.c.l.bf16 %v7661_v37  ;;  %v7556_v5 = vunpack.c.h.bf16 %v7661_v37  ;;  %v3293_v28 = vld [vmem:[%s12167_s11 + $0x10] sm:$0xff]  ;;  %v3291_v26 = vld [vmem:[%s12167_s11] sm:$0xff]  ;;  %s6959_s23 = sshll.u32 %s750_s25, 6 }
 0x2a1   : > { %2716 = vperm.xlu0 %7737, %v2597_v30   ;;  %2696 = vperm.xlu1 %7736, %v2537_v36   ;;  %v9199_v30 = vld [vmem:[%s8506_s5] sm:$0xff]  ;;  %v9204_v36 = vld [vmem:[%s8506_s5 + $0x8] sm:$0xff] }
 0x2a9   : > { %2701 = vperm.xlu0 %7737, %v2552_v54  }
 0x2ab   : > { %v2652_v15 = vpop.permute.xlu1 %2651 }
 0x2ac   : > { %v2729_v21 = vmul.f32 %v7635_v8, %v2652_v15 }
 0x2b3   : > { %v2657_v9 = vpop.permute.xlu0 %2656 }
 0x2b4   : > { %v2730_v14 = vmul.f32 %v7636_v16, %v2657_v9  ;;  %v2725_v16 = vmul.f32 %v7627_v44, %v2632_v22 }
 0x2b6   : > { %2789 = vmatpush.msra.mxu1 %v2730_v14  ;;  %v9234_v14 = vld [vmem:[%s8506_s5 + $0x28] sm:$0xff] }
 0x2b8   : > { %2790 = vmatpush.msra.mxu1 %v2729_v21 }
 0x2ba   : > { %2791 = vmatpush.msra.mxu1 %v2728_v51 }
 0x2bc   : > { %2792 = vmatpush.msra.mxu1 %v2727_v7 }
 0x2be   : > { %2793 = vmatpush.msra.mxu1 %v2726_v33 }
 0x2c0   : > { %2794 = vmatpush.msra.mxu1 %v2725_v16 }
 0x2c1   : > { %7142 = vmatmul.msk.f32.vlgmr.msra.gmra.mxu1 %vm2743_vm14, %v7555_v32  ;;  %v9241_v32 = vld [vmem:[%s8506_s5 + $0x30] sm:$0xff] }
 0x2c2   : > { %2909 = vmatpush.msrb.mxu1 %v8330_v1 }
 0x2c3   : > { %v2682_v42 = vpop.permute.xlu2 %2681 }
 0x2c4   : > { %2910 = vmatpush.msrb.mxu1 %v8330_v1  ;;  %v2735_v60 = vmul.f32 %v7647_v12, %v2682_v42 }
 0x2c9   : > { %7143 = vmatmul.msk.f32.gmra.mxu1 %vm2743_vm14, %v7556_v5 }
 0x2cb   : > { %v2662_v57 = vpop.permute.xlu2 %2661 }
 0x2cc   : > { %v2731_v6 = vmul.f32 %v7639_v45, %v2662_v57 }
 0x2d3   : > { %v2677_v47 = vpop.permute.xlu1 %2676 }
 0x2d4   : > { %v2734_v8 = vmul.f32 %v7644_v2, %v2677_v47 }
 0x2db   : > { %v2667_v24 = vpop.permute.xlu1 %2666 }
 0x2dc   : > { %v2732_v58 = vmul.f32 %v7640_v48, %v2667_v24 }
 0x2e3   : > { %v2687_v44 = vpop.permute.xlu0 %2686 }
 0x2e4   : > { %v2736_v50 = vmul.f32 %v7648_v17, %v2687_v44  ;;  %v7559_v17 = vunpack.c.l.bf16 %v7662_v18 }
 0x2e6   : > { %2818 = vmatpush.msra.mxu2 %v2736_v50  ;;  %v9246_v50 = vld [vmem:[%s8506_s5 + $0x38] sm:$0xff] }
 0x2e8   : > { %2819 = vmatpush.msra.mxu2 %v2735_v60 }
 0x2ea   : > { %2820 = vmatpush.msra.mxu2 %v2734_v8 }
 0x2eb   : > { %v2672_v55 = vpop.permute.xlu0 %2671  ;;  %v2707_v45 = vpop.permute.xlu2 %2706 }
 0x2ec   : > { %v2733_v34 = vmul.f32 %v7643_v62, %v2672_v55  ;;  %v2740_v63 = vmul.f32 %v7656_v53, %v2707_v45  ;;  %v3294_v53 = vld [vmem:[%s12167_s11 + $0x18] sm:$0xff] }
 0x2ee   : > { %2821 = vmatpush.msra.mxu2 %v2733_v34 }
 0x2f0   : > { %2822 = vmatpush.msra.mxu2 %v2732_v58 }
 0x2f2   : > { %2823 = vmatpush.msra.mxu2 %v2731_v6 }
 0x2f3   : > { %7144 = vmatmul.msk.f32.vlgmr.msra.gmra.mxu2 %vm2743_vm14, %v7559_v17  ;;  %v2692_v46 = vpop.permute.xlu2 %2691 }
 0x2f4   : > { %2938 = vmatpush.msrb.mxu2 %v8330_v1 }
 0x2f6   : > { %2939 = vmatpush.msrb.mxu2 %v8330_v1 }
 0x2fb   : > { %7145 = vmatmul.msk.f32.gmra.mxu2 %vm2743_vm14, %v7560_v56 }
 0x2ff   : > { %v9145_v62 = vpop.f32.mrf.mxu0 }
 0x300   : > { %7148 = vmatmul.msk.f32.vlgmr.msrb.gmra.mxu0 %vm933_vm0, %v9145_v62 }
 0x307   : > { %v9149_v48 = vpop.f32.mrf.mxu0 }
 0x308   : > { %7149 = vmatmul.msk.f32.gmra.mxu0 %vm933_vm0, %v9149_v48 }
 0x309   : > { %3121 = vmatpush.msra.mxu0 %v9149_v48 }
 0x30b   : > { %3122 = vmatpush.msra.mxu0 %v9145_v62  ;;  %v2712_v43 = vpop.permute.xlu1 %2711 }
 0x30c   : > { %v2741_v49 = vmul.f32 %v7659_v61, %v2712_v43  ;;  %v2737_v61 = vmul.f32 %v12248_v59, %v2692_v46 }
 0x30d   : > { %3335 = vmatpush.msrb.mxu0 %v3294_v53 }
 0x30f   : > { %3336 = vmatpush.msrb.mxu0 %v3293_v28 }
 0x310   : > { %7156 = vmatmul.msk.f32.vlgmr.msra.gmra.mxu0 %vm933_vm0, %v8330_v1 }
 0x311   : > { %3337 = vmatpush.msrb.mxu0 %v3292_v31 }
 0x313   : > { %v2717_v2 = vpop.permute.xlu0 %2716  ;;  %v2697_v29 = vpop.permute.xlu1 %2696  ;;  %3338 = vmatpush.msrb.mxu0 %v3291_v26 }
 0x314   : > { %v2742_v12 = vmul.f32 %v7660_v11, %v2717_v2  ;;  %v2738_v20 = vmul.f32 %v12247_v39, %v2697_v29  ;;  %v7563_v11 = vunpack.c.l.bf16 %v7663_v38 }
 0x316   : > { %2847 = vmatpush.msra.mxu3 %v2742_v12 }
 0x318   : > { %2848 = vmatpush.msra.mxu3 %v2741_v49  ;;  %7180 = vmatmul.msk.f32.vlgmr.msrb.gmra.mxu0 %vm1525_vm1, %v9199_v30 }
 0x31a   : > { %2849 = vmatpush.msra.mxu3 %v2740_v63 }
 0x31b   : > { %v2702_v35 = vpop.permute.xlu0 %2701 }
 0x31c   : > { %v2739_v52 = vmul.f32 %v7655_v41, %v2702_v35 }
 0x31e   : > { %2850 = vmatpush.msra.mxu3 %v2739_v52 }
 0x320   : > { %2851 = vmatpush.msra.mxu3 %v2738_v20  ;;  %7181 = vmatmul.msk.f32.gmra.mxu0 %vm1525_vm1, %v9204_v36  ;;  %v9265_v20 = vld [vmem:[%s12168_s12] ss:$0 sm:$0xff] }
 0x322   : > { %2852 = vmatpush.msra.mxu3 %v2737_v61 }
 0x323   : > { %7146 = vmatmul.msk.f32.vlgmr.msra.gmra.mxu3 %vm2743_vm14, %v7563_v11 }
 0x324   : > { %2967 = vmatpush.msrb.mxu3 %v8330_v1 }
 0x326   : > { %2968 = vmatpush.msrb.mxu3 %v8330_v1 }
 0x328   : > { %7182 = vmatmul.msk.f32.gmra.mxu0 %vm1525_vm1, %v9209_v3 }
 0x32b   : > { %7147 = vmatmul.msk.f32.gmra.mxu3 %vm2743_vm14, %v7564_v40 }
 0x330   : > { %7183 = vmatmul.msk.f32.gmra.mxu0 %vm1525_vm1, %v9216_v0 }
 0x338   : > { %7184 = vmatmul.msk.f32.gmra.mxu0 %vm1525_vm1, %v9225_v23 }
 0x33e   : > { %v9174_v41 = vpop.f32.mrf.mxu1 }
 0x33f   : > { %7150 = vmatmul.msk.f32.vlgmr.msrb.gmra.mxu1 %vm933_vm0, %v9174_v41 }
 0x340   : > { %7185 = vmatmul.msk.f32.gmra.mxu0 %vm1525_vm1, %v9234_v14 }
 0x346   : > { %v9178_v27 = vpop.f32.mrf.mxu1 }
 0x347   : > { %7151 = vmatmul.msk.f32.gmra.mxu1 %vm933_vm0, %v9178_v27 }
 0x348   : > { %3141 = vmatpush.msra.mxu1 %v9178_v27  ;;  %7186 = vmatmul.msk.f32.gmra.mxu0 %vm1525_vm1, %v9241_v32 }
 0x34a   : > { %3142 = vmatpush.msra.mxu1 %v9174_v41 }
 0x34f   : > { %7157 = vmatmul.msk.f32.vlgmr.msra.gmra.mxu1 %vm933_vm0, %v8330_v1 }
 0x350   : > { %7187 = vmatmul.msk.f32.gmra.mxu0 %vm1525_vm1, %v9246_v50 }
 0x376   : > { %v9213_v10 = vpop.f32.mrf.mxu2 }
 0x377   : > { %7152 = vmatmul.msk.f32.vlgmr.msrb.gmra.mxu2 %vm933_vm0, %v9213_v10 }
 0x37d   : > { %v2883_v13 = vpop.f32.mrf.mxu0 }
 0x37e   : > { %v2884_v25 = vadd.f32 1e-06, %v2883_v13  ;;  %v9222_v54 = vpop.f32.mrf.mxu2 }
 0x37f   : > { %7153 = vmatmul.msk.f32.gmra.mxu2 %vm933_vm0, %v9222_v54 }
 0x380   : > { %7843 = vrsqrt.f32 %v2884_v25  ;;  %3161 = vmatpush.msra.mxu2 %v9222_v54  ;;  %vm2982_vm14 = vweird.f32 %v2884_v25 }
 0x382   : > { %3162 = vmatpush.msra.mxu2 %v9213_v10 }
 0x385   : > { %v2886_v19 = vpop.f32.mrf.mxu0 }
 0x386   : > { %v7844_v22 = vpop.eup %7843  ;;  %v2887_v15 = vadd.f32 1e-06, %v2886_v19 }
 0x387   : > { %v2977_v9 = vmul.f32 %v7844_v22, %v2884_v25  ;;  %7158 = vmatmul.msk.f32.vlgmr.msra.gmra.mxu2 %vm933_vm0, %v8330_v1  ;;  %vm2983_vm12 = vweird.f32 %v7844_v22 }
 0x388   : > { %7845 = vrsqrt.f32 %v2887_v15  ;;  %vm2984_vm13 = vmor %vm2982_vm14, %vm2983_vm12  ;;  %vm2992_vm15 = vweird.f32 %v2887_v15 }
 0x389   : > { %v2978_v4 = vmul.f32 %v7844_v22, %v2977_v9 }
 0x38b   : > { %v2979_v21 = vmul.f32 0.5, %v2978_v4 }
 0x38d   : > { %v2980_v51 = vsub.f32 1.5, %v2979_v21  ;;  %v3124_v29 = vpop.f32.mrf.mxu0 }
 0x38e   : > { %v7846_v7 = vpop.eup %7845  ;;  %v3125_v39 = vadd.f32 1e-06, %v3124_v29 }
 0x38f   : > { %v2987_v37 = vmul.f32 %v7846_v7, %v2887_v15  ;;  %v2981_v33 = vmul.f32 %v7844_v22, %v2980_v51  ;;  %vm2993_vm2 = vweird.f32 %v7846_v7 }
 0x390   : > { %vm2994_vm3 = vmor %vm2992_vm15, %vm2993_vm2  ;;  %vm3193_vm10 = vweird.f32 %v3125_v39 }
 0x391   : > { %v2988_v16 = vmul.f32 %v7846_v7, %v2987_v37  ;;  %v2985_v5 = vsel %vm2984_vm13, %v7844_v22, %v2981_v33 }
 0x392   : > { %3058 = vperm.xlu0 %7737, %v2985_v5  }
 0x393   : > { %v2989_v47 = vmul.f32 0.5, %v2988_v16 }
 0x395   : > { %v2990_v42 = vsub.f32 1.5, %v2989_v47  ;;  %v3340_v46 = vpop.f32.mrf.mxu0 }
 0x396   : > { %v3341_v61 = vadd.f32 %v9265_v20, %v3340_v46 }
 0x397   : > { %v2991_v44 = vmul.f32 %v7846_v7, %v2990_v42 }
 0x399   : > { %v2995_v60 = vsel %vm2994_vm3, %v7846_v7, %v2991_v44 }
 0x39a   : > { %3063 = vperm.xlu1 %7736, %v2995_v60  }
 0x39d   : > { %v3343_v11 = vpop.f32.mrf.mxu0 }
 0x39e   : > { %v3344_v59 = vadd.f32 %v9265_v20, %v3343_v11 }
 0x3a0   : > { %3384 = vmatpush.msrb.mxu1 %v3344_v59 }
 0x3a2   : > { %3385 = vmatpush.msrb.mxu1 %v3341_v61 }
 0x3a5   : > { %v3346_v15 = vpop.f32.mrf.mxu0 }
 0x3a6   : > { %v9250_v8 = vpop.f32.mrf.mxu3 }
 0x3a7   : > { %7154 = vmatmul.msk.f32.vlgmr.msrb.gmra.mxu3 %vm933_vm0, %v9250_v8 }
 0x3ae   : > { %v9254_v24 = vpop.f32.mrf.mxu3 }
 0x3af   : > { %7155 = vmatmul.msk.f32.gmra.mxu3 %vm933_vm0, %v9254_v24 }
 0x3b0   : > { %3181 = vmatpush.msra.mxu3 %v9254_v24 }
 0x3b2   : > { %3182 = vmatpush.msra.mxu3 %v9250_v8 }
 0x3b7   : > { %7159 = vmatmul.msk.f32.vlgmr.msra.gmra.mxu3 %vm933_vm0, %v8330_v1 }
 0x3bc   : > { %v2912_v55 = vpop.f32.mrf.mxu1 }
 0x3bd   : > { %v2913_v34 = vadd.f32 1e-06, %v2912_v55 }
 0x3bf   : > { %7847 = vrsqrt.f32 %v2913_v34  ;;  %vm3002_vm4 = vweird.f32 %v2913_v34 }
 0x3c4   : > { %v2915_v18 = vpop.f32.mrf.mxu1 }
 0x3c5   : > { %v7848_v57 = vpop.eup %7847  ;;  %v2916_v58 = vadd.f32 1e-06, %v2915_v18  ;;  %v3349_v18 = vpop.f32.mrf.mxu0 }
 0x3c6   : > { %v2997_v17 = vmul.f32 %v7848_v57, %v2913_v34  ;;  %vm3003_vm5 = vweird.f32 %v7848_v57 }
 0x3c7   : > { %7849 = vrsqrt.f32 %v2916_v58  ;;  %vm3004_vm6 = vmor %vm3002_vm4, %vm3003_vm5  ;;  %vm3012_vm7 = vweird.f32 %v2916_v58 }
 0x3c8   : > { %v2998_v6 = vmul.f32 %v7848_v57, %v2997_v17  ;;  %7851 = vrsqrt.f32 %v3125_v39  ;;  %v3347_v17 = vadd.f32 %v9265_v20, %v3346_v15 }
 0x3ca   : > { %v2999_v56 = vmul.f32 0.5, %v2998_v6  ;;  %v3350_v6 = vadd.f32 %v9265_v20, %v3349_v18 }
 0x3cc   : > { %v3000_v43 = vsub.f32 1.5, %v2999_v56  ;;  %v3144_v37 = vpop.f32.mrf.mxu1  ;;  %3413 = vmatpush.msrb.mxu2 %v3350_v6 }
 0x3cd   : > { %v7850_v45 = vpop.eup %7849  ;;  %v3145_v42 = vadd.f32 1e-06, %v3144_v37  ;;  %v3352_v18 = vpop.f32.mrf.mxu0 }
 0x3ce   : > { %v3007_v2 = vmul.f32 %v7850_v45, %v2916_v58  ;;  %v3001_v12 = vmul.f32 %v7848_v57, %v3000_v43  ;;  %vm3013_vm8 = vweird.f32 %v7850_v45  ;;  %v7852_v40 = vpop.eup %7851  ;;  %3414 = vmatpush.msrb.mxu2 %v3347_v17 }
 0x3cf   : > { %vm3014_vm9 = vmor %vm3012_vm7, %vm3013_vm8  ;;  %v3188_v53 = vmul.f32 %v7852_v40, %v3125_v39  ;;  %vm3194_vm11 = vweird.f32 %v7852_v40  ;;  %vm3203_vm5 = vweird.f32 %v3145_v42 }
 0x3d0   : > { %v3008_v49 = vmul.f32 %v7850_v45, %v3007_v2  ;;  %v3005_v63 = vsel %vm3004_vm6, %v7848_v57, %v3001_v12  ;;  %vm3195_vm14 = vmor %vm3193_vm10, %vm3194_vm11 }
 0x3d1   : > { %3068 = vperm.xlu2 %7735, %v3005_v63   ;;  %v3189_v28 = vmul.f32 %v7852_v40, %v3188_v53 }
 0x3d2   : > { %v3009_v1 = vmul.f32 0.5, %v3008_v49 }
 0x3d3   : > { %v3190_v31 = vmul.f32 0.5, %v3189_v28  ;;  %v3256_v28 = vld [vmem:[%s12170_s14 + $0x18] sm:$0xff] }
 0x3d4   : > { %v3010_v35 = vsub.f32 1.5, %v3009_v1  ;;  %3500 = vmatpush.msra.mxu2 %v3256_v28 }
 0x3d5   : > { %v3191_v26 = vsub.f32 1.5, %v3190_v31  ;;  %v3255_v31 = vld [vmem:[%s12170_s14 + $0x10] sm:$0xff] }
 0x3d6   : > { %v3011_v52 = vmul.f32 %v7850_v45, %v3010_v35  ;;  %3501 = vmatpush.msra.mxu2 %v3255_v31 }
 0x3d7   : > { %v3192_v19 = vmul.f32 %v7852_v40, %v3191_v26 }
 0x3d8   : > { %v3015_v38 = vsel %vm3014_vm9, %v7850_v45, %v3011_v52 }
 0x3d9   : > { %3073 = vperm.xlu0 %7737, %v3015_v38   ;;  %v3196_v22 = vsel %vm3195_vm14, %v7852_v40, %v3192_v19 }
 0x3da   : > { %v3227_v4 = vperm.slane %v3196_v22, 0  ;;  %v3253_v22 = vld [vmem:[%s12170_s14] sm:$0xff] }
 0x3fa   : > { %v2941_v13 = vpop.f32.mrf.mxu2 }
 0x3fb   : > { %v2942_v25 = vadd.f32 1e-06, %v2941_v13 }
 0x3fd   : > { %7853 = vrsqrt.f32 %v2942_v25  ;;  %vm3022_vm12 = vweird.f32 %v2942_v25 }
 0x402   : > { %v2944_v9 = vpop.f32.mrf.mxu2 }
 0x403   : > { %v7854_v21 = vpop.eup %7853  ;;  %v2945_v51 = vadd.f32 1e-06, %v2944_v9 }
 0x404   : > { %v3059_v7 = vpop.permute.xlu0 %3058  ;;  %v3017_v33 = vmul.f32 %v7854_v21, %v2942_v25  ;;  %vm3023_vm13 = vweird.f32 %v7854_v21 }
 0x405   : > { %v3096_v16 = vmul.f32 %v3059_v7, %v9145_v62  ;;  %7855 = vrsqrt.f32 %v2945_v51  ;;  %vm3024_vm15 = vmor %vm3022_vm12, %vm3023_vm13  ;;  %vm3032_vm2 = vweird.f32 %v2945_v51 }
 0x406   : > { %v3018_v5 = vmul.f32 %v7854_v21, %v3017_v33  ;;  %7857 = vrsqrt.f32 %v3145_v42 }
 0x407   : > { %v9270_v47 = vmul.f32 %v3227_v4, %v3096_v16 }
 0x408   : > { %v3019_v44 = vmul.f32 0.5, %v3018_v5 }
 0x409   : > { %7188 = vmatmul.msk.f32.vlgmr.msrb.gmra.mxu1 %vm933_vm0, %v9270_v47 }
 0x40a   : > { %v3020_v60 = vsub.f32 1.5, %v3019_v44 }
 0x40b   : > { %v7856_v55 = vpop.eup %7855 }
 0x40c   : > { %v3064_v34 = vpop.permute.xlu1 %3063  ;;  %v3027_v57 = vmul.f32 %v7856_v55, %v2945_v51  ;;  %v3021_v58 = vmul.f32 %v7854_v21, %v3020_v60  ;;  %v7858_v2 = vpop.eup %7857  ;;  %vm3033_vm3 = vweird.f32 %v7856_v55 }
 0x40d   : > { %v3097_v62 = vmul.f32 %v3064_v34, %v9149_v48  ;;  %v3198_v49 = vmul.f32 %v7858_v2, %v3145_v42  ;;  %vm3034_vm4 = vmor %vm3032_vm2, %vm3033_vm3  ;;  %vm3204_vm6 = vweird.f32 %v7858_v2 }
 0x40e   : > { %v3028_v56 = vmul.f32 %v7856_v55, %v3027_v57  ;;  %v3025_v45 = vsel %vm3024_vm15, %v7854_v21, %v3021_v58  ;;  %vm3205_vm7 = vmor %vm3203_vm5, %vm3204_vm6  ;;  %v3164_v57 = vpop.f32.mrf.mxu2  ;;  %v3353_v58 = vadd.f32 %v9265_v20, %v3352_v18 }
 0x40f   : > { %v9277_v43 = vmul.f32 %v3227_v4, %v3097_v62  ;;  %3078 = vperm.xlu1 %7736, %v3025_v45   ;;  %v3199_v29 = vmul.f32 %v7858_v2, %v3198_v49  ;;  %v3355_v62 = vpop.f32.mrf.mxu0  ;;  %v3165_v6 = vadd.f32 1e-06, %v3164_v57  ;;  %v7161_v45 = vld [vmem:[%s12169_s13 + $0x28] sm:$0xff]  ;;  %v9326_v49 = vld [vmem:[%s12169_s13 + $0x18] sm:$0xff] }
 0x410   : > { %v3029_v12 = vmul.f32 0.5, %v3028_v56  ;;  %v3356_v17 = vadd.f32 %v9265_v20, %v3355_v62  ;;  %v7162_v56 = vld [vmem:[%s12169_s13 + $0x30] sm:$0xff] }
 0x411   : > { %7189 = vmatmul.msk.f32.gmra.mxu1 %vm933_vm0, %v9277_v43  ;;  %v3200_v35 = vmul.f32 0.5, %v3199_v29  ;;  %v7167_v29 = vld [vmem:[%s12169_s13 + $0x58] sm:$0xff]  ;;  %vm3213_vm13 = vweird.f32 %v3165_v6 }
 0x412   : > { %v3030_v48 = vsub.f32 1.5, %v3029_v12  ;;  %3442 = vmatpush.msrb.mxu3 %v3356_v17 }
 0x413   : > { %v3201_v52 = vsub.f32 1.5, %v3200_v35  ;;  %v9342_v35 = vld [vmem:[%s12169_s13 + $0x8] sm:$0xff] }
 0x414   : > { %v3031_v63 = vmul.f32 %v7856_v55, %v3030_v48  ;;  %3443 = vmatpush.msrb.mxu3 %v3353_v58 }
 0x415   : > { %v3202_v38 = vmul.f32 %v7858_v2, %v3201_v52  ;;  %v7166_v52 = vld [vmem:[%s12169_s13 + $0x50] sm:$0xff] }
 0x416   : > { %v3035_v1 = vsel %vm3034_vm4, %v7856_v55, %v3031_v63  ;;  %3565 = vmatpush.msra.mxu3 %v9326_v49 }
 0x417   : > { %3083 = vperm.xlu2 %7735, %v3035_v1   ;;  %v3206_v46 = vsel %vm3205_vm7, %v7858_v2, %v3202_v38  ;;  %v7160_v2 = vld [vmem:[%s12169_s13 + $0x20] sm:$0xff]  ;;  %v9334_v1 = vld [vmem:[%s12169_s13 + $0x10] sm:$0xff]  ;;  %v3358_v28 = vpop.f32.mrf.mxu0 }
 0x418   : > { %v3228_v11 = vperm.slane %v3206_v46, 0  ;;  %3566 = vmatpush.msra.mxu3 %v9334_v1  ;;  %v9351_v38 = vld [vmem:[%s12169_s13] sm:$0xff]  ;;  %v7165_v46 = vld [vmem:[%s12169_s13 + $0x48] sm:$0xff] }
 0x41a   : > { %3567 = vmatpush.msra.mxu3 %v9342_v35 }
 0x41c   : > { %3568 = vmatpush.msra.mxu3 %v9351_v38 }
 0x42a   : > { %v2970_v39 = vpop.f32.mrf.mxu3 }
 0x42b   : > { %v2971_v59 = vadd.f32 1e-06, %v2970_v39  ;;  %v3069_v61 = vpop.permute.xlu2 %3068 }
 0x42c   : > { %v3098_v40 = vmul.f32 %v3069_v61, %v9174_v41  ;;  %v3254_v41 = vld [vmem:[%s12170_s14 + $0x8] sm:$0xff] }
 0x42d   : > { %7859 = vrsqrt.f32 %v2971_v59  ;;  %3502 = vmatpush.msra.mxu2 %v3254_v41  ;;  %vm3042_vm9 = vweird.f32 %v2971_v59 }
 0x42e   : > { %v9282_v53 = vmul.f32 %v3228_v11, %v3098_v40 }
 0x42f   : > { %3503 = vmatpush.msra.mxu2 %v3253_v22 }
 0x430   : > { %7190 = vmatmul.msk.f32.vlgmr.msrb.gmra.mxu2 %vm933_vm0, %v9282_v53 }
 0x431   : > { %4008 = vmatpush.msrb.mxu2 %v7167_v29 }
 0x432   : > { %v2973_v26 = vpop.f32.mrf.mxu3 }
 0x433   : > { %v7860_v13 = vpop.eup %7859  ;;  %v2974_v25 = vadd.f32 1e-06, %v2973_v26  ;;  %4009 = vmatpush.msrb.mxu2 %v7166_v52 }
 0x434   : > { %v3037_v19 = vmul.f32 %v7860_v13, %v2971_v59  ;;  %vm3043_vm8 = vweird.f32 %v7860_v13 }
 0x435   : > { %7861 = vrsqrt.f32 %v2974_v25  ;;  %vm3044_vm10 = vmor %vm3042_vm9, %vm3043_vm8  ;;  %vm3052_vm14 = vweird.f32 %v2974_v25  ;;  %4010 = vmatpush.msrb.mxu2 %v7165_v46 }
 0x436   : > { %v3038_v15 = vmul.f32 %v7860_v13, %v3037_v19  ;;  %7863 = vrsqrt.f32 %v3165_v6 }
 0x438   : > { %v3039_v9 = vmul.f32 0.5, %v3038_v15  ;;  %v3361_v15 = vpop.f32.mrf.mxu0 }
 0x43a   : > { %v3040_v4 = vsub.f32 1.5, %v3039_v9 }
 0x43b   : > { %v7862_v21 = vpop.eup %7861 }
 0x43c   : > { %v3047_v51 = vmul.f32 %v7862_v21, %v2974_v25  ;;  %v3041_v7 = vmul.f32 %v7860_v13, %v3040_v4  ;;  %vm3053_vm11 = vweird.f32 %v7862_v21  ;;  %v7864_v12 = vpop.eup %7863  ;;  %v3359_v4 = vadd.f32 %v9265_v20, %v3358_v28 }
 0x43d   : > { %vm3054_vm12 = vmor %vm3052_vm14, %vm3053_vm11  ;;  %v3208_v48 = vmul.f32 %v7864_v12, %v3165_v6  ;;  %vm3214_vm15 = vweird.f32 %v7864_v12 }
 0x43e   : > { %v3048_v37 = vmul.f32 %v7862_v21, %v3047_v51  ;;  %v3045_v33 = vsel %vm3044_vm10, %v7860_v13, %v3041_v7  ;;  %vm3215_vm2 = vmor %vm3213_vm13, %vm3214_vm15 }
 0x43f   : > { %3088 = vperm.xlu0 %7737, %v3045_v33   ;;  %v3209_v63 = vmul.f32 %v7864_v12, %v3208_v48 }
 0x440   : > { %v3049_v16 = vmul.f32 0.5, %v3048_v37 }
 0x441   : > { %v3210_v39 = vmul.f32 0.5, %v3209_v63 }
 0x442   : > { %v3050_v5 = vsub.f32 1.5, %v3049_v16  ;;  %v7171_v16 = vld [vmem:[%s12170_s14 + $0x38] sm:$0xff] }
 0x443   : > { %v3211_v59 = vsub.f32 1.5, %v3210_v39  ;;  %v9440_v39 = vld [vmem:[%s12170_s14 + $0x58] sm:$0xff] }
 0x444   : > { %v3051_v42 = vmul.f32 %v7862_v21, %v3050_v5  ;;  %v7170_v5 = vld [vmem:[%s12170_s14 + $0x30] sm:$0xff] }
 0x445   : > { %v3212_v61 = vmul.f32 %v7864_v12, %v3211_v59  ;;  %v9452_v59 = vld [vmem:[%s12170_s14 + $0x48] sm:$0xff] }
 0x446   : > { %v3055_v44 = vsel %vm3054_vm12, %v7862_v21, %v3051_v42  ;;  %v3184_v21 = vpop.f32.mrf.mxu3 }
 0x447   : > { %3093 = vperm.xlu1 %7736, %v3055_v44   ;;  %v3216_v40 = vsel %vm3215_vm2, %v7864_v12, %v3212_v61  ;;  %v7169_v44 = vld [vmem:[%s12170_s14 + $0x28] sm:$0xff]  ;;  %v9458_v61 = vld [vmem:[%s12170_s14 + $0x40] sm:$0xff] }
 0x448   : > { %v3229_v26 = vperm.slane %v3216_v40, 0 }
 0x44b   : > { %v3074_v60 = vpop.permute.xlu0 %3073 }
 0x44c   : > { %v3099_v55 = vmul.f32 %v3074_v60, %v9178_v27  ;;  %v7163_v27 = vld [vmem:[%s12169_s13 + $0x38] sm:$0xff]  ;;  %v7168_v60 = vld [vmem:[%s12170_s14 + $0x20] sm:$0xff] }
 0x44d   : > { %3807 = vmatpush.msra.mxu0 %v7163_v27 }
 0x44e   : > { %v9299_v34 = vmul.f32 %v3228_v11, %v3099_v55  ;;  %v7164_v11 = vld [vmem:[%s12169_s13 + $0x40] sm:$0xff] }
 0x44f   : > { %3808 = vmatpush.msra.mxu0 %v7162_v56  ;;  %4011 = vmatpush.msrb.mxu2 %v7164_v11  ;;  %v9446_v11 = vld [vmem:[%s12170_s14 + $0x50] sm:$0xff] }
 0x450   : > { %12249 = vst [vmem:[#allocation14_spill] sm:$0xff] %v9299_v34  ;;  %7191 = vmatmul.msk.f32.gmra.mxu2 %vm933_vm0, %v9299_v34 }
 0x451   : > { %3809 = vmatpush.msra.mxu0 %v7161_v45 }
 0x453   : > { %3810 = vmatpush.msra.mxu0 %v7160_v2 }
 0x458   : > { %7196 = vmatmul.msk.f32.vlgmr.msra.gmra.mxu2 %vm1525_vm1, %v9199_v30 }
 0x460   : > { %7197 = vmatmul.msk.f32.gmra.mxu2 %vm1525_vm1, %v9204_v36 }
 0x468   : > { %7198 = vmatmul.msk.f32.gmra.mxu2 %vm1525_vm1, %v9209_v3 }
 0x470   : > { %7199 = vmatmul.msk.f32.gmra.mxu2 %vm1525_vm1, %v9216_v0 }
 0x471   : > { %v3084_v25 = vpop.permute.xlu2 %3083 }
 0x472   : > { %v3101_v9 = vmul.f32 %v3084_v25, %v9222_v54  ;;  %v3185_v54 = vadd.f32 1e-06, %v3184_v21  ;;  %v7177_v21 = vld [vmem:[%s12172_s16 + $0x1] sm:$0x1] }
 0x474   : > { %v9376_v51 = vmul.f32 %v3229_v26, %v3101_v9  ;;  %7865 = vrsqrt.f32 %v3185_v54  ;;  %vm3223_vm3 = vweird.f32 %v3185_v54 }
 0x476   : > { %12251 = vst [vmem:[#allocation16_spill] sm:$0xff] %v9376_v51 }
 0x478   : > { %7200 = vmatmul.msk.f32.gmra.mxu2 %vm1525_vm1, %v9225_v23 }
 0x480   : > { %7201 = vmatmul.msk.f32.gmra.mxu2 %vm1525_vm1, %v9234_v14 }
 0x481   : > { %v3079_v31 = vpop.permute.xlu1 %3078 }
 0x482   : > { %v3100_v41 = vmul.f32 %v3079_v31, %v9213_v10  ;;  %v3362_v10 = vadd.f32 %v9265_v20, %v3361_v15  ;;  %v7866_v20 = vpop.eup %7865 }
 0x483   : > { %v3218_v33 = vmul.f32 %v7866_v20, %v3185_v54  ;;  %vm3224_vm4 = vweird.f32 %v7866_v20 }
 0x484   : > { %v9366_v13 = vmul.f32 %v3229_v26, %v3100_v41  ;;  %3471 = vmatpush.msra.mxu1 %v3362_v10  ;;  %vm3225_vm5 = vmor %vm3223_vm3, %vm3224_vm4  ;;  %v7176_v10 = vld [vmem:[%s12171_s15 + $0x1] sm:$0x1] }
 0x485   : > { %v3219_v42 = vmul.f32 %v7866_v20, %v3218_v33 }
 0x486   : > { %12250 = vst [vmem:[#allocation15_spill] sm:$0xff] %v9366_v13  ;;  %v3387_v19 = vpop.f32.mrf.mxu1  ;;  %7192 = vmatmul.msk.f32.vlgmr.msrb.gmra.mxu3 %vm933_vm0, %v9366_v13  ;;  %3472 = vmatpush.msra.mxu1 %v3359_v4 }
 0x487   : > { %v3480_v22 = vmax.f32 %v3387_v19, 0.0  ;;  %v3220_v55 = vmul.f32 0.5, %v3219_v42  ;;  %4049 = vmatpush.msrb.mxu3 %v9440_v39 }
 0x488   : > { %7202 = vmatmul.msk.f32.gmra.mxu2 %vm1525_vm1, %v9241_v32  ;;  %3766 = vmatpush.msrb.mxu1 %v7171_v16 }
 0x489   : > { %7228 = vmatmul.msk.f32.vlgmr.msra.gmra.mxu0 %vm1525_vm1, %v3480_v22  ;;  %v3221_v18 = vsub.f32 1.5, %v3220_v55  ;;  %4050 = vmatpush.msrb.mxu3 %v9446_v11 }
 0x48a   : > { %3767 = vmatpush.msrb.mxu1 %v7170_v5 }
 0x48b   : > { %v3222_v57 = vmul.f32 %v7866_v20, %v3221_v18  ;;  %4051 = vmatpush.msrb.mxu3 %v9452_v59 }
 0x48c   : > { %3768 = vmatpush.msrb.mxu1 %v7169_v44 }
 0x48d   : > { %v3226_v62 = vsel %vm3225_vm5, %v7866_v20, %v3222_v57  ;;  %4052 = vmatpush.msrb.mxu3 %v9458_v61  ;;  %v3277_v20 = vadd.f32 %v7177_v21, %v7176_v10 }
 0x48e   : > { %v3390_v7 = vpop.f32.mrf.mxu1  ;;  %7193 = vmatmul.msk.f32.gmra.mxu3 %vm933_vm0, %v9376_v51  ;;  %3769 = vmatpush.msrb.mxu1 %v7168_v60  ;;  %v3230_v17 = vperm.slane %v3226_v62, 0 }
 0x48f   : > { %v3481_v37 = vmax.f32 %v3390_v7, 0.0  ;;  %v9503_v44 = vperm.slane %v3277_v20, 0 }
 0x490   : > { %7203 = vmatmul.msk.f32.gmra.mxu2 %vm1525_vm1, %v9246_v50 }
 0x491   : > { %7229 = vmatmul.msk.f32.gmra.mxu0 %vm1525_vm1, %v3481_v37 }
 0x496   : > { %7204 = vmatmul.msk.f32.vlgmr.msra.gmra.mxu3 %vm1525_vm1, %v3480_v22 }
 0x498   : > { %7244 = vmatmul.msk.f32.vlgmr.msrb.gmra.mxu2 %vm1525_vm1, %v3480_v22 }
 0x49e   : > { %7205 = vmatmul.msk.f32.gmra.mxu3 %vm1525_vm1, %v3481_v37 }
 0x4a0   : > { %7245 = vmatmul.msk.f32.gmra.mxu2 %vm1525_vm1, %v3481_v37 }
 0x4b1   : > { %v3089_v58 = vpop.permute.xlu0 %3088 }
 0x4b2   : > { %v3102_v6 = vmul.f32 %v3089_v58, %v9250_v8 }
 0x4b3   : > { %v3416_v27 = vpop.f32.mrf.mxu2 }
 0x4b4   : > { %v9400_v56 = vmul.f32 %v3230_v17, %v3102_v6  ;;  %v3482_v45 = vmax.f32 %v3416_v27, 0.0 }
 0x4b6   : > { %12252 = vst [vmem:[#allocation17_spill] sm:$0xff] %v9400_v56  ;;  %7194 = vmatmul.msk.f32.vlgmr.msra.gmra.mxu1 %vm933_vm0, %v9400_v56  ;;  %7206 = vmatmul.msk.f32.gmra.mxu3 %vm1525_vm1, %v3482_v45 }
 0x4b7   : > { %7230 = vmatmul.msk.f32.gmra.mxu0 %vm1525_vm1, %v3482_v45  ;;  %7246 = vmatmul.msk.f32.gmra.mxu2 %vm1525_vm1, %v3482_v45 }
 0x4b9   : > { %v3094_v2 = vpop.permute.xlu1 %3093 }
 0x4ba   : > { %v3103_v12 = vmul.f32 %v3094_v2, %v9254_v24 }
 0x4bc   : > { %v9408_v48 = vmul.f32 %v3230_v17, %v3103_v12 }
 0x4be   : > { %12253 = vst [vmem:[#allocation18_spill] sm:$0xff] %v9408_v48  ;;  %7195 = vmatmul.msk.f32.gmra.mxu1 %vm933_vm0, %v9408_v48 }
 0x4c6   : > { %7220 = vmatmul.msk.f32.vlgmr.msrb.gmra.mxu1 %vm1525_vm1, %v9199_v30 }
 0x4ce   : > { %7221 = vmatmul.msk.f32.gmra.mxu1 %vm1525_vm1, %v9204_v36 }
 0x4d3   : > { %v3419_v8 = vpop.f32.mrf.mxu2 }
 0x4d4   : > { %v3483_v63 = vmax.f32 %v3419_v8, 0.0 }
 0x4d6   : > { %7207 = vmatmul.msk.f32.gmra.mxu3 %vm1525_vm1, %v3483_v63  ;;  %7222 = vmatmul.msk.f32.gmra.mxu1 %vm1525_vm1, %v9209_v3 }
 0x4d7   : > { %7231 = vmatmul.msk.f32.gmra.mxu0 %vm1525_vm1, %v3483_v63  ;;  %7247 = vmatmul.msk.f32.gmra.mxu2 %vm1525_vm1, %v3483_v63 }
 0x4db   : > { %v3505_v41 = vpop.f32.mrf.mxu2 }
 0x4de   : > { %7223 = vmatmul.msk.f32.gmra.mxu1 %vm1525_vm1, %v9216_v0 }
 0x4e3   : > { %v3508_v25 = vpop.f32.mrf.mxu2 }
 0x4e6   : > { %7224 = vmatmul.msk.f32.gmra.mxu1 %vm1525_vm1, %v9225_v23 }
 0x4eb   : > { %v3511_v19 = vpop.f32.mrf.mxu2 }
 0x4ee   : > { %7225 = vmatmul.msk.f32.gmra.mxu1 %vm1525_vm1, %v9234_v14 }
 0x4f6   : > { %7226 = vmatmul.msk.f32.gmra.mxu1 %vm1525_vm1, %v9241_v32 }
 0x4fe   : > { %7227 = vmatmul.msk.f32.gmra.mxu1 %vm1525_vm1, %v9246_v50 }
 0x506   : > { %v3812_v37 = vpop.f32.mrf.mxu0 }
 0x509   : > { %v3445_v24 = vpop.f32.mrf.mxu3 }
 0x50a   : > { %v3484_v29 = vmax.f32 %v3445_v24, 0.0 }
 0x50c   : > { %7208 = vmatmul.msk.f32.gmra.mxu3 %vm1525_vm1, %v3484_v29  ;;  %7232 = vmatmul.msk.f32.gmra.mxu0 %vm1525_vm1, %v3484_v29 }
 0x50d   : > { %7248 = vmatmul.msk.f32.gmra.mxu2 %vm1525_vm1, %v3484_v29 }
 0x50e   : > { %v3815_v58 = vpop.f32.mrf.mxu0 }
 0x511   : > { %v3448_v52 = vpop.f32.mrf.mxu3 }
 0x512   : > { %v3485_v46 = vmax.f32 %v3448_v52, 0.0 }
 0x514   : > { %7209 = vmatmul.msk.f32.gmra.mxu3 %vm1525_vm1, %v3485_v46  ;;  %7233 = vmatmul.msk.f32.gmra.mxu0 %vm1525_vm1, %v3485_v46 }
 0x515   : > { %7249 = vmatmul.msk.f32.gmra.mxu2 %vm1525_vm1, %v3485_v46 }
 0x533   : > { %v3474_v40 = vpop.f32.mrf.mxu1 }
 0x534   : > { %v3486_v28 = vmax.f32 %v3474_v40, 0.0  ;;  %v3818_v29 = vpop.f32.mrf.mxu0 }
 0x536   : > { %7210 = vmatmul.msk.f32.gmra.mxu3 %vm1525_vm1, %v3486_v28  ;;  %7234 = vmatmul.msk.f32.gmra.mxu0 %vm1525_vm1, %v3486_v28 }
 0x537   : > { %7250 = vmatmul.msk.f32.gmra.mxu2 %vm1525_vm1, %v3486_v28 }
 0x53b   : > { %v3477_v31 = vpop.f32.mrf.mxu1 }
 0x53c   : > { %v3487_v26 = vmax.f32 %v3477_v31, 0.0 }
 0x53e   : > { %7211 = vmatmul.msk.f32.gmra.mxu3 %vm1525_vm1, %v3487_v26  ;;  %7235 = vmatmul.msk.f32.gmra.mxu0 %vm1525_vm1, %v3487_v26 }
 0x53f   : > { %7251 = vmatmul.msk.f32.gmra.mxu2 %vm1525_vm1, %v3487_v26 }
 0x543   : > { %v3771_v9 = vpop.f32.mrf.mxu1 }
 0x544   : > { %v3813_v60 = vadd.f32 %v3812_v37, %v3771_v9 }
 0x546   : > { %7252 = vmatmul.msk.f32.vlgmr.msrb.gmra.mxu3 %vm1525_vm1, %v9199_v30  ;;  %v3514_v30 = vpop.f32.mrf.mxu2  ;;  %v3836_v62 = vadd.f32 %v3813_v60, %v9503_v44 }
 0x548   : > { %v7236_v27 = vmul.f32 -1.442695, %v3836_v62 }
 0x54b   : > { %v3774_v42 = vpop.f32.mrf.mxu1 }
 0x54c   : > { %v3816_v24 = vadd.f32 %v3815_v58, %v3774_v42 }
 0x54e   : > { %7253 = vmatmul.msk.f32.gmra.mxu3 %vm1525_vm1, %v9204_v36  ;;  %v3570_v36 = vpop.f32.mrf.mxu3  ;;  %v3837_v40 = vadd.f32 %v3816_v24, %v9503_v44 }
 0x553   : > { %v3777_v2 = vpop.f32.mrf.mxu1 }
 0x556   : > { %7254 = vmatmul.msk.f32.gmra.mxu3 %vm1525_vm1, %v9209_v3  ;;  %v9483_v3 = vpop.f32.mrf.mxu2  ;;  %v3573_v22 = vpop.f32.mrf.mxu3 }
 0x557   : > { %v3574_v7 = vadd.f32 %v3573_v22, %v3508_v25 }
 0x55e   : > { %7255 = vmatmul.msk.f32.gmra.mxu3 %vm1525_vm1, %v9216_v0  ;;  %v3267_v0 = vld [vmem:[%s12171_s15] sm:$0x1]  ;;  %v9493_v4 = vpop.f32.mrf.mxu2  ;;  %v3576_v54 = vpop.f32.mrf.mxu3 }
 0x55f   : > { %v3577_v5 = vadd.f32 %v3576_v54, %v3511_v19  ;;  %v7237_v19 = vmul.f32 -1.442695, %v3837_v40 }
 0x566   : > { %7256 = vmatmul.msk.f32.gmra.mxu3 %vm1525_vm1, %v9225_v23  ;;  %v3268_v23 = vld [vmem:[%s12172_s16] sm:$0x1]  ;;  %v9505_v55 = vpop.f32.mrf.mxu2  ;;  %v3579_v45 = vpop.f32.mrf.mxu3 }
 0x56e   : > { %7257 = vmatmul.msk.f32.gmra.mxu3 %vm1525_vm1, %v9234_v14  ;;  %v3269_v14 = vadd.f32 %v3268_v23, %v3267_v0  ;;  %v9511_v63 = vpop.f32.mrf.mxu2  ;;  %v3821_v23 = vpop.f32.mrf.mxu0 }
 0x570   : > { %v9491_v15 = vperm.slane %v3269_v14, 0 }
 0x572   : > { %v3595_v16 = vadd.f32 %v3574_v7, %v9491_v15  ;;  %v3596_v57 = vadd.f32 %v3577_v5, %v9491_v15 }
 0x574   : > { %v7213_v18 = vmul.f32 -1.442695, %v3595_v16  ;;  %v7214_v17 = vmul.f32 -1.442695, %v3596_v57  ;;  %v7263_v16 = vld [vmem:[%s12167_s11 + $0x38] sm:$0xff] }
 0x575   : > { %4180 = vmatpush.msra.mxu1 %v7263_v16 }
 0x576   : > { %7258 = vmatmul.msk.f32.gmra.mxu3 %vm1525_vm1, %v9241_v32  ;;  %v3571_v32 = vadd.f32 %v3570_v36, %v3505_v41  ;;  %v3780_v41 = vpop.f32.mrf.mxu1  ;;  %v3819_v36 = vadd.f32 %v3818_v29, %v3777_v2  ;;  %v4013_v14 = vpop.f32.mrf.mxu2 }
 0x577   : > { %v3822_v22 = vadd.f32 %v3821_v23, %v3780_v41 }
 0x579   : > { %v3839_v21 = vadd.f32 %v3822_v22, %v9503_v44 }
 0x57b   : > { %v7239_v42 = vmul.f32 -1.442695, %v3839_v21 }
 0x57e   : > { %7259 = vmatmul.msk.f32.gmra.mxu3 %vm1525_vm1, %v9246_v50  ;;  %v3594_v50 = vadd.f32 %v3571_v32, %v9491_v15  ;;  %v3580_v32 = vadd.f32 %v3579_v45, %v3514_v30  ;;  %v3783_v57 = vpop.f32.mrf.mxu1 }
 0x580   : > { %v7212_v33 = vmul.f32 -1.442695, %v3594_v50  ;;  %v3838_v50 = vadd.f32 %v3819_v36, %v9503_v44  ;;  %v3597_v37 = vadd.f32 %v3580_v32, %v9491_v15 }
 0x582   : > { %7867 = vpow2.f32 %v7212_v33  ;;  %v7238_v20 = vmul.f32 -1.442695, %v3838_v50 }
 0x583   : > { %7869 = vpow2.f32 %v7213_v18  ;;  %v7215_v18 = vmul.f32 -1.442695, %v3597_v37 }
 0x584   : > { %7871 = vpow2.f32 %v7214_v17 }
 0x585   : > { %7873 = vpow2.f32 %v7236_v27  ;;  %v4016_v27 = vpop.f32.mrf.mxu2 }
 0x588   : > { %v7868_v6 = vpop.eup %7867 }
 0x589   : > { %v9509_v12 = vadd.f32 1.0, %v7868_v6  ;;  %v7870_v8 = vpop.eup %7869  ;;  %v3824_v62 = vpop.f32.mrf.mxu0  ;;  %v7262_v6 = vld [vmem:[%s12167_s11 + $0x30] sm:$0xff] }
 0x58a   : > { %v9514_v52 = vadd.f32 1.0, %v7870_v8  ;;  %v7872_v46 = vpop.eup %7871  ;;  %4181 = vmatpush.msra.mxu1 %v7262_v6  ;;  %v7261_v8 = vld [vmem:[%s12167_s11 + $0x28] sm:$0xff]  ;;  %v3825_v21 = vadd.f32 %v3824_v62, %v3783_v57  ;;  %v3786_v62 = vpop.f32.mrf.mxu1 }
 0x58b   : > { %7875 = vrcp.f32 %v9509_v12  ;;  %v7874_v31 = vpop.eup %7873  ;;  %v9518_v26 = vadd.f32 1.0, %v7872_v46  ;;  %v3643_v41 = vand.u32 2147483647, %v9509_v12  ;;  %vm3639_vm7 = vweird.f32 %v9509_v12 }
 0x58c   : > { %7877 = vrcp.f32 %v9514_v52  ;;  %v9522_v0 = vadd.f32 1.0, %v7874_v31  ;;  %4182 = vmatpush.msra.mxu1 %v7261_v8  ;;  %v7260_v31 = vld [vmem:[%s12167_s11 + $0x20] sm:$0xff]  ;;  %v3658_v23 = vand.u32 2147483647, %v9514_v52  ;;  %vm3654_vm11 = vweird.f32 %v9514_v52 }
 0x58d   : > { %7879 = vrcp.f32 %v9518_v26  ;;  %v4019_v16 = vpop.f32.mrf.mxu2  ;;  %vm3644_vm9 = vcmp.eq.f32.partialorder %v3643_v41, 8.507059e+37  ;;  %vm3669_vm2 = vweird.f32 %v9518_v26 }
 0x58e   : > { %7881 = vpow2.f32 %v7237_v19  ;;  %v3645_v19 = vand.u32 2147483648, %v9509_v12  ;;  %4183 = vmatpush.msra.mxu1 %v7260_v31  ;;  %vm9599_vm14 = vcmp.eq.f32.partialorder %v3658_v23, 8.507059e+37  ;;  %v3887_v31 = vand.u32 2147483648, %v9522_v0 }
 0x58f   : > { %v3582_v28 = vpop.f32.mrf.mxu3  ;;  %7883 = vrcp.f32 %v9522_v0  ;;  %vm3881_vm3 = vweird.f32 %v9522_v0 }
 0x590   : > { %v3583_v58 = vadd.f32 %v3582_v28, %v9483_v3  ;;  %7885 = vpow2.f32 %v7238_v20  ;;  %v9557_v3 = vld [vmem:[%s12171_s15 + $0x2] ss:$0 sm:$0xff]  ;;  %4386 = vmatpush.msrb.mxu1 %v9326_v49 }
 0x591   : > { %v9520_v25 = vpop.eup %7875  ;;  %7887 = vpow2.f32 %v7239_v42 }
 0x592   : > { %v3635_v9 = vmul.f32 %v9520_v25, %v9509_v12  ;;  %v9528_v10 = vpop.eup %7877  ;;  %7889 = vpow2.f32 %v7215_v18  ;;  %v3598_v40 = vadd.f32 %v3583_v58, %v9491_v15  ;;  %vm3640_vm6 = vweird.f32 %v9520_v25  ;;  %4387 = vmatpush.msrb.mxu1 %v9334_v1  ;;  %v3827_v58 = vpop.f32.mrf.mxu0 }
 0x593   : > { %v3650_v30 = vmul.f32 %v9528_v10, %v9514_v52  ;;  %v9535_v33 = vpop.eup %7879  ;;  %vm9581_vm8 = vmor %vm3639_vm7, %vm3640_vm6  ;;  %v9587_v12 = vadd.f32 %v9557_v3, %v4016_v27  ;;  %vm3655_vm10 = vweird.f32 %v9528_v10 }
 0x594   : > { %v3636_v54 = vsub.f32 1.0, %v3635_v9  ;;  %v7882_v5 = vpop.eup %7881  ;;  %v3665_v24 = vmul.f32 %v9535_v33, %v9518_v26  ;;  %v9577_v9 = vadd.f32 %v9557_v3, %v4013_v14  ;;  %v7216_v20 = vmul.f32 -1.442695, %v3598_v40  ;;  %4388 = vmatpush.msrb.mxu1 %v9342_v35  ;;  %vm9619_vm12 = vmor %vm3654_vm11, %vm3655_vm10 }
 0x595   : > { %v9540_v60 = vpop.eup %7883  ;;  %v3651_v45 = vsub.f32 1.0, %v3650_v30  ;;  %v9547_v2 = vadd.f32 1.0, %v7882_v5  ;;  %v3646_v5 = vor.u32 1.1754944e-38, %v3645_v19  ;;  %vm3670_vm13 = vweird.f32 %v9535_v33 }
 0x596   : > { %v3637_v17 = vmul.f32 %v9520_v25, %v3636_v54  ;;  %v3877_v29 = vmul.f32 %v9540_v60, %v9522_v0  ;;  %v3666_v22 = vsub.f32 1.0, %v3665_v24  ;;  %v7886_v32 = vpop.eup %7885  ;;  %v3660_v54 = vand.u32 2147483648, %v9514_v52  ;;  %4389 = vmatpush.msrb.mxu1 %v9351_v38  ;;  %vm9652_vm4 = vmor %vm3669_vm2, %vm3670_vm13 }
 0x597   : > { %v3585_v7 = vpop.f32.mrf.mxu3  ;;  %v3652_v36 = vmul.f32 %v9528_v10, %v3651_v45  ;;  %7891 = vrcp.f32 %v9547_v2  ;;  %v7888_v30 = vpop.eup %7887  ;;  %v9596_v57 = vadd.f32 1.0, %v7886_v32  ;;  %v9612_v52 = vadd.f32 %v9557_v3, %v4019_v16  ;;  %v9644_v32 = vld [vmem:[%s12172_s16 + $0x2] ss:$0 sm:$0xff] }
 0x598   : > { %v3638_v28 = vadd.f32 %v9520_v25, %v3637_v17  ;;  %v3878_v50 = vsub.f32 1.0, %v3877_v29  ;;  %v3586_v49 = vadd.f32 %v3585_v7, %v9493_v4  ;;  %v7890_v18 = vpop.eup %7889  ;;  %v3667_v1 = vmul.f32 %v9535_v33, %v3666_v22 }
 0x599   : > { %v3653_v42 = vadd.f32 %v9528_v10, %v3652_v36  ;;  %v3840_v7 = vadd.f32 %v3825_v21, %v9503_v44  ;;  %v3661_v27 = vor.u32 1.1754944e-38, %v3660_v54  ;;  %v9614_v8 = vadd.f32 1.0, %v7888_v30 }
 0x59a   : > { %v3642_v14 = vsel %vm9581_vm8, %v9520_v25, %v3638_v28  ;;  %v3879_v25 = vmul.f32 %v9540_v60, %v3878_v50  ;;  %7893 = vpow2.f32 %v7216_v20  ;;  %v3599_v24 = vadd.f32 %v3586_v49, %v9491_v15  ;;  %v3789_v20 = vpop.f32.mrf.mxu1 }
 0x59b   : > { %v3647_v6 = vsel %vm3644_vm9, %v3646_v5, %v3642_v14  ;;  %v9624_v29 = vadd.f32 1.0, %v7890_v18  ;;  %v3657_v40 = vsel %vm9619_vm12, %v9528_v10, %v3653_v42  ;;  %v3675_v28 = vand.u32 2147483648, %v9518_v26 }
 0x59c   : > { %vm3882_vm15 = vweird.f32 %v9540_v60  ;;  %7895 = vrcp.f32 %v9596_v57  ;;  %v3668_v41 = vadd.f32 %v9535_v33, %v3667_v1  ;;  %v7240_v19 = vmul.f32 -1.442695, %v3840_v7 }
 0x59d   : > { %v9609_v45 = vpop.eup %7891  ;;  %v3828_v36 = vadd.f32 %v3827_v58, %v3786_v62  ;;  %v3880_v23 = vadd.f32 %v9540_v60, %v3879_v25  ;;  %7897 = vrcp.f32 %v9614_v8  ;;  %v7217_v10 = vmul.f32 -1.442695, %v3599_v24  ;;  %vm9659_vm5 = vmor %vm3881_vm3, %vm3882_vm15 }
 0x59e   : > { %v3892_v38 = vmul.f32 %v9609_v45, %v9547_v2  ;;  %7899 = vrcp.f32 %v9624_v29  ;;  %v3885_v50 = vand.u32 2147483647, %v9522_v0  ;;  %v3888_v54 = vor.u32 1.1754944e-38, %v3887_v31 }
 0x59f   : > { %v3662_v0 = vsel %vm9599_vm14, %v3661_v27, %v3657_v40  ;;  %v3672_v14 = vsel %vm9652_vm4, %v9535_v33, %v3668_v41  ;;  %v3676_v30 = vor.u32 1.1754944e-38, %v3675_v28  ;;  %7901 = vpow2.f32 %v7240_v19 }
 0x5a0   : > { %v3893_v16 = vsub.f32 1.0, %v3892_v38  ;;  %v3884_v5 = vsel %vm9659_vm5, %v9540_v60, %v3880_v23  ;;  %v3902_v62 = vand.u32 2147483648, %v9547_v2  ;;  %7903 = vpow2.f32 %v7217_v10 }
 0x5a1   : > { %vm3886_vm6 = vcmp.eq.f32.partialorder %v3885_v50, 8.507059e+37  ;;  %v3900_v1 = vand.u32 2147483647, %v9547_v2  ;;  %vm3896_vm8 = vweird.f32 %v9547_v2  ;;  %vm3897_vm9 = vweird.f32 %v9609_v45 }
 0x5a2   : > { %v3889_v60 = vsel %vm3886_vm6, %v3888_v54, %v3884_v5  ;;  %v3894_v35 = vmul.f32 %v9609_v45, %v3893_v16  ;;  %v3903_v41 = vor.u32 1.1754944e-38, %v3902_v62  ;;  %v3917_v23 = vand.u32 2147483648, %v9596_v57  ;;  %vm9720_vm11 = vmor %vm3896_vm8, %vm3897_vm9 }
 0x5a3   : > { %vm9698_vm10 = vcmp.eq.f32.partialorder %v3900_v1, 8.507059e+37  ;;  %v4102_v21 = vsub.f32 1.0, %v3889_v60  ;;  %v3915_v62 = vand.u32 2147483647, %v9596_v57  ;;  %vm3911_vm14 = vweird.f32 %v9596_v57 }
 0x5a4   : > { %v3895_v37 = vadd.f32 %v9609_v45, %v3894_v35  ;;  %vm3684_vm13 = vweird.f32 %v9624_v29  ;;  %vm3926_vm15 = vweird.f32 %v9614_v8 }
 0x5a5   : > { %vm9749_vm2 = vcmp.eq.f32.partialorder %v3915_v62, 8.507059e+37 }
 0x5a6   : > { %v3899_v2 = vsel %vm9720_vm11, %v9609_v45, %v3895_v37 }
 0x5b3   : > { %v3830_v49 = vpop.f32.mrf.mxu0 }
 0x5b4   : > { %v3831_v31 = vadd.f32 %v3830_v49, %v3789_v20  ;;  %v3792_v49 = vpop.f32.mrf.mxu1 }
 0x5b9   : > { %v9561_v46 = vpop.f32.mrf.mxu3 }
 0x5ba   : > { %v3589_v22 = vadd.f32 %v9561_v46, %v9505_v55  ;;  %v3673_v55 = vand.u32 2147483647, %v9518_v26  ;;  %v7894_v46 = vpop.eup %7893  ;;  %v3841_v26 = vadd.f32 %v3828_v36, %v9503_v44 }
 0x5bb   : > { %v9672_v18 = vpop.eup %7895  ;;  %v9677_v33 = vadd.f32 1.0, %v7894_v46  ;;  %v3842_v46 = vadd.f32 %v3831_v31, %v9503_v44 }
 0x5bc   : > { %v3600_v58 = vadd.f32 %v3589_v22, %v9491_v15  ;;  %vm3674_vm7 = vcmp.eq.f32.partialorder %v3673_v55, 8.507059e+37  ;;  %v9680_v25 = vpop.eup %7897  ;;  %v3907_v40 = vmul.f32 %v9672_v18, %v9596_v57  ;;  %v7241_v28 = vmul.f32 -1.442695, %v3841_v26 }
 0x5bd   : > { %v9683_v27 = vsel %vm3674_vm7, %v3676_v30, %v3672_v14  ;;  %v9685_v24 = vpop.eup %7899  ;;  %v3922_v10 = vmul.f32 %v9680_v25, %v9614_v8  ;;  %7905 = vrcp.f32 %v9677_v33  ;;  %v3833_v14 = vpop.f32.mrf.mxu0  ;;  %v9711_v26 = vor.u32 1.1754944e-38, %v3917_v23 }
 0x5be   : > { %v7218_v38 = vmul.f32 -1.442695, %v3600_v58  ;;  %v3908_v55 = vsub.f32 1.0, %v3907_v40  ;;  %vm3912_vm12 = vweird.f32 %v9672_v18  ;;  %v7242_v35 = vmul.f32 -1.442695, %v3842_v46 }
 0x5bf   : > { %v3923_v5 = vsub.f32 1.0, %v3922_v10  ;;  %v3834_v40 = vadd.f32 %v3833_v14, %v3792_v49  ;;  %v3904_v10 = vsel %vm9698_vm10, %v3903_v41, %v3899_v2  ;;  %vm3927_vm3 = vweird.f32 %v9680_v25  ;;  %vm9775_vm5 = vmor %vm3911_vm14, %vm3912_vm12 }
 0x5c0   : > { %v4103_v49 = vsub.f32 1.0, %v3904_v10  ;;  %vm3685_vm4 = vweird.f32 %v9685_v24  ;;  %vm9788_vm7 = vmor %vm3926_vm15, %vm3927_vm3  ;;  %vm3699_vm11 = vweird.f32 %v9677_v33 }
 0x5c1   : > { %v9607_v17 = vpop.f32.mrf.mxu3  ;;  %vm9806_vm8 = vmor %vm3684_vm13, %vm3685_vm4 }
 0x5c2   : > { %v3592_v19 = vadd.f32 %v9607_v17, %v9511_v63  ;;  %v8195_v63 = vld [vmem:[%s8506_s5] sm:$0xff] }
 0x5c3   : > { %v4118_v17 = vmul.f32 %v8195_v63, %v3889_v60  ;;  %v3688_v60 = vand.u32 2147483647, %v9624_v29  ;;  %v3932_v63 = vand.u32 2147483648, %v9614_v8 }
 0x5c4   : > { %v3601_v30 = vadd.f32 %v3592_v19, %v9491_v15 }
 0x5c5   : > { %vm9779_vm6 = vcmp.eq.f32.partialorder %v3688_v60, 8.507059e+37 }
 0x5c6   : > { %v7219_v19 = vmul.f32 -1.442695, %v3601_v30  ;;  %v4022_v30 = vpop.f32.mrf.mxu2 }
 0x5c9   : > { %v4054_v42 = vpop.f32.mrf.mxu3 }
 0x5ca   : > { %v4055_v4 = vadd.f32 %v9644_v32, %v4054_v42 }
 0x5cc   : > { %v4078_v7 = vmul.f32 %v4055_v4, %v3647_v6  ;;  %v7902_v6 = vpop.eup %7901 }
 0x5cd   : > { %v7904_v50 = vpop.eup %7903  ;;  %v9707_v20 = vadd.f32 1.0, %v7902_v6  ;;  %v3924_v6 = vmul.f32 %v9680_v25, %v3923_v5 }
 0x5ce   : > { %v4086_v36 = vadd.f32 %v4078_v7, %v9577_v9  ;;  %v3680_v9 = vmul.f32 %v9685_v24, %v9624_v29  ;;  %v9713_v42 = vadd.f32 1.0, %v7904_v50  ;;  %v9727_v7 = vpop.eup %7905 }
 0x5cf   : > { %vm3700_vm10 = vweird.f32 %v9727_v7 }
 0x5d0   : > { %7907 = vtanh.f32 %v4086_v36  ;;  %v3681_v1 = vsub.f32 1.0, %v3680_v9  ;;  %v3843_v9 = vadd.f32 %v3834_v40, %v9503_v44  ;;  %v3930_v40 = vand.u32 2147483647, %v9614_v8  ;;  %vm9858_vm14 = vmor %vm3699_vm11, %vm3700_vm10 }
 0x5d1   : > { %7909 = vpow2.f32 %v7241_v28  ;;  %v4057_v54 = vpop.f32.mrf.mxu3  ;;  %v3690_v28 = vand.u32 2147483648, %v9624_v29  ;;  %vm3714_vm4 = vweird.f32 %v9713_v42 }
 0x5d2   : > { %7911 = vpow2.f32 %v7218_v38  ;;  %v4058_v16 = vadd.f32 %v9644_v32, %v4057_v54  ;;  %v3909_v38 = vmul.f32 %v9672_v18, %v3908_v55  ;;  %v3682_v50 = vmul.f32 %v9685_v24, %v3681_v1 }
 0x5d3   : > { %7913 = vrcp.f32 %v9707_v20  ;;  %v3933_v1 = vor.u32 1.1754944e-38, %v3932_v63  ;;  %vm3931_vm9 = vcmp.eq.f32.partialorder %v3930_v40, 8.507059e+37 }
 0x5d4   : > { %v4079_v4 = vmul.f32 %v4058_v16, %v3662_v0  ;;  %7915 = vrcp.f32 %v9713_v42  ;;  %v3910_v41 = vadd.f32 %v9672_v18, %v3909_v38  ;;  %v3683_v5 = vadd.f32 %v9685_v24, %v3682_v50 }
 0x5d6   : > { %v7908_v31 = vpop.eup %7907  ;;  %v4087_v0 = vadd.f32 %v4079_v4, %v9587_v12  ;;  %v3695_v12 = vmul.f32 %v9727_v7, %v9677_v33  ;;  %v3914_v57 = vsel %vm9775_vm5, %v9672_v18, %v3910_v41  ;;  %v3687_v18 = vsel %vm9806_vm8, %v9685_v24, %v3683_v5 }
 0x5d7   : > { %v7910_v36 = vpop.eup %7909  ;;  %v4110_v45 = vmul.f32 %v7908_v31, %v4102_v21  ;;  %v8196_v31 = vld [vmem:[%s8506_s5 + $0x8] sm:$0xff]  ;;  %v3919_v24 = vsel %vm9749_vm2, %v9711_v26, %v3914_v57  ;;  %v4025_v26 = vpop.f32.mrf.mxu2  ;;  %vm3941_vm2 = vweird.f32 %v9707_v20 }
 0x5d8   : > { %v7912_v23 = vpop.eup %7911  ;;  %7917 = vtanh.f32 %v4087_v0  ;;  %v9753_v22 = vadd.f32 1.0, %v7910_v36  ;;  %v3696_v62 = vsub.f32 1.0, %v3695_v12  ;;  %v4119_v38 = vmul.f32 %v8196_v31, %v3904_v10 }
 0x5d9   : > { %7919 = vpow2.f32 %v7242_v35  ;;  %v9747_v55 = vadd.f32 %v4118_v17, %v4110_v45  ;;  %v4060_v21 = vpop.f32.mrf.mxu3  ;;  %v9758_v54 = vadd.f32 1.0, %v7912_v23  ;;  %v3925_v17 = vadd.f32 %v9680_v25, %v3924_v6  ;;  %v9763_v14 = vpop.eup %7913 }
 0x5da   : > { %7921 = vpow2.f32 %v7219_v19  ;;  %v4061_v37 = vadd.f32 %v9644_v32, %v4060_v21  ;;  %v9769_v58 = vpop.eup %7915  ;;  %v3937_v8 = vmul.f32 %v9763_v14, %v9707_v20  ;;  %v3697_v6 = vmul.f32 %v9727_v7, %v3696_v62 }
 0x5db   : > { %7265 = vmatmul.msk.f32.vlgmr.msra.gmra.mxu1 %vm1525_vm1, %v9747_v55  ;;  %7923 = vrcp.f32 %v9753_v22  ;;  %v3710_v45 = vmul.f32 %v9769_v58, %v9713_v42  ;;  %v3691_v23 = vor.u32 1.1754944e-38, %v3690_v28  ;;  %v3947_v31 = vand.u32 2147483648, %v9707_v20 }
 0x5dc   : > { %v4080_v16 = vmul.f32 %v4061_v37, %v9683_v27  ;;  %4870 = vmatpush.msra.mxu1 %v9440_v39  ;;  %v7243_v27 = vmul.f32 -1.442695, %v3843_v9  ;;  %7925 = vrcp.f32 %v9758_v54  ;;  %v3938_v29 = vsub.f32 1.0, %v3937_v8 }
 0x5dd   : > { %v3692_v9 = vsel %vm9779_vm6, %v3691_v23, %v3687_v18  ;;  %v3698_v41 = vadd.f32 %v9727_v7, %v3697_v6  ;;  %vm3942_vm13 = vweird.f32 %v9763_v14  ;;  %vm3715_vm15 = vweird.f32 %v9769_v58 }
 0x5de   : > { %v7918_v2 = vpop.eup %7917  ;;  %v4088_v60 = vadd.f32 %v4080_v16, %v9612_v52  ;;  %4871 = vmatpush.msra.mxu1 %v9446_v11  ;;  %v3929_v52 = vsel %vm9788_vm7, %v9680_v25, %v3925_v17  ;;  %v8197_v16 = vld [vmem:[%s8506_s5 + $0x10] sm:$0xff]  ;;  %v3939_v35 = vmul.f32 %v9763_v14, %v3938_v29  ;;  %v3945_v29 = vand.u32 2147483647, %v9707_v20  ;;  %vm9892_vm3 = vmor %vm3941_vm2, %vm3942_vm13 }
 0x5df   : > { %v7920_v19 = vpop.eup %7919  ;;  %v4111_v0 = vmul.f32 %v7918_v2, %v4103_v49  ;;  %v9829_v12 = vsel %vm3931_vm9, %v3933_v1, %v3929_v52  ;;  %v4104_v49 = vsub.f32 1.0, %v3919_v24  ;;  %v4120_v5 = vmul.f32 %v8197_v16, %v3919_v24  ;;  %vm9907_vm5 = vmor %vm3714_vm4, %vm3715_vm15 }
 0x5e0   : > { %v7922_v11 = vpop.eup %7921  ;;  %7927 = vtanh.f32 %v4088_v60  ;;  %4872 = vmatpush.msra.mxu1 %v9452_v59  ;;  %v9824_v50 = vadd.f32 1.0, %v7920_v19  ;;  %v4023_v59 = vadd.f32 %v9557_v3, %v4022_v30  ;;  %v4105_v17 = vsub.f32 1.0, %v9829_v12 }
 0x5e1   : > { %7929 = vpow2.f32 %v7243_v27  ;;  %v4063_v10 = vpop.f32.mrf.mxu3  ;;  %v9822_v25 = vadd.f32 %v4119_v38, %v4111_v0  ;;  %v9834_v28 = vadd.f32 1.0, %v7922_v11  ;;  %v9840_v46 = vpop.eup %7923  ;;  %v3705_v30 = vand.u32 2147483648, %v9677_v33  ;;  %v8198_v0 = vld [vmem:[%s8506_s5 + $0x18] sm:$0xff] }
 0x5e2   : > { %v4064_v63 = vadd.f32 %v9644_v32, %v4063_v10  ;;  %4873 = vmatpush.msra.mxu1 %v9458_v61  ;;  %v3711_v61 = vsub.f32 1.0, %v3710_v45  ;;  %v9844_v37 = vpop.eup %7925  ;;  %7931 = vrcp.f32 %v9824_v50  ;;  %v3703_v1 = vand.u32 2147483647, %v9677_v33 }
 0x5e3   : > { %7266 = vmatmul.msk.f32.gmra.mxu1 %vm1525_vm1, %v9822_v25  ;;  %v3952_v40 = vmul.f32 %v9840_v46, %v9753_v22  ;;  %7933 = vrcp.f32 %v9834_v28  ;;  %v3702_v33 = vsel %vm9858_vm14, %v9727_v7, %v3698_v41  ;;  %v3725_v60 = vmul.f32 %v9844_v37, %v9758_v54  ;;  %v4028_v41 = vpop.f32.mrf.mxu2 }
 0x5e4   : > { %v4081_v21 = vmul.f32 %v4064_v63, %v3692_v9  ;;  %v3712_v57 = vmul.f32 %v9769_v58, %v3711_v61  ;;  %v3706_v38 = vor.u32 1.1754944e-38, %v3705_v30  ;;  %v4121_v36 = vmul.f32 %v8198_v0, %v9829_v12 }
 0x5e5   : > { %v4026_v52 = vadd.f32 %v9557_v3, %v4025_v26  ;;  %vm3704_vm12 = vcmp.eq.f32.partialorder %v3703_v1, 8.507059e+37  ;;  %v3953_v18 = vsub.f32 1.0, %v3952_v40  ;;  %v3940_v45 = vadd.f32 %v9763_v14, %v3939_v35 }
 0x5e6   : > { %v7928_v62 = vpop.eup %7927  ;;  %v4089_v4 = vadd.f32 %v4081_v21, %v4023_v59  ;;  %v3707_v6 = vsel %vm3704_vm12, %v3706_v38, %v3702_v33  ;;  %v3713_v24 = vadd.f32 %v9769_v58, %v3712_v57  ;;  %v3726_v12 = vsub.f32 1.0, %v3725_v60 }
 0x5e7   : > { %v7930_v27 = vpop.eup %7929  ;;  %v4112_v2 = vmul.f32 %v7928_v62, %v4104_v49  ;;  %v3948_v59 = vor.u32 1.1754944e-38, %v3947_v31  ;;  %v3720_v9 = vand.u32 2147483648, %v9713_v42  ;;  %v3718_v49 = vand.u32 2147483647, %v9713_v42 }
 0x5e8   : > { %7935 = vtanh.f32 %v4089_v4  ;;  %v9874_v11 = vadd.f32 1.0, %v7930_v27  ;;  %v9881_v23 = vpop.eup %7931  ;;  %v3954_v30 = vmul.f32 %v9840_v46, %v3953_v18  ;;  %v3717_v42 = vsel %vm9907_vm5, %v9769_v58, %v3713_v24 }
 0x5e9   : > { %v4066_v19 = vpop.f32.mrf.mxu3  ;;  %v9869_v8 = vadd.f32 %v4120_v5, %v4112_v2  ;;  %v9885_v63 = vpop.eup %7933  ;;  %v3967_v20 = vmul.f32 %v9881_v23, %v9824_v50  ;;  %v3944_v5 = vsel %vm9892_vm3, %v9763_v14, %v3940_v45  ;;  %v3727_v4 = vmul.f32 %v9844_v37, %v3726_v12 }
 0x5ea   : > { %v4067_v7 = vadd.f32 %v9644_v32, %v4066_v19  ;;  %7937 = vrcp.f32 %v9874_v11  ;;  %v4029_v1 = vadd.f32 %v9557_v3, %v4028_v41  ;;  %vm3946_vm6 = vcmp.eq.f32.partialorder %v3945_v29, 8.507059e+37 }
 0x5eb   : > { %7267 = vmatmul.msk.f32.gmra.mxu1 %vm1525_vm1, %v9869_v8  ;;  %v3721_v14 = vor.u32 1.1754944e-38, %v3720_v9  ;;  %v3962_v40 = vand.u32 2147483648, %v9753_v22  ;;  %v3949_v2 = vsel %vm3946_vm6, %v3948_v59, %v3944_v5  ;;  %vm3719_vm7 = vcmp.eq.f32.partialorder %v3718_v49, 8.507059e+37  ;;  %v4031_v59 = vpop.f32.mrf.mxu2 }
 0x5ec   : > { %v4082_v10 = vmul.f32 %v4067_v7, %v3707_v6  ;;  %vm3957_vm8 = vweird.f32 %v9840_v46  ;;  %v3968_v58 = vsub.f32 1.0, %v3967_v20  ;;  %v3955_v57 = vadd.f32 %v9840_v46, %v3954_v30 }
 0x5ed   : > { %v3722_v33 = vsel %vm3719_vm7, %v3721_v14, %v3717_v42  ;;  %v3728_v38 = vadd.f32 %v9844_v37, %v3727_v4  ;;  %vm3730_vm9 = vweird.f32 %v9844_v37  ;;  %vm3956_vm10 = vweird.f32 %v9753_v22 }
 0x5ee   : > { %v7936_v26 = vpop.eup %7935  ;;  %v4090_v61 = vadd.f32 %v4082_v10, %v4026_v52  ;;  %v4106_v0 = vsub.f32 1.0, %v3949_v2  ;;  %v3735_v52 = vand.u32 2147483648, %v9758_v54  ;;  %vm9935_vm11 = vmor %vm3956_vm10, %vm3957_vm8  ;;  %vm3729_vm14 = vweird.f32 %v9758_v54  ;;  %v8199_v10 = vld [vmem:[%s8506_s5 + $0x20] sm:$0xff] }
 0x5ef   : > { %v4113_v16 = vmul.f32 %v7936_v26, %v4105_v17  ;;  %v3740_v17 = vmul.f32 %v9885_v63, %v9834_v28  ;;  %v3733_v45 = vand.u32 2147483647, %v9758_v54  ;;  %v4122_v24 = vmul.f32 %v8199_v10, %v3949_v2  ;;  %vm9950_vm12 = vmor %vm3729_vm14, %vm3730_vm9 }
 0x5f0   : > { %7939 = vtanh.f32 %v4090_v61  ;;  %v9926_v60 = vpop.eup %7937  ;;  %v3969_v12 = vmul.f32 %v9881_v23, %v3968_v58  ;;  %v3959_v9 = vsel %vm9935_vm11, %v9840_v46, %v3955_v57  ;;  %v3963_v54 = vor.u32 1.1754944e-38, %v3962_v40 }
 0x5f1   : > { %v4069_v27 = vpop.f32.mrf.mxu3  ;;  %v9918_v35 = vadd.f32 %v4121_v36, %v4113_v16  ;;  %v3741_v19 = vsub.f32 1.0, %v3740_v17  ;;  %v3960_v36 = vand.u32 2147483647, %v9753_v22  ;;  %v3982_v22 = vmul.f32 %v9926_v60, %v9874_v11 }
 0x5f2   : > { %v4070_v39 = vadd.f32 %v9644_v32, %v4069_v27  ;;  %v3732_v21 = vsel %vm9950_vm12, %v9844_v37, %v3728_v38  ;;  %v3736_v61 = vor.u32 1.1754944e-38, %v3735_v52  ;;  %v4032_v46 = vadd.f32 %v9557_v3, %v4031_v59  ;;  %v8200_v38 = vld [vmem:[%s8506_s5 + $0x28] sm:$0xff] }
 0x5f3   : > { %7268 = vmatmul.msk.f32.gmra.mxu1 %vm1525_vm1, %v9918_v35  ;;  %v3742_v41 = vmul.f32 %v9885_v63, %v3741_v19  ;;  %vm3961_vm13 = vcmp.eq.f32.partialorder %v3960_v36, 8.507059e+37  ;;  %vm3734_vm15 = vcmp.eq.f32.partialorder %v3733_v45, 8.507059e+37  ;;  %vm3972_vm2 = vweird.f32 %v9881_v23 }
 0x5f4   : > { %v4083_v31 = vmul.f32 %v4070_v39, %v3722_v33  ;;  %v3964_v20 = vsel %vm3961_vm13, %v3963_v54, %v3959_v9  ;;  %v3983_v5 = vsub.f32 1.0, %v3982_v22  ;;  %v3737_v62 = vsel %vm3734_vm15, %v3736_v61, %v3732_v21  ;;  %v8201_v54 = vld [vmem:[%s8506_s5 + $0x30] sm:$0xff] }
 0x5f5   : > { %v3970_v42 = vadd.f32 %v9881_v23, %v3969_v12  ;;  %v3977_v37 = vand.u32 2147483648, %v9824_v50  ;;  %v3743_v17 = vadd.f32 %v9885_v63, %v3742_v41  ;;  %vm3745_vm3 = vweird.f32 %v9885_v63 }
 0x5f6   : > { %v7940_v7 = vpop.eup %7939  ;;  %v4091_v6 = vadd.f32 %v4083_v31, %v4029_v1  ;;  %vm3971_vm4 = vweird.f32 %v9824_v50  ;;  %v4107_v1 = vsub.f32 1.0, %v3964_v20  ;;  %v3975_v14 = vand.u32 2147483647, %v9824_v50 }
 0x5f7   : > { %v4114_v29 = vmul.f32 %v7940_v7, %v4106_v0  ;;  %v3750_v27 = vand.u32 2147483648, %v9834_v28  ;;  %vm9972_vm5 = vmor %vm3971_vm4, %vm3972_vm2  ;;  %vm3744_vm6 = vweird.f32 %v9834_v28  ;;  %v3748_v58 = vand.u32 2147483647, %v9834_v28  ;;  %v4034_v28 = vpop.f32.mrf.mxu2 }
 0x5f8   : > { %7941 = vtanh.f32 %v4091_v6  ;;  %v3984_v33 = vmul.f32 %v9926_v60, %v3983_v5  ;;  %v3974_v31 = vsel %vm9972_vm5, %v9881_v23, %v3970_v42  ;;  %vm9982_vm7 = vmor %vm3744_vm6, %vm3745_vm3  ;;  %v4123_v19 = vmul.f32 %v8200_v38, %v3964_v20  ;;  %v8202_v20 = vld [vmem:[%s8506_s5 + $0x38] sm:$0xff]  ;;  %v10056_v38 = vld [vmem:[%s12169_s13 + $0x50] sm:$0xff] }
 0x5f9   : > { %v4072_v49 = vpop.f32.mrf.mxu3  ;;  %v9958_v30 = vadd.f32 %v4122_v24, %v4114_v29  ;;  %v3978_v0 = vor.u32 1.1754944e-38, %v3977_v37  ;;  %v3747_v36 = vsel %vm9982_vm7, %v9885_v63, %v3743_v17  ;;  %vm3976_vm8 = vcmp.eq.f32.partialorder %v3975_v14, 8.507059e+37 }
 0x5fa   : > { %v4073_v16 = vadd.f32 %v9644_v32, %v4072_v49  ;;  %v3751_v52 = vor.u32 1.1754944e-38, %v3750_v27  ;;  %vm3749_vm9 = vcmp.eq.f32.partialorder %v3748_v58, 8.507059e+37  ;;  %vm3987_vm10 = vweird.f32 %v9926_v60  ;;  %v10036_v58 = vld [vmem:[%s12170_s14 + $0x8] sm:$0xff] }
 0x5fb   : > { %7269 = vmatmul.msk.f32.gmra.mxu1 %vm1525_vm1, %v9958_v30  ;;  %v3979_v6 = vsel %vm3976_vm8, %v3978_v0, %v3974_v31  ;;  %v3985_v10 = vadd.f32 %v9926_v60, %v3984_v33  ;;  %v3992_v63 = vand.u32 2147483648, %v9874_v11  ;;  %v4035_v24 = vadd.f32 %v9557_v3, %v4034_v28  ;;  %v10042_v33 = vld [vmem:[%s12170_s14] sm:$0xff]  ;;  %v10062_v0 = vld [vmem:[%s12169_s13 + $0x48] sm:$0xff]  ;;  %v10078_v28 = vld [vmem:[%s12170_s14 + $0x38] sm:$0xff] }
 0x5fc   : > { %v4084_v4 = vmul.f32 %v4073_v16, %v3737_v62  ;;  %v3752_v45 = vsel %vm3749_vm9, %v3751_v52, %v3747_v36  ;;  %vm3986_vm11 = vweird.f32 %v9874_v11  ;;  %v4108_v59 = vsub.f32 1.0, %v3979_v6  ;;  %v7742_v62 = vld [vmem:[%s12168_s12 + $0x1] ss:$0 sm:$0xff] }
 0x5fd   : > { %v3990_v22 = vand.u32 2147483647, %v9874_v11  ;;  %vm3988_vm14 = vmor %vm3986_vm11, %vm3987_vm10  ;;  %v4124_v21 = vmul.f32 %v8201_v54, %v3979_v6  ;;  %v3993_v41 = vor.u32 1.1754944e-38, %v3992_v63  ;;  %v10068_v36 = vld [vmem:[%s12169_s13 + $0x40] sm:$0xff]  ;;  %v10092_v6 = vld [vmem:[%s12170_s14 + $0x28] sm:$0xff] }
 0x5fe   : > { %v7942_v40 = vpop.eup %7941  ;;  %v4092_v39 = vadd.f32 %v4084_v4, %v4032_v46  ;;  %v3989_v26 = vsel %vm3988_vm14, %v9926_v60, %v3985_v10 }
 0x5ff   : > { %v4115_v57 = vmul.f32 %v7942_v40, %v4107_v1  ;;  %vm3991_vm12 = vcmp.eq.f32.partialorder %v3990_v22, 8.507059e+37  ;;  %v10024_v40 = vld [vmem:[%s12170_s14 + $0x18] sm:$0xff]  ;;  %v8218_v22 = vld [vmem:[%s12169_s13 + $0x20] sm:$0xff] }
 0x600   : > { %7943 = vtanh.f32 %v4092_v39  ;;  %v3994_v3 = vsel %vm3991_vm12, %v3993_v41, %v3989_v26  ;;  %v10030_v39 = vld [vmem:[%s12170_s14 + $0x10] sm:$0xff] }
 0x601   : > { %v4075_v7 = vpop.f32.mrf.mxu3  ;;  %v9990_v18 = vadd.f32 %v4123_v19, %v4115_v57  ;;  %v4109_v49 = vsub.f32 1.0, %v3994_v3  ;;  %v4125_v16 = vmul.f32 %v8202_v20, %v3994_v3  ;;  %v10050_v57 = vld [vmem:[%s12169_s13 + $0x58] sm:$0xff]  ;;  %v8220_v26 = vld [vmem:[%s12169_s13 + $0x10] sm:$0xff]  ;;  %v8222_v3 = vld [vmem:[%s12169_s13] sm:$0xff] }
 0x602   : > { %v4076_v23 = vadd.f32 %v9644_v32, %v4075_v7  ;;  %v10085_v7 = vld [vmem:[%s12170_s14 + $0x30] sm:$0xff] }
 0x603   : > { %7270 = vmatmul.msk.f32.gmra.mxu1 %vm1525_vm1, %v9990_v18 }
 0x604   : > { %v4085_v12 = vmul.f32 %v4076_v23, %v3752_v45  ;;  %v10099_v23 = vld [vmem:[%s12170_s14 + $0x20] sm:$0xff] }
 0x606   : > { %v7944_v32 = vpop.eup %7943  ;;  %v4093_v29 = vadd.f32 %v4085_v12, %v4035_v24  ;;  %v8215_v24 = vld [vmem:[%s12169_s13 + $0x38] sm:$0xff]  ;;  %v8216_v12 = vld [vmem:[%s12169_s13 + $0x30] sm:$0xff] }
 0x607   : > { %v4116_v9 = vmul.f32 %v7944_v32, %v4108_v59  ;;  %v8217_v59 = vld [vmem:[%s12169_s13 + $0x28] sm:$0xff] }
 0x608   : > { %7945 = vtanh.f32 %v4093_v29 }
 0x609   : > { %v10003_v61 = vadd.f32 %v4124_v21, %v4116_v9  ;;  %v8219_v9 = vld [vmem:[%s12169_s13 + $0x18] sm:$0xff]  ;;  %v8221_v21 = vld [vmem:[%s12169_s13 + $0x8] sm:$0xff] }
 0x60b   : > { %7271 = vmatmul.msk.f32.gmra.mxu1 %vm1525_vm1, %v10003_v61 }
 0x60e   : > { %v7946_v11 = vpop.eup %7945 }
 0x60f   : > { %v4117_v46 = vmul.f32 %v7946_v11, %v4109_v49 }
 0x611   : > { %v10008_v5 = vadd.f32 %v4125_v16, %v4117_v46 }
 0x613   : > { %7272 = vmatmul.msk.f32.gmra.mxu1 %vm1525_vm1, %v10008_v5 }
 0x658   : > { %v4185_v60 = vpop.f32.mrf.mxu1 }
 0x659   : > { %v4186_v4 = vadd.f32 %v7742_v62, %v4185_v60 }
 0x660   : > { %v4188_v42 = vpop.f32.mrf.mxu1 }
 0x661   : > { %v4189_v37 = vadd.f32 %v7742_v62, %v4188_v42 }
 0x663   : > { %4223 = vmatpush.msrb.mxu0 %v4189_v37 }
 0x665   : > { %4224 = vmatpush.msrb.mxu0 %v4186_v4 }
 0x666   : > { %7273 = vmatmul.msk.f32.vlgmr.msrb.gmra.mxu0 %vm933_vm0, %v9270_v47 }
 0x668   : > { %v4191_v17 = vpop.f32.mrf.mxu1 }
 0x669   : > { %v4192_v27 = vadd.f32 %v7742_v62, %v4191_v17 }
 0x66e   : > { %7274 = vmatmul.msk.f32.gmra.mxu0 %vm933_vm0, %v9277_v43 }
 0x670   : > { %v4194_v1 = vpop.f32.mrf.mxu1 }
 0x671   : > { %v4195_v14 = vadd.f32 %v7742_v62, %v4194_v1 }
 0x673   : > { %4246 = vmatpush.msra.mxu0 %v4195_v14  ;;  %v8223_v14 = vld [vmem:[%s12170_s14 + $0x58] sm:$0xff] }
 0x675   : > { %4247 = vmatpush.msra.mxu0 %v4192_v27  ;;  %v8224_v27 = vld [vmem:[%s12170_s14 + $0x50] sm:$0xff] }
 0x676   : > { %7275 = vmatmul.msk.f32.vlgmr.msra.gmra.mxu0 %vm933_vm0, %v9282_v53 }
 0x677   : > { %4321 = vmatpush.msrb.mxu0 %v10024_v40 }
 0x678   : > { %v4197_v2 = vpop.f32.mrf.mxu1 }
 0x679   : > { %4322 = vmatpush.msrb.mxu0 %v10030_v39  ;;  %v4198_v19 = vadd.f32 %v7742_v62, %v4197_v2  ;;  %v8225_v2 = vld [vmem:[%s12170_s14 + $0x48] sm:$0xff] }
 0x67b   : > { %4323 = vmatpush.msrb.mxu0 %v10036_v58 }
 0x67d   : > { %4324 = vmatpush.msrb.mxu0 %v10042_v33 }
 0x67e   : > { %7276 = vmatmul.msk.f32.gmra.mxu0 %vm933_vm0, %v9299_v34 }
 0x67f   : > { %4829 = vmatpush.msra.mxu0 %v10050_v57 }
 0x680   : > { %v4200_v31 = vpop.f32.mrf.mxu1 }
 0x681   : > { %v4201_v50 = vadd.f32 %v7742_v62, %v4200_v31  ;;  %4830 = vmatpush.msra.mxu0 %v10056_v38 }
 0x683   : > { %4269 = vmatpush.msra.mxu2 %v4201_v50  ;;  %4831 = vmatpush.msra.mxu0 %v10062_v0 }
 0x685   : > { %4270 = vmatpush.msra.mxu2 %v4198_v19  ;;  %4832 = vmatpush.msra.mxu0 %v10068_v36 }
 0x686   : > { %7277 = vmatmul.msk.f32.vlgmr.msra.gmra.mxu2 %vm933_vm0, %v9366_v13  ;;  %7281 = vmatmul.msk.f32.vlgmr.msrb.gmra.mxu0 %vm1525_vm1, %v9747_v55 }
 0x687   : > { %4587 = vmatpush.msrb.mxu2 %v10078_v28  ;;  %5142 = vmatpush.msrb.mxu0 %v10024_v40 }
 0x688   : > { %v4203_v52 = vpop.f32.mrf.mxu1 }
 0x689   : > { %4588 = vmatpush.msrb.mxu2 %v10085_v7  ;;  %5143 = vmatpush.msrb.mxu0 %v10030_v39  ;;  %v4204_v63 = vadd.f32 %v7742_v62, %v4203_v52 }
 0x68b   : > { %4589 = vmatpush.msrb.mxu2 %v10092_v6  ;;  %5144 = vmatpush.msrb.mxu0 %v10036_v58 }
 0x68d   : > { %4590 = vmatpush.msrb.mxu2 %v10099_v23  ;;  %5145 = vmatpush.msrb.mxu0 %v10042_v33 }
 0x68e   : > { %7278 = vmatmul.msk.f32.gmra.mxu2 %vm933_vm0, %v9376_v51  ;;  %7282 = vmatmul.msk.f32.gmra.mxu0 %vm1525_vm1, %v9822_v25 }
 0x690   : > { %v4206_v45 = vpop.f32.mrf.mxu1 }
 0x691   : > { %v4207_v10 = vadd.f32 %v7742_v62, %v4206_v45 }
 0x693   : > { %4292 = vmatpush.msra.mxu3 %v4207_v10 }
 0x695   : > { %4293 = vmatpush.msra.mxu3 %v4204_v63 }
 0x696   : > { %7279 = vmatmul.msk.f32.vlgmr.msra.gmra.mxu3 %vm933_vm0, %v9400_v56  ;;  %7283 = vmatmul.msk.f32.gmra.mxu0 %vm1525_vm1, %v9869_v8 }
 0x697   : > { %7305 = vmatmul.msk.f32.vlgmr.msrb.gmra.mxu2 %vm1525_vm1, %v9747_v55  ;;  %4628 = vmatpush.msrb.mxu3 %v8215_v24 }
 0x699   : > { %4629 = vmatpush.msrb.mxu3 %v8216_v12 }
 0x69b   : > { %4630 = vmatpush.msrb.mxu3 %v8217_v59 }
 0x69d   : > { %4631 = vmatpush.msrb.mxu3 %v8218_v22 }
 0x69e   : > { %7280 = vmatmul.msk.f32.gmra.mxu3 %vm933_vm0, %v9408_v48  ;;  %7284 = vmatmul.msk.f32.gmra.mxu0 %vm1525_vm1, %v9918_v35 }
 0x69f   : > { %7306 = vmatmul.msk.f32.gmra.mxu2 %vm1525_vm1, %v9822_v25 }
 0x6a6   : > { %7285 = vmatmul.msk.f32.gmra.mxu0 %vm1525_vm1, %v9958_v30 }
 0x6a7   : > { %7307 = vmatmul.msk.f32.gmra.mxu2 %vm1525_vm1, %v9869_v8 }
 0x6ae   : > { %7286 = vmatmul.msk.f32.gmra.mxu0 %vm1525_vm1, %v9990_v18 }
 0x6af   : > { %7308 = vmatmul.msk.f32.gmra.mxu2 %vm1525_vm1, %v9918_v35 }
 0x6b6   : > { %7287 = vmatmul.msk.f32.gmra.mxu0 %vm1525_vm1, %v10003_v61 }
 0x6b7   : > { %7309 = vmatmul.msk.f32.gmra.mxu2 %vm1525_vm1, %v9958_v30 }
 0x6be   : > { %7288 = vmatmul.msk.f32.gmra.mxu0 %vm1525_vm1, %v10008_v5 }
 0x6bf   : > { %7310 = vmatmul.msk.f32.gmra.mxu2 %vm1525_vm1, %v9990_v18 }
 0x6c7   : > { %7311 = vmatmul.msk.f32.gmra.mxu2 %vm1525_vm1, %v10003_v61 }
 0x6cf   : > { %7312 = vmatmul.msk.f32.gmra.mxu2 %vm1525_vm1, %v10008_v5 }
 0x6e3   : > { %v4226_v32 = vpop.f32.mrf.mxu0 }
 0x6e4   : > { %v4301_v29 = vmax.f32 %v4226_v32, 0.0 }
 0x6e6   : > { %7289 = vmatmul.msk.f32.vlgmr.msrb.gmra.mxu1 %vm1525_vm1, %v4301_v29  ;;  %7313 = vmatmul.msk.f32.vlgmr.msrb.gmra.mxu3 %vm1525_vm1, %v4301_v29 }
 0x6e7   : > { %7329 = vmatmul.msk.f32.vlgmr.msra.gmra.mxu0 %vm1525_vm1, %v4301_v29  ;;  %5207 = vmatpush.msrb.mxu1 %v8219_v9 }
 0x6e8   : > { %5650 = vmatpush.msra.mxu0 %v10050_v57  ;;  %v8226_v57 = vld [vmem:[%s12170_s14 + $0x40] sm:$0xff] }
 0x6e9   : > { %5208 = vmatpush.msrb.mxu1 %v8220_v26 }
 0x6ea   : > { %5651 = vmatpush.msra.mxu0 %v10056_v38 }
 0x6eb   : > { %v4229_v54 = vpop.f32.mrf.mxu0  ;;  %5209 = vmatpush.msrb.mxu1 %v8221_v21 }
 0x6ec   : > { %v4302_v41 = vmax.f32 %v4229_v54, 0.0  ;;  %5652 = vmatpush.msra.mxu0 %v10062_v0 }
 0x6ed   : > { %5210 = vmatpush.msrb.mxu1 %v8222_v3 }
 0x6ee   : > { %7290 = vmatmul.msk.f32.gmra.mxu1 %vm1525_vm1, %v4302_v41  ;;  %7314 = vmatmul.msk.f32.gmra.mxu3 %vm1525_vm1, %v4302_v41 }
 0x6ef   : > { %7330 = vmatmul.msk.f32.gmra.mxu0 %vm1525_vm1, %v4302_v41 }
 0x6f0   : > { %5653 = vmatpush.msra.mxu0 %v10068_v36 }
 0x6f3   : > { %v4249_v49 = vpop.f32.mrf.mxu0 }
 0x6f4   : > { %v4303_v11 = vmax.f32 %v4249_v49, 0.0 }
 0x6f6   : > { %7291 = vmatmul.msk.f32.gmra.mxu1 %vm1525_vm1, %v4303_v11  ;;  %7315 = vmatmul.msk.f32.gmra.mxu3 %vm1525_vm1, %v4303_v11 }
 0x6f7   : > { %7331 = vmatmul.msk.f32.gmra.mxu0 %vm1525_vm1, %v4303_v11 }
 0x6fb   : > { %v4252_v46 = vpop.f32.mrf.mxu0 }
 0x6fc   : > { %v4304_v20 = vmax.f32 %v4252_v46, 0.0 }
 0x6fe   : > { %7292 = vmatmul.msk.f32.gmra.mxu1 %vm1525_vm1, %v4304_v20  ;;  %7316 = vmatmul.msk.f32.gmra.mxu3 %vm1525_vm1, %v4304_v20 }
 0x6ff   : > { %7332 = vmatmul.msk.f32.gmra.mxu0 %vm1525_vm1, %v4304_v20 }
 0x703   : > { %v4326_v31 = vpop.f32.mrf.mxu0 }
 0x709   : > { %v4272_v16 = vpop.f32.mrf.mxu2 }
 0x70a   : > { %v4305_v60 = vmax.f32 %v4272_v16, 0.0 }
 0x70b   : > { %v4329_v50 = vpop.f32.mrf.mxu0 }
 0x70c   : > { %7293 = vmatmul.msk.f32.gmra.mxu1 %vm1525_vm1, %v4305_v60  ;;  %7317 = vmatmul.msk.f32.gmra.mxu3 %vm1525_vm1, %v4305_v60 }
 0x70d   : > { %7333 = vmatmul.msk.f32.gmra.mxu0 %vm1525_vm1, %v4305_v60 }
 0x711   : > { %v4275_v62 = vpop.f32.mrf.mxu2 }
 0x712   : > { %v4306_v42 = vmax.f32 %v4275_v62, 0.0 }
 0x713   : > { %v4332_v38 = vpop.f32.mrf.mxu0 }
 0x714   : > { %7294 = vmatmul.msk.f32.gmra.mxu1 %vm1525_vm1, %v4306_v42  ;;  %7318 = vmatmul.msk.f32.gmra.mxu3 %vm1525_vm1, %v4306_v42 }
 0x715   : > { %7334 = vmatmul.msk.f32.gmra.mxu0 %vm1525_vm1, %v4306_v42 }
 0x719   : > { %v4295_v37 = vpop.f32.mrf.mxu3 }
 0x71a   : > { %v4307_v4 = vmax.f32 %v4295_v37, 0.0  ;;  %v4592_v45 = vpop.f32.mrf.mxu2 }
 0x71b   : > { %v4335_v19 = vpop.f32.mrf.mxu0 }
 0x71c   : > { %7295 = vmatmul.msk.f32.gmra.mxu1 %vm1525_vm1, %v4307_v4  ;;  %7319 = vmatmul.msk.f32.gmra.mxu3 %vm1525_vm1, %v4307_v4 }
 0x71d   : > { %7335 = vmatmul.msk.f32.gmra.mxu0 %vm1525_vm1, %v4307_v4 }
 0x721   : > { %v4298_v17 = vpop.f32.mrf.mxu3 }
 0x722   : > { %v4308_v1 = vmax.f32 %v4298_v17, 0.0  ;;  %v4595_v32 = vpop.f32.mrf.mxu2 }
 0x723   : > { %v10215_v0 = vpop.f32.mrf.mxu0 }
 0x724   : > { %7296 = vmatmul.msk.f32.gmra.mxu1 %vm1525_vm1, %v4308_v1  ;;  %7320 = vmatmul.msk.f32.gmra.mxu3 %vm1525_vm1, %v4308_v1 }
 0x725   : > { %7336 = vmatmul.msk.f32.gmra.mxu0 %vm1525_vm1, %v4308_v1 }
 0x72a   : > { %v4598_v46 = vpop.f32.mrf.mxu2 }
 0x72b   : > { %v10221_v52 = vpop.f32.mrf.mxu0 }
 0x72c   : > { %7337 = vmatmul.msk.f32.vlgmr.msra.gmra.mxu1 %vm1525_vm1, %v9747_v55 }
 0x72d   : > { %5691 = vmatpush.msra.mxu1 %v8223_v14 }
 0x72f   : > { %5692 = vmatpush.msra.mxu1 %v8224_v27 }
 0x731   : > { %5693 = vmatpush.msra.mxu1 %v8225_v2 }
 0x733   : > { %5694 = vmatpush.msra.mxu1 %v8226_v57  ;;  %v10223_v24 = vpop.f32.mrf.mxu0 }
 0x734   : > { %7338 = vmatmul.msk.f32.gmra.mxu1 %vm1525_vm1, %v9822_v25 }
 0x73b   : > { %v10227_v21 = vpop.f32.mrf.mxu0 }
 0x73c   : > { %7339 = vmatmul.msk.f32.gmra.mxu1 %vm1525_vm1, %v9869_v8 }
 0x744   : > { %7340 = vmatmul.msk.f32.gmra.mxu1 %vm1525_vm1, %v9918_v35 }
 0x74c   : > { %7341 = vmatmul.msk.f32.gmra.mxu1 %vm1525_vm1, %v9958_v30 }
 0x754   : > { %7342 = vmatmul.msk.f32.gmra.mxu1 %vm1525_vm1, %v9990_v18 }
 0x75c   : > { %7343 = vmatmul.msk.f32.gmra.mxu1 %vm1525_vm1, %v10003_v61 }
 0x763   : > { %v4391_v36 = vpop.f32.mrf.mxu1 }
 0x764   : > { %7344 = vmatmul.msk.f32.gmra.mxu1 %vm1525_vm1, %v10008_v5  ;;  %v4392_v12 = vadd.f32 %v4391_v36, %v4326_v31  ;;  %v4834_v16 = vpop.f32.mrf.mxu0 }
 0x766   : > { %v4415_v22 = vadd.f32 %v4392_v12, %v9491_v15 }
 0x768   : > { %v7297_v54 = vmul.f32 -1.442695, %v4415_v22 }
 0x769   : > { %v4633_v63 = vpop.f32.mrf.mxu3 }
 0x76a   : > { %v4634_v59 = vadd.f32 %v4633_v63, %v4592_v45  ;;  %7947 = vpow2.f32 %v7297_v54 }
 0x76b   : > { %v4394_v10 = vpop.f32.mrf.mxu1 }
 0x76c   : > { %v4657_v9 = vadd.f32 %v4634_v59, %v9503_v44  ;;  %v4395_v41 = vadd.f32 %v4394_v10, %v4329_v50  ;;  %v4601_v50 = vpop.f32.mrf.mxu2  ;;  %v4837_v45 = vpop.f32.mrf.mxu0 }
 0x76e   : > { %v7321_v3 = vmul.f32 -1.442695, %v4657_v9  ;;  %v4416_v49 = vadd.f32 %v4395_v41, %v9491_v15 }
 0x770   : > { %7949 = vpow2.f32 %v7321_v3  ;;  %v7298_v60 = vmul.f32 -1.442695, %v4416_v49  ;;  %v7948_v42 = vpop.eup %7947 }
 0x771   : > { %v4636_v26 = vpop.f32.mrf.mxu3  ;;  %v10231_v17 = vadd.f32 1.0, %v7948_v42  ;;  %v7348_v42 = vld [vmem:[%s12167_s11 + $0x58] sm:$0xff] }
 0x772   : > { %v4637_v11 = vadd.f32 %v4636_v26, %v4595_v32  ;;  %7951 = vpow2.f32 %v7298_v60  ;;  %5001 = vmatpush.msra.mxu2 %v7348_v42 }
 0x773   : > { %v4397_v29 = vpop.f32.mrf.mxu1  ;;  %7953 = vrcp.f32 %v10231_v17  ;;  %vm4460_vm13 = vweird.f32 %v10231_v17 }
 0x774   : > { %v4658_v37 = vadd.f32 %v4637_v11, %v9503_v44  ;;  %v4398_v1 = vadd.f32 %v4397_v29, %v4332_v38  ;;  %v4840_v60 = vpop.f32.mrf.mxu0 }
 0x776   : > { %v7950_v4 = vpop.eup %7949  ;;  %v7322_v14 = vmul.f32 -1.442695, %v4658_v37  ;;  %v4417_v31 = vadd.f32 %v4398_v1, %v9491_v15 }
 0x777   : > { %v10233_v27 = vadd.f32 1.0, %v7950_v4 }
 0x778   : > { %7955 = vpow2.f32 %v7322_v14  ;;  %v7952_v36 = vpop.eup %7951  ;;  %v7299_v12 = vmul.f32 -1.442695, %v4417_v31  ;;  %v4466_v31 = vand.u32 2147483648, %v10231_v17 }
 0x779   : > { %v4639_v62 = vpop.f32.mrf.mxu3  ;;  %7957 = vrcp.f32 %v10233_v27  ;;  %v10239_v59 = vadd.f32 1.0, %v7952_v36  ;;  %v10241_v22 = vpop.eup %7953  ;;  %vm4702_vm15 = vweird.f32 %v10233_v27 }
 0x77a   : > { %v4640_v2 = vadd.f32 %v4639_v62, %v4598_v46  ;;  %7959 = vpow2.f32 %v7299_v12  ;;  %v4604_v46 = vpop.f32.mrf.mxu2  ;;  %v7346_v12 = vld [vmem:[%s12167_s11 + $0x48] sm:$0xff]  ;;  %vm4461_vm2 = vweird.f32 %v10241_v22 }
 0x77b   : > { %v4400_v20 = vpop.f32.mrf.mxu1  ;;  %7961 = vrcp.f32 %v10239_v59  ;;  %vm10334_vm5 = vmor %vm4460_vm13, %vm4461_vm2  ;;  %vm4475_vm6 = vweird.f32 %v10239_v59 }
 0x77c   : > { %v4659_v63 = vadd.f32 %v4640_v2, %v9503_v44  ;;  %v4401_v38 = vadd.f32 %v4400_v20, %v4335_v19  ;;  %v4456_v19 = vmul.f32 %v10241_v22, %v10231_v17 }
 0x77e   : > { %v7956_v32 = vpop.eup %7955  ;;  %v7323_v29 = vmul.f32 -1.442695, %v4659_v63  ;;  %v4418_v26 = vadd.f32 %v4401_v38, %v9491_v15  ;;  %v4457_v1 = vsub.f32 1.0, %v4456_v19  ;;  %v4464_v63 = vand.u32 2147483647, %v10231_v17 }
 0x77f   : > { %v10244_v54 = vpop.eup %7957  ;;  %v10247_v41 = vadd.f32 1.0, %v7956_v32  ;;  %v4708_v32 = vand.u32 2147483648, %v10233_v27 }
 0x780   : > { %7963 = vpow2.f32 %v7323_v29  ;;  %v4698_v20 = vmul.f32 %v10244_v54, %v10233_v27  ;;  %v7300_v62 = vmul.f32 -1.442695, %v4418_v26  ;;  %v7960_v37 = vpop.eup %7959  ;;  %v4458_v19 = vmul.f32 %v10241_v22, %v4457_v1 }
 0x781   : > { %v4642_v10 = vpop.f32.mrf.mxu3  ;;  %7965 = vrcp.f32 %v10247_v41  ;;  %v10262_v14 = vpop.eup %7961  ;;  %v10284_v26 = vadd.f32 1.0, %v7960_v37  ;;  %vm10301_vm3 = vcmp.eq.f32.partialorder %v4464_v63, 8.507059e+37  ;;  %v10305_v1 = vor.u32 1.1754944e-38, %v4708_v32 }
 0x782   : > { %v4643_v3 = vadd.f32 %v4642_v10, %v4601_v50  ;;  %v10271_v50 = vld [vmem:[%s12171_s15 + $0x2] ss:$0 sm:$0xff]  ;;  %v4699_v10 = vsub.f32 1.0, %v4698_v20  ;;  %7967 = vpow2.f32 %v7300_v62  ;;  %v4481_v63 = vand.u32 2147483648, %v10239_v59 }
 0x783   : > { %v10274_v36 = vadd.f32 %v10271_v50, %v4834_v16  ;;  %v10282_v29 = vadd.f32 %v10271_v50, %v4837_v45  ;;  %v10288_v16 = vadd.f32 %v10271_v50, %v4840_v60  ;;  %v4467_v45 = vor.u32 1.1754944e-38, %v4466_v31  ;;  %v4607_v31 = vpop.f32.mrf.mxu2 }
 0x784   : > { %v4660_v4 = vadd.f32 %v4643_v3, %v9503_v44  ;;  %v4700_v37 = vmul.f32 %v10244_v54, %v4699_v10  ;;  %7969 = vrcp.f32 %v10284_v26  ;;  %v4843_v10 = vpop.f32.mrf.mxu0  ;;  %v4723_v32 = vand.u32 2147483648, %v10247_v41 }
 0x785   : > { %vm4703_vm4 = vweird.f32 %v10244_v54  ;;  %vm4476_vm9 = vweird.f32 %v10262_v14  ;;  %vm4717_vm11 = vweird.f32 %v10247_v41 }
 0x786   : > { %v7964_v38 = vpop.eup %7963  ;;  %v7324_v3 = vmul.f32 -1.442695, %v4660_v4  ;;  %vm10356_vm8 = vmor %vm4702_vm15, %vm4703_vm4  ;;  %vm4490_vm15 = vweird.f32 %v10284_v26 }
 0x787   : > { %v10294_v42 = vpop.eup %7965  ;;  %vm10415_vm12 = vmor %vm4475_vm6, %vm4476_vm9 }
 0x788   : > { %7971 = vpow2.f32 %v7324_v3  ;;  %vm4718_vm14 = vweird.f32 %v10294_v42 }
 0x789   : > { %v4403_v57 = vpop.f32.mrf.mxu1  ;;  %vm10448_vm2 = vmor %vm4717_vm11, %vm4718_vm14 }
 0x78a   : > { %v4404_v11 = vadd.f32 %v4403_v57, %v10215_v0  ;;  %v7347_v0 = vld [vmem:[%s12167_s11 + $0x50] sm:$0xff] }
 0x78b   : > { %5002 = vmatpush.msra.mxu2 %v7347_v0  ;;  %v10297_v0 = vadd.f32 1.0, %v7964_v38  ;;  %v4713_v38 = vmul.f32 %v10294_v42, %v10247_v41 }
 0x78c   : > { %v4419_v2 = vadd.f32 %v4404_v11, %v9491_v15  ;;  %v4471_v11 = vmul.f32 %v10262_v14, %v10239_v59  ;;  %v4846_v4 = vpop.f32.mrf.mxu0 }
 0x78d   : > { %5003 = vmatpush.msra.mxu2 %v7346_v12  ;;  %v4714_v13 = vsub.f32 1.0, %v4713_v38  ;;  %v4738_v38 = vand.u32 2147483648, %v10297_v0  ;;  %vm4732_vm4 = vweird.f32 %v10297_v0 }
 0x78e   : > { %v7301_v20 = vmul.f32 -1.442695, %v4419_v2  ;;  %v7968_v2 = vpop.eup %7967 }
 0x78f   : > { %v4645_v49 = vpop.f32.mrf.mxu3  ;;  %v10325_v51 = vadd.f32 1.0, %v7968_v2  ;;  %v10347_v2 = vor.u32 1.1754944e-38, %v4481_v63  ;;  %v10350_v17 = vpop.eup %7969  ;;  %v4721_v63 = vand.u32 2147483647, %v10247_v41 }
 0x790   : > { %v4646_v62 = vadd.f32 %v4645_v49, %v4604_v46  ;;  %v4706_v49 = vand.u32 2147483647, %v10233_v27  ;;  %v4479_v46 = vand.u32 2147483647, %v10239_v59  ;;  %7973 = vpow2.f32 %v7301_v20 }
 0x791   : > { %v4406_v9 = vpop.f32.mrf.mxu1  ;;  %7975 = vrcp.f32 %v10297_v0  ;;  %v10328_v20 = vadd.f32 %v10271_v50, %v4843_v10  ;;  %v7972_v10 = vpop.eup %7971  ;;  %vm10425_vm13 = vcmp.eq.f32.partialorder %v4721_v63, 8.507059e+37  ;;  %v4736_v27 = vand.u32 2147483647, %v10297_v0 }
 0x792   : > { %v4407_v60 = vadd.f32 %v4406_v9, %v10221_v52  ;;  %v4459_v52 = vadd.f32 %v10241_v22, %v4458_v19  ;;  %v4472_v9 = vsub.f32 1.0, %v4471_v11  ;;  %v4661_v48 = vadd.f32 %v4646_v62, %v9503_v44  ;;  %v7345_v11 = vld [vmem:[%s12167_s11 + $0x40] sm:$0xff] }
 0x793   : > { %v4701_v19 = vadd.f32 %v10244_v54, %v4700_v37  ;;  %5004 = vmatpush.msra.mxu2 %v7345_v11  ;;  %vm10342_vm7 = vcmp.eq.f32.partialorder %v4706_v49, 8.507059e+37  ;;  %vm10368_vm10 = vcmp.eq.f32.partialorder %v4479_v46, 8.507059e+37  ;;  %7977 = vrcp.f32 %v10325_v51 }
 0x794   : > { %v4420_v3 = vadd.f32 %v4407_v60, %v9491_v15  ;;  %v4463_v37 = vsel %vm10334_vm5, %v10241_v22, %v4459_v52  ;;  %v10360_v22 = vor.u32 1.1754944e-38, %v4723_v32  ;;  %v7325_v49 = vmul.f32 -1.442695, %v4661_v48 }
 0x795   : > { %5408 = vmatpush.msrb.mxu2 %v10078_v28  ;;  %v4715_v11 = vmul.f32 %v10294_v42, %v4714_v13  ;;  %v10409_v60 = vor.u32 1.1754944e-38, %v4738_v38  ;;  %vm4737_vm14 = vcmp.eq.f32.partialorder %v4736_v27, 8.507059e+37 }
 0x796   : > { %v7302_v52 = vmul.f32 -1.442695, %v4420_v3  ;;  %v7974_v48 = vpop.eup %7973  ;;  %v4494_v3 = vand.u32 2147483647, %v10284_v26  ;;  %7979 = vpow2.f32 %v7325_v49 }
 0x797   : > { %v4648_v12 = vpop.f32.mrf.mxu3  ;;  %5409 = vmatpush.msrb.mxu2 %v10085_v7  ;;  %v4486_v7 = vmul.f32 %v10350_v17, %v10284_v26 }
 0x798   : > { %v4649_v62 = vadd.f32 %v4648_v12, %v4607_v31  ;;  %v4473_v12 = vmul.f32 %v10262_v14, %v4472_v9  ;;  %v4705_v9 = vsel %vm10356_vm8, %v10244_v54, %v4701_v19  ;;  %v4468_v54 = vsel %vm10301_vm3, %v4467_v45, %v4463_v37 }
 0x799   : > { %v10265_v57 = vpop.f32.mrf.mxu1  ;;  %v4496_v19 = vand.u32 2147483648, %v10284_v26  ;;  %5410 = vmatpush.msrb.mxu2 %v10092_v6  ;;  %v10394_v45 = vsel %vm10342_vm7, %v10305_v1, %v4705_v9  ;;  %v10396_v31 = vadd.f32 1.0, %v7974_v48  ;;  %7981 = vpow2.f32 %v7302_v52  ;;  %v10402_v6 = vld [vmem:[%s12172_s16 + $0x2] ss:$0 sm:$0xff] }
 0x79a   : > { %v4410_v28 = vadd.f32 %v10265_v57, %v10223_v24  ;;  %v4662_v24 = vadd.f32 %v4649_v62, %v9503_v44  ;;  %v10380_v57 = vpop.eup %7975  ;;  %v4474_v32 = vadd.f32 %v10262_v14, %v4473_v12  ;;  %v10389_v62 = vadd.f32 1.0, %v7972_v10  ;;  %v4610_v12 = vpop.f32.mrf.mxu2 }
 0x79b   : > { %5411 = vmatpush.msrb.mxu2 %v10099_v23  ;;  %v4728_v1 = vmul.f32 %v10380_v57, %v10297_v0  ;;  %v10420_v52 = vadd.f32 %v10271_v50, %v4846_v4  ;;  %v4487_v48 = vsub.f32 1.0, %v4486_v7  ;;  %v10429_v38 = vpop.eup %7977  ;;  %v4716_v4 = vadd.f32 %v10294_v42, %v4715_v11 }
 0x79c   : > { %v4421_v34 = vadd.f32 %v4410_v28, %v9491_v15  ;;  %v7326_v49 = vmul.f32 -1.442695, %v4662_v24  ;;  %v4478_v28 = vsel %vm10415_vm12, %v10262_v14, %v4474_v32  ;;  %7983 = vrcp.f32 %v10389_v62  ;;  %v7980_v32 = vpop.eup %7979 }
 0x79d   : > { %v4923_v24 = vsub.f32 1.0, %v10394_v45  ;;  %7985 = vrcp.f32 %v10396_v31  ;;  %v4729_v7 = vsub.f32 1.0, %v4728_v1  ;;  %v4483_v11 = vsel %vm10368_vm10, %v10347_v2, %v4478_v28 }
 0x79e   : > { %7987 = vpow2.f32 %v7326_v49  ;;  %vm4491_vm3 = vweird.f32 %v10350_v17  ;;  %v4720_v41 = vsel %vm10448_vm2, %v10294_v42, %v4716_v4  ;;  %v4497_v2 = vor.u32 1.1754944e-38, %v4496_v19 }
 0x79f   : > { %v4651_v46 = vpop.f32.mrf.mxu3  ;;  %vm10466_vm5 = vcmp.eq.f32.partialorder %v4494_v3, 8.507059e+37  ;;  %v4730_v42 = vmul.f32 %v10380_v57, %v4729_v7  ;;  %v4753_v19 = vand.u32 2147483648, %v10389_v62  ;;  %v4509_v28 = vand.u32 2147483647, %v10325_v51  ;;  %vm10497_vm8 = vmor %vm4490_vm15, %vm4491_vm3 }
 0x7a0   : > { %v4652_v59 = vadd.f32 %v4651_v46, %v4610_v12  ;;  %v4939_v46 = vmul.f32 %v10394_v45, %v9747_v55  ;;  %v4501_v55 = vmul.f32 %v10429_v38, %v10325_v51  ;;  %v10462_v45 = vadd.f32 1.0, %v7980_v32 }
 0x7a1   : > { %v10316_v56 = vpop.f32.mrf.mxu1  ;;  %vm4733_vm6 = vweird.f32 %v10380_v57  ;;  %vm4505_vm7 = vweird.f32 %v10325_v51  ;;  %v4731_v9 = vadd.f32 %v10380_v57, %v4730_v42  ;;  %vm4747_vm10 = vweird.f32 %v10389_v62 }
 0x7a2   : > { %v4413_v14 = vadd.f32 %v10316_v56, %v10227_v21  ;;  %v4488_v56 = vmul.f32 %v10350_v17, %v4487_v48  ;;  %v4663_v21 = vadd.f32 %v4652_v59, %v9503_v44  ;;  %v4613_v59 = vpop.f32.mrf.mxu2  ;;  %v4502_v3 = vsub.f32 1.0, %v4501_v55  ;;  %vm10517_vm9 = vmor %vm4732_vm4, %vm4733_vm6 }
 0x7a3   : > { %v10490_v55 = vor.u32 1.1754944e-38, %v4753_v19  ;;  %vm4506_vm11 = vweird.f32 %v10429_v38  ;;  %vm10547_vm12 = vcmp.eq.f32.partialorder %v4509_v28, 8.507059e+37 }
 0x7a4   : > { %v4422_v12 = vadd.f32 %v4413_v14, %v9491_v15  ;;  %v4511_v14 = vand.u32 2147483648, %v10325_v51  ;;  %v7327_v32 = vmul.f32 -1.442695, %v4663_v21  ;;  %v4849_v21 = vpop.f32.mrf.mxu0 }
 0x7a9   : > { %v4875_v37 = vpop.f32.mrf.mxu1 }
 0x7aa   : > { %v4876_v13 = vadd.f32 %v10402_v6, %v4875_v37  ;;  %v7982_v37 = vpop.eup %7981 }
 0x7ab   : > { %v10470_v10 = vpop.eup %7983 }
 0x7ac   : > { %v4899_v23 = vmul.f32 %v4876_v13, %v4468_v54  ;;  %v7303_v54 = vmul.f32 -1.442695, %v4421_v34  ;;  %v4654_v13 = vpop.f32.mrf.mxu3  ;;  %v10477_v48 = vpop.eup %7985  ;;  %vm4748_vm15 = vweird.f32 %v10470_v10 }
 0x7ad   : > { %v4655_v7 = vadd.f32 %v4654_v13, %v4613_v59  ;;  %vm4521_vm3 = vweird.f32 %v10477_v48  ;;  %vm10607_vm4 = vmor %vm4747_vm10, %vm4748_vm15 }
 0x7ae   : > { %v4907_v63 = vadd.f32 %v4899_v23, %v10274_v36  ;;  %v10474_v23 = vadd.f32 1.0, %v7982_v37  ;;  %v4725_v37 = vsel %vm10425_vm13, %v10360_v22, %v4720_v41  ;;  %vm10563_vm13 = vmor %vm4505_vm7, %vm4506_vm11  ;;  %vm4762_vm7 = vweird.f32 %v10462_v45 }
 0x7af   : > { %v4664_v26 = vadd.f32 %v4655_v7, %v9503_v44 }
 0x7b0   : > { %7989 = vtanh.f32 %v4907_v63  ;;  %v7988_v63 = vpop.eup %7987 }
 0x7b1   : > { %v4878_v36 = vpop.f32.mrf.mxu1  ;;  %7991 = vpow2.f32 %v7303_v54  ;;  %v4489_v54 = vadd.f32 %v10350_v17, %v4488_v56 }
 0x7b2   : > { %v4879_v1 = vadd.f32 %v10402_v6, %v4878_v36  ;;  %v4743_v36 = vmul.f32 %v10470_v10, %v10389_v62  ;;  %7993 = vrcp.f32 %v10462_v45 }
 0x7b3   : > { %7995 = vrcp.f32 %v10474_v23 }
 0x7b4   : > { %v4900_v4 = vmul.f32 %v4879_v1, %v4483_v11  ;;  %v7304_v11 = vmul.f32 -1.442695, %v4422_v12  ;;  %v4503_v12 = vmul.f32 %v10429_v38, %v4502_v3  ;;  %v10508_v1 = vadd.f32 1.0, %v7988_v63 }
 0x7b6   : > { %v7990_v34 = vpop.eup %7989  ;;  %v4908_v56 = vadd.f32 %v4900_v4, %v10282_v29  ;;  %v4493_v29 = vsel %vm10497_vm8, %v10350_v17, %v4489_v54  ;;  %v4744_v17 = vsub.f32 1.0, %v4743_v36  ;;  %v10522_v4 = vadd.f32 %v10271_v50, %v4849_v21 }
 0x7b7   : > { %v4931_v13 = vmul.f32 %v7990_v34, %v4923_v24  ;;  %v7992_v41 = vpop.eup %7991  ;;  %v4516_v24 = vmul.f32 %v10477_v48, %v10396_v31  ;;  %v4498_v63 = vsel %vm10466_vm5, %v4497_v2, %v4493_v29  ;;  %v4504_v36 = vadd.f32 %v10429_v38, %v4503_v12 }
 0x7b8   : > { %7997 = vtanh.f32 %v4908_v56  ;;  %v10525_v3 = vadd.f32 1.0, %v7992_v41  ;;  %v10536_v7 = vpop.eup %7993  ;;  %v4745_v21 = vmul.f32 %v10470_v10, %v4744_v17  ;;  %v4512_v12 = vor.u32 1.1754944e-38, %v4511_v14 }
 0x7b9   : > { %7999 = vpow2.f32 %v7327_v32  ;;  %v10511_v19 = vadd.f32 %v4939_v46, %v4931_v13  ;;  %v4881_v59 = vpop.f32.mrf.mxu1  ;;  %v4924_v46 = vsub.f32 1.0, %v4725_v37  ;;  %v4735_v32 = vsel %vm10517_vm9, %v10380_v57, %v4731_v9  ;;  %v10542_v49 = vpop.eup %7995 }
 0x7ba   : > { %8001 = vpow2.f32 %v7304_v11  ;;  %v4882_v54 = vadd.f32 %v10402_v6, %v4881_v59  ;;  %v4517_v2 = vsub.f32 1.0, %v4516_v24  ;;  %v7328_v57 = vmul.f32 -1.442695, %v4664_v26 }
 0x7bb   : > { %7350 = vmatmul.msk.f32.vlgmr.msra.gmra.mxu2 %vm1525_vm1, %v10511_v19  ;;  %7366 = vmatmul.msk.f32.vlgmr.msrb.gmra.mxu0 %vm1525_vm1, %v10511_v19  ;;  %8003 = vrcp.f32 %v10508_v1  ;;  %v4740_v13 = vsel %vm4737_vm14, %v10409_v60, %v4735_v32  ;;  %v4758_v0 = vmul.f32 %v10536_v7, %v10462_v45  ;;  %v4531_v29 = vmul.f32 %v10542_v49, %v10474_v23 }
 0x7bc   : > { %v4901_v34 = vmul.f32 %v4882_v54, %v4498_v63  ;;  %5963 = vmatpush.msrb.mxu0 %v10024_v40  ;;  %v4751_v40 = vand.u32 2147483647, %v10389_v62  ;;  %8005 = vrcp.f32 %v10525_v3  ;;  %v4518_v41 = vmul.f32 %v10477_v48, %v4517_v2 }
 0x7bd   : > { %v4925_v26 = vsub.f32 1.0, %v4740_v13  ;;  %vm4520_vm5 = vweird.f32 %v10396_v31  ;;  %v4526_v2 = vand.u32 2147483648, %v10396_v31  ;;  %vm4763_vm9 = vweird.f32 %v10536_v7 }
 0x7be   : > { %v7998_v56 = vpop.eup %7997  ;;  %v4909_v22 = vadd.f32 %v4901_v34, %v10288_v16  ;;  %5964 = vmatpush.msrb.mxu0 %v10030_v39  ;;  %v4940_v16 = vmul.f32 %v4725_v37, %v9822_v25  ;;  %v4508_v39 = vsel %vm10563_vm13, %v10429_v38, %v4504_v36  ;;  %v4746_v38 = vadd.f32 %v10470_v10, %v4745_v21  ;;  %vm10626_vm6 = vmor %vm4520_vm5, %vm4521_vm3 }
 0x7bf   : > { %v8000_v9 = vpop.eup %7999  ;;  %v4932_v27 = vmul.f32 %v7998_v56, %v4924_v46  ;;  %v4513_v51 = vsel %vm10547_vm12, %v4512_v12, %v4508_v39  ;;  %vm10591_vm2 = vcmp.eq.f32.partialorder %v4751_v40, 8.507059e+37  ;;  %v4532_v46 = vsub.f32 1.0, %v4531_v29  ;;  %vm10665_vm11 = vmor %vm4762_vm7, %vm4763_vm9 }
 0x7c0   : > { %v8002_v60 = vpop.eup %8001  ;;  %8007 = vtanh.f32 %v4909_v22  ;;  %5965 = vmatpush.msrb.mxu0 %v10036_v58  ;;  %v10580_v24 = vadd.f32 1.0, %v8000_v9  ;;  %v4759_v58 = vsub.f32 1.0, %v4758_v0  ;;  %v4768_v34 = vand.u32 2147483648, %v10462_v45 }
 0x7c1   : > { %8009 = vpow2.f32 %v7328_v57  ;;  %v4884_v25 = vpop.f32.mrf.mxu1  ;;  %v10578_v37 = vadd.f32 %v4940_v16, %v4932_v27  ;;  %v10585_v42 = vpop.eup %8003  ;;  %v10587_v17 = vadd.f32 1.0, %v8002_v60  ;;  %v4524_v36 = vand.u32 2147483647, %v10396_v31 }
 0x7c2   : > { %v4885_v59 = vadd.f32 %v10402_v6, %v4884_v25  ;;  %5966 = vmatpush.msrb.mxu0 %v10042_v33  ;;  %v4519_v33 = vadd.f32 %v10477_v48, %v4518_v41  ;;  %v10601_v63 = vpop.eup %8005  ;;  %v4773_v11 = vmul.f32 %v10585_v42, %v10508_v1  ;;  %8011 = vrcp.f32 %v10580_v24 }
 0x7c3   : > { %7351 = vmatmul.msk.f32.gmra.mxu2 %vm1525_vm1, %v10578_v37  ;;  %7367 = vmatmul.msk.f32.gmra.mxu0 %vm1525_vm1, %v10578_v37  ;;  %v4750_v62 = vsel %vm10607_vm4, %v10470_v10, %v4746_v38  ;;  %v4760_v22 = vmul.f32 %v10536_v7, %v4759_v58  ;;  %8013 = vrcp.f32 %v10587_v17  ;;  %v4941_v9 = vmul.f32 %v4740_v13, %v9869_v8 }
 0x7c4   : > { %v4902_v54 = vmul.f32 %v4885_v59, %v4513_v51  ;;  %v4523_v10 = vsel %vm10626_vm6, %v10477_v48, %v4519_v33  ;;  %v4546_v0 = vmul.f32 %v10601_v63, %v10525_v3  ;;  %v4755_v27 = vsel %vm10591_vm2, %v10490_v55, %v4750_v62 }
 0x7c5   : > { %v4527_v28 = vor.u32 1.1754944e-38, %v4526_v2  ;;  %v4774_v8 = vsub.f32 1.0, %v4773_v11  ;;  %vm4525_vm8 = vcmp.eq.f32.partialorder %v4524_v36, 8.507059e+37  ;;  %v4769_v39 = vor.u32 1.1754944e-38, %v4768_v34 }
 0x7c6   : > { %v8008_v57 = vpop.eup %8007  ;;  %v4910_v56 = vadd.f32 %v4902_v54, %v10328_v20  ;;  %v4533_v20 = vmul.f32 %v10542_v49, %v4532_v46  ;;  %v4761_v29 = vadd.f32 %v10536_v7, %v4760_v22  ;;  %vm4536_vm10 = vweird.f32 %v10542_v49 }
 0x7c7   : > { %v8010_v21 = vpop.eup %8009  ;;  %v4933_v40 = vmul.f32 %v8008_v57, %v4925_v26  ;;  %v4528_v41 = vsel %vm4525_vm8, %v4527_v28, %v4523_v10  ;;  %v4547_v26 = vsub.f32 1.0, %v4546_v0  ;;  %v4926_v59 = vsub.f32 1.0, %v4755_v27 }
 0x7c8   : > { %8015 = vtanh.f32 %v4910_v56  ;;  %v10643_v13 = vadd.f32 1.0, %v8010_v21  ;;  %v10652_v55 = vpop.eup %8011  ;;  %v4534_v25 = vadd.f32 %v10542_v49, %v4533_v20  ;;  %v4766_v58 = vand.u32 2147483647, %v10462_v45 }
 0x7c9   : > { %v4887_v16 = vpop.f32.mrf.mxu1  ;;  %v10641_v60 = vadd.f32 %v4941_v9, %v4933_v40  ;;  %v10656_v38 = vpop.eup %8013  ;;  %v4539_v51 = vand.u32 2147483647, %v10474_v23  ;;  %v4541_v14 = vand.u32 2147483648, %v10474_v23  ;;  %v4775_v46 = vmul.f32 %v10585_v42, %v4774_v8 }
 0x7ca   : > { %v4888_v48 = vadd.f32 %v10402_v6, %v4887_v16  ;;  %8017 = vrcp.f32 %v10643_v13  ;;  %vm4535_vm14 = vweird.f32 %v10474_v23  ;;  %v4788_v34 = vmul.f32 %v10652_v55, %v10580_v24 }
 0x7cb   : > { %7352 = vmatmul.msk.f32.gmra.mxu2 %vm1525_vm1, %v10641_v60  ;;  %7368 = vmatmul.msk.f32.gmra.mxu0 %vm1525_vm1, %v10641_v60  ;;  %v4765_v45 = vsel %vm10665_vm11, %v10536_v7, %v4761_v29  ;;  %vm10680_vm12 = vmor %vm4535_vm14, %vm4536_vm10  ;;  %v4942_v57 = vmul.f32 %v4755_v27, %v9918_v35  ;;  %v4548_v23 = vmul.f32 %v10601_v63, %v4547_v26  ;;  %vm4767_vm13 = vcmp.eq.f32.partialorder %v4766_v58, 8.507059e+37 }
 0x7cc   : > { %v4903_v12 = vmul.f32 %v4888_v48, %v4528_v41  ;;  %v4561_v11 = vmul.f32 %v10656_v38, %v10587_v17  ;;  %vm4540_vm15 = vcmp.eq.f32.partialorder %v4539_v51, 8.507059e+37  ;;  %v4542_v7 = vor.u32 1.1754944e-38, %v4541_v14 }
 0x7cd   : > { %vm4778_vm2 = vweird.f32 %v10585_v42  ;;  %v4770_v21 = vsel %vm4767_vm13, %v4769_v39, %v4765_v45  ;;  %v4776_v35 = vadd.f32 %v10585_v42, %v4775_v46  ;;  %vm4777_vm3 = vweird.f32 %v10508_v1 }
 0x7ce   : > { %v8016_v54 = vpop.eup %8015  ;;  %v4911_v32 = vadd.f32 %v4903_v12, %v10420_v52  ;;  %v4538_v52 = vsel %vm10680_vm12, %v10542_v49, %v4534_v25  ;;  %v4783_v49 = vand.u32 2147483648, %v10508_v1  ;;  %v4789_v40 = vsub.f32 1.0, %v4788_v34  ;;  %vm10708_vm5 = vmor %vm4777_vm3, %vm4778_vm2  ;;  %v4852_v12 = vpop.f32.mrf.mxu0 }
 0x7cf   : > { %v4934_v36 = vmul.f32 %v8016_v54, %v4926_v59  ;;  %v4543_v31 = vsel %vm4540_vm15, %v4542_v7, %v4538_v52  ;;  %v4549_v20 = vadd.f32 %v10601_v63, %v4548_v23  ;;  %vm4551_vm4 = vweird.f32 %v10601_v63 }
 0x7d0   : > { %8019 = vtanh.f32 %v4911_v32  ;;  %v10702_v9 = vpop.eup %8017  ;;  %v4562_v0 = vsub.f32 1.0, %v4561_v11  ;;  %v4927_v28 = vsub.f32 1.0, %v4770_v21  ;;  %v4781_v16 = vand.u32 2147483647, %v10508_v1 }
 0x7d1   : > { %v4890_v62 = vpop.f32.mrf.mxu1  ;;  %v10691_v56 = vadd.f32 %v4942_v57, %v4934_v36  ;;  %v4556_v8 = vand.u32 2147483648, %v10525_v3  ;;  %v4780_v39 = vsel %vm10708_vm5, %v10585_v42, %v4776_v35  ;;  %vm4550_vm6 = vweird.f32 %v10525_v3 }
 0x7d2   : > { %v4891_v22 = vadd.f32 %v10402_v6, %v4890_v62  ;;  %v4554_v29 = vand.u32 2147483647, %v10525_v3  ;;  %v4790_v25 = vmul.f32 %v10652_v55, %v4789_v40  ;;  %v4803_v26 = vmul.f32 %v10702_v9, %v10643_v13  ;;  %vm10725_vm7 = vmor %vm4550_vm6, %vm4551_vm4 }
 0x7d3   : > { %7353 = vmatmul.msk.f32.gmra.mxu2 %vm1525_vm1, %v10691_v56  ;;  %7369 = vmatmul.msk.f32.gmra.mxu0 %vm1525_vm1, %v10691_v56  ;;  %v4943_v42 = vmul.f32 %v4770_v21, %v9958_v30  ;;  %v4553_v3 = vsel %vm10725_vm7, %v10601_v63, %v4549_v20  ;;  %v4563_v58 = vmul.f32 %v10656_v38, %v4562_v0  ;;  %vm4782_vm8 = vcmp.eq.f32.partialorder %v4781_v16, 8.507059e+37 }
 0x7d4   : > { %v4904_v10 = vmul.f32 %v4891_v22, %v4543_v31  ;;  %v4557_v51 = vor.u32 1.1754944e-38, %v4556_v8  ;;  %v4853_v33 = vadd.f32 %v10271_v50, %v4852_v12  ;;  %vm4555_vm9 = vcmp.eq.f32.partialorder %v4554_v29, 8.507059e+37 }
 0x7d5   : > { %vm4793_vm10 = vweird.f32 %v10652_v55  ;;  %v4804_v30 = vsub.f32 1.0, %v4803_v26  ;;  %v4791_v36 = vadd.f32 %v10652_v55, %v4790_v25  ;;  %v4798_v63 = vand.u32 2147483648, %v10580_v24 }
 0x7d6   : > { %v8020_v48 = vpop.eup %8019  ;;  %v4912_v41 = vadd.f32 %v4904_v10, %v10522_v4  ;;  %v4784_v4 = vor.u32 1.1754944e-38, %v4783_v49  ;;  %v4558_v34 = vsel %vm4555_vm9, %v4557_v51, %v4553_v3  ;;  %v4564_v2 = vadd.f32 %v10656_v38, %v4563_v58  ;;  %v4855_v10 = vpop.f32.mrf.mxu0 }
 0x7d7   : > { %v4935_v1 = vmul.f32 %v8020_v48, %v4927_v28  ;;  %vm4566_vm11 = vweird.f32 %v10656_v38  ;;  %vm4792_vm14 = vweird.f32 %v10580_v24  ;;  %v4796_v52 = vand.u32 2147483647, %v10580_v24 }
 0x7d8   : > { %8021 = vtanh.f32 %v4912_v41  ;;  %v4785_v46 = vsel %vm4782_vm8, %v4784_v4, %v4780_v39  ;;  %v4571_v23 = vand.u32 2147483648, %v10587_v17  ;;  %vm10752_vm12 = vmor %vm4792_vm14, %vm4793_vm10  ;;  %vm4565_vm13 = vweird.f32 %v10587_v17 }
 0x7d9   : > { %v4893_v14 = vpop.f32.mrf.mxu1  ;;  %v10734_v54 = vadd.f32 %v4943_v42, %v4935_v1  ;;  %v4928_v57 = vsub.f32 1.0, %v4785_v46  ;;  %v4569_v21 = vand.u32 2147483647, %v10587_v17  ;;  %v4805_v35 = vmul.f32 %v10702_v9, %v4804_v30  ;;  %vm4567_vm15 = vmor %vm4565_vm13, %vm4566_vm11 }
 0x7da   : > { %v4894_v32 = vadd.f32 %v10402_v6, %v4893_v14  ;;  %v4795_v24 = vsel %vm10752_vm12, %v10652_v55, %v4791_v36  ;;  %v4944_v49 = vmul.f32 %v4785_v46, %v9990_v18  ;;  %v4799_v40 = vor.u32 1.1754944e-38, %v4798_v63 }
 0x7db   : > { %7354 = vmatmul.msk.f32.gmra.mxu2 %vm1525_vm1, %v10734_v54  ;;  %7370 = vmatmul.msk.f32.gmra.mxu0 %vm1525_vm1, %v10734_v54  ;;  %v4568_v31 = vsel %vm4567_vm15, %v10656_v38, %v4564_v2  ;;  %vm4797_vm2 = vcmp.eq.f32.partialorder %v4796_v52, 8.507059e+37  ;;  %v4572_v20 = vor.u32 1.1754944e-38, %v4571_v23  ;;  %vm4570_vm3 = vcmp.eq.f32.partialorder %v4569_v21, 8.507059e+37  ;;  %v12335_v2 = vld [vmem:[#allocation15_spill] sm:$0xff]  ;;  %v12336_v52 = vld [vmem:[#allocation16_spill] sm:$0xff]  ;;  %v8229_v21 = vld [vmem:[%s12169_s13 + $0x38] sm:$0xff] }
 0x7dc   : > { %v4905_v45 = vmul.f32 %v4894_v32, %v4558_v34  ;;  %v4800_v17 = vsel %vm4797_vm2, %v4799_v40, %v4795_v24  ;;  %vm4808_vm4 = vweird.f32 %v10702_v9  ;;  %v4806_v16 = vadd.f32 %v10702_v9, %v4805_v35  ;;  %v12334_v34 = vld [vmem:[#allocation14_spill] sm:$0xff]  ;;  %v8230_v35 = vld [vmem:[%s12169_s13 + $0x30] sm:$0xff] }
 0x7dd   : > { %v4573_v55 = vsel %vm4570_vm3, %v4572_v20, %v4568_v31  ;;  %v4856_v18 = vadd.f32 %v10271_v50, %v4855_v10  ;;  %v4813_v38 = vand.u32 2147483648, %v10643_v13  ;;  %vm4807_vm5 = vweird.f32 %v10643_v13  ;;  %v8232_v24 = vld [vmem:[%s12169_s13 + $0x20] sm:$0xff]  ;;  %v8233_v10 = vld [vmem:[%s12169_s13 + $0x18] sm:$0xff] }
 0x7de   : > { %v8022_v11 = vpop.eup %8021  ;;  %v4913_v62 = vadd.f32 %v4905_v45, %v4853_v33  ;;  %v4929_v48 = vsub.f32 1.0, %v4800_v17  ;;  %vm4809_vm6 = vmor %vm4807_vm5, %vm4808_vm4  ;;  %v4945_v25 = vmul.f32 %v4800_v17, %v10003_v61  ;;  %v8234_v20 = vld [vmem:[%s12169_s13 + $0x58] sm:$0xff]  ;;  %v8236_v17 = vld [vmem:[%s12169_s13 + $0x50] sm:$0xff] }
 0x7df   : > { %v4936_v22 = vmul.f32 %v8022_v11, %v4928_v57  ;;  %v4810_v12 = vsel %vm4809_vm6, %v10702_v9, %v4806_v16  ;;  %v4814_v26 = vor.u32 1.1754944e-38, %v4813_v38  ;;  %v8239_v38 = vld [vmem:[%s12169_s13] sm:$0xff] }
 0x7e0   : > { %8023 = vtanh.f32 %v4913_v62  ;;  %v12337_v62 = vld [vmem:[#allocation17_spill] sm:$0xff] }
 0x7e1   : > { %v4896_v0 = vpop.f32.mrf.mxu1  ;;  %v10764_v27 = vadd.f32 %v4944_v49, %v4936_v22  ;;  %v8231_v22 = vld [vmem:[%s12169_s13 + $0x28] sm:$0xff]  ;;  %v12338_v49 = vld [vmem:[#allocation18_spill] sm:$0xff] }
 0x7e2   : > { %v4897_v28 = vadd.f32 %v10402_v6, %v4896_v0  ;;  %v4811_v6 = vand.u32 2147483647, %v10643_v13  ;;  %v8235_v0 = vld [vmem:[%s12169_s13 + $0x10] sm:$0xff] }
 0x7e3   : > { %7355 = vmatmul.msk.f32.gmra.mxu2 %vm1525_vm1, %v10764_v27  ;;  %7371 = vmatmul.msk.f32.gmra.mxu0 %vm1525_vm1, %v10764_v27 }
 0x7e4   : > { %v4906_v8 = vmul.f32 %v4897_v28, %v4573_v55  ;;  %vm4812_vm7 = vcmp.eq.f32.partialorder %v4811_v6, 8.507059e+37  ;;  %v8237_v55 = vld [vmem:[%s12169_s13 + $0x8] sm:$0xff] }
 0x7e5   : > { %v4815_v1 = vsel %vm4812_vm7, %v4814_v26, %v4810_v12 }
 0x7e6   : > { %v8024_v39 = vpop.eup %8023  ;;  %v4914_v41 = vadd.f32 %v4906_v8, %v4856_v18  ;;  %v4930_v13 = vsub.f32 1.0, %v4815_v1  ;;  %v4946_v4 = vmul.f32 %v4815_v1, %v10008_v5  ;;  %v7743_v5 = vld [vmem:[%s12168_s12 + $0x2] ss:$0 sm:$0xff]  ;;  %v8238_v18 = vld [vmem:[%s12169_s13 + $0x48] sm:$0xff] }
 0x7e7   : > { %v4937_v29 = vmul.f32 %v8024_v39, %v4929_v48  ;;  %v8240_v8 = vld [vmem:[%s12169_s13 + $0x40] sm:$0xff] }
 0x7e8   : > { %8025 = vtanh.f32 %v4914_v41 }
 0x7e9   : > { %v10779_v50 = vadd.f32 %v4945_v25, %v4937_v29 }
 0x7eb   : > { %7356 = vmatmul.msk.f32.gmra.mxu2 %vm1525_vm1, %v10779_v50  ;;  %7372 = vmatmul.msk.f32.gmra.mxu0 %vm1525_vm1, %v10779_v50 }
 0x7ee   : > { %v8026_v59 = vpop.eup %8025 }
 0x7ef   : > { %v4938_v42 = vmul.f32 %v8026_v59, %v4930_v13 }
 0x7f1   : > { %v10786_v9 = vadd.f32 %v4946_v4, %v4938_v42  ;;  %v8241_v4 = vld [vmem:[%s12170_s14 + $0x58] sm:$0xff] }
 0x7f3   : > { %7357 = vmatmul.msk.f32.gmra.mxu2 %vm1525_vm1, %v10786_v9  ;;  %7373 = vmatmul.msk.f32.gmra.mxu0 %vm1525_vm1, %v10786_v9 }
 0x7fb   : > { %7390 = vmatmul.msk.f32.vlgmr.msrb.gmra.mxu2 %vm1525_vm1, %v10511_v19 }
 0x803   : > { %7391 = vmatmul.msk.f32.gmra.mxu2 %vm1525_vm1, %v10578_v37 }
 0x80b   : > { %7392 = vmatmul.msk.f32.gmra.mxu2 %vm1525_vm1, %v10641_v60 }
 0x813   : > { %7393 = vmatmul.msk.f32.gmra.mxu2 %vm1525_vm1, %v10691_v56 }
 0x81b   : > { %7394 = vmatmul.msk.f32.gmra.mxu2 %vm1525_vm1, %v10734_v54 }
 0x823   : > { %7395 = vmatmul.msk.f32.gmra.mxu2 %vm1525_vm1, %v10764_v27 }
 0x82b   : > { %7396 = vmatmul.msk.f32.gmra.mxu2 %vm1525_vm1, %v10779_v50 }
 0x833   : > { %7397 = vmatmul.msk.f32.gmra.mxu2 %vm1525_vm1, %v10786_v9 }
 0x83e   : > { %v5006_v61 = vpop.f32.mrf.mxu2 }
 0x83f   : > { %v5007_v51 = vadd.f32 %v7743_v5, %v5006_v61  ;;  %v5147_v61 = vpop.f32.mrf.mxu0 }
 0x846   : > { %v5009_v3 = vpop.f32.mrf.mxu2 }
 0x847   : > { %v5010_v58 = vadd.f32 %v7743_v5, %v5009_v3  ;;  %v8243_v3 = vld [vmem:[%s12170_s14 + $0x48] sm:$0xff] }
 0x849   : > { %5044 = vmatpush.msra.mxu3 %v5010_v58  ;;  %v8244_v58 = vld [vmem:[%s12170_s14 + $0x40] sm:$0xff] }
 0x84b   : > { %5045 = vmatpush.msra.mxu3 %v5007_v51  ;;  %v5150_v51 = vpop.f32.mrf.mxu0 }
 0x84c   : > { %7358 = vmatmul.msk.f32.vlgmr.msra.gmra.mxu3 %vm933_vm0, %v9270_v47 }
 0x84e   : > { %v5012_v14 = vpop.f32.mrf.mxu2 }
 0x84f   : > { %v5013_v32 = vadd.f32 %v7743_v5, %v5012_v14 }
 0x853   : > { %v5153_v14 = vpop.f32.mrf.mxu0 }
 0x854   : > { %7359 = vmatmul.msk.f32.gmra.mxu3 %vm933_vm0, %v9277_v43 }
 0x856   : > { %v5015_v33 = vpop.f32.mrf.mxu2 }
 0x857   : > { %v5016_v46 = vadd.f32 %v7743_v5, %v5015_v33 }
 0x859   : > { %5067 = vmatpush.msrb.mxu3 %v5016_v46 }
 0x85b   : > { %5068 = vmatpush.msrb.mxu3 %v5013_v32  ;;  %v5156_v33 = vpop.f32.mrf.mxu0 }
 0x85c   : > { %7360 = vmatmul.msk.f32.vlgmr.msrb.gmra.mxu3 %vm933_vm0, %v9282_v53 }
 0x85e   : > { %v5018_v30 = vpop.f32.mrf.mxu2 }
 0x85f   : > { %v5019_v45 = vadd.f32 %v7743_v5, %v5018_v30 }
 0x863   : > { %v10911_v46 = vpop.f32.mrf.mxu0 }
 0x864   : > { %7361 = vmatmul.msk.f32.gmra.mxu3 %vm933_vm0, %v12334_v34 }
 0x866   : > { %v5021_v36 = vpop.f32.mrf.mxu2 }
 0x867   : > { %v5022_v63 = vadd.f32 %v7743_v5, %v5021_v36 }
 0x869   : > { %5090 = vmatpush.msra.mxu3 %v5022_v63 }
 0x86b   : > { %5091 = vmatpush.msra.mxu3 %v5019_v45  ;;  %v10915_v32 = vpop.f32.mrf.mxu0 }
 0x86c   : > { %7362 = vmatmul.msk.f32.vlgmr.msra.gmra.mxu3 %vm933_vm0, %v12335_v2 }
 0x86e   : > { %v5024_v57 = vpop.f32.mrf.mxu2 }
 0x86f   : > { %v5025_v7 = vadd.f32 %v7743_v5, %v5024_v57 }
 0x873   : > { %v10919_v36 = vpop.f32.mrf.mxu0 }
 0x874   : > { %7363 = vmatmul.msk.f32.gmra.mxu3 %vm933_vm0, %v12336_v52 }
 0x876   : > { %v5027_v23 = vpop.f32.mrf.mxu2 }
 0x877   : > { %v5028_v11 = vadd.f32 %v7743_v5, %v5027_v23  ;;  %v8242_v5 = vld [vmem:[%s12170_s14 + $0x50] sm:$0xff] }
 0x879   : > { %5113 = vmatpush.msrb.mxu3 %v5028_v11 }
 0x87b   : > { %5114 = vmatpush.msrb.mxu3 %v5025_v7  ;;  %v10922_v7 = vpop.f32.mrf.mxu0 }
 0x87c   : > { %7364 = vmatmul.msk.f32.vlgmr.msrb.gmra.mxu3 %vm933_vm0, %v12337_v62 }
 0x87d   : > { %5449 = vmatpush.msra.mxu3 %v8229_v21 }
 0x87e   : > { %v5413_v63 = vpop.f32.mrf.mxu2 }
 0x87f   : > { %5450 = vmatpush.msra.mxu3 %v8230_v35 }
 0x881   : > { %5451 = vmatpush.msra.mxu3 %v8231_v22 }
 0x883   : > { %5452 = vmatpush.msra.mxu3 %v8232_v24 }
 0x884   : > { %7365 = vmatmul.msk.f32.gmra.mxu3 %vm933_vm0, %v12338_v49 }
 0x886   : > { %v5416_v22 = vpop.f32.mrf.mxu2 }
 0x8cf   : > { %v5047_v40 = vpop.f32.mrf.mxu3 }
 0x8d0   : > { %v5122_v31 = vmax.f32 %v5047_v40, 0.0 }
 0x8d2   : > { %7374 = vmatmul.msk.f32.vlgmr.msrb.gmra.mxu1 %vm1525_vm1, %v5122_v31  ;;  %7398 = vmatmul.msk.f32.vlgmr.msra.gmra.mxu3 %vm1525_vm1, %v5122_v31 }
 0x8d3   : > { %7414 = vmatmul.msk.f32.vlgmr.msra.gmra.mxu0 %vm1525_vm1, %v5122_v31  ;;  %6028 = vmatpush.msrb.mxu1 %v8233_v10 }
 0x8d4   : > { %6471 = vmatpush.msra.mxu0 %v8234_v20 }
 0x8d5   : > { %6029 = vmatpush.msrb.mxu1 %v8235_v0 }
 0x8d6   : > { %6472 = vmatpush.msra.mxu0 %v8236_v17 }
 0x8d7   : > { %v5050_v28 = vpop.f32.mrf.mxu3  ;;  %6030 = vmatpush.msrb.mxu1 %v8237_v55 }
 0x8d8   : > { %v5123_v16 = vmax.f32 %v5050_v28, 0.0  ;;  %6473 = vmatpush.msra.mxu0 %v8238_v18 }
 0x8d9   : > { %6031 = vmatpush.msrb.mxu1 %v8239_v38 }
 0x8da   : > { %7375 = vmatmul.msk.f32.gmra.mxu1 %vm1525_vm1, %v5123_v16  ;;  %7399 = vmatmul.msk.f32.gmra.mxu3 %vm1525_vm1, %v5123_v16 }
 0x8db   : > { %7415 = vmatmul.msk.f32.gmra.mxu0 %vm1525_vm1, %v5123_v16 }
 0x8dc   : > { %6474 = vmatpush.msra.mxu0 %v8240_v8 }
 0x8df   : > { %v5070_v48 = vpop.f32.mrf.mxu3 }
 0x8e0   : > { %v5124_v6 = vmax.f32 %v5070_v48, 0.0  ;;  %v5419_v48 = vpop.f32.mrf.mxu2 }
 0x8e2   : > { %7376 = vmatmul.msk.f32.gmra.mxu1 %vm1525_vm1, %v5124_v6  ;;  %7400 = vmatmul.msk.f32.gmra.mxu3 %vm1525_vm1, %v5124_v6 }
 0x8e3   : > { %7416 = vmatmul.msk.f32.gmra.mxu0 %vm1525_vm1, %v5124_v6 }
 0x8e7   : > { %v5073_v39 = vpop.f32.mrf.mxu3 }
 0x8e8   : > { %v5125_v41 = vmax.f32 %v5073_v39, 0.0 }
 0x8ea   : > { %7377 = vmatmul.msk.f32.gmra.mxu1 %vm1525_vm1, %v5125_v41  ;;  %7401 = vmatmul.msk.f32.gmra.mxu3 %vm1525_vm1, %v5125_v41 }
 0x8eb   : > { %7417 = vmatmul.msk.f32.gmra.mxu0 %vm1525_vm1, %v5125_v41 }
 0x8ef   : > { %v5093_v29 = vpop.f32.mrf.mxu3 }
 0x8f0   : > { %v5126_v12 = vmax.f32 %v5093_v29, 0.0 }
 0x8f2   : > { %7378 = vmatmul.msk.f32.gmra.mxu1 %vm1525_vm1, %v5126_v12  ;;  %7402 = vmatmul.msk.f32.gmra.mxu3 %vm1525_vm1, %v5126_v12 }
 0x8f3   : > { %7418 = vmatmul.msk.f32.gmra.mxu0 %vm1525_vm1, %v5126_v12 }
 0x8f7   : > { %v5096_v25 = vpop.f32.mrf.mxu3 }
 0x8f8   : > { %v5127_v26 = vmax.f32 %v5096_v25, 0.0 }
 0x8fa   : > { %7379 = vmatmul.msk.f32.gmra.mxu1 %vm1525_vm1, %v5127_v26  ;;  %7403 = vmatmul.msk.f32.gmra.mxu3 %vm1525_vm1, %v5127_v26 }
 0x8fb   : > { %7419 = vmatmul.msk.f32.gmra.mxu0 %vm1525_vm1, %v5127_v26 }
 0x8ff   : > { %v5116_v1 = vpop.f32.mrf.mxu3 }
 0x900   : > { %v5128_v13 = vmax.f32 %v5116_v1, 0.0 }
 0x902   : > { %7380 = vmatmul.msk.f32.gmra.mxu1 %vm1525_vm1, %v5128_v13  ;;  %7404 = vmatmul.msk.f32.gmra.mxu3 %vm1525_vm1, %v5128_v13 }
 0x903   : > { %7420 = vmatmul.msk.f32.gmra.mxu0 %vm1525_vm1, %v5128_v13 }
 0x907   : > { %v5119_v59 = vpop.f32.mrf.mxu3 }
 0x908   : > { %v5129_v42 = vmax.f32 %v5119_v59, 0.0 }
 0x90a   : > { %7381 = vmatmul.msk.f32.gmra.mxu1 %vm1525_vm1, %v5129_v42  ;;  %7405 = vmatmul.msk.f32.gmra.mxu3 %vm1525_vm1, %v5129_v42 }
 0x90b   : > { %7421 = vmatmul.msk.f32.gmra.mxu0 %vm1525_vm1, %v5129_v42 }
 0x912   : > { %7422 = vmatmul.msk.f32.vlgmr.msra.gmra.mxu1 %vm1525_vm1, %v10511_v19 }
 0x913   : > { %6512 = vmatpush.msra.mxu1 %v8241_v4 }
 0x915   : > { %6513 = vmatpush.msra.mxu1 %v8242_v5 }
 0x917   : > { %6514 = vmatpush.msra.mxu1 %v8243_v3 }
 0x919   : > { %6515 = vmatpush.msra.mxu1 %v8244_v58 }
 0x91a   : > { %7423 = vmatmul.msk.f32.gmra.mxu1 %vm1525_vm1, %v10578_v37 }
 0x922   : > { %7424 = vmatmul.msk.f32.gmra.mxu1 %vm1525_vm1, %v10641_v60 }
 0x92a   : > { %7425 = vmatmul.msk.f32.gmra.mxu1 %vm1525_vm1, %v10691_v56 }
 0x932   : > { %7426 = vmatmul.msk.f32.gmra.mxu1 %vm1525_vm1, %v10734_v54 }
 0x93a   : > { %7427 = vmatmul.msk.f32.gmra.mxu1 %vm1525_vm1, %v10764_v27 }
 0x942   : > { %7428 = vmatmul.msk.f32.gmra.mxu1 %vm1525_vm1, %v10779_v50 }
 0x94a   : > { %7429 = vmatmul.msk.f32.gmra.mxu1 %vm1525_vm1, %v10786_v9 }
 0x94f   : > { %v5212_v30 = vpop.f32.mrf.mxu1 }
 0x950   : > { %v5213_v57 = vadd.f32 %v5212_v30, %v5147_v61  ;;  %v5655_v0 = vpop.f32.mrf.mxu0  ;;  %v5422_v61 = vpop.f32.mrf.mxu2 }
 0x952   : > { %v5236_v11 = vadd.f32 %v5213_v57, %v9491_v15 }
 0x954   : > { %v7382_v24 = vmul.f32 -1.442695, %v5236_v11 }
 0x955   : > { %v5454_v45 = vpop.f32.mrf.mxu3 }
 0x956   : > { %v5455_v21 = vadd.f32 %v5454_v45, %v5413_v63  ;;  %8027 = vpow2.f32 %v7382_v24 }
 0x957   : > { %v5215_v23 = vpop.f32.mrf.mxu1 }
 0x958   : > { %v5478_v40 = vadd.f32 %v5455_v21, %v9503_v44  ;;  %v5216_v31 = vadd.f32 %v5215_v23, %v5150_v51  ;;  %v5658_v12 = vpop.f32.mrf.mxu0 }
 0x95a   : > { %v7406_v17 = vmul.f32 -1.442695, %v5478_v40  ;;  %v5237_v28 = vadd.f32 %v5216_v31, %v9491_v15  ;;  %v5425_v31 = vpop.f32.mrf.mxu2 }
 0x95c   : > { %8029 = vpow2.f32 %v7406_v17  ;;  %v7383_v18 = vmul.f32 -1.442695, %v5237_v28  ;;  %v8028_v8 = vpop.eup %8027 }
 0x95d   : > { %v5457_v35 = vpop.f32.mrf.mxu3  ;;  %v10927_v39 = vadd.f32 1.0, %v8028_v8 }
 0x95e   : > { %v5458_v20 = vadd.f32 %v5457_v35, %v5416_v22  ;;  %8031 = vpow2.f32 %v7383_v18  ;;  %v10957_v18 = vld [vmem:[%s12171_s15 + $0x2] ss:$0 sm:$0xff] }
 0x95f   : > { %v5218_v10 = vpop.f32.mrf.mxu1  ;;  %vm5281_vm8 = vweird.f32 %v10927_v39 }
 0x960   : > { %v5479_v55 = vadd.f32 %v5458_v20, %v9503_v44  ;;  %v5219_v41 = vadd.f32 %v5218_v10, %v5153_v14  ;;  %v5661_v57 = vpop.f32.mrf.mxu0 }
 0x962   : > { %v7407_v6 = vmul.f32 -1.442695, %v5479_v55  ;;  %v8030_v29 = vpop.eup %8029  ;;  %v5238_v26 = vadd.f32 %v5219_v41, %v9491_v15 }
 0x963   : > { %v10931_v13 = vadd.f32 1.0, %v8030_v29 }
 0x964   : > { %8033 = vpow2.f32 %v7407_v6  ;;  %v8032_v42 = vpop.eup %8031  ;;  %v7384_v3 = vmul.f32 -1.442695, %v5238_v26  ;;  %v10968_v6 = vadd.f32 %v10957_v18, %v5658_v12 }
 0x965   : > { %v5460_v16 = vpop.f32.mrf.mxu3  ;;  %8035 = vrcp.f32 %v10927_v39  ;;  %v10935_v51 = vadd.f32 1.0, %v8032_v42  ;;  %v10976_v42 = vadd.f32 %v10957_v18, %v5661_v57  ;;  %vm5523_vm11 = vweird.f32 %v10931_v13 }
 0x966   : > { %v5461_v25 = vadd.f32 %v5460_v16, %v5419_v48  ;;  %8037 = vrcp.f32 %v10931_v13 }
 0x967   : > { %v5221_v38 = vpop.f32.mrf.mxu1  ;;  %8039 = vpow2.f32 %v7384_v3  ;;  %vm5296_vm12 = vweird.f32 %v10935_v51 }
 0x968   : > { %v5480_v4 = vadd.f32 %v5461_v25, %v9503_v44  ;;  %v5222_v58 = vadd.f32 %v5221_v38, %v5156_v33  ;;  %8041 = vrcp.f32 %v10935_v51  ;;  %v10960_v38 = vadd.f32 %v10957_v18, %v5655_v0 }
 0x969   : > { %v5285_v25 = vand.u32 2147483647, %v10927_v39 }
 0x96a   : > { %v8034_v5 = vpop.eup %8033  ;;  %v7408_v30 = vmul.f32 -1.442695, %v5480_v4  ;;  %v5239_v23 = vadd.f32 %v5222_v58, %v9491_v15 }
 0x96b   : > { %v10937_v14 = vpop.eup %8035  ;;  %v10939_v45 = vadd.f32 1.0, %v8034_v5  ;;  %vm10990_vm10 = vcmp.eq.f32.partialorder %v5285_v25, 8.507059e+37 }
 0x96c   : > { %v5277_v33 = vmul.f32 %v10937_v14, %v10927_v39  ;;  %8043 = vpow2.f32 %v7408_v30  ;;  %v10946_v35 = vpop.eup %8037  ;;  %v7385_v24 = vmul.f32 -1.442695, %v5239_v23  ;;  %vm5282_vm9 = vweird.f32 %v10937_v14 }
 0x96d   : > { %v5463_v59 = vpop.f32.mrf.mxu3  ;;  %8045 = vrcp.f32 %v10939_v45  ;;  %v8040_v20 = vpop.eup %8039  ;;  %v5519_v17 = vmul.f32 %v10946_v35, %v10931_v13  ;;  %vm11007_vm14 = vmor %vm5281_vm8, %vm5282_vm9  ;;  %vm5524_vm13 = vweird.f32 %v10946_v35  ;;  %vm5538_vm2 = vweird.f32 %v10939_v45 }
 0x96e   : > { %v5464_v63 = vadd.f32 %v5463_v59, %v5422_v61  ;;  %v5278_v10 = vsub.f32 1.0, %v5277_v33  ;;  %v10952_v55 = vpop.eup %8041  ;;  %8047 = vpow2.f32 %v7385_v24  ;;  %v10970_v41 = vadd.f32 1.0, %v8040_v20  ;;  %vm11057_vm3 = vmor %vm5523_vm11, %vm5524_vm13 }
 0x96f   : > { %v5224_v1 = vpop.f32.mrf.mxu1  ;;  %v5520_v26 = vsub.f32 1.0, %v5519_v17  ;;  %v5287_v59 = vand.u32 2147483648, %v10927_v39  ;;  %v5292_v12 = vmul.f32 %v10952_v55, %v10935_v51  ;;  %v5529_v61 = vand.u32 2147483648, %v10931_v13  ;;  %v7433_v39 = vld [vmem:[%s12167_s11 + $0x78] sm:$0xff] }
 0x970   : > { %v5481_v21 = vadd.f32 %v5464_v63, %v9503_v44  ;;  %v5225_v40 = vadd.f32 %v5224_v1, %v10911_v46  ;;  %v5279_v29 = vmul.f32 %v10937_v14, %v5278_v10  ;;  %v5664_v1 = vpop.f32.mrf.mxu0  ;;  %5822 = vmatpush.msra.mxu2 %v7433_v39  ;;  %vm5297_vm4 = vweird.f32 %v10952_v55 }
 0x971   : > { %v5521_v33 = vmul.f32 %v10946_v35, %v5520_v26  ;;  %v5293_v24 = vsub.f32 1.0, %v5292_v12  ;;  %v5300_v26 = vand.u32 2147483647, %v10935_v51  ;;  %vm11105_vm7 = vmor %vm5296_vm12, %vm5297_vm4 }
 0x972   : > { %v7409_v28 = vmul.f32 -1.442695, %v5481_v21  ;;  %v8044_v16 = vpop.eup %8043  ;;  %v5240_v46 = vadd.f32 %v5225_v40, %v9491_v15  ;;  %v5280_v63 = vadd.f32 %v10937_v14, %v5279_v29  ;;  %v5302_v40 = vand.u32 2147483648, %v10935_v51 }
 0x973   : > { %v10965_v48 = vpop.eup %8045  ;;  %v10978_v4 = vadd.f32 1.0, %v8044_v16  ;;  %v5530_v16 = vor.u32 1.1754944e-38, %v5529_v61  ;;  %v11014_v29 = vadd.f32 %v10957_v18, %v5664_v1  ;;  %v5522_v1 = vadd.f32 %v10946_v35, %v5521_v33 }
 0x974   : > { %8049 = vpow2.f32 %v7409_v28  ;;  %v5534_v5 = vmul.f32 %v10965_v48, %v10939_v45  ;;  %v7386_v3 = vmul.f32 -1.442695, %v5240_v46  ;;  %v8048_v23 = vpop.eup %8047  ;;  %v5284_v25 = vsel %vm11007_vm14, %v10937_v14, %v5280_v63 }
 0x975   : > { %v5466_v22 = vpop.f32.mrf.mxu3  ;;  %8051 = vrcp.f32 %v10970_v41  ;;  %v11011_v46 = vadd.f32 1.0, %v8048_v23  ;;  %v5544_v23 = vand.u32 2147483648, %v10939_v45  ;;  %vm11076_vm5 = vcmp.eq.f32.partialorder %v5300_v26, 8.507059e+37 }
 0x976   : > { %v5467_v0 = vadd.f32 %v5466_v22, %v5425_v31  ;;  %v5288_v22 = vor.u32 1.1754944e-38, %v5287_v59  ;;  %8053 = vrcp.f32 %v10978_v4  ;;  %v5535_v10 = vsub.f32 1.0, %v5534_v5 }
 0x977   : > { %v5227_v11 = vpop.f32.mrf.mxu1  ;;  %8055 = vpow2.f32 %v7386_v3  ;;  %v5294_v3 = vmul.f32 %v10952_v55, %v5293_v24  ;;  %vm5539_vm6 = vweird.f32 %v10965_v48  ;;  %v5545_v5 = vor.u32 1.1754944e-38, %v5544_v23 }
 0x978   : > { %v5228_v58 = vadd.f32 %v5227_v11, %v10915_v32  ;;  %v5482_v21 = vadd.f32 %v5467_v0, %v9503_v44  ;;  %v5428_v32 = vpop.f32.mrf.mxu2  ;;  %v5527_v11 = vand.u32 2147483647, %v10931_v13  ;;  %v7432_v0 = vld [vmem:[%s12167_s11 + $0x70] sm:$0xff]  ;;  %v5536_v63 = vmul.f32 %v10965_v48, %v5535_v10  ;;  %v5667_v33 = vpop.f32.mrf.mxu0  ;;  %v7430_v13 = vld [vmem:[%s12167_s11 + $0x60] sm:$0xff]  ;;  %vm11116_vm8 = vmor %vm5538_vm2, %vm5539_vm6 }
 0x979   : > { %5823 = vmatpush.msra.mxu2 %v7432_v0  ;;  %8057 = vrcp.f32 %v11011_v46  ;;  %v5289_v24 = vsel %vm10990_vm10, %v5288_v22, %v5284_v25  ;;  %v11073_v57 = vadd.f32 %v10957_v18, %v5667_v33  ;;  %v5315_v23 = vand.u32 2147483647, %v10970_v41 }
 0x97a   : > { %v8050_v31 = vpop.eup %8049  ;;  %v5241_v20 = vadd.f32 %v5228_v58, %v9491_v15  ;;  %v7410_v59 = vmul.f32 -1.442695, %v5482_v21  ;;  %vm11033_vm15 = vcmp.eq.f32.partialorder %v5527_v11, 8.507059e+37  ;;  %v11038_v58 = vor.u32 1.1754944e-38, %v5302_v40 }
 0x97b   : > { %v11029_v14 = vpop.eup %8051  ;;  %v11031_v61 = vadd.f32 1.0, %v8050_v31  ;;  %v5537_v0 = vadd.f32 %v10965_v48, %v5536_v63  ;;  %v8247_v63 = vld [vmem:[%s12170_s14 + $0x38] sm:$0xff]  ;;  %vm5311_vm10 = vweird.f32 %v10970_v41  ;;  %vm5553_vm11 = vweird.f32 %v10978_v4 }
 0x97c   : > { %v7387_v21 = vmul.f32 -1.442695, %v5241_v20  ;;  %8059 = vpow2.f32 %v7410_v59  ;;  %v5295_v20 = vadd.f32 %v10952_v55, %v5294_v3  ;;  %v11095_v3 = vld [vmem:[%s12172_s16 + $0x2] ss:$0 sm:$0xff]  ;;  %vm5312_vm14 = vweird.f32 %v11029_v14 }
 0x97d   : > { %v5469_v30 = vpop.f32.mrf.mxu3  ;;  %8061 = vrcp.f32 %v11031_v61  ;;  %vm11172_vm12 = vcmp.eq.f32.partialorder %v5315_v23, 8.507059e+37  ;;  %v5574_v28 = vand.u32 2147483648, %v11031_v61  ;;  %vm5568_vm2 = vweird.f32 %v11031_v61 }
 0x97e   : > { %v5470_v12 = vadd.f32 %v5469_v30, %v5428_v32  ;;  %v7431_v30 = vld [vmem:[%s12167_s11 + $0x68] sm:$0xff]  ;;  %v11046_v32 = vpop.eup %8053  ;;  %8063 = vpow2.f32 %v7387_v21  ;;  %vm5326_vm6 = vweird.f32 %v11011_v46 }
 0x97f   : > { %v10963_v8 = vpop.f32.mrf.mxu1  ;;  %v8056_v31 = vpop.eup %8055  ;;  %5824 = vmatpush.msra.mxu2 %v7431_v30  ;;  %v5549_v25 = vmul.f32 %v11046_v32, %v10978_v4  ;;  %vm5554_vm13 = vweird.f32 %v11046_v32 }
 0x980   : > { %v5231_v11 = vadd.f32 %v10963_v8, %v10919_v36  ;;  %v5483_v10 = vadd.f32 %v5470_v12, %v9503_v44  ;;  %v5526_v36 = vsel %vm11057_vm3, %v10946_v35, %v5522_v1  ;;  %v5307_v8 = vmul.f32 %v11029_v14, %v10970_v41  ;;  %v5431_v59 = vpop.f32.mrf.mxu2  ;;  %v11109_v40 = vpop.eup %8057  ;;  %vm11212_vm3 = vmor %vm5553_vm11, %vm5554_vm13 }
 0x981   : > { %v5542_v35 = vand.u32 2147483647, %v10939_v45  ;;  %5825 = vmatpush.msra.mxu2 %v7430_v13  ;;  %v11085_v12 = vadd.f32 1.0, %v8056_v31  ;;  %v11090_v1 = vsel %vm11033_vm15, %v5530_v16, %v5526_v36  ;;  %v5559_v31 = vand.u32 2147483648, %v10978_v4  ;;  %vm11192_vm15 = vmor %vm5311_vm10, %vm5312_vm14 }
 0x982   : > { %v5242_v26 = vadd.f32 %v5231_v11, %v9491_v15  ;;  %v7411_v33 = vmul.f32 -1.442695, %v5483_v10  ;;  %v5308_v11 = vsub.f32 1.0, %v5307_v8  ;;  %v8248_v8 = vld [vmem:[%s12170_s14 + $0x30] sm:$0xff]  ;;  %v5550_v13 = vsub.f32 1.0, %v5549_v25 }
 0x983   : > { %6229 = vmatpush.msrb.mxu2 %v8247_v63  ;;  %vm11120_vm9 = vcmp.eq.f32.partialorder %v5542_v35, 8.507059e+37  ;;  %v5299_v45 = vsel %vm11105_vm7, %v10952_v55, %v5295_v20  ;;  %v5541_v35 = vsel %vm11116_vm8, %v10965_v48, %v5537_v0  ;;  %8065 = vrcp.f32 %v11085_v12  ;;  %v8249_v55 = vld [vmem:[%s12170_s14 + $0x28] sm:$0xff] }
 0x984   : > { %8067 = vpow2.f32 %v7411_v33  ;;  %v5760_v0 = vmul.f32 %v11090_v1, %v10511_v19  ;;  %v5309_v63 = vmul.f32 %v11029_v14, %v5308_v11  ;;  %v11166_v33 = vsel %vm11120_vm9, %v5545_v5, %v5541_v35 }
 0x985   : > { %v5472_v22 = vpop.f32.mrf.mxu3  ;;  %6230 = vmatpush.msrb.mxu2 %v8248_v8  ;;  %v5317_v5 = vand.u32 2147483648, %v10970_v41  ;;  %v5745_v35 = vsub.f32 1.0, %v11166_v33 }
 0x986   : > { %v5473_v21 = vadd.f32 %v5472_v22, %v5431_v59  ;;  %v5744_v22 = vsub.f32 1.0, %v11090_v1  ;;  %v7388_v59 = vmul.f32 -1.442695, %v5242_v26  ;;  %v5304_v1 = vsel %vm11076_vm5, %v11038_v58, %v5299_v45 }
 0x987   : > { %v11001_v17 = vpop.f32.mrf.mxu1  ;;  %6231 = vmatpush.msrb.mxu2 %v8249_v55  ;;  %v5310_v51 = vadd.f32 %v11029_v14, %v5309_v63  ;;  %v5557_v55 = vand.u32 2147483647, %v10978_v4  ;;  %vm5327_vm5 = vweird.f32 %v11109_v40  ;;  %v5332_v4 = vand.u32 2147483648, %v11011_v46 }
 0x988   : > { %v5234_v25 = vadd.f32 %v11001_v17, %v10922_v7  ;;  %v5484_v48 = vadd.f32 %v5473_v21, %v9503_v44  ;;  %v5322_v7 = vmul.f32 %v11109_v40, %v11011_v46  ;;  %v5551_v17 = vmul.f32 %v11046_v32, %v5550_v13  ;;  %v5434_v13 = vpop.f32.mrf.mxu2  ;;  %vm11255_vm8 = vmor %vm5326_vm6, %vm5327_vm5 }
 0x989   : > { %vm11216_vm4 = vcmp.eq.f32.partialorder %v5557_v55, 8.507059e+37 }
 0x98a   : > { %v5243_v11 = vadd.f32 %v5234_v25, %v9491_v15  ;;  %v7412_v58 = vmul.f32 -1.442695, %v5484_v48 }
 0x98c   : > { %v7389_v63 = vmul.f32 -1.442695, %v5243_v11 }
 0x98f   : > { %v5696_v39 = vpop.f32.mrf.mxu1 }
 0x990   : > { %v5697_v30 = vadd.f32 %v11095_v3, %v5696_v39 }
 0x992   : > { %v5720_v36 = vmul.f32 %v5697_v30, %v5289_v24  ;;  %v8060_v24 = vpop.eup %8059 }
 0x993   : > { %v11136_v39 = vpop.eup %8061  ;;  %v11150_v26 = vadd.f32 1.0, %v8060_v24 }
 0x994   : > { %v5728_v30 = vadd.f32 %v5720_v36, %v10960_v38  ;;  %v8064_v20 = vpop.eup %8063  ;;  %v8250_v38 = vld [vmem:[%s12170_s14 + $0x20] sm:$0xff]  ;;  %v5564_v19 = vmul.f32 %v11136_v39, %v11031_v61  ;;  %v5475_v36 = vpop.f32.mrf.mxu3  ;;  %vm5569_vm7 = vweird.f32 %v11136_v39 }
 0x995   : > { %6232 = vmatpush.msrb.mxu2 %v8250_v38  ;;  %v11168_v16 = vadd.f32 1.0, %v8064_v20  ;;  %v11179_v24 = vpop.eup %8065  ;;  %v5476_v25 = vadd.f32 %v5475_v36, %v5434_v13  ;;  %vm11277_vm10 = vmor %vm5568_vm2, %vm5569_vm7 }
 0x996   : > { %8069 = vtanh.f32 %v5728_v30  ;;  %v8068_v23 = vpop.eup %8067  ;;  %v5552_v30 = vadd.f32 %v11046_v32, %v5551_v17  ;;  %v5565_v48 = vsub.f32 1.0, %v5564_v19  ;;  %v5318_v19 = vor.u32 1.1754944e-38, %v5317_v5 }
 0x997   : > { %v5699_v21 = vpop.f32.mrf.mxu1  ;;  %8071 = vpow2.f32 %v7388_v59  ;;  %v5323_v59 = vsub.f32 1.0, %v5322_v7  ;;  %v11199_v36 = vadd.f32 1.0, %v8068_v23  ;;  %v5337_v41 = vmul.f32 %v11179_v24, %v11085_v12 }
 0x998   : > { %v5700_v10 = vadd.f32 %v11095_v3, %v5699_v21  ;;  %8073 = vrcp.f32 %v11150_v26  ;;  %v5485_v11 = vadd.f32 %v5476_v25, %v9503_v44  ;;  %v5556_v13 = vsel %vm11212_vm3, %v11046_v32, %v5552_v30 }
 0x999   : > { %8075 = vrcp.f32 %v11168_v16  ;;  %v5338_v30 = vsub.f32 1.0, %v5337_v41  ;;  %v5330_v7 = vand.u32 2147483647, %v11011_v46  ;;  %vm5342_vm11 = vweird.f32 %v11179_v24 }
 0x99a   : > { %v5721_v45 = vmul.f32 %v5700_v10, %v5304_v1  ;;  %8077 = vpow2.f32 %v7412_v58  ;;  %v5314_v1 = vsel %vm11192_vm15, %v11029_v14, %v5310_v51  ;;  %v5560_v58 = vor.u32 1.1754944e-38, %v5559_v31 }
 0x99b   : > { %v5319_v23 = vsel %vm11172_vm12, %v5318_v19, %v5314_v1  ;;  %v5339_v41 = vmul.f32 %v11179_v24, %v5338_v30  ;;  %vm5331_vm9 = vcmp.eq.f32.partialorder %v5330_v7, 8.507059e+37  ;;  %vm5341_vm12 = vweird.f32 %v11085_v12 }
 0x99c   : > { %v8070_v20 = vpop.eup %8069  ;;  %v5729_v38 = vadd.f32 %v5721_v45, %v10968_v6  ;;  %v5324_v6 = vmul.f32 %v11109_v40, %v5323_v59  ;;  %vm11309_vm13 = vmor %vm5341_vm12, %vm5342_vm11  ;;  %vm5583_vm15 = vweird.f32 %v11150_v26  ;;  %vm5356_vm5 = vweird.f32 %v11168_v16 }
 0x99d   : > { %v5752_v17 = vmul.f32 %v8070_v20, %v5744_v22  ;;  %v8072_v21 = vpop.eup %8071  ;;  %v7413_v20 = vmul.f32 -1.442695, %v5485_v11 }
 0x99e   : > { %8079 = vtanh.f32 %v5729_v38  ;;  %v11222_v5 = vpop.eup %8073  ;;  %v11229_v59 = vadd.f32 1.0, %v8072_v21  ;;  %v5325_v25 = vadd.f32 %v11109_v40, %v5324_v6  ;;  %v5333_v21 = vor.u32 1.1754944e-38, %v5332_v4 }
 0x99f   : > { %v11206_v10 = vadd.f32 %v5760_v0, %v5752_v17  ;;  %v5702_v51 = vpop.f32.mrf.mxu1  ;;  %v5566_v0 = vmul.f32 %v11136_v39, %v5565_v48  ;;  %8081 = vpow2.f32 %v7389_v63  ;;  %v11239_v31 = vpop.eup %8075  ;;  %v5579_v55 = vmul.f32 %v11222_v5, %v11150_v26 }
 0x9a0   : > { %v5703_v45 = vadd.f32 %v11095_v3, %v5702_v51  ;;  %8083 = vrcp.f32 %v11199_v36  ;;  %v8078_v8 = vpop.eup %8077  ;;  %v5561_v48 = vsel %vm11216_vm4, %v5560_v58, %v5556_v13  ;;  %v5761_v6 = vmul.f32 %v11166_v33, %v10578_v37 }
 0x9a1   : > { %7435 = vmatmul.msk.f32.vlgmr.msra.gmra.mxu2 %vm1525_vm1, %v11206_v10  ;;  %7451 = vmatmul.msk.f32.vlgmr.msrb.gmra.mxu0 %vm1525_vm1, %v11206_v10  ;;  %v5567_v17 = vadd.f32 %v11136_v39, %v5566_v0  ;;  %8085 = vrcp.f32 %v11229_v59  ;;  %v5329_v46 = vsel %vm11255_vm8, %v11109_v40, %v5325_v25  ;;  %v5580_v11 = vsub.f32 1.0, %v5579_v55 }
 0x9a2   : > { %v5722_v32 = vmul.f32 %v5703_v45, %v5319_v23  ;;  %v11267_v14 = vadd.f32 1.0, %v8078_v8  ;;  %v5746_v37 = vsub.f32 1.0, %v5561_v48  ;;  %v5572_v33 = vand.u32 2147483647, %v11031_v61 }
 0x9a3   : > { %v5334_v45 = vsel %vm5331_vm9, %v5333_v21, %v5329_v46  ;;  %v5571_v23 = vsel %vm11277_vm10, %v11136_v39, %v5567_v17  ;;  %v5575_v4 = vor.u32 1.1754944e-38, %v5574_v28  ;;  %v5340_v25 = vadd.f32 %v11179_v24, %v5339_v41 }
 0x9a4   : > { %v8080_v63 = vpop.eup %8079  ;;  %v5730_v38 = vadd.f32 %v5722_v32, %v10976_v42  ;;  %v5581_v55 = vmul.f32 %v11222_v5, %v5580_v11  ;;  %v5347_v39 = vand.u32 2147483648, %v11085_v12  ;;  %vm5573_vm14 = vcmp.eq.f32.partialorder %v5572_v33, 8.507059e+37 }
 0x9a5   : > { %v5753_v1 = vmul.f32 %v8080_v63, %v5745_v35  ;;  %v8082_v42 = vpop.eup %8081  ;;  %v5352_v35 = vmul.f32 %v11239_v31, %v11168_v16  ;;  %v5345_v63 = vand.u32 2147483647, %v11085_v12  ;;  %v5576_v17 = vsel %vm5573_vm14, %v5575_v4, %v5571_v23  ;;  %v5670_v23 = vpop.f32.mrf.mxu0 }
 0x9a6   : > { %8087 = vtanh.f32 %v5730_v38  ;;  %v11271_v51 = vpop.eup %8083  ;;  %v11283_v13 = vadd.f32 1.0, %v8082_v42  ;;  %v5762_v19 = vmul.f32 %v5561_v48, %v10641_v60  ;;  %v5348_v42 = vor.u32 1.1754944e-38, %v5347_v39 }
 0x9a7   : > { %8089 = vpow2.f32 %v7413_v20  ;;  %v5705_v22 = vpop.f32.mrf.mxu1  ;;  %v11269_v58 = vadd.f32 %v5761_v6, %v5753_v1  ;;  %v5353_v30 = vsub.f32 1.0, %v5352_v35  ;;  %v11296_v8 = vpop.eup %8085  ;;  %v5594_v61 = vmul.f32 %v11271_v51, %v11199_v36 }
 0x9a8   : > { %v5706_v0 = vadd.f32 %v11095_v3, %v5705_v22  ;;  %8091 = vrcp.f32 %v11267_v14  ;;  %v5367_v21 = vmul.f32 %v11296_v8, %v11229_v59  ;;  %v5589_v35 = vand.u32 2147483648, %v11150_v26 }
 0x9a9   : > { %7436 = vmatmul.msk.f32.gmra.mxu2 %vm1525_vm1, %v11269_v58  ;;  %7452 = vmatmul.msk.f32.gmra.mxu0 %vm1525_vm1, %v11269_v58  ;;  %8093 = vrcp.f32 %v11283_v13  ;;  %v5354_v12 = vmul.f32 %v11239_v31, %v5353_v30  ;;  %v5595_v6 = vsub.f32 1.0, %v5594_v61  ;;  %vm5346_vm2 = vcmp.eq.f32.partialorder %v5345_v63, 8.507059e+37 }
 0x9aa   : > { %v5723_v32 = vmul.f32 %v5706_v0, %v5334_v45  ;;  %v5747_v11 = vsub.f32 1.0, %v5576_v17  ;;  %vm5584_vm3 = vweird.f32 %v11222_v5  ;;  %vm5357_vm4 = vweird.f32 %v11239_v31 }
 0x9ab   : > { %v5355_v33 = vadd.f32 %v11239_v31, %v5354_v12  ;;  %v5368_v0 = vsub.f32 1.0, %v5367_v21  ;;  %v5596_v4 = vmul.f32 %v11271_v51, %v5595_v6  ;;  %vm11350_vm6 = vmor %vm5583_vm15, %vm5584_vm3  ;;  %vm5599_vm10 = vweird.f32 %v11271_v51 }
 0x9ac   : > { %v8088_v28 = vpop.eup %8087  ;;  %v5731_v20 = vadd.f32 %v5723_v32, %v11014_v29  ;;  %v5344_v29 = vsel %vm11309_vm13, %v11179_v24, %v5340_v25  ;;  %v5587_v32 = vand.u32 2147483647, %v11150_v26  ;;  %v5362_v25 = vand.u32 2147483648, %v11168_v16  ;;  %vm11361_vm7 = vmor %vm5356_vm5, %vm5357_vm4 }
 0x9ad   : > { %v8090_v38 = vpop.eup %8089  ;;  %v5754_v7 = vmul.f32 %v8088_v28, %v5746_v37  ;;  %v5349_v22 = vsel %vm5346_vm2, %v5348_v42, %v5344_v29  ;;  %v5582_v37 = vadd.f32 %v11222_v5, %v5581_v55  ;;  %v5360_v28 = vand.u32 2147483647, %v11168_v16 }
 0x9ae   : > { %8095 = vtanh.f32 %v5731_v20  ;;  %v11324_v60 = vadd.f32 1.0, %v8090_v38  ;;  %v11327_v24 = vpop.eup %8091  ;;  %v5590_v38 = vor.u32 1.1754944e-38, %v5589_v35  ;;  %v5763_v26 = vmul.f32 %v5576_v17, %v10691_v56 }
 0x9af   : > { %v5708_v46 = vpop.f32.mrf.mxu1  ;;  %v11321_v41 = vadd.f32 %v5762_v19, %v5754_v7  ;;  %v11337_v45 = vpop.eup %8093  ;;  %v5609_v55 = vmul.f32 %v11327_v24, %v11267_v14  ;;  %v5586_v63 = vsel %vm11350_vm6, %v11222_v5, %v5582_v37  ;;  %v5369_v16 = vmul.f32 %v11296_v8, %v5368_v0 }
 0x9b0   : > { %v5709_v48 = vadd.f32 %v11095_v3, %v5708_v46  ;;  %8097 = vrcp.f32 %v11324_v60  ;;  %v5382_v1 = vmul.f32 %v11337_v45, %v11283_v13  ;;  %v5671_v5 = vadd.f32 %v10957_v18, %v5670_v23 }
 0x9b1   : > { %7437 = vmatmul.msk.f32.gmra.mxu2 %vm1525_vm1, %v11321_v41  ;;  %7453 = vmatmul.msk.f32.gmra.mxu0 %vm1525_vm1, %v11321_v41  ;;  %vm5588_vm8 = vcmp.eq.f32.partialorder %v5587_v32, 8.507059e+37  ;;  %v5363_v19 = vor.u32 1.1754944e-38, %v5362_v25  ;;  %v5610_v21 = vsub.f32 1.0, %v5609_v55  ;;  %vm5361_vm9 = vcmp.eq.f32.partialorder %v5360_v28, 8.507059e+37  ;;  %v5673_v25 = vpop.f32.mrf.mxu0 }
 0x9b2   : > { %v5724_v40 = vmul.f32 %v5709_v48, %v5349_v22  ;;  %v5591_v6 = vsel %vm5588_vm8, %v5590_v38, %v5586_v63  ;;  %v5604_v17 = vand.u32 2147483648, %v11199_v36  ;;  %v5597_v42 = vadd.f32 %v11271_v51, %v5596_v4 }
 0x9b3   : > { %v5370_v48 = vadd.f32 %v11296_v8, %v5369_v16  ;;  %vm5372_vm11 = vweird.f32 %v11296_v8  ;;  %vm5598_vm14 = vweird.f32 %v11199_v36  ;;  %v5748_v22 = vsub.f32 1.0, %v5591_v6 }
 0x9b4   : > { %v8096_v30 = vpop.eup %8095  ;;  %v5732_v39 = vadd.f32 %v5724_v40, %v11073_v57  ;;  %v5359_v57 = vsel %vm11361_vm7, %v11239_v31, %v5355_v33  ;;  %v5602_v37 = vand.u32 2147483647, %v11199_v36  ;;  %v5377_v40 = vand.u32 2147483648, %v11229_v59  ;;  %vm11391_vm12 = vmor %vm5598_vm14, %vm5599_vm10 }
 0x9b5   : > { %v5755_v20 = vmul.f32 %v8096_v30, %v5747_v11  ;;  %v5364_v31 = vsel %vm5361_vm9, %v5363_v19, %v5359_v57  ;;  %v5383_v11 = vsub.f32 1.0, %v5382_v1  ;;  %v5611_v0 = vmul.f32 %v11327_v24, %v5610_v21 }
 0x9b6   : > { %8099 = vtanh.f32 %v5732_v39  ;;  %v11383_v46 = vpop.eup %8097  ;;  %vm5371_vm13 = vweird.f32 %v11229_v59  ;;  %v5375_v32 = vand.u32 2147483647, %v11229_v59  ;;  %v5601_v36 = vsel %vm11391_vm12, %v11271_v51, %v5597_v42 }
 0x9b7   : > { %v5711_v29 = vpop.f32.mrf.mxu1  ;;  %v11373_v12 = vadd.f32 %v5763_v26, %v5755_v20  ;;  %v5624_v30 = vmul.f32 %v11383_v46, %v11324_v60  ;;  %vm11404_vm15 = vmor %vm5371_vm13, %vm5372_vm11  ;;  %v5764_v39 = vmul.f32 %v5591_v6, %v10734_v54  ;;  %v5605_v28 = vor.u32 1.1754944e-38, %v5604_v17 }
 0x9b8   : > { %v5712_v56 = vadd.f32 %v11095_v3, %v5711_v29  ;;  %v5374_v59 = vsel %vm11404_vm15, %v11296_v8, %v5370_v48  ;;  %v5384_v20 = vmul.f32 %v11337_v45, %v5383_v11  ;;  %vm5603_vm2 = vcmp.eq.f32.partialorder %v5602_v37, 8.507059e+37 }
 0x9b9   : > { %7438 = vmatmul.msk.f32.gmra.mxu2 %vm1525_vm1, %v11373_v12  ;;  %7454 = vmatmul.msk.f32.gmra.mxu0 %vm1525_vm1, %v11373_v12  ;;  %v5378_v63 = vor.u32 1.1754944e-38, %v5377_v40  ;;  %v5674_v7 = vadd.f32 %v10957_v18, %v5673_v25  ;;  %v5606_v26 = vsel %vm5603_vm2, %v5605_v28, %v5601_v36  ;;  %vm5376_vm3 = vcmp.eq.f32.partialorder %v5375_v32, 8.507059e+37  ;;  %v5676_v40 = vpop.f32.mrf.mxu0 }
 0x9ba   : > { %v5725_v35 = vmul.f32 %v5712_v56, %v5364_v31  ;;  %v5625_v54 = vsub.f32 1.0, %v5624_v30  ;;  %v5612_v1 = vadd.f32 %v11327_v24, %v5611_v0  ;;  %vm5614_vm4 = vweird.f32 %v11327_v24 }
 0x9bb   : > { %v5379_v16 = vsel %vm5376_vm3, %v5378_v63, %v5374_v59  ;;  %v5619_v8 = vand.u32 2147483648, %v11267_v14  ;;  %v5385_v19 = vadd.f32 %v11337_v45, %v5384_v20  ;;  %vm5387_vm5 = vweird.f32 %v11337_v45 }
 0x9bc   : > { %v8100_v33 = vpop.eup %8099  ;;  %v5733_v4 = vadd.f32 %v5725_v35, %v5671_v5  ;;  %vm5613_vm6 = vweird.f32 %v11267_v14  ;;  %v5749_v29 = vsub.f32 1.0, %v5606_v26  ;;  %v5617_v21 = vand.u32 2147483647, %v11267_v14 }
 0x9bd   : > { %v5756_v55 = vmul.f32 %v8100_v33, %v5748_v22  ;;  %v5392_v6 = vand.u32 2147483648, %v11283_v13  ;;  %vm11429_vm7 = vmor %vm5613_vm6, %vm5614_vm4  ;;  %vm5386_vm8 = vweird.f32 %v11283_v13  ;;  %v5390_v42 = vand.u32 2147483647, %v11283_v13 }
 0x9be   : > { %8101 = vtanh.f32 %v5733_v4  ;;  %v5626_v35 = vmul.f32 %v11383_v46, %v5625_v54  ;;  %v5616_v11 = vsel %vm11429_vm7, %v11327_v24, %v5612_v1  ;;  %vm5388_vm9 = vmor %vm5386_vm8, %vm5387_vm5  ;;  %v5765_v14 = vmul.f32 %v5606_v26, %v10764_v27 }
 0x9bf   : > { %v5714_v38 = vpop.f32.mrf.mxu1  ;;  %v11413_v51 = vadd.f32 %v5764_v39, %v5756_v55  ;;  %v5620_v22 = vor.u32 1.1754944e-38, %v5619_v8  ;;  %v5389_v37 = vsel %vm5388_vm9, %v11337_v45, %v5385_v19  ;;  %vm5618_vm10 = vcmp.eq.f32.partialorder %v5617_v21, 8.507059e+37 }
 0x9c0   : > { %v5715_v57 = vadd.f32 %v11095_v3, %v5714_v38  ;;  %v5393_v33 = vor.u32 1.1754944e-38, %v5392_v6  ;;  %vm5391_vm11 = vcmp.eq.f32.partialorder %v5390_v42, 8.507059e+37  ;;  %v5627_v24 = vadd.f32 %v11383_v46, %v5626_v35 }
 0x9c1   : > { %7439 = vmatmul.msk.f32.gmra.mxu2 %vm1525_vm1, %v11413_v51  ;;  %7455 = vmatmul.msk.f32.gmra.mxu0 %vm1525_vm1, %v11413_v51  ;;  %v5621_v13 = vsel %vm5618_vm10, %v5620_v22, %v5616_v11  ;;  %vm5629_vm14 = vweird.f32 %v11383_v46  ;;  %v5677_v27 = vadd.f32 %v10957_v18, %v5676_v40  ;;  %v5634_v45 = vand.u32 2147483648, %v11324_v60 }
 0x9c2   : > { %v5726_v5 = vmul.f32 %v5715_v57, %v5379_v16  ;;  %v5394_v32 = vsel %vm5391_vm11, %v5393_v33, %v5389_v37  ;;  %vm5628_vm12 = vweird.f32 %v11324_v60  ;;  %v5750_v30 = vsub.f32 1.0, %v5621_v13 }
 0x9c3   : > { %vm5630_vm13 = vmor %vm5628_vm12, %vm5629_vm14  ;;  %v5766_v28 = vmul.f32 %v5621_v13, %v10779_v50  ;;  %v5635_v59 = vor.u32 1.1754944e-38, %v5634_v45 }
 0x9c4   : > { %v8102_v56 = vpop.eup %8101  ;;  %v5734_v31 = vadd.f32 %v5726_v5, %v5674_v7  ;;  %v5631_v39 = vsel %vm5630_vm13, %v11383_v46, %v5627_v24 }
 0x9c5   : > { %v5757_v48 = vmul.f32 %v8102_v56, %v5749_v29 }
 0x9c6   : > { %8103 = vtanh.f32 %v5734_v31 }
 0x9c7   : > { %v5717_v0 = vpop.f32.mrf.mxu1  ;;  %v11441_v23 = vadd.f32 %v5765_v14, %v5757_v48 }
 0x9c8   : > { %v5718_v4 = vadd.f32 %v11095_v3, %v5717_v0  ;;  %v5632_v3 = vand.u32 2147483647, %v11324_v60 }
 0x9c9   : > { %7440 = vmatmul.msk.f32.gmra.mxu2 %vm1525_vm1, %v11441_v23  ;;  %7456 = vmatmul.msk.f32.gmra.mxu0 %vm1525_vm1, %v11441_v23 }
 0x9ca   : > { %v5727_v25 = vmul.f32 %v5718_v4, %v5394_v32  ;;  %vm5633_vm15 = vcmp.eq.f32.partialorder %v5632_v3, 8.507059e+37 }
 0x9cb   : > { %v5636_v20 = vsel %vm5633_vm15, %v5635_v59, %v5631_v39 }
 0x9cc   : > { %v8104_v55 = vpop.eup %8103  ;;  %v5735_v36 = vadd.f32 %v5727_v25, %v5677_v27  ;;  %v5751_v60 = vsub.f32 1.0, %v5636_v20  ;;  %v5767_v7 = vmul.f32 %v5636_v20, %v10786_v9  ;;  %v7744_v9 = vld [vmem:[%s12168_s12 + $0x3] ss:$0 sm:$0xff] }
 0x9cd   : > { %v5758_v61 = vmul.f32 %v8104_v55, %v5750_v30 }
 0x9ce   : > { %8105 = vtanh.f32 %v5735_v36 }
 0x9cf   : > { %v11456_v18 = vadd.f32 %v5766_v28, %v5758_v61 }
 0x9d1   : > { %7441 = vmatmul.msk.f32.gmra.mxu2 %vm1525_vm1, %v11456_v18  ;;  %7457 = vmatmul.msk.f32.gmra.mxu0 %vm1525_vm1, %v11456_v18 }
 0x9d4   : > { %v8106_v63 = vpop.eup %8105 }
 0x9d5   : > { %v5759_v38 = vmul.f32 %v8106_v63, %v5751_v60 }
 0x9d7   : > { %v11463_v46 = vadd.f32 %v5767_v7, %v5759_v38 }
 0x9d9   : > { %7442 = vmatmul.msk.f32.gmra.mxu2 %vm1525_vm1, %v11463_v46  ;;  %7458 = vmatmul.msk.f32.gmra.mxu0 %vm1525_vm1, %v11463_v46 }
 0x9e1   : > { %7475 = vmatmul.msk.f32.vlgmr.msrb.gmra.mxu2 %vm1525_vm1, %v11206_v10 }
 0x9e9   : > { %7476 = vmatmul.msk.f32.gmra.mxu2 %vm1525_vm1, %v11269_v58 }
 0x9f1   : > { %7477 = vmatmul.msk.f32.gmra.mxu2 %vm1525_vm1, %v11321_v41 }
 0x9f9   : > { %7478 = vmatmul.msk.f32.gmra.mxu2 %vm1525_vm1, %v11373_v12 }
 0xa01   : > { %7479 = vmatmul.msk.f32.gmra.mxu2 %vm1525_vm1, %v11413_v51 }
 0xa09   : > { %7480 = vmatmul.msk.f32.gmra.mxu2 %vm1525_vm1, %v11441_v23 }
 0xa11   : > { %7481 = vmatmul.msk.f32.gmra.mxu2 %vm1525_vm1, %v11456_v18 }
 0xa19   : > { %7482 = vmatmul.msk.f32.gmra.mxu2 %vm1525_vm1, %v11463_v46 }
 0xa1e   : > { %v5968_v24 = vpop.f32.mrf.mxu0 }
 0xa24   : > { %v5827_v50 = vpop.f32.mrf.mxu2 }
 0xa25   : > { %v5828_v54 = vadd.f32 %v7744_v9, %v5827_v50 }
 0xa26   : > { %v5971_v27 = vpop.f32.mrf.mxu0 }
 0xa2c   : > { %v5830_v26 = vpop.f32.mrf.mxu2 }
 0xa2d   : > { %v5831_v57 = vadd.f32 %v7744_v9, %v5830_v26 }
 0xa2e   : > { %v5974_v45 = vpop.f32.mrf.mxu0 }
 0xa2f   : > { %5865 = vmatpush.msrb.mxu3 %v5831_v57 }
 0xa31   : > { %5866 = vmatpush.msrb.mxu3 %v5828_v54 }
 0xa32   : > { %7443 = vmatmul.msk.f32.vlgmr.msrb.gmra.mxu3 %vm933_vm0, %v9270_v47 }
 0xa34   : > { %v5833_v16 = vpop.f32.mrf.mxu2 }
 0xa35   : > { %v5834_v5 = vadd.f32 %v7744_v9, %v5833_v16 }
 0xa36   : > { %v5977_v25 = vpop.f32.mrf.mxu0 }
 0xa3a   : > { %7444 = vmatmul.msk.f32.gmra.mxu3 %vm933_vm0, %v9277_v43 }
 0xa3c   : > { %v5836_v1 = vpop.f32.mrf.mxu2 }
 0xa3d   : > { %v5837_v8 = vadd.f32 %v7744_v9, %v5836_v1 }
 0xa3e   : > { %v11552_v30 = vpop.f32.mrf.mxu0 }
 0xa3f   : > { %5888 = vmatpush.msra.mxu3 %v5837_v8 }
 0xa41   : > { %5889 = vmatpush.msra.mxu3 %v5834_v5 }
 0xa42   : > { %7445 = vmatmul.msk.f32.vlgmr.msra.gmra.mxu3 %vm933_vm0, %v9282_v53  ;;  %v8251_v53 = vld [vmem:[%s12169_s13 + $0x38] sm:$0xff] }
 0xa44   : > { %v5839_v19 = vpop.f32.mrf.mxu2 }
 0xa45   : > { %v5840_v6 = vadd.f32 %v7744_v9, %v5839_v19 }
 0xa46   : > { %v11556_v3 = vpop.f32.mrf.mxu0 }
 0xa4a   : > { %7446 = vmatmul.msk.f32.gmra.mxu3 %vm933_vm0, %v12334_v34  ;;  %v8252_v34 = vld [vmem:[%s12169_s13 + $0x30] sm:$0xff] }
 0xa4c   : > { %v5842_v29 = vpop.f32.mrf.mxu2 }
 0xa4d   : > { %v5843_v21 = vadd.f32 %v7744_v9, %v5842_v29 }
 0xa4e   : > { %v11560_v36 = vpop.f32.mrf.mxu0 }
 0xa4f   : > { %5911 = vmatpush.msrb.mxu3 %v5843_v21 }
 0xa51   : > { %5912 = vmatpush.msrb.mxu3 %v5840_v6 }
 0xa52   : > { %7447 = vmatmul.msk.f32.vlgmr.msrb.gmra.mxu3 %vm933_vm0, %v12335_v2  ;;  %v8253_v2 = vld [vmem:[%s12169_s13 + $0x28] sm:$0xff] }
 0xa54   : > { %v5845_v47 = vpop.f32.mrf.mxu2 }
 0xa55   : > { %v5846_v17 = vadd.f32 %v7744_v9, %v5845_v47 }
 0xa56   : > { %v11562_v60 = vpop.f32.mrf.mxu0 }
 0xa5a   : > { %7448 = vmatmul.msk.f32.gmra.mxu3 %vm933_vm0, %v12336_v52  ;;  %v8254_v52 = vld [vmem:[%s12169_s13 + $0x20] sm:$0xff] }
 0xa5c   : > { %v5848_v43 = vpop.f32.mrf.mxu2 }
 0xa5d   : > { %v5849_v56 = vadd.f32 %v7744_v9, %v5848_v43 }
 0xa5f   : > { %5934 = vmatpush.msra.mxu3 %v5849_v56 }
 0xa61   : > { %5935 = vmatpush.msra.mxu3 %v5846_v17 }
 0xa62   : > { %7449 = vmatmul.msk.f32.vlgmr.msra.gmra.mxu3 %vm933_vm0, %v12337_v62 }
 0xa63   : > { %6270 = vmatpush.msrb.mxu3 %v8251_v53 }
 0xa64   : > { %v6234_v61 = vpop.f32.mrf.mxu2 }
 0xa65   : > { %6271 = vmatpush.msrb.mxu3 %v8252_v34 }
 0xa67   : > { %6272 = vmatpush.msrb.mxu3 %v8253_v2 }
 0xa69   : > { %6273 = vmatpush.msrb.mxu3 %v8254_v52 }
 0xa6a   : > { %7450 = vmatmul.msk.f32.gmra.mxu3 %vm933_vm0, %v12338_v49 }
 0xa6c   : > { %v6237_v38 = vpop.f32.mrf.mxu2 }
 0xa74   : > { %v6240_v5 = vpop.f32.mrf.mxu2 }
 0xab5   : > { %v5868_v62 = vpop.f32.mrf.mxu3 }
 0xab6   : > { %v5943_v31 = vmax.f32 %v5868_v62, 0.0 }
 0xab8   : > { %7459 = vmatmul.msk.f32.vlgmr.msrb.gmra.mxu1 %vm1525_vm1, %v5943_v31  ;;  %7483 = vmatmul.msk.f32.vlgmr.msrb.gmra.mxu3 %vm1525_vm1, %v5943_v31 }
 0xab9   : > { %7499 = vmatmul.msk.f32.vlgmr.msra.gmra.mxu0 %vm1525_vm1, %v5943_v31 }
 0xabd   : > { %v5871_v42 = vpop.f32.mrf.mxu3 }
 0xabe   : > { %v5944_v35 = vmax.f32 %v5871_v42, 0.0 }
 0xac0   : > { %7460 = vmatmul.msk.f32.gmra.mxu1 %vm1525_vm1, %v5944_v35  ;;  %7484 = vmatmul.msk.f32.gmra.mxu3 %vm1525_vm1, %v5944_v35 }
 0xac1   : > { %7500 = vmatmul.msk.f32.gmra.mxu0 %vm1525_vm1, %v5944_v35  ;;  %v6243_v35 = vpop.f32.mrf.mxu2 }
 0xac5   : > { %v5891_v48 = vpop.f32.mrf.mxu3 }
 0xac6   : > { %v5945_v11 = vmax.f32 %v5891_v48, 0.0 }
 0xac8   : > { %7461 = vmatmul.msk.f32.gmra.mxu1 %vm1525_vm1, %v5945_v11  ;;  %7485 = vmatmul.msk.f32.gmra.mxu3 %vm1525_vm1, %v5945_v11 }
 0xac9   : > { %7501 = vmatmul.msk.f32.gmra.mxu0 %vm1525_vm1, %v5945_v11 }
 0xacd   : > { %v5894_v49 = vpop.f32.mrf.mxu3 }
 0xace   : > { %v5946_v14 = vmax.f32 %v5894_v49, 0.0 }
 0xad0   : > { %7462 = vmatmul.msk.f32.gmra.mxu1 %vm1525_vm1, %v5946_v14  ;;  %7486 = vmatmul.msk.f32.gmra.mxu3 %vm1525_vm1, %v5946_v14 }
 0xad1   : > { %7502 = vmatmul.msk.f32.gmra.mxu0 %vm1525_vm1, %v5946_v14 }
 0xad5   : > { %v5914_v22 = vpop.f32.mrf.mxu3 }
 0xad6   : > { %v5947_v37 = vmax.f32 %v5914_v22, 0.0 }
 0xad8   : > { %7463 = vmatmul.msk.f32.gmra.mxu1 %vm1525_vm1, %v5947_v37  ;;  %7487 = vmatmul.msk.f32.gmra.mxu3 %vm1525_vm1, %v5947_v37 }
 0xad9   : > { %7503 = vmatmul.msk.f32.gmra.mxu0 %vm1525_vm1, %v5947_v37 }
 0xadd   : > { %v5917_v40 = vpop.f32.mrf.mxu3 }
 0xade   : > { %v5948_v33 = vmax.f32 %v5917_v40, 0.0 }
 0xae0   : > { %7464 = vmatmul.msk.f32.gmra.mxu1 %vm1525_vm1, %v5948_v33  ;;  %7488 = vmatmul.msk.f32.gmra.mxu3 %vm1525_vm1, %v5948_v33 }
 0xae1   : > { %7504 = vmatmul.msk.f32.gmra.mxu0 %vm1525_vm1, %v5948_v33 }
 0xae5   : > { %v5937_v0 = vpop.f32.mrf.mxu3 }
 0xae6   : > { %v5949_v13 = vmax.f32 %v5937_v0, 0.0 }
 0xae8   : > { %7465 = vmatmul.msk.f32.gmra.mxu1 %vm1525_vm1, %v5949_v13  ;;  %7489 = vmatmul.msk.f32.gmra.mxu3 %vm1525_vm1, %v5949_v13 }
 0xae9   : > { %7505 = vmatmul.msk.f32.gmra.mxu0 %vm1525_vm1, %v5949_v13 }
 0xaed   : > { %v5940_v4 = vpop.f32.mrf.mxu3 }
 0xaee   : > { %v5950_v32 = vmax.f32 %v5940_v4, 0.0 }
 0xaf0   : > { %7466 = vmatmul.msk.f32.gmra.mxu1 %vm1525_vm1, %v5950_v32  ;;  %7490 = vmatmul.msk.f32.gmra.mxu3 %vm1525_vm1, %v5950_v32 }
 0xaf1   : > { %7506 = vmatmul.msk.f32.gmra.mxu0 %vm1525_vm1, %v5950_v32 }
 0xaf8   : > { %7507 = vmatmul.msk.f32.vlgmr.msra.gmra.mxu1 %vm1525_vm1, %v11206_v10 }
 0xb00   : > { %7508 = vmatmul.msk.f32.gmra.mxu1 %vm1525_vm1, %v11269_v58 }
 0xb08   : > { %7509 = vmatmul.msk.f32.gmra.mxu1 %vm1525_vm1, %v11321_v41 }
 0xb10   : > { %7510 = vmatmul.msk.f32.gmra.mxu1 %vm1525_vm1, %v11373_v12 }
 0xb18   : > { %7511 = vmatmul.msk.f32.gmra.mxu1 %vm1525_vm1, %v11413_v51 }
 0xb20   : > { %7512 = vmatmul.msk.f32.gmra.mxu1 %vm1525_vm1, %v11441_v23 }
 0xb28   : > { %7513 = vmatmul.msk.f32.gmra.mxu1 %vm1525_vm1, %v11456_v18 }
 0xb30   : > { %7514 = vmatmul.msk.f32.gmra.mxu1 %vm1525_vm1, %v11463_v46 }
 0xb35   : > { %v6033_v55 = vpop.f32.mrf.mxu1 }
 0xb36   : > { %v6034_v28 = vadd.f32 %v6033_v55, %v5968_v24  ;;  %v6476_v16 = vpop.f32.mrf.mxu0 }
 0xb38   : > { %v6057_v63 = vadd.f32 %v6034_v28, %v9491_v15 }
 0xb3a   : > { %v7467_v9 = vmul.f32 -1.442695, %v6057_v63 }
 0xb3b   : > { %v6275_v39 = vpop.f32.mrf.mxu3 }
 0xb3c   : > { %v6276_v20 = vadd.f32 %v6275_v39, %v6234_v61  ;;  %8107 = vpow2.f32 %v7467_v9 }
 0xb3d   : > { %v6036_v59 = vpop.f32.mrf.mxu1 }
 0xb3e   : > { %v6299_v7 = vadd.f32 %v6276_v20, %v9503_v44  ;;  %v6037_v54 = vadd.f32 %v6036_v59, %v5971_v27  ;;  %v6479_v53 = vpop.f32.mrf.mxu0 }
 0xb40   : > { %v7491_v57 = vmul.f32 -1.442695, %v6299_v7  ;;  %v6058_v1 = vadd.f32 %v6037_v54, %v9491_v15 }
 0xb42   : > { %8109 = vpow2.f32 %v7491_v57  ;;  %v7468_v21 = vmul.f32 -1.442695, %v6058_v1  ;;  %v8108_v6 = vpop.eup %8107  ;;  %v11603_v57 = vld [vmem:[%s12171_s15 + $0x2] ss:$0 sm:$0xff] }
 0xb43   : > { %v6278_v50 = vpop.f32.mrf.mxu3  ;;  %v11568_v17 = vadd.f32 1.0, %v8108_v6 }
 0xb44   : > { %v6279_v47 = vadd.f32 %v6278_v50, %v6237_v38  ;;  %8111 = vpow2.f32 %v7468_v21 }
 0xb45   : > { %v6039_v26 = vpop.f32.mrf.mxu1  ;;  %8113 = vrcp.f32 %v11568_v17  ;;  %v6106_v1 = vand.u32 2147483647, %v11568_v17  ;;  %vm6102_vm0 = vweird.f32 %v11568_v17 }
 0xb46   : > { %v6040_v19 = vadd.f32 %v6039_v26, %v5974_v45  ;;  %v6300_v2 = vadd.f32 %v6279_v47, %v9503_v44  ;;  %v6482_v33 = vpop.f32.mrf.mxu0 }
 0xb47   : > { %vm11627_vm3 = vcmp.eq.f32.partialorder %v6106_v1, 8.507059e+37 }
 0xb48   : > { %v8110_v43 = vpop.eup %8109  ;;  %v6059_v56 = vadd.f32 %v6040_v19, %v9491_v15  ;;  %v7492_v48 = vmul.f32 -1.442695, %v6300_v2 }
 0xb49   : > { %v11570_v34 = vadd.f32 1.0, %v8110_v43 }
 0xb4a   : > { %v7469_v52 = vmul.f32 -1.442695, %v6059_v56  ;;  %v8112_v49 = vpop.eup %8111 }
 0xb4b   : > { %v6281_v8 = vpop.f32.mrf.mxu3  ;;  %8115 = vrcp.f32 %v11570_v34  ;;  %v11576_v22 = vadd.f32 1.0, %v8112_v49  ;;  %v11579_v40 = vpop.eup %8113  ;;  %v6350_v19 = vand.u32 2147483648, %v11570_v34  ;;  %vm6344_vm2 = vweird.f32 %v11570_v34 }
 0xb4c   : > { %v6282_v11 = vadd.f32 %v6281_v8, %v6240_v5  ;;  %8117 = vpow2.f32 %v7469_v52  ;;  %v6098_v45 = vmul.f32 %v11579_v40, %v11568_v17  ;;  %v6108_v8 = vand.u32 2147483648, %v11568_v17 }
 0xb4d   : > { %v6042_v29 = vpop.f32.mrf.mxu1  ;;  %8119 = vpow2.f32 %v7492_v48  ;;  %vm6103_vm4 = vweird.f32 %v11579_v40  ;;  %vm6117_vm7 = vweird.f32 %v11576_v22 }
 0xb4e   : > { %v6043_v31 = vadd.f32 %v6042_v29, %v5977_v25  ;;  %v6301_v37 = vadd.f32 %v6282_v11, %v9503_v44  ;;  %8121 = vrcp.f32 %v11576_v22  ;;  %v6246_v25 = vpop.f32.mrf.mxu2  ;;  %v6099_v20 = vsub.f32 1.0, %v6098_v45  ;;  %v6485_v54 = vpop.f32.mrf.mxu0  ;;  %vm11678_vm6 = vmor %vm6102_vm0, %vm6103_vm4 }
 0xb4f   : > { %v11612_v29 = vadd.f32 %v11603_v57, %v6479_v53  ;;  %v11633_v11 = vor.u32 1.1754944e-38, %v6350_v19 }
 0xb50   : > { %v6060_v14 = vadd.f32 %v6043_v31, %v9491_v15  ;;  %v7493_v27 = vmul.f32 -1.442695, %v6301_v37  ;;  %v6100_v6 = vmul.f32 %v11579_v40, %v6099_v20  ;;  %v6602_v20 = vld [vmem:[%s12174_s18 + $0x8] sm:$0xff] }
 0xb51   : > { %v11581_v0 = vpop.eup %8115 }
 0xb52   : > { %v7470_v13 = vmul.f32 -1.442695, %v6060_v14  ;;  %v8118_v32 = vpop.eup %8117  ;;  %v6340_v39 = vmul.f32 %v11581_v0, %v11570_v34  ;;  %v6101_v14 = vadd.f32 %v11579_v40, %v6100_v6  ;;  %vm6345_vm5 = vweird.f32 %v11581_v0 }
 0xb53   : > { %v6284_v62 = vpop.f32.mrf.mxu3  ;;  %v8120_v61 = vpop.eup %8119  ;;  %v11588_v28 = vadd.f32 1.0, %v8118_v32  ;;  %v6600_v32 = vld [vmem:[%s12173_s17 + $0x18] sm:$0xff]  ;;  %vm11687_vm8 = vmor %vm6344_vm2, %vm6345_vm5 }
 0xb54   : > { %v6285_v55 = vadd.f32 %v6284_v62, %v6243_v35  ;;  %8123 = vpow2.f32 %v7470_v13  ;;  %v11591_v63 = vadd.f32 1.0, %v8120_v61  ;;  %v11594_v7 = vpop.eup %8121  ;;  %v6341_v50 = vsub.f32 1.0, %v6340_v39  ;;  %6682 = vmatpush.msra.mxu3 %v6600_v32 }
 0xb55   : > { %v6045_v42 = vpop.f32.mrf.mxu1  ;;  %8125 = vpow2.f32 %v7493_v27  ;;  %v6113_v56 = vmul.f32 %v11594_v7, %v11576_v22  ;;  %v11621_v62 = vadd.f32 %v11603_v57, %v6482_v33  ;;  %v6109_v35 = vor.u32 1.1754944e-38, %v6108_v8 }
 0xb56   : > { %v6046_v59 = vadd.f32 %v6045_v42, %v11552_v30  ;;  %v6302_v38 = vadd.f32 %v6285_v55, %v9503_v44  ;;  %8127 = vrcp.f32 %v11588_v28  ;;  %v11606_v30 = vadd.f32 %v11603_v57, %v6476_v16  ;;  %v6249_v31 = vpop.f32.mrf.mxu2  ;;  %v6599_v55 = vld [vmem:[%s12173_s17 + $0x10] sm:$0xff]  ;;  %v6488_v19 = vpop.f32.mrf.mxu0 }
 0xb57   : > { %8129 = vrcp.f32 %v11591_v63  ;;  %v6342_v52 = vmul.f32 %v11581_v0, %v6341_v50  ;;  %v6114_v13 = vsub.f32 1.0, %v6113_v56  ;;  %v6121_v39 = vand.u32 2147483647, %v11576_v22  ;;  %6683 = vmatpush.msra.mxu3 %v6599_v55 }
 0xb58   : > { %v6061_v9 = vadd.f32 %v6046_v59, %v9491_v15  ;;  %v7494_v47 = vmul.f32 -1.442695, %v6302_v38  ;;  %v6123_v59 = vand.u32 2147483648, %v11576_v22  ;;  %v6598_v38 = vld [vmem:[%s12173_s17 + $0x8] sm:$0xff]  ;;  %vm6118_vm10 = vweird.f32 %v11594_v7 }
 0xb59   : > { %v6343_v45 = vadd.f32 %v11581_v0, %v6342_v52  ;;  %v6115_v6 = vmul.f32 %v11594_v7, %v6114_v13  ;;  %6684 = vmatpush.msra.mxu3 %v6598_v38  ;;  %vm11714_vm11 = vcmp.eq.f32.partialorder %v6121_v39, 8.507059e+37  ;;  %vm6132_vm14 = vweird.f32 %v11588_v28  ;;  %v11748_v38 = vld [vmem:[%s12172_s16 + $0x2] ss:$0 sm:$0xff]  ;;  %vm11757_vm12 = vmor %vm6117_vm7, %vm6118_vm10 }
 0xb5a   : > { %v8124_v5 = vpop.eup %8123  ;;  %v7471_v53 = vmul.f32 -1.442695, %v6061_v9  ;;  %8131 = vpow2.f32 %v7494_v47  ;;  %v11672_v9 = vadd.f32 %v11603_v57, %v6485_v54  ;;  %v6601_v47 = vld [vmem:[%s12174_s18] sm:$0xff]  ;;  %vm6359_vm13 = vweird.f32 %v11591_v63 }
 0xb5b   : > { %v6287_v24 = vpop.f32.mrf.mxu3  ;;  %v8126_v2 = vpop.eup %8125  ;;  %v11625_v42 = vadd.f32 1.0, %v8124_v5 }
 0xb5c   : > { %v6288_v21 = vadd.f32 %v6287_v24, %v6246_v25  ;;  %v11631_v48 = vpop.eup %8127  ;;  %v11638_v37 = vadd.f32 1.0, %v8126_v2  ;;  %v6603_v24 = vld [vmem:[%s12174_s18 + $0x10] sm:$0xff]  ;;  %8133 = vpow2.f32 %v7471_v53  ;;  %v6348_v25 = vand.u32 2147483647, %v11570_v34  ;;  %v6597_v34 = vld [vmem:[%s12173_s17] sm:$0xff] }
 0xb5d   : > { %v6048_v4 = vpop.f32.mrf.mxu1  ;;  %v11658_v61 = vpop.eup %8129  ;;  %8135 = vrcp.f32 %v11625_v42  ;;  %v6128_v50 = vmul.f32 %v11631_v48, %v11588_v28  ;;  %6685 = vmatpush.msra.mxu3 %v6597_v34  ;;  %vm6133_vm15 = vweird.f32 %v11631_v48  ;;  %vm6147_vm4 = vweird.f32 %v11625_v42 }
 0xb5e   : > { %v6049_v16 = vadd.f32 %v6048_v4, %v11556_v3  ;;  %v6303_v49 = vadd.f32 %v6288_v21, %v9503_v44  ;;  %v6604_v4 = vld [vmem:[%s12174_s18 + $0x18] sm:$0xff]  ;;  %8137 = vrcp.f32 %v11638_v37  ;;  %v6105_v21 = vsel %vm11678_vm6, %v11579_v40, %v6101_v14 }
 0xb5f   : > { %6641 = vmatpush.msra.mxu2 %v6604_v4  ;;  %v6347_v40 = vsel %vm11687_vm8, %v11581_v0, %v6343_v45  ;;  %vm11709_vm9 = vcmp.eq.f32.partialorder %v6348_v25, 8.507059e+37  ;;  %v6252_v4 = vpop.f32.mrf.mxu2  ;;  %v6136_v45 = vand.u32 2147483647, %v11588_v28  ;;  %v8256_v25 = vld [vmem:[%s8506_s5] sm:$0xff]  ;;  %vm6360_vm2 = vweird.f32 %v11658_v61 }
 0xb60   : > { %v6062_v33 = vadd.f32 %v6049_v16, %v9491_v15  ;;  %v7495_v1 = vmul.f32 -1.442695, %v6303_v49  ;;  %v6355_v16 = vmul.f32 %v11658_v61, %v11591_v63  ;;  %v8132_v2 = vpop.eup %8131  ;;  %v11720_v49 = vadd.f32 %v11603_v57, %v6488_v19  ;;  %7523 = vmatmul.msk.f32.vlgmr.msra.gmra.mxu3 %vm1525_vm1, %v8256_v25  ;;  %vm11826_vm6 = vmor %vm6359_vm13, %vm6360_vm2 }
 0xb61   : > { %6642 = vmatpush.msra.mxu2 %v6603_v24  ;;  %v11730_v32 = vsel %vm11709_vm9, %v11633_v11, %v6347_v40  ;;  %v6116_v24 = vadd.f32 %v11594_v7, %v6115_v6  ;;  %vm11772_vm0 = vcmp.eq.f32.partialorder %v6136_v45, 8.507059e+37 }
 0xb62   : > { %v7472_v17 = vmul.f32 -1.442695, %v6062_v33  ;;  %v8134_v0 = vpop.eup %8133  ;;  %8139 = vpow2.f32 %v7495_v1  ;;  %v6110_v33 = vsel %vm11627_vm3, %v6109_v35, %v6105_v21  ;;  %v6356_v3 = vsub.f32 1.0, %v6355_v16  ;;  %vm11800_vm3 = vmor %vm6132_vm14, %vm6133_vm15 }
 0xb63   : > { %v6290_v43 = vpop.f32.mrf.mxu3  ;;  %6643 = vmatpush.msra.mxu2 %v6602_v20  ;;  %v11725_v13 = vpop.eup %8135  ;;  %v11737_v35 = vadd.f32 1.0, %v8132_v2  ;;  %v11743_v11 = vadd.f32 1.0, %v8134_v0  ;;  %v6565_v19 = vsub.f32 1.0, %v11730_v32  ;;  %v6120_v34 = vsel %vm11757_vm12, %v11594_v7, %v6116_v24 }
 0xb64   : > { %v6291_v8 = vadd.f32 %v6290_v43, %v6249_v31  ;;  %v6124_v31 = vor.u32 1.1754944e-38, %v6123_v59  ;;  %8141 = vpow2.f32 %v7472_v17  ;;  %v6363_v59 = vand.u32 2147483647, %v11591_v63  ;;  %v11741_v20 = vpop.eup %8137 }
 0xb65   : > { %v11598_v26 = vpop.f32.mrf.mxu1  ;;  %6644 = vmatpush.msra.mxu2 %v6601_v47  ;;  %v6143_v21 = vmul.f32 %v11725_v13, %v11625_v42  ;;  %v11766_v47 = vmul.f32 %v11730_v32, %v11206_v10  ;;  %8143 = vrcp.f32 %v11737_v35  ;;  %v6357_v10 = vmul.f32 %v11658_v61, %v6356_v3 }
 0xb66   : > { %v6052_v43 = vadd.f32 %v11598_v26, %v11560_v36  ;;  %v6129_v36 = vsub.f32 1.0, %v6128_v50  ;;  %v6138_v26 = vand.u32 2147483648, %v11588_v28  ;;  %v6304_v14 = vadd.f32 %v6291_v8, %v9503_v44 }
 0xb67   : > { %8145 = vrcp.f32 %v11743_v11  ;;  %v6144_v0 = vsub.f32 1.0, %v6143_v21  ;;  %v6365_v24 = vand.u32 2147483648, %v11591_v63  ;;  %v6255_v45 = vpop.f32.mrf.mxu2  ;;  %vm6148_vm5 = vweird.f32 %v11725_v13 }
 0xb68   : > { %v6063_v55 = vadd.f32 %v6052_v43, %v9491_v15  ;;  %v6130_v1 = vmul.f32 %v11631_v48, %v6129_v36  ;;  %v6139_v8 = vor.u32 1.1754944e-38, %v6138_v26  ;;  %v7496_v5 = vmul.f32 -1.442695, %v6304_v14  ;;  %v8140_v16 = vpop.eup %8139  ;;  %vm11868_vm9 = vmor %vm6147_vm4, %vm6148_vm5 }
 0xb69   : > { %v6370_v43 = vmul.f32 %v11741_v20, %v11638_v37  ;;  %v6125_v26 = vsel %vm11714_vm11, %v6124_v31, %v6120_v34  ;;  %v11788_v14 = vadd.f32 1.0, %v8140_v16  ;;  %v6358_v31 = vadd.f32 %v11658_v61, %v6357_v10 }
 0xb6a   : > { %v7473_v40 = vmul.f32 -1.442695, %v6063_v55  ;;  %v8142_v56 = vpop.eup %8141  ;;  %8147 = vpow2.f32 %v7496_v5  ;;  %v6145_v5 = vmul.f32 %v11725_v13, %v6144_v0  ;;  %vm6364_vm8 = vcmp.eq.f32.partialorder %v6363_v59, 8.507059e+37  ;;  %v8259_v0 = vld [vmem:[%s8506_s5 + $0x10] sm:$0xff] }
 0xb6b   : > { %v6293_v52 = vpop.f32.mrf.mxu3  ;;  %v6371_v25 = vsub.f32 1.0, %v6370_v43  ;;  %v6362_v16 = vsel %vm11826_vm6, %v11658_v61, %v6358_v31  ;;  %v6366_v43 = vor.u32 1.1754944e-38, %v6365_v24  ;;  %vm6375_vm10 = vweird.f32 %v11741_v20 }
 0xb6c   : > { %v6294_v54 = vadd.f32 %v6293_v52, %v6252_v4  ;;  %v6131_v52 = vadd.f32 %v11631_v48, %v6130_v1  ;;  %v6153_v4 = vand.u32 2147483648, %v11625_v42  ;;  %v6146_v61 = vadd.f32 %v11725_v13, %v6145_v5 }
 0xb6d   : > { %v11651_v27 = vpop.f32.mrf.mxu1  ;;  %vm6374_vm11 = vweird.f32 %v11638_v37  ;;  %vm6162_vm14 = vweird.f32 %v11743_v11  ;;  %vm6389_vm4 = vweird.f32 %v11737_v35 }
 0xb6e   : > { %v6055_v7 = vadd.f32 %v11651_v27, %v11562_v60  ;;  %v6305_v36 = vadd.f32 %v6294_v54, %v9503_v44  ;;  %v8258_v60 = vld [vmem:[%s8506_s5 + $0x8] sm:$0xff]  ;;  %v6135_v28 = vsel %vm11800_vm3, %v11631_v48, %v6131_v52  ;;  %v6151_v54 = vand.u32 2147483647, %v11625_v42  ;;  %vm11892_vm12 = vmor %vm6374_vm11, %vm6375_vm10 }
 0xb6f   : > { %7524 = vmatmul.msk.f32.gmra.mxu3 %vm1525_vm1, %v8258_v60  ;;  %v6140_v34 = vsel %vm11772_vm0, %v6139_v8, %v6135_v28  ;;  %v6150_v24 = vsel %vm11868_vm9, %v11725_v13, %v6146_v61  ;;  %vm6404_vm11 = vweird.f32 %v11788_v14 }
 0xb70   : > { %v6064_v3 = vadd.f32 %v6055_v7, %v9491_v15  ;;  %v11820_v15 = vor.u32 1.1754944e-38, %v6153_v4  ;;  %vm11844_vm7 = vcmp.eq.f32.partialorder %v6151_v54, 8.507059e+37  ;;  %v6168_v4 = vand.u32 2147483648, %v11743_v11 }
 0xb75   : > { %v6517_v39 = vpop.f32.mrf.mxu1 }
 0xb76   : > { %v6518_v50 = vadd.f32 %v11748_v38, %v6517_v39  ;;  %v11812_v39 = vpop.eup %8143 }
 0xb77   : > { %v11816_v17 = vpop.eup %8145  ;;  %v6385_v10 = vmul.f32 %v11812_v39, %v11737_v35  ;;  %7525 = vmatmul.msk.f32.gmra.mxu3 %vm1525_vm1, %v8259_v0  ;;  %vm6390_vm2 = vweird.f32 %v11812_v39 }
 0xb78   : > { %v6541_v6 = vmul.f32 %v6518_v50, %v6110_v33  ;;  %v6296_v33 = vpop.f32.mrf.mxu3  ;;  %v7497_v50 = vmul.f32 -1.442695, %v6305_v36  ;;  %vm6163_vm13 = vweird.f32 %v11816_v17  ;;  %vm11938_vm5 = vmor %vm6389_vm4, %vm6390_vm2 }
 0xb79   : > { %v6297_v1 = vadd.f32 %v6296_v33, %v6255_v45  ;;  %v6367_v33 = vsel %vm6364_vm8, %v6366_v43, %v6362_v16  ;;  %v6386_v63 = vsub.f32 1.0, %v6385_v10  ;;  %vm11947_vm6 = vmor %vm6162_vm14, %vm6163_vm13 }
 0xb7a   : > { %v6549_v2 = vadd.f32 %v6541_v6, %v11606_v30  ;;  %v11794_v30 = vadd.f32 1.0, %v8142_v56  ;;  %v8148_v6 = vpop.eup %8147  ;;  %v7474_v56 = vmul.f32 -1.442695, %v6064_v3  ;;  %v6566_v3 = vsub.f32 1.0, %v6367_v33 }
 0xb7b   : > { %v6306_v22 = vadd.f32 %v6297_v1, %v9503_v44  ;;  %v11855_v44 = vadd.f32 1.0, %v8148_v6  ;;  %v6378_v1 = vand.u32 2147483647, %v11638_v37  ;;  %v6387_v6 = vmul.f32 %v11812_v39, %v6386_v63 }
 0xb7c   : > { %8149 = vtanh.f32 %v6549_v2  ;;  %v6372_v2 = vmul.f32 %v11741_v20, %v6371_v25  ;;  %vm6177_vm3 = vweird.f32 %v11794_v30  ;;  %v6393_v63 = vand.u32 2147483647, %v11737_v35 }
 0xb7d   : > { %8151 = vpow2.f32 %v7473_v40  ;;  %v6520_v27 = vpop.f32.mrf.mxu1  ;;  %v7498_v31 = vmul.f32 -1.442695, %v6306_v22  ;;  %vm6379_vm15 = vcmp.eq.f32.partialorder %v6378_v1, 8.507059e+37  ;;  %vm6419_vm2 = vweird.f32 %v11855_v44 }
 0xb7e   : > { %v6521_v55 = vadd.f32 %v11748_v38, %v6520_v27  ;;  %8153 = vrcp.f32 %v11788_v14  ;;  %v6373_v45 = vadd.f32 %v11741_v20, %v6372_v2  ;;  %vm6394_vm8 = vcmp.eq.f32.partialorder %v6393_v63, 8.507059e+37 }
 0xb7f   : > { %8155 = vrcp.f32 %v11794_v30 }
 0xb80   : > { %v6542_v21 = vmul.f32 %v6521_v55, %v6125_v26  ;;  %8157 = vpow2.f32 %v7497_v50  ;;  %v6166_v26 = vand.u32 2147483647, %v11743_v11  ;;  %v6380_v55 = vand.u32 2147483648, %v11638_v37 }
 0xb81   : > { %v6582_v50 = vmul.f32 %v6367_v33, %v11269_v58  ;;  %v6377_v48 = vsel %vm11892_vm12, %v11741_v20, %v6373_v45 }
 0xb82   : > { %v8150_v40 = vpop.eup %8149  ;;  %v6550_v7 = vadd.f32 %v6542_v21, %v11612_v29  ;;  %v6158_v29 = vmul.f32 %v11816_v17, %v11743_v11  ;;  %v6381_v43 = vor.u32 1.1754944e-38, %v6380_v55  ;;  %vm11912_vm0 = vcmp.eq.f32.partialorder %v6166_v26, 8.507059e+37 }
 0xb83   : > { %v8152_v52 = vpop.eup %8151  ;;  %v6573_v8 = vmul.f32 %v8150_v40, %v6565_v19  ;;  %v8260_v40 = vld [vmem:[%s8506_s5 + $0x18] sm:$0xff] }
 0xb84   : > { %8159 = vtanh.f32 %v6550_v7  ;;  %v11859_v60 = vpop.eup %8153  ;;  %v11861_v59 = vadd.f32 1.0, %v8152_v52  ;;  %v6159_v42 = vsub.f32 1.0, %v6158_v29  ;;  %7526 = vmatmul.msk.f32.gmra.mxu3 %vm1525_vm1, %v8260_v40  ;;  %v6382_v52 = vsel %vm6379_vm15, %v6381_v43, %v6377_v48  ;;  %v6491_v40 = vpop.f32.mrf.mxu0 }
 0xb85   : > { %v6589_v32 = vadd.f32 %v11766_v47, %v6573_v8  ;;  %v6523_v19 = vpop.f32.mrf.mxu1  ;;  %8161 = vpow2.f32 %v7474_v56  ;;  %v11872_v47 = vpop.eup %8155  ;;  %v6400_v13 = vmul.f32 %v11859_v60, %v11788_v14  ;;  %v6388_v29 = vadd.f32 %v11812_v39, %v6387_v6 }
 0xb86   : > { %v6524_v27 = vadd.f32 %v11748_v38, %v6523_v19  ;;  %v8158_v28 = vpop.eup %8157  ;;  %8163 = vrcp.f32 %v11855_v44  ;;  %v6173_v58 = vmul.f32 %v11872_v47, %v11794_v30  ;;  %v6160_v16 = vmul.f32 %v11816_v17, %v6159_v42 }
 0xb87   : > { %7515 = vmatmul.msk.f32.vlgmr.msra.gmra.mxu2 %vm1525_vm1, %v6589_v32  ;;  %8165 = vrcp.f32 %v11861_v59  ;;  %v11908_v10 = vadd.f32 1.0, %v8158_v28  ;;  %v6401_v61 = vsub.f32 1.0, %v6400_v13  ;;  %v6395_v19 = vand.u32 2147483648, %v11737_v35  ;;  %v8261_v28 = vld [vmem:[%s8506_s5 + $0x20] sm:$0xff] }
 0xb88   : > { %v6543_v25 = vmul.f32 %v6524_v27, %v6140_v34  ;;  %8167 = vpow2.f32 %v7498_v31  ;;  %v6155_v34 = vsel %vm11844_vm7, %v11820_v15, %v6150_v24  ;;  %v6169_v15 = vor.u32 1.1754944e-38, %v6168_v4 }
 0xb89   : > { %v6174_v22 = vsub.f32 1.0, %v6173_v58  ;;  %v6161_v32 = vadd.f32 %v11816_v17, %v6160_v16  ;;  %v6567_v4 = vsub.f32 1.0, %v6382_v52  ;;  %v6583_v24 = vmul.f32 %v6382_v52, %v11321_v41 }
 0xb8a   : > { %v8160_v5 = vpop.eup %8159  ;;  %v6551_v54 = vadd.f32 %v6543_v25, %v11621_v62  ;;  %v6392_v41 = vsel %vm11938_vm5, %v11812_v39, %v6388_v29  ;;  %v6396_v55 = vor.u32 1.1754944e-38, %v6395_v19  ;;  %vm6178_vm7 = vweird.f32 %v11872_v47 }
 0xb8b   : > { %v6574_v37 = vmul.f32 %v8160_v5, %v6566_v3  ;;  %v8162_v62 = vpop.eup %8161  ;;  %v6175_v45 = vmul.f32 %v11872_v47, %v6174_v22  ;;  %v6402_v3 = vmul.f32 %v11859_v60, %v6401_v61  ;;  %v6165_v42 = vsel %vm11947_vm6, %v11816_v17, %v6161_v32  ;;  %vm11984_vm10 = vmor %vm6177_vm3, %vm6178_vm7 }
 0xb8c   : > { %8169 = vtanh.f32 %v6551_v54  ;;  %v11916_v8 = vpop.eup %8163  ;;  %v11918_v36 = vadd.f32 1.0, %v8162_v62  ;;  %7527 = vmatmul.msk.f32.gmra.mxu3 %vm1525_vm1, %v8261_v28  ;;  %v6183_v17 = vand.u32 2147483648, %v11794_v30  ;;  %v6397_v54 = vsel %vm6394_vm8, %v6396_v55, %v6392_v41 }
 0xb8d   : > { %v6526_v56 = vpop.f32.mrf.mxu1  ;;  %v6590_v7 = vadd.f32 %v6582_v50, %v6574_v37  ;;  %v11923_v0 = vpop.eup %8165  ;;  %8171 = vrcp.f32 %v11908_v10  ;;  %v6415_v53 = vmul.f32 %v11916_v8, %v11855_v44  ;;  %v6176_v13 = vadd.f32 %v11872_v47, %v6175_v45 }
 0xb8e   : > { %v6527_v20 = vadd.f32 %v11748_v38, %v6526_v56  ;;  %v8168_v33 = vpop.eup %8167  ;;  %8173 = vrcp.f32 %v11918_v36  ;;  %v6188_v11 = vmul.f32 %v11923_v0, %v11861_v59  ;;  %v6170_v37 = vsel %vm11912_vm0, %v6169_v15, %v6165_v42 }
 0xb8f   : > { %7516 = vmatmul.msk.f32.gmra.mxu2 %vm1525_vm1, %v6590_v7  ;;  %v11962_v50 = vadd.f32 1.0, %v8168_v33  ;;  %v6416_v58 = vsub.f32 1.0, %v6415_v53  ;;  %v6403_v48 = vadd.f32 %v11859_v60, %v6402_v3  ;;  %vm6405_vm9 = vweird.f32 %v11859_v60  ;;  %v8262_v33 = vld [vmem:[%s8506_s5 + $0x28] sm:$0xff] }
 0xb90   : > { %v6544_v26 = vmul.f32 %v6527_v20, %v6155_v34  ;;  %v6181_v62 = vand.u32 2147483647, %v11794_v30  ;;  %v6189_v34 = vsub.f32 1.0, %v6188_v11  ;;  %v6410_v16 = vand.u32 2147483648, %v11788_v14  ;;  %vm11998_vm14 = vmor %vm6404_vm11, %vm6405_vm9 }
 0xb91   : > { %v6568_v7 = vsub.f32 1.0, %v6397_v54  ;;  %v6408_v20 = vand.u32 2147483647, %v11788_v14  ;;  %v6180_v30 = vsel %vm11984_vm10, %v11872_v47, %v6176_v13  ;;  %v6184_v22 = vor.u32 1.1754944e-38, %v6183_v17  ;;  %v6494_v13 = vpop.f32.mrf.mxu0 }
 0xb92   : > { %v8170_v27 = vpop.eup %8169  ;;  %v6552_v31 = vadd.f32 %v6544_v26, %v11672_v9  ;;  %v6584_v14 = vmul.f32 %v6397_v54, %v11373_v12  ;;  %v6407_v26 = vsel %vm11998_vm14, %v11859_v60, %v6403_v48  ;;  %v6190_v32 = vmul.f32 %v11923_v0, %v6189_v34 }
 0xb93   : > { %v6575_v9 = vmul.f32 %v8170_v27, %v6567_v4  ;;  %v11968_v21 = vpop.eup %8171  ;;  %v6411_v47 = vor.u32 1.1754944e-38, %v6410_v16  ;;  %vm6182_vm12 = vcmp.eq.f32.partialorder %v6181_v62, 8.507059e+37  ;;  %vm6409_vm13 = vcmp.eq.f32.partialorder %v6408_v20, 8.507059e+37  ;;  %v8263_v62 = vld [vmem:[%s8506_s5 + $0x30] sm:$0xff] }
 0xb94   : > { %8175 = vtanh.f32 %v6552_v31  ;;  %v11977_v43 = vpop.eup %8173  ;;  %v6430_v15 = vmul.f32 %v11968_v21, %v11908_v10  ;;  %7528 = vmatmul.msk.f32.gmra.mxu3 %vm1525_vm1, %v8262_v33  ;;  %v6492_v12 = vadd.f32 %v11603_v57, %v6491_v40  ;;  %v6185_v27 = vsel %vm6182_vm12, %v6184_v22, %v6180_v30 }
 0xb95   : > { %v6529_v1 = vpop.f32.mrf.mxu1  ;;  %v6591_v5 = vadd.f32 %v6583_v24, %v6575_v9  ;;  %8177 = vrcp.f32 %v11962_v50  ;;  %v6203_v19 = vmul.f32 %v11977_v43, %v11918_v36  ;;  %v6412_v53 = vsel %vm6409_vm13, %v6411_v47, %v6407_v26 }
 0xb96   : > { %v6530_v39 = vadd.f32 %v11748_v38, %v6529_v1  ;;  %v6431_v24 = vsub.f32 1.0, %v6430_v15  ;;  %vm6193_vm15 = vweird.f32 %v11923_v0  ;;  %vm6420_vm0 = vweird.f32 %v11916_v8 }
 0xb97   : > { %7517 = vmatmul.msk.f32.gmra.mxu2 %vm1525_vm1, %v6591_v5  ;;  %v6191_v35 = vadd.f32 %v11923_v0, %v6190_v32  ;;  %v6204_v9 = vsub.f32 1.0, %v6203_v19  ;;  %v6425_v41 = vand.u32 2147483648, %v11855_v44  ;;  %v6198_v3 = vand.u32 2147483648, %v11861_v59  ;;  %vm12029_vm4 = vmor %vm6419_vm2, %vm6420_vm0 }
 0xb98   : > { %v6545_v6 = vmul.f32 %v6530_v39, %v6170_v37  ;;  %v6569_v42 = vsub.f32 1.0, %v6412_v53  ;;  %v6423_v55 = vand.u32 2147483647, %v11855_v44  ;;  %vm6192_vm3 = vweird.f32 %v11861_v59 }
 0xb99   : > { %v6196_v5 = vand.u32 2147483647, %v11861_v59  ;;  %vm12035_vm5 = vmor %vm6192_vm3, %vm6193_vm15  ;;  %v6585_v54 = vmul.f32 %v6412_v53, %v11413_v51  ;;  %v6432_v59 = vmul.f32 %v11968_v21, %v6431_v24  ;;  %v6205_v48 = vmul.f32 %v11977_v43, %v6204_v9 }
 0xb9a   : > { %v8176_v2 = vpop.eup %8175  ;;  %v6553_v52 = vadd.f32 %v6545_v6, %v11720_v49  ;;  %v6417_v49 = vmul.f32 %v11916_v8, %v6416_v58  ;;  %v6195_v37 = vsel %vm12035_vm5, %v11923_v0, %v6191_v35  ;;  %v6426_v6 = vor.u32 1.1754944e-38, %v6425_v41 }
 0xb9b   : > { %v6576_v29 = vmul.f32 %v8176_v2, %v6568_v7  ;;  %v12014_v31 = vpop.eup %8177  ;;  %v6199_v34 = vor.u32 1.1754944e-38, %v6198_v3  ;;  %vm6424_vm6 = vcmp.eq.f32.partialorder %v6423_v55, 8.507059e+37  ;;  %v6495_v40 = vadd.f32 %v11603_v57, %v6494_v13 }
 0xb9c   : > { %8179 = vtanh.f32 %v6553_v52  ;;  %v6418_v45 = vadd.f32 %v11916_v8, %v6417_v49  ;;  %v6445_v28 = vmul.f32 %v12014_v31, %v11962_v50  ;;  %7529 = vmatmul.msk.f32.gmra.mxu3 %vm1525_vm1, %v8263_v62  ;;  %vm6197_vm7 = vcmp.eq.f32.partialorder %v6196_v5, 8.507059e+37 }
 0xb9d   : > { %v6532_v4 = vpop.f32.mrf.mxu1  ;;  %v6592_v63 = vadd.f32 %v6584_v14, %v6576_v29  ;;  %v6200_v20 = vsel %vm6197_vm7, %v6199_v34, %v6195_v37  ;;  %v6433_v0 = vadd.f32 %v11968_v21, %v6432_v59  ;;  %vm6435_vm8 = vweird.f32 %v11968_v21  ;;  %v7745_v59 = vld [vmem:[%s12175_s19] ss:$0 sm:$0xff] }
 0xb9e   : > { %v6533_v60 = vadd.f32 %v11748_v38, %v6532_v4  ;;  %v6422_v58 = vsel %vm12029_vm4, %v11916_v8, %v6418_v45  ;;  %v6446_v7 = vsub.f32 1.0, %v6445_v28  ;;  %v6206_v15 = vadd.f32 %v11977_v43, %v6205_v48 }
 0xb9f   : > { %7518 = vmatmul.msk.f32.gmra.mxu2 %vm1525_vm1, %v6592_v63  ;;  %v6427_v56 = vsel %vm6424_vm6, %v6426_v6, %v6422_v58  ;;  %vm6208_vm9 = vweird.f32 %v11977_v43  ;;  %v6440_v52 = vand.u32 2147483648, %v11908_v10  ;;  %v6213_v30 = vand.u32 2147483648, %v11918_v36  ;;  %v8264_v63 = vld [vmem:[%s8506_s5 + $0x38] sm:$0xff]  ;;  %s752_s5 = scalar_lea.vmem [#allocation3], %s6959_s23  ;;  %s6829_s23 = scalar_lea.sflag [#allocation4], %s750_s25 }
 0xba0   : > { %v6546_v25 = vmul.f32 %v6533_v60, %v6185_v27  ;;  %v6570_v22 = vsub.f32 1.0, %v6427_v56  ;;  %vm6434_vm10 = vweird.f32 %v11908_v10  ;;  %v6438_v61 = vand.u32 2147483647, %v11908_v10  ;;  %s6842_s2 = sshll.u32 %s752_s5, 4  ;;  %s6843_s2 = int_to_ptr.vmem [resolvable:$true] %s6842_s2 }
 0xba1   : > { %vm6207_vm11 = vweird.f32 %v11918_v36  ;;  %v6211_v26 = vand.u32 2147483647, %v11918_v36  ;;  %vm12063_vm14 = vmor %vm6434_vm10, %vm6435_vm8  ;;  %v6586_v19 = vmul.f32 %v6427_v56, %v11441_v23  ;;  %v6447_v33 = vmul.f32 %v12014_v31, %v6446_v7 }
 0xba2   : > { %v8180_v11 = vpop.eup %8179  ;;  %v6554_v1 = vadd.f32 %v6546_v25, %v6492_v12  ;;  %vm12067_vm12 = vmor %vm6207_vm11, %vm6208_vm9  ;;  %v6437_v10 = vsel %vm12063_vm14, %v11968_v21, %v6433_v0  ;;  %v6441_v4 = vor.u32 1.1754944e-38, %v6440_v52  ;;  %v6497_v12 = vpop.f32.mrf.mxu0  ;;  %v6214_v27 = vor.u32 1.1754944e-38, %v6213_v30 }
 0xba3   : > { %v6577_v44 = vmul.f32 %v8180_v11, %v6569_v42  ;;  %v6210_v36 = vsel %vm12067_vm12, %v11977_v43, %v6206_v15  ;;  %vm6439_vm13 = vcmp.eq.f32.partialorder %v6438_v61, 8.507059e+37  ;;  %vm6212_vm15 = vcmp.eq.f32.partialorder %v6211_v26, 8.507059e+37 }
 0xba4   : > { %8181 = vtanh.f32 %v6554_v1  ;;  %7530 = vmatmul.msk.f32.gmra.mxu3 %vm1525_vm1, %v8264_v63  ;;  %v6442_v21 = vsel %vm6439_vm13, %v6441_v4, %v6437_v10  ;;  %v6215_v24 = vsel %vm6212_vm15, %v6214_v27, %v6210_v36  ;;  %v6448_v45 = vadd.f32 %v12014_v31, %v6447_v33 }
 0xba5   : > { %v6535_v16 = vpop.f32.mrf.mxu1  ;;  %v6593_v51 = vadd.f32 %v6585_v54, %v6577_v44  ;;  %vm6450_vm0 = vweird.f32 %v12014_v31  ;;  %v6498_v43 = vadd.f32 %v11603_v57, %v6497_v12  ;;  %v6455_v35 = vand.u32 2147483648, %v11962_v50  ;;  %v6748_v44 = vld [vmem:[%s12176_s20 + $0x8] sm:$0xff] }
 0xba6   : > { %v6536_v8 = vadd.f32 %v11748_v38, %v6535_v16  ;;  %v6571_v9 = vsub.f32 1.0, %v6442_v21  ;;  %vm6449_vm2 = vweird.f32 %v11962_v50  ;;  %v6453_v41 = vand.u32 2147483647, %v11962_v50 }
 0xba7   : > { %7519 = vmatmul.msk.f32.gmra.mxu2 %vm1525_vm1, %v6593_v51  ;;  %vm6451_vm3 = vmor %vm6449_vm2, %vm6450_vm0  ;;  %v6587_v55 = vmul.f32 %v6442_v21, %v11456_v18  ;;  %v6456_v28 = vor.u32 1.1754944e-38, %v6455_v35  ;;  %v6750_v18 = vld [vmem:[%s12176_s20 + $0x18] sm:$0xff] }
 0xba8   : > { %v6547_v2 = vmul.f32 %v6536_v8, %v6200_v20  ;;  %v6452_v11 = vsel %vm6451_vm3, %v12014_v31, %v6448_v45  ;;  %vm6454_vm4 = vcmp.eq.f32.partialorder %v6453_v41, 8.507059e+37  ;;  %v6749_v31 = vld [vmem:[%s12176_s20 + $0x10] sm:$0xff]  ;;  %6791 = vmatpush.msrb.mxu0 %v6750_v18 }
 0xba9   : > { %v6457_v57 = vsel %vm6454_vm4, %v6456_v28, %v6452_v11 }
 0xbaa   : > { %v8182_v29 = vpop.eup %8181  ;;  %v6555_v14 = vadd.f32 %v6547_v2, %v6495_v40  ;;  %v6572_v5 = vsub.f32 1.0, %v6457_v57  ;;  %v6588_v50 = vmul.f32 %v6457_v57, %v11463_v46  ;;  %6792 = vmatpush.msrb.mxu0 %v6749_v31  ;;  %v6747_v46 = vld [vmem:[%s12176_s20] sm:$0xff] }
 0xbab   : > { %v6578_v47 = vmul.f32 %v8182_v29, %v6570_v22 }
 0xbac   : > { %8183 = vtanh.f32 %v6555_v14  ;;  %6793 = vmatpush.msrb.mxu0 %v6748_v44 }
 0xbad   : > { %v6538_v60 = vpop.f32.mrf.mxu1  ;;  %v6594_v53 = vadd.f32 %v6586_v19, %v6578_v47 }
 0xbae   : > { %v6539_v23 = vadd.f32 %v11748_v38, %v6538_v60  ;;  %6794 = vmatpush.msrb.mxu0 %v6747_v46 }
 0xbaf   : > { %7520 = vmatmul.msk.f32.gmra.mxu2 %vm1525_vm1, %v6594_v53 }
 0xbb0   : > { %v6548_v25 = vmul.f32 %v6539_v23, %v6215_v24 }
 0xbb2   : > { %v8184_v3 = vpop.eup %8183  ;;  %v6556_v38 = vadd.f32 %v6548_v25, %v6498_v43 }
 0xbb3   : > { %v6579_v42 = vmul.f32 %v8184_v3, %v6571_v9 }
 0xbb4   : > { %8185 = vtanh.f32 %v6556_v38 }
 0xbb5   : > { %v6595_v1 = vadd.f32 %v6587_v55, %v6579_v42  ;;  %v7746_v42 = vld [vmem:[%s12177_s21] ss:$0 sm:$0xff] }
 0xbb7   : > { %7521 = vmatmul.msk.f32.gmra.mxu2 %vm1525_vm1, %v6595_v1 }
 0xbba   : > { %v8186_v39 = vpop.eup %8185 }
 0xbbb   : > { %v6580_v13 = vmul.f32 %v8186_v39, %v6572_v5 }
 0xbbd   : > { %v6596_v17 = vadd.f32 %v6588_v50, %v6580_v13 }
 0xbbf   : > { %7522 = vmatmul.msk.f32.gmra.mxu2 %vm1525_vm1, %v6596_v17 }
 0xbe3   : > { %v6687_v54 = vpop.f32.mrf.mxu3 }
 0xbf2   : > { %v6690_v58 = vpop.f32.mrf.mxu3 }
 0xbfa   : > { %v6693_v62 = vpop.f32.mrf.mxu3 }
 0xc07   : > { %v6696_v7 = vpop.f32.mrf.mxu3 }
 0xc0a   : > { %v6646_v37 = vpop.f32.mrf.mxu2 }
 0xc0b   : > { %v6688_v48 = vadd.f32 %v6687_v54, %v6646_v37 }
 0xc0d   : > { %v6715_v6 = vadd.f32 %v7745_v59, %v6688_v48 }
 0xc0f   : > { %vm6723_vm5 = vcmp.ge.f32.partialorder %v6715_v6, 0.0  ;;  %v6731_v34 = vmul.f32 0.01, %v6715_v6  ;;  %v6699_v61 = vpop.f32.mrf.mxu3 }
 0xc11   : > { %v6739_v16 = vsel %vm6723_vm5, %v6715_v6, %v6731_v34 }
 0xc12   : > { %v6649_v51 = vpop.f32.mrf.mxu2  ;;  %7531 = vmatmul.msk.f32.vlgmr.msrb.gmra.mxu0 %vm1525_vm1, %v6739_v16 }
 0xc13   : > { %v6691_v40 = vadd.f32 %v6690_v58, %v6649_v51 }
 0xc15   : > { %v6716_v8 = vadd.f32 %v7745_v59, %v6691_v40 }
 0xc17   : > { %v6732_v56 = vmul.f32 0.01, %v6716_v8  ;;  %vm6724_vm6 = vcmp.ge.f32.partialorder %v6716_v8, 0.0  ;;  %v6702_v19 = vpop.f32.mrf.mxu3 }
 0xc19   : > { %v6740_v20 = vsel %vm6724_vm6, %v6716_v8, %v6732_v56 }
 0xc1a   : > { %v6652_v0 = vpop.f32.mrf.mxu2  ;;  %7532 = vmatmul.msk.f32.gmra.mxu0 %vm1525_vm1, %v6740_v20 }
 0xc1b   : > { %v6694_v2 = vadd.f32 %v6693_v62, %v6652_v0 }
 0xc1d   : > { %v6717_v15 = vadd.f32 %v7745_v59, %v6694_v2 }
 0xc1f   : > { %v6733_v52 = vmul.f32 0.01, %v6717_v15  ;;  %vm6725_vm7 = vcmp.ge.f32.partialorder %v6717_v15, 0.0  ;;  %v6705_v27 = vpop.f32.mrf.mxu3 }
 0xc21   : > { %v6741_v30 = vsel %vm6725_vm7, %v6717_v15, %v6733_v52 }
 0xc22   : > { %v6655_v22 = vpop.f32.mrf.mxu2  ;;  %7533 = vmatmul.msk.f32.gmra.mxu0 %vm1525_vm1, %v6741_v30 }
 0xc23   : > { %v6697_v29 = vadd.f32 %v6696_v7, %v6655_v22 }
 0xc25   : > { %v6718_v14 = vadd.f32 %v7745_v59, %v6697_v29 }
 0xc27   : > { %v6734_v26 = vmul.f32 0.01, %v6718_v14  ;;  %vm6726_vm8 = vcmp.ge.f32.partialorder %v6718_v14, 0.0  ;;  %v6708_v43 = vpop.f32.mrf.mxu3 }
 0xc29   : > { %v6742_v49 = vsel %vm6726_vm8, %v6718_v14, %v6734_v26 }
 0xc2a   : > { %v6658_v32 = vpop.f32.mrf.mxu2  ;;  %7534 = vmatmul.msk.f32.gmra.mxu0 %vm1525_vm1, %v6742_v49 }
 0xc2b   : > { %v6700_v47 = vadd.f32 %v6699_v61, %v6658_v32 }
 0xc2d   : > { %v6719_v10 = vadd.f32 %v7745_v59, %v6700_v47 }
 0xc2f   : > { %v6735_v33 = vmul.f32 0.01, %v6719_v10  ;;  %vm6727_vm9 = vcmp.ge.f32.partialorder %v6719_v10, 0.0 }
 0xc31   : > { %v6743_v36 = vsel %vm6727_vm9, %v6719_v10, %v6735_v33 }
 0xc32   : > { %v6661_v4 = vpop.f32.mrf.mxu2  ;;  %7535 = vmatmul.msk.f32.gmra.mxu0 %vm1525_vm1, %v6743_v36 }
 0xc33   : > { %v6703_v63 = vadd.f32 %v6702_v19, %v6661_v4 }
 0xc35   : > { %v6720_v12 = vadd.f32 %v7745_v59, %v6703_v63 }
 0xc37   : > { %v6736_v60 = vmul.f32 0.01, %v6720_v12  ;;  %vm6728_vm10 = vcmp.ge.f32.partialorder %v6720_v12, 0.0 }
 0xc39   : > { %v6744_v53 = vsel %vm6728_vm10, %v6720_v12, %v6736_v60 }
 0xc3a   : > { %v6664_v23 = vpop.f32.mrf.mxu2  ;;  %7536 = vmatmul.msk.f32.gmra.mxu0 %vm1525_vm1, %v6744_v53 }
 0xc3b   : > { %v6706_v21 = vadd.f32 %v6705_v27, %v6664_v23 }
 0xc3d   : > { %v6721_v24 = vadd.f32 %v7745_v59, %v6706_v21 }
 0xc3f   : > { %v6737_v45 = vmul.f32 0.01, %v6721_v24  ;;  %vm6729_vm11 = vcmp.ge.f32.partialorder %v6721_v24, 0.0 }
 0xc41   : > { %v6745_v25 = vsel %vm6729_vm11, %v6721_v24, %v6737_v45 }
 0xc42   : > { %v6667_v35 = vpop.f32.mrf.mxu2  ;;  %7537 = vmatmul.msk.f32.gmra.mxu0 %vm1525_vm1, %v6745_v25 }
 0xc43   : > { %v6709_v9 = vadd.f32 %v6708_v43, %v6667_v35 }
 0xc45   : > { %v6722_v41 = vadd.f32 %v7745_v59, %v6709_v9 }
 0xc47   : > { %v6738_v3 = vmul.f32 0.01, %v6722_v41  ;;  %vm6730_vm14 = vcmp.ge.f32.partialorder %v6722_v41, 0.0 }
 0xc49   : > { %v6746_v38 = vsel %vm6730_vm14, %v6722_v41, %v6738_v3 }
 0xc4a   : > { %7538 = vmatmul.msk.f32.gmra.mxu0 %vm1525_vm1, %v6746_v38 }
 0xc8f   : > { %v6796_v55 = vpop.f32.mrf.mxu0 }
 0xc90   : > { %v6797_v11 = vadd.f32 %v7746_v42, %v6796_v55 }
 0xc92   : > { %6820 = vst [vmem:[%s752_s5] sm:$0xff] %v6797_v11 }
 0xc97   : > { %v6799_v28 = vpop.f32.mrf.mxu0 }
 0xc98   : > { %v6800_v1 = vadd.f32 %v7746_v42, %v6799_v28 }
 0xc9a   : > { %6821 = vst [vmem:[%s752_s5 + $0x8] sm:$0xff] %v6800_v1 }
 0xc9f   : > { %v6802_v57 = vpop.f32.mrf.mxu0 }
 0xca0   : > { %v6803_v5 = vadd.f32 %v7746_v42, %v6802_v57 }
 0xca2   : > { %6822 = vst [vmem:[%s752_s5 + $0x10] sm:$0xff] %v6803_v5 }
 0xca7   : > { %v6805_v39 = vpop.f32.mrf.mxu0 }
 0xca8   : > { %v6806_v13 = vadd.f32 %v7746_v42, %v6805_v39 }
 0xcaa   : > { %6823 = vst [vmem:[%s752_s5 + $0x18] sm:$0xff] %v6806_v13 }
 0xcaf   : > { %v6808_v50 = vpop.f32.mrf.mxu0 }
 0xcb0   : > { %v6809_v17 = vadd.f32 %v7746_v42, %v6808_v50 }
 0xcb2   : > { %6824 = vst [vmem:[%s752_s5 + $0x20] sm:$0xff] %v6809_v17 }
 0xcb7   : > { %v6811_v18 = vpop.f32.mrf.mxu0 }
 0xcb8   : > { %v6812_v31 = vadd.f32 %v7746_v42, %v6811_v18 }
 0xcba   : > { %6825 = vst [vmem:[%s752_s5 + $0x28] sm:$0xff] %v6812_v31 }
 0xcbf   : > { %v6814_v44 = vpop.f32.mrf.mxu0 }
 0xcc0   : > { %v6815_v46 = vadd.f32 %v7746_v42, %v6814_v44 }
 0xcc2   : > { %6826 = vst [vmem:[%s752_s5 + $0x30] sm:$0xff] %v6815_v46 }
 0xcc7   : > { %v6817_v54 = vpop.f32.mrf.mxu0 }
 0xcc8   : > { %v6818_v58 = vadd.f32 %v7746_v42, %v6817_v54 }
 0xcca   : > { %6827 = vst [vmem:[%s752_s5 + $0x38] sm:$0xff] %v6818_v58 }
 0xccb   : > { %8292 = shalt.err (!%p8289_p3)
}
 0xccc   : > { %s8331_s25 = smov 128   ;;  %s8332_s5 = smov 8  }
 0xccd   : > { %7692 = dma.vmem_to_hbm [thread:$0]  (%p8489_p5), %s6843_s2, 1024, %s6845_s27, %s6829_s23, %s8331_s25, %s8331_s25, %s8332_s5  }
 0xcce PF: > { %s12424_s26 = sld [smem:[#allocation8_spill]] }
 0xccf   : > { %s12425_s7 = sld [smem:[#allocation6_spill]] }
 0xcd4   : > { %p7698_p4 = scmp.ge.s32.totalorder %s12424_s26, 2 }
 0xcd5   : > { %s6859_s1 = sand.u32 1, %s12425_s7  }
 0xcd6   : > { %p7695_p7 = pnand %p7698_p4, %p8493_p6  ;;  %s6860_s4 = scalar_lea.sflag [#allocation4], %s6859_s1 }
 0xcd8   : > { %p7696_p8 = pneg %p7695_p7 }
 0xcda   : > { %8310 = dma.done.wait (%p7696_p8), %s6860_s4, 1024  }
 0xcdb   : > { %8312 = vsyncadd (%p7696_p8), %s6860_s4, 4294966272  ;;  %s12427_s0 = sld [smem:[#allocation10_spill]]  ;;  %s12430_s29 = smov %s8319_s30 }
 0xcdc   : > { %s12428_s24 = sld [smem:[#allocation7_spill]] }
 0xcdd   : > { %s12429_s4 = sld [smem:[#allocation11_spill]] }
 0xce1   : > { %p33_p9 = scmp.ge.s32.totalorder %s12427_s0, 4  }
 0xce2   : > { %s12431_s30 = smov %s12428_s24 }
 0xce3   :  { %35 = sbr.rel (!%p33_p9) target bundleno = 15 (0xf), region = 169 }
 0xce8   :  { %6866 = vsyncpa [#allocation4], 1 }
 0xce9   :  { %6868 = vsyncpa [#allocation4 + $0x1], 1 }

</bundles_post_ra>
